<compile_context>
chip_gen: v5e
topology: v5e:2x2
jax: 0.10.0
libtpu: 0.0.40
codegen_flags: <defaults>
</compile_context>

<pallas_src>
import functools

import jax
import jax.numpy as jnp
from jax.experimental import pallas as pl
from jax.experimental.pallas import tpu as pltpu

_LANE = 128

# Flat-spatial row counts used inside the fused conv kernel (11-wide grid).
_GW = 11        # grid width after 8x8 space-to-depth of the zero-padded 88x88 frame
_XROWS = 144    # padded input rows handed to the kernel (needs >= 132)
_R1 = 120       # conv1 rows computed (needs >= 116)
_R2 = 104       # conv2 rows computed (needs >= 104)
_R3 = 80        # conv3 rows computed (needs >= 73)
_OUT_ROWS = 50  # 49 valid conv3 positions + 1 zero row  -> FC K = 50*64 = 3200


def _round_up(x, m):
    return (x + m - 1) // m * m


# ---------------------------------------------------------------------------
# Kernel 1: fused conv stack, one sample per grid step, everything in VMEM.
# ---------------------------------------------------------------------------
def _conv_stack_kernel(x_ref, w1_ref, b1_ref, w2_ref, b2_ref, w3_ref, b3_ref,
                       o_ref, h1_ref, h2_ref):
    """conv1 -> conv2 -> conv3 (+bias+ReLU) for one sample.

    Spatial is kept flattened on an 11-wide grid; every (stride-1) conv is a
    sum over its kernel offsets of   shifted_rows @ W_offset.  Rows whose
    window wraps the grid are garbage but are never read downstream.
    """
    offs2 = (0, 1, _GW, _GW + 1)          # 2x2 stride-1 offsets

    # conv1: 8x8/stride-4 folded to 2x2/stride-1 on the s2d(8) input.
    # Output channels = (parity di, parity dj, c1) = 4*32 = 128 (lane dense).
    acc = jnp.dot(x_ref[0:_R1, :], w1_ref[0], preferred_element_type=jnp.float32)
    for o in range(1, 4):
        s = offs2[o]
        acc += jnp.dot(x_ref[s:s + _R1, :], w1_ref[o],
                       preferred_element_type=jnp.float32)
    h1_ref[...] = jnp.maximum(acc + b1_ref[...], 0.0).astype(h1_ref.dtype)

    # conv2: 4x4/stride-2 folded to 2x2/stride-1 on the parity-grouped h1.
    acc = jnp.dot(h1_ref[0:_R2, :], w2_ref[0], preferred_element_type=jnp.float32)
    for o in range(1, 4):
        s = offs2[o]
        acc += jnp.dot(h1_ref[s:s + _R2, :], w2_ref[o],
                       preferred_element_type=jnp.float32)
    h2_ref[...] = jnp.maximum(acc + b2_ref[...], 0.0).astype(h2_ref.dtype)

    # conv3: 3x3/stride-1.
    acc = jnp.dot(h2_ref[0:_R3, :], w3_ref[0], preferred_element_type=jnp.float32)
    for o in range(1, 9):
        s = _GW * (o // 3) + (o % 3)
        acc += jnp.dot(h2_ref[s:s + _R3, :], w3_ref[o],
                       preferred_element_type=jnp.float32)
    h3 = jnp.maximum(acc + b3_ref[...], 0.0)

    # Extract the 7x7 valid rows (flat index 11*p + q, p,q <= 6) into a compact
    # (49, 64) layout; row 49 stays zero so the FC input K pads to 3200.
    o_ref[...] = jnp.zeros_like(o_ref)
    for p in range(7):
        o_ref[7 * p:7 * p + 7, :] = h3[_GW * p:_GW * p + 7, :].astype(o_ref.dtype)


def conv_stack(xs, p):
    """xs: (B, 144, 256) bf16 (space-to-depth(8) input).  Returns (B, 50, 64) bf16."""
    B = xs.shape[0]
    cost = pl.CostEstimate(
        flops=2 * B * (_R1 * 256 * 128 * 4 + _R2 * 128 * 64 * 4 + _R3 * 64 * 64 * 9),
        transcendentals=0,
        bytes_accessed=B * (_XROWS * 256 + _OUT_ROWS * 64) * 2
        + (4 * 256 * 128 + 4 * 128 * 64 + 9 * 64 * 64) * 2,
    )
    return pl.pallas_call(
        _conv_stack_kernel,
        out_shape=jax.ShapeDtypeStruct((B, _OUT_ROWS, 64), jnp.bfloat16),
        grid=(B,),
        in_specs=[
            pl.BlockSpec((None, _XROWS, 256), lambda b: (b, 0, 0)),
            pl.BlockSpec((4, 256, 128), lambda b: (0, 0, 0)),   # resident weights
            pl.BlockSpec((1, 128), lambda b: (0, 0)),
            pl.BlockSpec((4, 128, 64), lambda b: (0, 0, 0)),
            pl.BlockSpec((1, 64), lambda b: (0, 0)),
            pl.BlockSpec((9, 64, 64), lambda b: (0, 0, 0)),
            pl.BlockSpec((1, 64), lambda b: (0, 0)),
        ],
        out_specs=pl.BlockSpec((None, _OUT_ROWS, 64), lambda b: (b, 0, 0)),
        scratch_shapes=[
            pltpu.VMEM((_R1, 128), jnp.bfloat16),   # conv1 activations
            pltpu.VMEM((_R2, 64), jnp.bfloat16),    # conv2 activations
        ],
        compiler_params=pltpu.CompilerParams(dimension_semantics=("parallel",)),
        cost_estimate=cost,
    )(xs, p["c1_w"], p["c1_b"], p["c2_w"], p["c2_b"], p["c3_w"], p["c3_b"])


# ---------------------------------------------------------------------------
# Kernel 2: FC head  --  q = relu(x @ W1 + b1) @ W2 + b2, single K step.
# ---------------------------------------------------------------------------
def _fc_head_kernel(x_ref, w1_ref, b1_ref, w2_ref, b2_ref, o_ref):
    h = jnp.dot(x_ref[...], w1_ref[...], preferred_element_type=jnp.float32)
    h = jnp.maximum(h + b1_ref[...], 0.0)
    q = jnp.dot(h.astype(w2_ref.dtype), w2_ref[...],
                preferred_element_type=jnp.float32)
    o_ref[...] = (q + b2_ref[...]).astype(o_ref.dtype)


def fc_head(x, w1, b1, w2, b2, *, tm_cap=128):
    M, K = x.shape
    Kw, H = w1.shape
    Hw, N = w2.shape
    assert Kw == K and Hw == H and K % _LANE == 0 and N % _LANE == 0
    tm = min(tm_cap, _round_up(M, 8))
    Mp = _round_up(M, tm)
    if Mp != M:
        x = jnp.pad(x, ((0, Mp - M), (0, 0)))
    cost = pl.CostEstimate(
        flops=2 * Mp * (K * H + H * N),
        transcendentals=0,
        bytes_accessed=(Mp * K + K * H + H * N) * 2 + Mp * N * 4,
    )
    out = pl.pallas_call(
        _fc_head_kernel,
        out_shape=jax.ShapeDtypeStruct((Mp, N), jnp.float32),
        grid=(Mp // tm,),
        in_specs=[
            pl.BlockSpec((tm, K), lambda i: (i, 0)),
            pl.BlockSpec((K, H), lambda i: (0, 0)),   # resident W1 (single K step)
            pl.BlockSpec((1, H), lambda i: (0, 0)),
            pl.BlockSpec((H, N), lambda i: (0, 0)),   # resident W2
            pl.BlockSpec((1, N), lambda i: (0, 0)),
        ],
        out_specs=pl.BlockSpec((tm, N), lambda i: (i, 0)),
        compiler_params=pltpu.CompilerParams(dimension_semantics=("parallel",)),
        cost_estimate=cost,
    )(x, w1, b1, w2, b2)
    return out[:M]


# ---------------------------------------------------------------------------
# Input prep: NCHW frame -> flattened 8x8 space-to-depth (no data expansion).
# ---------------------------------------------------------------------------
def _prep_input(x):
    """(B, 4, 84, 84) f32 NCHW -> (B, 144, 256) bf16.

    Row r = a*11 + b indexes the 11x11 grid of 8x8 pixel blocks of the
    zero-padded 88x88 frame; channel = (ri*8 + rj)*4 + c.
    """
    B, C, H, W = x.shape
    x = jnp.transpose(x, (0, 2, 3, 1))                           # NHWC
    x = jnp.pad(x, ((0, 0), (0, 88 - H), (0, 88 - W), (0, 0)))
    x = x.reshape(B, 11, 8, 11, 8, C)
    x = jnp.transpose(x, (0, 1, 3, 2, 4, 5))                     # (B, a, b, ri, rj, c)
    x = x.reshape(B, 121, 64 * C)
    x = jnp.pad(x, ((0, 0), (0, _XROWS - 121), (0, 0)))
    return x.astype(jnp.bfloat16)


# ---------------------------------------------------------------------------
# Parameters: init in PyTorch layout, then prepare ONCE into kernel layout.
# ---------------------------------------------------------------------------
def init_params_torch_layout(key, num_actions, n_stacked_frames):
    depths = (32, 64, 64)
    n_flatten = 64 * 7 * 7
    final = 512
    keys = jax.random.split(key, 10)

    def w_init(k, shape, fan_in):
        return jax.random.normal(k, shape, jnp.float32) / jnp.sqrt(fan_in)

    return {
        "c1_w": w_init(keys[0], (depths[0], n_stacked_frames, 8, 8),
                       n_stacked_frames * 64),
        "c1_b": w_init(keys[1], (depths[0],), 64.0),
        "c2_w": w_init(keys[2], (depths[1], depths[0], 4, 4), depths[0] * 16),
        "c2_b": w_init(keys[3], (depths[1],), 64.0),
        "c3_w": w_init(keys[4], (depths[2], depths[1], 3, 3), depths[1] * 9),
        "c3_b": w_init(keys[5], (depths[2],), 64.0),
        "fc1_w": w_init(keys[6], (final, n_flatten), float(n_flatten)),
        "fc1_b": w_init(keys[7], (final,), float(n_flatten)),
        "fc2_w": w_init(keys[8], (num_actions, final), float(final)),
        "fc2_b": w_init(keys[9], (num_actions,), float(final)),
    }


def _prep_conv1(w, b):
    """Torch (32,4,8,8) -> (4, 256, 128) bf16 weight for the 2x2 stride-1 conv
    on the 8x8 space-to-depth input; output channel = (di, dj, c1)."""
    c1n, cin, kh, kw = w.shape                       # 32, 4, 8, 8
    base = jnp.transpose(w, (2, 3, 1, 0))            # (i, j, c, c1)
    groups = []
    for di in range(2):
        for dj in range(2):
            ext = jnp.zeros((16, 16, cin, c1n), w.dtype)
            ext = ext.at[4 * di:4 * di + 8, 4 * dj:4 * dj + 8].set(base)
            ext = ext.reshape(2, 8, 2, 8, cin, c1n)          # (A, ri, B, rj, c, c1)
            ext = jnp.transpose(ext, (0, 2, 1, 3, 4, 5))     # (A, B, ri, rj, c, c1)
            groups.append(ext.reshape(2, 2, kh * kw * cin, c1n))
    w1g = jnp.concatenate(groups, axis=-1)                   # (2, 2, 256, 128)
    w1g = w1g.reshape(4, kh * kw * cin, 4 * c1n).astype(jnp.bfloat16)
    b1g = jnp.tile(b, 4).reshape(1, 4 * c1n).astype(jnp.float32)
    return w1g, b1g


def _prep_conv2(w, b):
    """Torch (64,32,4,4) -> (4, 128, 64) bf16 weight for the 2x2 stride-1 conv
    on the parity-grouped conv1 output (input channel = (di, dj, c1))."""
    c2n, c1n, kh, kw = w.shape
    t = jnp.transpose(w, (2, 3, 1, 0))               # (i2, j2, c1, c2)
    t = t.reshape(2, 2, 2, 2, c1n, c2n)              # (A, di, B, dj, c1, c2)
    t = jnp.transpose(t, (0, 2, 1, 3, 4, 5))         # (A, B, di, dj, c1, c2)
    w2g = t.reshape(4, 4 * c1n, c2n).astype(jnp.bfloat16)
    return w2g, b.reshape(1, c2n).astype(jnp.float32)


def _prep_conv3(w, b):
    """Torch (64,64,3,3) -> (9, 64, 64) bf16."""
    c3n, c2n, kh, kw = w.shape
    w3g = jnp.transpose(w, (2, 3, 1, 0)).reshape(kh * kw, c2n, c3n)
    return w3g.astype(jnp.bfloat16), b.reshape(1, c3n).astype(jnp.float32)


def prepare_params(p):
    out = {}
    out["c1_w"], out["c1_b"] = _prep_conv1(p["c1_w"], p["c1_b"])
    out["c2_w"], out["c2_b"] = _prep_conv2(p["c2_w"], p["c2_b"])
    out["c3_w"], out["c3_b"] = _prep_conv3(p["c3_w"], p["c3_b"])

    # fc1: torch weight (512, 3136) expects an NCHW (c,h,w) flatten.  The conv
    # kernel emits (pos = h*7+w, c) order, so permute the input-feature rows
    # once, then pad K 3136 -> 3200 (= 50*64, lane aligned); the extra rows are
    # zero and line up with the conv output's zero row.
    final, n_flat = p["fc1_w"].shape
    w1 = p["fc1_w"].T.reshape(64, 7, 7, final)
    w1 = jnp.transpose(w1, (1, 2, 0, 3)).reshape(n_flat, final)
    kp = _OUT_ROWS * 64
    out["fc1_w"] = jnp.pad(w1, ((0, kp - n_flat), (0, 0))).astype(jnp.bfloat16)
    out["fc1_b"] = p["fc1_b"].reshape(1, final).astype(jnp.float32)

    num_actions = p["fc2_w"].shape[0]
    n2 = _round_up(num_actions, _LANE)
    out["fc2_w"] = jnp.pad(p["fc2_w"].T,
                           ((0, 0), (0, n2 - num_actions))).astype(jnp.bfloat16)
    out["fc2_b"] = jnp.pad(p["fc2_b"],
                           (0, n2 - num_actions)).reshape(1, n2).astype(jnp.float32)
    return out


# ---------------------------------------------------------------------------
# Network forward (equivalent to Network.forward)
# ---------------------------------------------------------------------------
def network_forward(params, x, *, num_actions):
    # x: (B, n_stacked_frames, 84, 84) float32, NCHW like the PyTorch module.
    xs = _prep_input(x)                                        # (B, 144, 256) bf16
    h = conv_stack(xs, params)                                 # (B, 50, 64) bf16
    h = h.reshape(h.shape[0], _OUT_ROWS * 64)                  # (B, 3200), free reshape
    q = fc_head(h, params["fc1_w"], params["fc1_b"],
                params["fc2_w"], params["fc2_b"])              # (B, 128) f32
    return q[:, :num_actions]


# ---------------------------------------------------------------------------
# Pure-XLA f32 reference (PyTorch-equivalent), for an in-script sanity check.
# ---------------------------------------------------------------------------
def _reference_forward(tp, x):
    h = jnp.transpose(x, (0, 2, 3, 1))
    for name, stride in (("c1", 4), ("c2", 2), ("c3", 1)):
        w = jnp.transpose(tp[name + "_w"], (2, 3, 1, 0))       # HWIO
        h = jax.lax.conv_general_dilated(
            h, w, (stride, stride), "VALID",
            dimension_numbers=("NHWC", "HWIO", "NHWC"))
        h = jax.nn.relu(h + tp[name + "_b"])
    B = h.shape[0]
    flat = jnp.transpose(h, (0, 3, 1, 2)).reshape(B, -1)       # torch NCHW flatten
    h1 = jax.nn.relu(flat @ tp["fc1_w"].T + tp["fc1_b"])
    return h1 @ tp["fc2_w"].T + tp["fc2_b"]


# ---------------------------------------------------------------------------
if __name__ == "__main__":
    num_actions = 6
    n_stacked_frames = 4
    batch = 2

    key = jax.random.PRNGKey(0)
    pkey, xkey = jax.random.split(key)
    torch_params = init_params_torch_layout(pkey, num_actions, n_stacked_frames)
    params = jax.device_put(prepare_params(torch_params))   # prepared once, outside jit

    # 84x84 is hard-wired by nature_cnn's default frame_size (gives the 3136 flatten).
    x = jax.random.normal(xkey, (batch, n_stacked_frames, 84, 84), jnp.float32)

    fwd = jax.jit(functools.partial(network_forward, num_actions=num_actions))
    q_values = fwd(params, x)
    jax.block_until_ready(q_values)

    assert q_values.shape == (batch, num_actions), q_values.shape
    assert q_values.dtype == jnp.float32

    # Loose sanity check vs an XLA f32 reference (bf16 MXU path -> loose tol).
    q_ref = _reference_forward(torch_params, x)
    err = float(jnp.max(jnp.abs(q_values - q_ref)))
    assert err < 0.3, f"mismatch vs reference: max |dq| = {err}"

    print("KERNEL_OK")
</pallas_src>

<mosaic_0001>
module attributes {stable_mosaic.version = 11 : i64} {
  func.func @_conv_stack_kernel(%arg0: i32, %arg1: memref<1x144x256xbf16, #tpu.memory_space<vmem>>, %arg2: memref<4x256x128xbf16, #tpu.memory_space<vmem>>, %arg3: memref<1x128xf32, #tpu.memory_space<vmem>>, %arg4: memref<4x128x64xbf16, #tpu.memory_space<vmem>>, %arg5: memref<1x64xf32, #tpu.memory_space<vmem>>, %arg6: memref<9x64x64xbf16, #tpu.memory_space<vmem>>, %arg7: memref<1x64xf32, #tpu.memory_space<vmem>>, %arg8: memref<1x50x64xbf16, #tpu.memory_space<vmem>>, %arg9: memref<120x128xbf16, #tpu.memory_space<vmem>>, %arg10: memref<104x64xbf16, #tpu.memory_space<vmem>>) attributes {dimension_semantics = [#tpu.dimension_semantics<parallel>], iteration_bounds = array<i64: 2>, scalar_prefetch = 0 : i64, scratch_operands = 2 : i64, tpu.core_type = #tpu.core_type<tc>, window_params = [{transform_indices = @transform_0, window_bounds = array<i64: 1, 144, 256>}, {pipeline_mode = #tpu.pipeline_mode<synchronous>, transform_indices = @transform_1, window_bounds = array<i64: 4, 256, 128>}, {pipeline_mode = #tpu.pipeline_mode<synchronous>, transform_indices = @transform_2, window_bounds = array<i64: 1, 128>}, {pipeline_mode = #tpu.pipeline_mode<synchronous>, transform_indices = @transform_3, window_bounds = array<i64: 4, 128, 64>}, {pipeline_mode = #tpu.pipeline_mode<synchronous>, transform_indices = @transform_4, window_bounds = array<i64: 1, 64>}, {pipeline_mode = #tpu.pipeline_mode<synchronous>, transform_indices = @transform_5, window_bounds = array<i64: 9, 64, 64>}, {pipeline_mode = #tpu.pipeline_mode<synchronous>, transform_indices = @transform_6, window_bounds = array<i64: 1, 64>}, {transform_indices = @transform_7, window_bounds = array<i64: 1, 50, 64>}]} {
    %c0 = arith.constant 0 : index
    %c0_0 = arith.constant 0 : index
    %c0_1 = arith.constant 0 : index
    %0 = vector.load %arg1[%c0, %c0_0, %c0_1] : memref<1x144x256xbf16, #tpu.memory_space<vmem>>, vector<1x120x256xbf16>
    %1 = vector.shape_cast %0 : vector<1x120x256xbf16> to vector<120x256xbf16>
    %c0_2 = arith.constant 0 : index
    %c0_3 = arith.constant 0 : index
    %c0_4 = arith.constant 0 : index
    %2 = vector.load %arg2[%c0_2, %c0_3, %c0_4] : memref<4x256x128xbf16, #tpu.memory_space<vmem>>, vector<1x256x128xbf16>
    %3 = vector.shape_cast %2 : vector<1x256x128xbf16> to vector<256x128xbf16>
    %cst = arith.constant dense<0.000000e+00> : vector<120x128xf32>
    %4 = tpu.matmul %1, %3, %cst {dimension_numbers = #tpu.dot_dimension_numbers<[1], [0], [0], [1], [0, 0, 1, 1], [], []>} : vector<120x256xbf16>, vector<256x128xbf16>, vector<120x128xf32> -> vector<120x128xf32>
    %c0_5 = arith.constant 0 : index
    %c1 = arith.constant 1 : index
    %c0_6 = arith.constant 0 : index
    %5 = vector.load %arg1[%c0_5, %c1, %c0_6] : memref<1x144x256xbf16, #tpu.memory_space<vmem>>, vector<1x120x256xbf16>
    %6 = vector.shape_cast %5 : vector<1x120x256xbf16> to vector<120x256xbf16>
    %c1_7 = arith.constant 1 : index
    %c0_8 = arith.constant 0 : index
    %c0_9 = arith.constant 0 : index
    %7 = vector.load %arg2[%c1_7, %c0_8, %c0_9] : memref<4x256x128xbf16, #tpu.memory_space<vmem>>, vector<1x256x128xbf16>
    %8 = vector.shape_cast %7 : vector<1x256x128xbf16> to vector<256x128xbf16>
    %cst_10 = arith.constant dense<0.000000e+00> : vector<120x128xf32>
    %9 = tpu.matmul %6, %8, %cst_10 {dimension_numbers = #tpu.dot_dimension_numbers<[1], [0], [0], [1], [0, 0, 1, 1], [], []>} : vector<120x256xbf16>, vector<256x128xbf16>, vector<120x128xf32> -> vector<120x128xf32>
    %10 = arith.addf %4, %9 : vector<120x128xf32>
    %c0_11 = arith.constant 0 : index
    %c11 = arith.constant 11 : index
    %c0_12 = arith.constant 0 : index
    %11 = vector.load %arg1[%c0_11, %c11, %c0_12] : memref<1x144x256xbf16, #tpu.memory_space<vmem>>, vector<1x120x256xbf16>
    %12 = vector.shape_cast %11 : vector<1x120x256xbf16> to vector<120x256xbf16>
    %c2 = arith.constant 2 : index
    %c0_13 = arith.constant 0 : index
    %c0_14 = arith.constant 0 : index
    %13 = vector.load %arg2[%c2, %c0_13, %c0_14] : memref<4x256x128xbf16, #tpu.memory_space<vmem>>, vector<1x256x128xbf16>
    %14 = vector.shape_cast %13 : vector<1x256x128xbf16> to vector<256x128xbf16>
    %cst_15 = arith.constant dense<0.000000e+00> : vector<120x128xf32>
    %15 = tpu.matmul %12, %14, %cst_15 {dimension_numbers = #tpu.dot_dimension_numbers<[1], [0], [0], [1], [0, 0, 1, 1], [], []>} : vector<120x256xbf16>, vector<256x128xbf16>, vector<120x128xf32> -> vector<120x128xf32>
    %16 = arith.addf %10, %15 : vector<120x128xf32>
    %c0_16 = arith.constant 0 : index
    %c12 = arith.constant 12 : index
    %c0_17 = arith.constant 0 : index
    %17 = vector.load %arg1[%c0_16, %c12, %c0_17] : memref<1x144x256xbf16, #tpu.memory_space<vmem>>, vector<1x120x256xbf16>
    %18 = vector.shape_cast %17 : vector<1x120x256xbf16> to vector<120x256xbf16>
    %c3 = arith.constant 3 : index
    %c0_18 = arith.constant 0 : index
    %c0_19 = arith.constant 0 : index
    %19 = vector.load %arg2[%c3, %c0_18, %c0_19] : memref<4x256x128xbf16, #tpu.memory_space<vmem>>, vector<1x256x128xbf16>
    %20 = vector.shape_cast %19 : vector<1x256x128xbf16> to vector<256x128xbf16>
    %cst_20 = arith.constant dense<0.000000e+00> : vector<120x128xf32>
    %21 = tpu.matmul %18, %20, %cst_20 {dimension_numbers = #tpu.dot_dimension_numbers<[1], [0], [0], [1], [0, 0, 1, 1], [], []>} : vector<120x256xbf16>, vector<256x128xbf16>, vector<120x128xf32> -> vector<120x128xf32>
    %22 = arith.addf %16, %21 : vector<120x128xf32>
    %c0_21 = arith.constant 0 : index
    %c0_22 = arith.constant 0 : index
    %23 = vector.load %arg3[%c0_21, %c0_22] : memref<1x128xf32, #tpu.memory_space<vmem>>, vector<1x128xf32>
    %24 = vector.broadcast %23 : vector<1x128xf32> to vector<120x128xf32>
    %25 = arith.addf %22, %24 : vector<120x128xf32>
    %cst_23 = arith.constant 0.000000e+00 : f32
    %26 = vector.broadcast %cst_23 : f32 to vector<120x128xf32>
    %27 = arith.maximumf %25, %26 : vector<120x128xf32>
    %28 = arith.truncf %27 : vector<120x128xf32> to vector<120x128xbf16>
    %c0_24 = arith.constant 0 : index
    %c0_25 = arith.constant 0 : index
    %29 = vector.load %arg9[%c0_24, %c0_25] : memref<120x128xbf16, #tpu.memory_space<vmem>>, vector<120x128xbf16>
    tpu.vector_store %arg9[%c0_24, %c0_25], %28 {strides = array<i32>} : memref<120x128xbf16, #tpu.memory_space<vmem>>, vector<120x128xbf16>,
    %c0_26 = arith.constant 0 : index
    %c0_27 = arith.constant 0 : index
    %30 = vector.load %arg9[%c0_26, %c0_27] : memref<120x128xbf16, #tpu.memory_space<vmem>>, vector<104x128xbf16>
    %c0_28 = arith.constant 0 : index
    %c0_29 = arith.constant 0 : index
    %c0_30 = arith.constant 0 : index
    %31 = vector.load %arg4[%c0_28, %c0_29, %c0_30] : memref<4x128x64xbf16, #tpu.memory_space<vmem>>, vector<1x128x64xbf16>
    %32 = vector.shape_cast %31 : vector<1x128x64xbf16> to vector<128x64xbf16>
    %cst_31 = arith.constant dense<0.000000e+00> : vector<104x64xf32>
    %33 = tpu.matmul %30, %32, %cst_31 {dimension_numbers = #tpu.dot_dimension_numbers<[1], [0], [0], [1], [0, 0, 1, 1], [], []>} : vector<104x128xbf16>, vector<128x64xbf16>, vector<104x64xf32> -> vector<104x64xf32>
    %c1_32 = arith.constant 1 : index
    %c0_33 = arith.constant 0 : index
    %34 = vector.load %arg9[%c1_32, %c0_33] : memref<120x128xbf16, #tpu.memory_space<vmem>>, vector<104x128xbf16>
    %c1_34 = arith.constant 1 : index
    %c0_35 = arith.constant 0 : index
    %c0_36 = arith.constant 0 : index
    %35 = vector.load %arg4[%c1_34, %c0_35, %c0_36] : memref<4x128x64xbf16, #tpu.memory_space<vmem>>, vector<1x128x64xbf16>
    %36 = vector.shape_cast %35 : vector<1x128x64xbf16> to vector<128x64xbf16>
    %cst_37 = arith.constant dense<0.000000e+00> : vector<104x64xf32>
    %37 = tpu.matmul %34, %36, %cst_37 {dimension_numbers = #tpu.dot_dimension_numbers<[1], [0], [0], [1], [0, 0, 1, 1], [], []>} : vector<104x128xbf16>, vector<128x64xbf16>, vector<104x64xf32> -> vector<104x64xf32>
    %38 = arith.addf %33, %37 : vector<104x64xf32>
    %c11_38 = arith.constant 11 : index
    %c0_39 = arith.constant 0 : index
    %39 = vector.load %arg9[%c11_38, %c0_39] : memref<120x128xbf16, #tpu.memory_space<vmem>>, vector<104x128xbf16>
    %c2_40 = arith.constant 2 : index
    %c0_41 = arith.constant 0 : index
    %c0_42 = arith.constant 0 : index
    %40 = vector.load %arg4[%c2_40, %c0_41, %c0_42] : memref<4x128x64xbf16, #tpu.memory_space<vmem>>, vector<1x128x64xbf16>
    %41 = vector.shape_cast %40 : vector<1x128x64xbf16> to vector<128x64xbf16>
    %cst_43 = arith.constant dense<0.000000e+00> : vector<104x64xf32>
    %42 = tpu.matmul %39, %41, %cst_43 {dimension_numbers = #tpu.dot_dimension_numbers<[1], [0], [0], [1], [0, 0, 1, 1], [], []>} : vector<104x128xbf16>, vector<128x64xbf16>, vector<104x64xf32> -> vector<104x64xf32>
    %43 = arith.addf %38, %42 : vector<104x64xf32>
    %c12_44 = arith.constant 12 : index
    %c0_45 = arith.constant 0 : index
    %44 = vector.load %arg9[%c12_44, %c0_45] : memref<120x128xbf16, #tpu.memory_space<vmem>>, vector<104x128xbf16>
    %c3_46 = arith.constant 3 : index
    %c0_47 = arith.constant 0 : index
    %c0_48 = arith.constant 0 : index
    %45 = vector.load %arg4[%c3_46, %c0_47, %c0_48] : memref<4x128x64xbf16, #tpu.memory_space<vmem>>, vector<1x128x64xbf16>
    %46 = vector.shape_cast %45 : vector<1x128x64xbf16> to vector<128x64xbf16>
    %cst_49 = arith.constant dense<0.000000e+00> : vector<104x64xf32>
    %47 = tpu.matmul %44, %46, %cst_49 {dimension_numbers = #tpu.dot_dimension_numbers<[1], [0], [0], [1], [0, 0, 1, 1], [], []>} : vector<104x128xbf16>, vector<128x64xbf16>, vector<104x64xf32> -> vector<104x64xf32>
    %48 = arith.addf %43, %47 : vector<104x64xf32>
    %c0_50 = arith.constant 0 : index
    %c0_51 = arith.constant 0 : index
    %49 = vector.load %arg5[%c0_50, %c0_51] : memref<1x64xf32, #tpu.memory_space<vmem>>, vector<1x64xf32>
    %50 = vector.broadcast %49 : vector<1x64xf32> to vector<104x64xf32>
    %51 = arith.addf %48, %50 : vector<104x64xf32>
    %cst_52 = arith.constant 0.000000e+00 : f32
    %52 = vector.broadcast %cst_52 : f32 to vector<104x64xf32>
    %53 = arith.maximumf %51, %52 : vector<104x64xf32>
    %54 = arith.truncf %53 : vector<104x64xf32> to vector<104x64xbf16>
    %c0_53 = arith.constant 0 : index
    %c0_54 = arith.constant 0 : index
    %55 = vector.load %arg10[%c0_53, %c0_54] : memref<104x64xbf16, #tpu.memory_space<vmem>>, vector<104x64xbf16>
    tpu.vector_store %arg10[%c0_53, %c0_54], %54 {strides = array<i32>} : memref<104x64xbf16, #tpu.memory_space<vmem>>, vector<104x64xbf16>,
    %c0_55 = arith.constant 0 : index
    %c0_56 = arith.constant 0 : index
    %56 = vector.load %arg10[%c0_55, %c0_56] : memref<104x64xbf16, #tpu.memory_space<vmem>>, vector<80x64xbf16>
    %c0_57 = arith.constant 0 : index
    %c0_58 = arith.constant 0 : index
    %c0_59 = arith.constant 0 : index
    %57 = vector.load %arg6[%c0_57, %c0_58, %c0_59] : memref<9x64x64xbf16, #tpu.memory_space<vmem>>, vector<1x64x64xbf16>
    %58 = vector.shape_cast %57 : vector<1x64x64xbf16> to vector<64x64xbf16>
    %cst_60 = arith.constant dense<0.000000e+00> : vector<80x64xf32>
    %59 = tpu.matmul %56, %58, %cst_60 {dimension_numbers = #tpu.dot_dimension_numbers<[1], [0], [0], [1], [0, 0, 1, 1], [], []>} : vector<80x64xbf16>, vector<64x64xbf16>, vector<80x64xf32> -> vector<80x64xf32>
    %c1_61 = arith.constant 1 : index
    %c0_62 = arith.constant 0 : index
    %60 = vector.load %arg10[%c1_61, %c0_62] : memref<104x64xbf16, #tpu.memory_space<vmem>>, vector<80x64xbf16>
    %c1_63 = arith.constant 1 : index
    %c0_64 = arith.constant 0 : index
    %c0_65 = arith.constant 0 : index
    %61 = vector.load %arg6[%c1_63, %c0_64, %c0_65] : memref<9x64x64xbf16, #tpu.memory_space<vmem>>, vector<1x64x64xbf16>
    %62 = vector.shape_cast %61 : vector<1x64x64xbf16> to vector<64x64xbf16>
    %cst_66 = arith.constant dense<0.000000e+00> : vector<80x64xf32>
    %63 = tpu.matmul %60, %62, %cst_66 {dimension_numbers = #tpu.dot_dimension_numbers<[1], [0], [0], [1], [0, 0, 1, 1], [], []>} : vector<80x64xbf16>, vector<64x64xbf16>, vector<80x64xf32> -> vector<80x64xf32>
    %64 = arith.addf %59, %63 : vector<80x64xf32>
    %c2_67 = arith.constant 2 : index
    %c0_68 = arith.constant 0 : index
    %65 = vector.load %arg10[%c2_67, %c0_68] : memref<104x64xbf16, #tpu.memory_space<vmem>>, vector<80x64xbf16>
    %c2_69 = arith.constant 2 : index
    %c0_70 = arith.constant 0 : index
    %c0_71 = arith.constant 0 : index
    %66 = vector.load %arg6[%c2_69, %c0_70, %c0_71] : memref<9x64x64xbf16, #tpu.memory_space<vmem>>, vector<1x64x64xbf16>
    %67 = vector.shape_cast %66 : vector<1x64x64xbf16> to vector<64x64xbf16>
    %cst_72 = arith.constant dense<0.000000e+00> : vector<80x64xf32>
    %68 = tpu.matmul %65, %67, %cst_72 {dimension_numbers = #tpu.dot_dimension_numbers<[1], [0], [0], [1], [0, 0, 1, 1], [], []>} : vector<80x64xbf16>, vector<64x64xbf16>, vector<80x64xf32> -> vector<80x64xf32>
    %69 = arith.addf %64, %68 : vector<80x64xf32>
    %c11_73 = arith.constant 11 : index
    %c0_74 = arith.constant 0 : index
    %70 = vector.load %arg10[%c11_73, %c0_74] : memref<104x64xbf16, #tpu.memory_space<vmem>>, vector<80x64xbf16>
    %c3_75 = arith.constant 3 : index
    %c0_76 = arith.constant 0 : index
    %c0_77 = arith.constant 0 : index
    %71 = vector.load %arg6[%c3_75, %c0_76, %c0_77] : memref<9x64x64xbf16, #tpu.memory_space<vmem>>, vector<1x64x64xbf16>
    %72 = vector.shape_cast %71 : vector<1x64x64xbf16> to vector<64x64xbf16>
    %cst_78 = arith.constant dense<0.000000e+00> : vector<80x64xf32>
    %73 = tpu.matmul %70, %72, %cst_78 {dimension_numbers = #tpu.dot_dimension_numbers<[1], [0], [0], [1], [0, 0, 1, 1], [], []>} : vector<80x64xbf16>, vector<64x64xbf16>, vector<80x64xf32> -> vector<80x64xf32>
    %74 = arith.addf %69, %73 : vector<80x64xf32>
    %c12_79 = arith.constant 12 : index
    %c0_80 = arith.constant 0 : index
    %75 = vector.load %arg10[%c12_79, %c0_80] : memref<104x64xbf16, #tpu.memory_space<vmem>>, vector<80x64xbf16>
    %c4 = arith.constant 4 : index
    %c0_81 = arith.constant 0 : index
    %c0_82 = arith.constant 0 : index
    %76 = vector.load %arg6[%c4, %c0_81, %c0_82] : memref<9x64x64xbf16, #tpu.memory_space<vmem>>, vector<1x64x64xbf16>
    %77 = vector.shape_cast %76 : vector<1x64x64xbf16> to vector<64x64xbf16>
    %cst_83 = arith.constant dense<0.000000e+00> : vector<80x64xf32>
    %78 = tpu.matmul %75, %77, %cst_83 {dimension_numbers = #tpu.dot_dimension_numbers<[1], [0], [0], [1], [0, 0, 1, 1], [], []>} : vector<80x64xbf16>, vector<64x64xbf16>, vector<80x64xf32> -> vector<80x64xf32>
    %79 = arith.addf %74, %78 : vector<80x64xf32>
    %c13 = arith.constant 13 : index
    %c0_84 = arith.constant 0 : index
    %80 = vector.load %arg10[%c13, %c0_84] : memref<104x64xbf16, #tpu.memory_space<vmem>>, vector<80x64xbf16>
    %c5 = arith.constant 5 : index
    %c0_85 = arith.constant 0 : index
    %c0_86 = arith.constant 0 : index
    %81 = vector.load %arg6[%c5, %c0_85, %c0_86] : memref<9x64x64xbf16, #tpu.memory_space<vmem>>, vector<1x64x64xbf16>
    %82 = vector.shape_cast %81 : vector<1x64x64xbf16> to vector<64x64xbf16>
    %cst_87 = arith.constant dense<0.000000e+00> : vector<80x64xf32>
    %83 = tpu.matmul %80, %82, %cst_87 {dimension_numbers = #tpu.dot_dimension_numbers<[1], [0], [0], [1], [0, 0, 1, 1], [], []>} : vector<80x64xbf16>, vector<64x64xbf16>, vector<80x64xf32> -> vector<80x64xf32>
    %84 = arith.addf %79, %83 : vector<80x64xf32>
    %c22 = arith.constant 22 : index
    %c0_88 = arith.constant 0 : index
    %85 = vector.load %arg10[%c22, %c0_88] : memref<104x64xbf16, #tpu.memory_space<vmem>>, vector<80x64xbf16>
    %c6 = arith.constant 6 : index
    %c0_89 = arith.constant 0 : index
    %c0_90 = arith.constant 0 : index
    %86 = vector.load %arg6[%c6, %c0_89, %c0_90] : memref<9x64x64xbf16, #tpu.memory_space<vmem>>, vector<1x64x64xbf16>
    %87 = vector.shape_cast %86 : vector<1x64x64xbf16> to vector<64x64xbf16>
    %cst_91 = arith.constant dense<0.000000e+00> : vector<80x64xf32>
    %88 = tpu.matmul %85, %87, %cst_91 {dimension_numbers = #tpu.dot_dimension_numbers<[1], [0], [0], [1], [0, 0, 1, 1], [], []>} : vector<80x64xbf16>, vector<64x64xbf16>, vector<80x64xf32> -> vector<80x64xf32>
    %89 = arith.addf %84, %88 : vector<80x64xf32>
    %c23 = arith.constant 23 : index
    %c0_92 = arith.constant 0 : index
    %90 = vector.load %arg10[%c23, %c0_92] : memref<104x64xbf16, #tpu.memory_space<vmem>>, vector<80x64xbf16>
    %c7 = arith.constant 7 : index
    %c0_93 = arith.constant 0 : index
    %c0_94 = arith.constant 0 : index
    %91 = vector.load %arg6[%c7, %c0_93, %c0_94] : memref<9x64x64xbf16, #tpu.memory_space<vmem>>, vector<1x64x64xbf16>
    %92 = vector.shape_cast %91 : vector<1x64x64xbf16> to vector<64x64xbf16>
    %cst_95 = arith.constant dense<0.000000e+00> : vector<80x64xf32>
    %93 = tpu.matmul %90, %92, %cst_95 {dimension_numbers = #tpu.dot_dimension_numbers<[1], [0], [0], [1], [0, 0, 1, 1], [], []>} : vector<80x64xbf16>, vector<64x64xbf16>, vector<80x64xf32> -> vector<80x64xf32>
    %94 = arith.addf %89, %93 : vector<80x64xf32>
    %c24 = arith.constant 24 : index
    %c0_96 = arith.constant 0 : index
    %95 = vector.load %arg10[%c24, %c0_96] : memref<104x64xbf16, #tpu.memory_space<vmem>>, vector<80x64xbf16>
    %c8 = arith.constant 8 : index
    %c0_97 = arith.constant 0 : index
    %c0_98 = arith.constant 0 : index
    %96 = vector.load %arg6[%c8, %c0_97, %c0_98] : memref<9x64x64xbf16, #tpu.memory_space<vmem>>, vector<1x64x64xbf16>
    %97 = vector.shape_cast %96 : vector<1x64x64xbf16> to vector<64x64xbf16>
    %cst_99 = arith.constant dense<0.000000e+00> : vector<80x64xf32>
    %98 = tpu.matmul %95, %97, %cst_99 {dimension_numbers = #tpu.dot_dimension_numbers<[1], [0], [0], [1], [0, 0, 1, 1], [], []>} : vector<80x64xbf16>, vector<64x64xbf16>, vector<80x64xf32> -> vector<80x64xf32>
    %99 = arith.addf %94, %98 : vector<80x64xf32>
    %c0_100 = arith.constant 0 : index
    %c0_101 = arith.constant 0 : index
    %100 = vector.load %arg7[%c0_100, %c0_101] : memref<1x64xf32, #tpu.memory_space<vmem>>, vector<1x64xf32>
    %101 = vector.broadcast %100 : vector<1x64xf32> to vector<80x64xf32>
    %102 = arith.addf %99, %101 : vector<80x64xf32>
    %cst_102 = arith.constant 0.000000e+00 : f32
    %103 = vector.broadcast %cst_102 : f32 to vector<80x64xf32>
    %104 = arith.maximumf %102, %103 : vector<80x64xf32>
    %cst_103 = arith.constant 0.000000e+00 : bf16
    %105 = vector.broadcast %cst_103 : bf16 to vector<50x64xbf16>
    %c0_104 = arith.constant 0 : index
    %c0_105 = arith.constant 0 : index
    %c0_106 = arith.constant 0 : index
    %106 = vector.load %arg8[%c0_104, %c0_105, %c0_106] : memref<1x50x64xbf16, #tpu.memory_space<vmem>>, vector<1x50x64xbf16>
    %107 = vector.shape_cast %106 : vector<1x50x64xbf16> to vector<50x64xbf16>
    %108 = vector.shape_cast %105 : vector<50x64xbf16> to vector<1x50x64xbf16>
    tpu.vector_store %arg8[%c0_104, %c0_105, %c0_106], %108 {strides = array<i32>} : memref<1x50x64xbf16, #tpu.memory_space<vmem>>, vector<1x50x64xbf16>,
    %109 = vector.extract_strided_slice %104 {offsets = [0, 0], sizes = [7, 64], strides = [1, 1]} : vector<80x64xf32> to vector<7x64xf32>
    %110 = arith.truncf %109 : vector<7x64xf32> to vector<7x64xbf16>
    %c0_107 = arith.constant 0 : index
    %c0_108 = arith.constant 0 : index
    %c0_109 = arith.constant 0 : index
    %111 = vector.load %arg8[%c0_107, %c0_108, %c0_109] : memref<1x50x64xbf16, #tpu.memory_space<vmem>>, vector<1x7x64xbf16>
    %112 = vector.shape_cast %111 : vector<1x7x64xbf16> to vector<7x64xbf16>
    %113 = vector.shape_cast %110 : vector<7x64xbf16> to vector<1x7x64xbf16>
    tpu.vector_store %arg8[%c0_107, %c0_108, %c0_109], %113 {strides = array<i32>} : memref<1x50x64xbf16, #tpu.memory_space<vmem>>, vector<1x7x64xbf16>,
    %114 = vector.extract_strided_slice %104 {offsets = [11, 0], sizes = [7, 64], strides = [1, 1]} : vector<80x64xf32> to vector<7x64xf32>
    %115 = arith.truncf %114 : vector<7x64xf32> to vector<7x64xbf16>
    %c0_110 = arith.constant 0 : index
    %c7_111 = arith.constant 7 : index
    %c0_112 = arith.constant 0 : index
    %116 = vector.load %arg8[%c0_110, %c7_111, %c0_112] : memref<1x50x64xbf16, #tpu.memory_space<vmem>>, vector<1x7x64xbf16>
    %117 = vector.shape_cast %116 : vector<1x7x64xbf16> to vector<7x64xbf16>
    %118 = vector.shape_cast %115 : vector<7x64xbf16> to vector<1x7x64xbf16>
    tpu.vector_store %arg8[%c0_110, %c7_111, %c0_112], %118 {strides = array<i32>} : memref<1x50x64xbf16, #tpu.memory_space<vmem>>, vector<1x7x64xbf16>,
    %119 = vector.extract_strided_slice %104 {offsets = [22, 0], sizes = [7, 64], strides = [1, 1]} : vector<80x64xf32> to vector<7x64xf32>
    %120 = arith.truncf %119 : vector<7x64xf32> to vector<7x64xbf16>
    %c0_113 = arith.constant 0 : index
    %c14 = arith.constant 14 : index
    %c0_114 = arith.constant 0 : index
    %121 = vector.load %arg8[%c0_113, %c14, %c0_114] : memref<1x50x64xbf16, #tpu.memory_space<vmem>>, vector<1x7x64xbf16>
    %122 = vector.shape_cast %121 : vector<1x7x64xbf16> to vector<7x64xbf16>
    %123 = vector.shape_cast %120 : vector<7x64xbf16> to vector<1x7x64xbf16>
    tpu.vector_store %arg8[%c0_113, %c14, %c0_114], %123 {strides = array<i32>} : memref<1x50x64xbf16, #tpu.memory_space<vmem>>, vector<1x7x64xbf16>,
    %124 = vector.extract_strided_slice %104 {offsets = [33, 0], sizes = [7, 64], strides = [1, 1]} : vector<80x64xf32> to vector<7x64xf32>
    %125 = arith.truncf %124 : vector<7x64xf32> to vector<7x64xbf16>
    %c0_115 = arith.constant 0 : index
    %c21 = arith.constant 21 : index
    %c0_116 = arith.constant 0 : index
    %126 = vector.load %arg8[%c0_115, %c21, %c0_116] : memref<1x50x64xbf16, #tpu.memory_space<vmem>>, vector<1x7x64xbf16>
    %127 = vector.shape_cast %126 : vector<1x7x64xbf16> to vector<7x64xbf16>
    %128 = vector.shape_cast %125 : vector<7x64xbf16> to vector<1x7x64xbf16>
    tpu.vector_store %arg8[%c0_115, %c21, %c0_116], %128 {strides = array<i32>} : memref<1x50x64xbf16, #tpu.memory_space<vmem>>, vector<1x7x64xbf16>,
    %129 = vector.extract_strided_slice %104 {offsets = [44, 0], sizes = [7, 64], strides = [1, 1]} : vector<80x64xf32> to vector<7x64xf32>
    %130 = arith.truncf %129 : vector<7x64xf32> to vector<7x64xbf16>
    %c0_117 = arith.constant 0 : index
    %c28 = arith.constant 28 : index
    %c0_118 = arith.constant 0 : index
    %131 = vector.load %arg8[%c0_117, %c28, %c0_118] : memref<1x50x64xbf16, #tpu.memory_space<vmem>>, vector<1x7x64xbf16>
    %132 = vector.shape_cast %131 : vector<1x7x64xbf16> to vector<7x64xbf16>
    %133 = vector.shape_cast %130 : vector<7x64xbf16> to vector<1x7x64xbf16>
    tpu.vector_store %arg8[%c0_117, %c28, %c0_118], %133 {strides = array<i32>} : memref<1x50x64xbf16, #tpu.memory_space<vmem>>, vector<1x7x64xbf16>,
    %134 = vector.extract_strided_slice %104 {offsets = [55, 0], sizes = [7, 64], strides = [1, 1]} : vector<80x64xf32> to vector<7x64xf32>
    %135 = arith.truncf %134 : vector<7x64xf32> to vector<7x64xbf16>
    %c0_119 = arith.constant 0 : index
    %c35 = arith.constant 35 : index
    %c0_120 = arith.constant 0 : index
    %136 = vector.load %arg8[%c0_119, %c35, %c0_120] : memref<1x50x64xbf16, #tpu.memory_space<vmem>>, vector<1x7x64xbf16>
    %137 = vector.shape_cast %136 : vector<1x7x64xbf16> to vector<7x64xbf16>
    %138 = vector.shape_cast %135 : vector<7x64xbf16> to vector<1x7x64xbf16>
    tpu.vector_store %arg8[%c0_119, %c35, %c0_120], %138 {strides = array<i32>} : memref<1x50x64xbf16, #tpu.memory_space<vmem>>, vector<1x7x64xbf16>,
    %139 = vector.extract_strided_slice %104 {offsets = [66, 0], sizes = [7, 64], strides = [1, 1]} : vector<80x64xf32> to vector<7x64xf32>
    %140 = arith.truncf %139 : vector<7x64xf32> to vector<7x64xbf16>
    %c0_121 = arith.constant 0 : index
    %c42 = arith.constant 42 : index
    %c0_122 = arith.constant 0 : index
    %141 = vector.load %arg8[%c0_121, %c42, %c0_122] : memref<1x50x64xbf16, #tpu.memory_space<vmem>>, vector<1x7x64xbf16>
    %142 = vector.shape_cast %141 : vector<1x7x64xbf16> to vector<7x64xbf16>
    %143 = vector.shape_cast %140 : vector<7x64xbf16> to vector<1x7x64xbf16>
    tpu.vector_store %arg8[%c0_121, %c42, %c0_122], %143 {strides = array<i32>} : memref<1x50x64xbf16, #tpu.memory_space<vmem>>, vector<1x7x64xbf16>,
    return
  }
  func.func @transform_0(%arg0: i32) -> (i32, i32, i32) {
    %c0_i32 = arith.constant 0 : i32
    %c0_i32_0 = arith.constant 0 : i32
    %c0_i32_1 = arith.constant 0 : i32
    return %arg0, %c0_i32, %c0_i32_0 : i32, i32, i32
  }
  func.func @transform_1(%arg0: i32) -> (i32, i32, i32) {
    %c0_i32 = arith.constant 0 : i32
    %c0_i32_0 = arith.constant 0 : i32
    %c0_i32_1 = arith.constant 0 : i32
    %c0_i32_2 = arith.constant 0 : i32
    return %c0_i32, %c0_i32_0, %c0_i32_1 : i32, i32, i32
  }
  func.func @transform_2(%arg0: i32) -> (i32, i32) {
    %c0_i32 = arith.constant 0 : i32
    %c0_i32_0 = arith.constant 0 : i32
    %c0_i32_1 = arith.constant 0 : i32
    return %c0_i32, %c0_i32_0 : i32, i32
  }
  func.func @transform_3(%arg0: i32) -> (i32, i32, i32) {
    %c0_i32 = arith.constant 0 : i32
    %c0_i32_0 = arith.constant 0 : i32
    %c0_i32_1 = arith.constant 0 : i32
    %c0_i32_2 = arith.constant 0 : i32
    return %c0_i32, %c0_i32_0, %c0_i32_1 : i32, i32, i32
  }
  func.func @transform_4(%arg0: i32) -> (i32, i32) {
    %c0_i32 = arith.constant 0 : i32
    %c0_i32_0 = arith.constant 0 : i32
    %c0_i32_1 = arith.constant 0 : i32
    return %c0_i32, %c0_i32_0 : i32, i32
  }
  func.func @transform_5(%arg0: i32) -> (i32, i32, i32) {
    %c0_i32 = arith.constant 0 : i32
    %c0_i32_0 = arith.constant 0 : i32
    %c0_i32_1 = arith.constant 0 : i32
    %c0_i32_2 = arith.constant 0 : i32
    return %c0_i32, %c0_i32_0, %c0_i32_1 : i32, i32, i32
  }
  func.func @transform_6(%arg0: i32) -> (i32, i32) {
    %c0_i32 = arith.constant 0 : i32
    %c0_i32_0 = arith.constant 0 : i32
    %c0_i32_1 = arith.constant 0 : i32
    return %c0_i32, %c0_i32_0 : i32, i32
  }
  func.func @transform_7(%arg0: i32) -> (i32, i32, i32) {
    %c0_i32 = arith.constant 0 : i32
    %c0_i32_0 = arith.constant 0 : i32
    %c0_i32_1 = arith.constant 0 : i32
    return %arg0, %c0_i32, %c0_i32_0 : i32, i32, i32
  }
}

module attributes {stable_mosaic.version = 11 : i64} {
  func.func @_fc_head_kernel(%arg0: i32, %arg1: memref<8x3200xbf16, #tpu.memory_space<vmem>>, %arg2: memref<3200x512xbf16, #tpu.memory_space<vmem>>, %arg3: memref<1x512xf32, #tpu.memory_space<vmem>>, %arg4: memref<512x128xbf16, #tpu.memory_space<vmem>>, %arg5: memref<1x128xf32, #tpu.memory_space<vmem>>, %arg6: memref<8x128xf32, #tpu.memory_space<vmem>>) attributes {dimension_semantics = [#tpu.dimension_semantics<parallel>], iteration_bounds = array<i64: 1>, scalar_prefetch = 0 : i64, scratch_operands = 0 : i64, tpu.core_type = #tpu.core_type<tc>, window_params = [{transform_indices = @transform_0, window_bounds = array<i64: 8, 3200>}, {pipeline_mode = #tpu.pipeline_mode<synchronous>, transform_indices = @transform_1, window_bounds = array<i64: 3200, 512>}, {pipeline_mode = #tpu.pipeline_mode<synchronous>, transform_indices = @transform_2, window_bounds = array<i64: 1, 512>}, {pipeline_mode = #tpu.pipeline_mode<synchronous>, transform_indices = @transform_3, window_bounds = array<i64: 512, 128>}, {pipeline_mode = #tpu.pipeline_mode<synchronous>, transform_indices = @transform_4, window_bounds = array<i64: 1, 128>}, {transform_indices = @transform_5, window_bounds = array<i64: 8, 128>}]} {
    %c0 = arith.constant 0 : index
    %c0_0 = arith.constant 0 : index
    %0 = vector.load %arg1[%c0, %c0_0] : memref<8x3200xbf16, #tpu.memory_space<vmem>>, vector<8x3200xbf16>
    %c0_1 = arith.constant 0 : index
    %c0_2 = arith.constant 0 : index
    %1 = vector.load %arg2[%c0_1, %c0_2] : memref<3200x512xbf16, #tpu.memory_space<vmem>>, vector<3200x512xbf16>
    %cst = arith.constant dense<0.000000e+00> : vector<8x512xf32>
    %2 = tpu.matmul %0, %1, %cst {dimension_numbers = #tpu.dot_dimension_numbers<[1], [0], [0], [1], [0, 0, 1, 1], [], []>} : vector<8x3200xbf16>, vector<3200x512xbf16>, vector<8x512xf32> -> vector<8x512xf32>
    %c0_3 = arith.constant 0 : index
    %c0_4 = arith.constant 0 : index
    %3 = vector.load %arg3[%c0_3, %c0_4] : memref<1x512xf32, #tpu.memory_space<vmem>>, vector<1x512xf32>
    %4 = vector.broadcast %3 : vector<1x512xf32> to vector<8x512xf32>
    %5 = arith.addf %2, %4 : vector<8x512xf32>
    %cst_5 = arith.constant 0.000000e+00 : f32
    %6 = vector.broadcast %cst_5 : f32 to vector<8x512xf32>
    %7 = arith.maximumf %5, %6 : vector<8x512xf32>
    %8 = arith.truncf %7 : vector<8x512xf32> to vector<8x512xbf16>
    %c0_6 = arith.constant 0 : index
    %c0_7 = arith.constant 0 : index
    %9 = vector.load %arg4[%c0_6, %c0_7] : memref<512x128xbf16, #tpu.memory_space<vmem>>, vector<512x128xbf16>
    %cst_8 = arith.constant dense<0.000000e+00> : vector<8x128xf32>
    %10 = tpu.matmul %8, %9, %cst_8 {dimension_numbers = #tpu.dot_dimension_numbers<[1], [0], [0], [1], [0, 0, 1, 1], [], []>} : vector<8x512xbf16>, vector<512x128xbf16>, vector<8x128xf32> -> vector<8x128xf32>
    %c0_9 = arith.constant 0 : index
    %c0_10 = arith.constant 0 : index
    %11 = vector.load %arg5[%c0_9, %c0_10] : memref<1x128xf32, #tpu.memory_space<vmem>>, vector<1x128xf32>
    %12 = vector.broadcast %11 : vector<1x128xf32> to vector<8x128xf32>
    %13 = arith.addf %10, %12 : vector<8x128xf32>
    %c0_11 = arith.constant 0 : index
    %c0_12 = arith.constant 0 : index
    %14 = vector.load %arg6[%c0_11, %c0_12] : memref<8x128xf32, #tpu.memory_space<vmem>>, vector<8x128xf32>
    tpu.vector_store %arg6[%c0_11, %c0_12], %13 {strides = array<i32>} : memref<8x128xf32, #tpu.memory_space<vmem>>, vector<8x128xf32>,
    return
  }
  func.func @transform_0(%arg0: i32) -> (i32, i32) {
    %c0_i32 = arith.constant 0 : i32
    %c0_i32_0 = arith.constant 0 : i32
    return %arg0, %c0_i32 : i32, i32
  }
  func.func @transform_1(%arg0: i32) -> (i32, i32) {
    %c0_i32 = arith.constant 0 : i32
    %c0_i32_0 = arith.constant 0 : i32
    %c0_i32_1 = arith.constant 0 : i32
    return %c0_i32, %c0_i32_0 : i32, i32
  }
  func.func @transform_2(%arg0: i32) -> (i32, i32) {
    %c0_i32 = arith.constant 0 : i32
    %c0_i32_0 = arith.constant 0 : i32
    %c0_i32_1 = arith.constant 0 : i32
    return %c0_i32, %c0_i32_0 : i32, i32
  }
  func.func @transform_3(%arg0: i32) -> (i32, i32) {
    %c0_i32 = arith.constant 0 : i32
    %c0_i32_0 = arith.constant 0 : i32
    %c0_i32_1 = arith.constant 0 : i32
    return %c0_i32, %c0_i32_0 : i32, i32
  }
  func.func @transform_4(%arg0: i32) -> (i32, i32) {
    %c0_i32 = arith.constant 0 : i32
    %c0_i32_0 = arith.constant 0 : i32
    %c0_i32_1 = arith.constant 0 : i32
    return %c0_i32, %c0_i32_0 : i32, i32
  }
  func.func @transform_5(%arg0: i32) -> (i32, i32) {
    %c0_i32 = arith.constant 0 : i32
    %c0_i32_0 = arith.constant 0 : i32
    return %arg0, %c0_i32 : i32, i32
  }
}

</mosaic_0001>

<bundles_post_ra>
// kernel: network_forward.2
= control target key start
LH: loop header
LB: loop body
LE: loop exit
PB: predicated region body
PF: predicated region fallthrough
CT: control target
= control target key end

     0   :  { %s5248_s24 = smov 0   ;;  %s6518_s0 = inlined_call_operand.vmem [shape: bf16[2,144,256], index: 0, kind: input, shape index: {}]   ;;  %s6519_s1 = inlined_call_operand.vmem [shape: bf16[4,256,128], index: 1, kind: input, shape index: {}]   ;;  %s6520_s2 = inlined_call_operand.vmem [shape: f32[1,128], index: 2, kind: input, shape index: {}]   ;;  %s6521_s3 = inlined_call_operand.vmem [shape: bf16[4,128,64], index: 3, kind: input, shape index: {}]   ;;  %s6522_s4 = inlined_call_operand.vmem [shape: f32[1,64], index: 4, kind: input, shape index: {}]   ;;  %s6523_s5 = inlined_call_operand.vmem [shape: bf16[9,64,64], index: 5, kind: input, shape index: {}]   ;;  %s6524_s6 = inlined_call_operand.vmem [shape: f32[1,64], index: 6, kind: input, shape index: {}]   ;;  %s6525_s7 = inlined_call_operand.vmem [shape: bf16[2,50,64], index: 7, kind: output, shape index: {}]  }
   0x1 LB: > { %s3917_s25 = sadd.s32 4294967295, %s5205_s24   ;;  %p3921_p0 = scmp.ge.s32.totalorder %s5205_s24, 1  ;;  %s5205_s24 = sphi %s5248_s24, %s17_s24  }
   0x2   : > { %p237_p1 = scmp.lt.s32.totalorder %s5205_s24, 3 }
   0x4   : > { %p238_p2 = pnand %p3921_p0, %p237_p1 }
   0x5   : > { %p269_p3 = scmp.lt.s32.totalorder (!%p238_p2), %s3917_s25, 1 }
   0x6   : > { %241 = sbr.rel (%p238_p2) target bundleno = 948 (0x3b4), region = 48 }
   0xb   : > { %v4937_v0 = vld [vmem:[%s6519_s1 + $0xb8] sm:$0xff]  ;;  %v4936_v1 = vld [vmem:[%s6519_s1 + $0xb0] sm:$0xff]  ;;  %s6529_s25 = smov (!%p269_p3, %s3917_s25), 1  ;;  %v4935_v4 = vld [vmem:[%s6519_s1 + $0xa8] sm:$0xff]  ;;  %vm425_vm0 = vsmask.f32 7424 }
   0xc   : > { %5169 = vmatpush.bf16.msra.mxu1 %v4937_v0  ;;  %5170 = vmatpush.bf16.msra.mxu2 %v4937_v0  ;;  %v4929_v2 = vld [vmem:[%s6519_s1 + $0x78] sm:$0xff]  ;;  %v4928_v3 = vld [vmem:[%s6519_s1 + $0x70] sm:$0xff]  ;;  %s5185_s11 = smul.u32 144, %s6529_s25  ;;  %v4927_v5 = vld [vmem:[%s6519_s1 + $0x68] sm:$0xff]  ;;  %vm1083_vm1 = vsmask.f32 6400 }
   0xd   : > { %664 = vmatpush.bf16.msra.mxu0 %v4937_v0  ;;  %922 = vmatpush.bf16.msra.mxu3 %v4929_v2  ;;  %v4934_v6 = vld [vmem:[%s6519_s1 + $0xa0] sm:$0xff]  ;;  %v4933_v14 = vld [vmem:[%s6519_s1 + $0x98] sm:$0xff]  ;;  %v4932_v20 = vld [vmem:[%s6519_s1 + $0x90] sm:$0xff]  ;;  %vm1488_vm2 = vcmask 1045504   ;;  %vm2567_vm3 = vcmask 519168   ;;  %vm2705_vm4 = vcmask 523264  }
   0xe   : > { %s5280_s18 = scalar_lea.vmem %s6518_s0, %s5185_s11  ;;  %v4926_v11 = vld [vmem:[%s6519_s1 + $0x60] sm:$0xff]  ;;  %v4925_v18 = vld [vmem:[%s6519_s1 + $0x58] sm:$0xff]  ;;  %v4924_v23 = vld [vmem:[%s6519_s1 + $0x50] sm:$0xff]  ;;  %vm2836_vm5 = vcmask 1046528   ;;  %vm3235_vm6 = vsmask.f32 5376 }
   0xf   : > { %v5286_v7 = vld [vmem:[%s5280_s18 + $0x70] sm:$0xff]  ;;  %v5289_v8 = vld [vmem:[%s5280_s18 + $0x78] sm:$0x11]  ;;  %v4006_v16 = vld [vmem:[%s5280_s18 + $0x60] sm:$0xf]  ;;  %vm3400_vm7 = vcmask 1044480  }
  0x10   : > { %5171 = vmatpush.bf16.msra.mxu1 %v4936_v1  ;;  %5172 = vmatpush.bf16.msra.mxu2 %v4936_v1  ;;  %v3998_v9 = vld [vmem:[%s5280_s18 + $0x50] sm:$0xf]  ;;  %v4911_v10 = vld [vmem:[%s5280_s18 + $0x54] sm:$0xf0]  ;;  %v5297_v12 = vunpack.c.l.b16 %v5286_v7  ;;  %v407_v13 = vunpack.c.l.b16 %v5289_v8  ;;  %v4913_v17 = vld [vmem:[%s5280_s18 + $0x64] sm:$0xf0] }
  0x11   : > { %665 = vmatpush.bf16.msra.mxu0 %v4936_v1  ;;  %923 = vmatpush.bf16.msra.mxu3 %v4928_v3  ;;  %v5303_v15 = vor.u32 %v4911_v10, %v3998_v9  ;;  %v5314_v21 = vor.u32 %v4913_v17, %v4006_v16  ;;  %v4931_v25 = vld [vmem:[%s6519_s1 + $0x88] sm:$0xff]  ;;  %v3958_v29 = vld [vmem:[%s5280_s18] sm:$0xf]  ;;  %v3966_v35 = vld [vmem:[%s5280_s18 + $0x10] sm:$0xf]  ;;  %s5186_s30 = smul.u32 28, %s6529_s25 }
  0x12   : > { %v423_v19 = vpack.c.b16 %v407_v13, %v5297_v12  ;;  %v4923_v30 = vld [vmem:[%s6519_s1 + $0x48] sm:$0xff]  ;;  %v4903_v36 = vld [vmem:[%s5280_s18 + $0x14] sm:$0xf0]  ;;  %v4930_v37 = vld [vmem:[%s6519_s1 + $0x80] sm:$0xff]  ;;  %vm3508_vm8 = vsmask.f32 4352 }
  0x13   : > { %v502_v22 = vshll.u32 %v5303_v15, 16  ;;  %v514_v27 = vshrl.u32 %v5303_v15, 16  ;;  %v518_v28 = vshll.u32 %v5314_v21, 16  ;;  %v4901_v31 = vld [vmem:[%s5280_s18 + $0x4] sm:$0xf0]  ;;  %v5342_v40 = vor.u32 %v4903_v36, %v3966_v35  ;;  %v4921_v41 = vld [vmem:[%s6519_s1 + $0x38] sm:$0xff]  ;;  %s6425_s10 = scalar_lea.vmem %s6525_s7, %s5186_s30 }
  0x14   : > { %5173 = vmatpush.bf16.msra.mxu1 %v4935_v4  ;;  %5174 = vmatpush.bf16.msra.mxu2 %v4935_v4  ;;  %v534_v24 = vshll.u32 %v423_v19, 16  ;;  %v546_v33 = vshrl.u32 %v423_v19, 16  ;;  %v5334_v34 = vor.u32 %v4901_v31, %v3958_v29  ;;  %v4945_v42 = vld [vmem:[%s6519_s1 + $0xf8] sm:$0xff]  ;;  %v4922_v44 = vld [vmem:[%s6519_s1 + $0x40] sm:$0xff]  ;;  %v3960_v49 = vld [vmem:[%s5280_s18 + $0x8] sm:$0xf0] }
  0x15   : > { %666 = vmatpush.bf16.msra.mxu0 %v4935_v4  ;;  %924 = vmatpush.bf16.msra.mxu3 %v4927_v5  ;;  %v5323_v26 = vrot.slane %v502_v22, 1  ;;  %v520_v39 = vrot.slane %v518_v28, 1  ;;  %v434_v46 = vshll.u32 %v5342_v40, 16  ;;  %v4900_v48 = vld [vmem:[%s5280_s18 + $0x4] sm:$0xf]  ;;  %v4991_v52 = vld [vmem:[%s6519_s1 + $0x1f8] sm:$0xff] }
  0x16   : > { %v5332_v32 = vrot.slane %v534_v24, 1  ;;  %v429_v43 = vshll.u32 %v5334_v34, 16  ;;  %v427_v45 = vshrl.u32 %v5334_v34, 16  ;;  %v4920_v54 = vld [vmem:[%s6519_s1 + $0x30] sm:$0xff]  ;;  %v3963_v57 = vor.u32 %v4900_v48, %v3960_v49  ;;  %v4919_v59 = vld [vmem:[%s6519_s1 + $0x28] sm:$0xff]  ;;  %v4918_v62 = vld [vmem:[%s6519_s1 + $0x20] sm:$0xff] }
  0x17   : > { %v516_v38 = vor.u32 %v514_v27, %v5323_v26  ;;  %v436_v53 = vrot.slane %v434_v46, 1  ;;  %v4944_v55 = vld [vmem:[%s6519_s1 + $0xf0] sm:$0xff]  ;;  %v4943_v60 = vld [vmem:[%s6519_s1 + $0xe8] sm:$0xff]  ;;  %v530_v61 = vshrl.u32 %v5314_v21, 16  ;;  %v4942_v63 = vld [vmem:[%s6519_s1 + $0xe0] sm:$0xff]  ;;  %vm3794_vm11 = vcmask 519171  }
  0x18   : > { %5175 = vmatpush.bf16.msra.mxu1 %v4934_v6  ;;  %5176 = vmatpush.bf16.msra.mxu2 %v4934_v6  ;;  %v548_v47 = vor.u32 %v546_v33, %v5332_v32  ;;  %v431_v50 = vrot.slane %v429_v43, 1  ;;  %v3974_v0 = vld [vmem:[%s5280_s18 + $0x20] sm:$0xf]  ;;  %v4905_v1 = vld [vmem:[%s5280_s18 + $0x24] sm:$0xf0]  ;;  %v4917_v4 = vld [vmem:[%s6519_s1 + $0x18] sm:$0xff] }
  0x19   : > { %667 = vmatpush.bf16.msra.mxu0 %v4934_v6  ;;  %925 = vmatpush.bf16.msra.mxu3 %v4926_v11  ;;  %v521_v51 = vsel %vm425_vm0, %v516_v38, %v520_v39  ;;  %v532_v2 = vor.u32 %v530_v61, %v520_v39  ;;  %v5385_v3 = vor.u32 %v4905_v1, %v3974_v0  ;;  %v4941_v5 = vld [vmem:[%s6519_s1 + $0xd8] sm:$0xff]  ;;  %v450_v6 = vshrl.u32 %v5342_v40, 16  ;;  %v4916_v11 = vld [vmem:[%s6519_s1 + $0x10] sm:$0xff]  ;;  %v4915_v24 = vld [vmem:[%s6519_s1 + $0x8] sm:$0xff] }
  0x1a   : > { %v432_v56 = vor.u32 %v431_v50, %v427_v45  ;;  %v4990_v13 = vld [vmem:[%s6519_s1 + $0x1f0] sm:$0xff]  ;;  %v3968_v19 = vld [vmem:[%s5280_s18 + $0x18] sm:$0xf0]  ;;  %v441_v22 = vshll.u32 %v3963_v57, 16  ;;  %v439_v27 = vshrl.u32 %v3963_v57, 16  ;;  %v4938_v31 = vld [vmem:[%s6519_s1 + $0xc0] sm:$0xff] }
  0x1b   : > { %v454_v9 = vshll.u32 %v5385_v3, 16  ;;  %v537_v10 = vsel %vm425_vm0, %v532_v2, %v5332_v32  ;;  %v4940_v17 = vld [vmem:[%s6519_s1 + $0xd0] sm:$0xff]  ;;  %v4983_v32 = vld [vmem:[%s6519_s1 + $0x1b8] sm:$0xff]  ;;  %v466_v43 = vshrl.u32 %v5385_v3, 16  ;;  %v4989_v46 = vld [vmem:[%s6519_s1 + $0x1e8] sm:$0xff]  ;;  %vm3785_vm14 = vcmask 1041408  }
  0x1c   : > { %5177 = vmatpush.bf16.msra.mxu1 %v4933_v14  ;;  %5178 = vmatpush.bf16.msra.mxu2 %v4933_v14  ;;  %v437_v58 = vsel %vm425_vm0, %v432_v56, %v436_v53  ;;  %v443_v28 = vrot.slane %v441_v22, 1  ;;  %v4975_v33 = vld [vmem:[%s6519_s1 + $0x178] sm:$0xff]  ;;  %v3982_v35 = vld [vmem:[%s5280_s18 + $0x30] sm:$0xf]  ;;  %v4904_v49 = vld [vmem:[%s5280_s18 + $0x24] sm:$0xf] }
  0x1d   : > { %668 = vmatpush.bf16.msra.mxu0 %v4933_v14  ;;  %926 = vmatpush.bf16.msra.mxu3 %v4925_v18  ;;  %v452_v14 = vor.u32 %v450_v6, %v436_v53  ;;  %v456_v16 = vrot.slane %v454_v9, 1  ;;  %v4902_v18 = vld [vmem:[%s5280_s18 + $0x14] sm:$0xf]  ;;  %v4907_v36 = vld [vmem:[%s5280_s18 + $0x34] sm:$0xf0]  ;;  %v4980_v0 = vld [vmem:[%s6519_s1 + $0x1a0] sm:$0xff] }
  0x1e   : > { %v5429_v39 = vor.u32 %v4907_v36, %v3982_v35  ;;  %v3976_v50 = vld [vmem:[%s5280_s18 + $0x28] sm:$0xf0]  ;;  %v3990_v56 = vld [vmem:[%s5280_s18 + $0x40] sm:$0xf]  ;;  %v3984_v6 = vld [vmem:[%s5280_s18 + $0x38] sm:$0xf0] }
  0x1f   : > { %v4988_v1 = vld [vmem:[%s6519_s1 + $0x1e0] sm:$0xff]  ;;  %v4979_v22 = vld [vmem:[%s6519_s1 + $0x198] sm:$0xff]  ;;  %vm3776_vm9 = vsmask.f32 3328  ;;  %vm3795_vm12 = vsmask.f32 7950 }
  0x20   : > { %5179 = vmatpush.bf16.msra.mxu1 %v4932_v20  ;;  %5180 = vmatpush.bf16.msra.mxu2 %v4932_v20  ;;  %v482_v61 = vshrl.u32 %v5429_v39, 16  ;;  %v4972_v9 = vld [vmem:[%s6519_s1 + $0x160] sm:$0xff]  ;;  %vm3777_vm10 = vmand %vm2567_vm3, %vm3776_vm9  ;;  %vm3786_vm15 = vcmask 1045508   ;;  %vm3830_vm9 = vsmask.f32 1280 }
  0x21   : > { %669 = vmatpush.bf16.msra.mxu0 %v4932_v20  ;;  %927 = vmatpush.bf16.msra.mxu3 %v4924_v23  ;;  %v457_v20 = vsel %vm425_vm0, %v452_v14, %v456_v16  ;;  %v3971_v23 = vor.u32 %v4902_v18, %v3968_v19  ;;  %vm3796_vm13 = vmand %vm3794_vm11, %vm3795_vm12  ;;  %vm3846_vm12 = vsmask.f32 7942 }
  0x23   : > { %v446_v29 = vshll.u32 %v3971_v23, 16 }
  0x24   : > { %5181 = vmatpush.bf16.msra.mxu1 %v4931_v25  ;;  %5182 = vmatpush.bf16.msra.mxu2 %v4931_v25 }
  0x25   : > { %670 = vmatpush.bf16.msra.mxu0 %v4931_v25  ;;  %928 = vmatpush.bf16.msra.mxu3 %v4923_v30  ;;  %v4939_v25 = vld [vmem:[%s6519_s1 + $0xc8] sm:$0xff]  ;;  %v4914_v30 = vld [vmem:[%s6519_s1] sm:$0xff]  ;;  %v448_v38 = vrot.slane %v446_v29, 1 }
  0x28   : > { %5183 = vmatpush.bf16.msra.mxu1 %v4930_v37  ;;  %5184 = vmatpush.bf16.msra.mxu2 %v4930_v37 }
  0x29   : > { %929 = vmatpush.bf16.msra.mxu3 %v4922_v44  ;;  %671 = vmatpush.bf16.msra.mxu0 %v4930_v37  ;;  %v444_v37 = vor.u32 %v443_v28, %v439_v27  ;;  %v470_v44 = vshll.u32 %v5429_v39, 16  ;;  %v3992_v27 = vld [vmem:[%s5280_s18 + $0x48] sm:$0xf0] }
  0x2a   : > { %v4965_v28 = vld [vmem:[%s6519_s1 + $0x128] sm:$0xff] }
  0x2b   : > { %697 = vmatmul.bf16.vlgmr.msra.gmra.mxu1 %v521_v51  ;;  %707 = vmatmul.bf16.vlgmr.msra.gmra.mxu2 %v548_v47  ;;  %v449_v45 = vsel %vm425_vm0, %v444_v37, %v448_v38  ;;  %v468_v47 = vor.u32 %v466_v43, %v456_v16  ;;  %v472_v48 = vrot.slane %v470_v44, 1  ;;  %v4981_v51 = vld [vmem:[%s6519_s1 + $0x1a8] sm:$0xff]  ;;  %v4978_v37 = vld [vmem:[%s6519_s1 + $0x190] sm:$0xff]  ;;  %v4963_v43 = vld [vmem:[%s6519_s1 + $0x118] sm:$0xff] }
  0x2c   : > { %874 = vmatpush.bf16.msrb.mxu2 %v4921_v41  ;;  %712 = vmatpush.bf16.msrb.mxu1 %v4945_v42  ;;  %v4982_v41 = vld [vmem:[%s6519_s1 + $0x1b0] sm:$0xff] }
  0x2d   : > { %1679 = vmatpush.bf16.msrb.mxu3 %v4991_v52  ;;  %672 = vmatmul.bf16.vlgmr.msra.gmra.mxu0 %v437_v58  ;;  %v4974_v42 = vld [vmem:[%s6519_s1 + $0x170] sm:$0xff]  ;;  %v3979_v52 = vor.u32 %v4904_v49, %v3976_v50  ;;  %v473_v53 = vsel %vm425_vm0, %v468_v47, %v472_v48  ;;  %v484_v2 = vor.u32 %v482_v61, %v472_v48  ;;  %v4977_v50 = vld [vmem:[%s6519_s1 + $0x188] sm:$0xff]  ;;  %v406_v61 = vunpack.c.h.b16 %v5286_v7 }
  0x2e   : > { %930 = vmatmul.bf16.vlgmr.msra.gmra.mxu3 %v3963_v57  ;;  %v4909_v57 = vld [vmem:[%s5280_s18 + $0x44] sm:$0xf0] }
  0x2f   : > { %v474_v14 = vshrl.u32 %v3979_v52, 16  ;;  %v761_v7 = vpack.c.b16 %v406_v61, %v406_v61 }
  0x30   : > { %875 = vmatpush.bf16.msrb.mxu2 %v4920_v54  ;;  %713 = vmatpush.bf16.msrb.mxu1 %v4944_v55  ;;  %v458_v54 = vshrl.u32 %v3971_v23, 16  ;;  %v462_v55 = vshll.u32 %v3979_v52, 16 }
  0x31   : > { %1680 = vmatpush.bf16.msrb.mxu3 %v4990_v13  ;;  %v4966_v13 = vld [vmem:[%s6519_s1 + $0x130] sm:$0xff] }
  0x32   : > { %v460_v58 = vor.u32 %v458_v54, %v448_v38  ;;  %v4964_v38 = vld [vmem:[%s6519_s1 + $0x120] sm:$0xff]  ;;  %v4962_v54 = vld [vmem:[%s6519_s1 + $0x110] sm:$0xff] }
  0x34   : > { %876 = vmatpush.bf16.msrb.mxu2 %v4919_v59  ;;  %714 = vmatpush.bf16.msrb.mxu1 %v4943_v60  ;;  %v464_v59 = vrot.slane %v462_v55, 1  ;;  %v5455_v60 = vor.u32 %v4909_v57, %v3990_v56 }
  0x35   : > { %1681 = vmatpush.bf16.msrb.mxu3 %v4989_v46 }
  0x36   : > { %v498_v19 = vshrl.u32 %v5455_v60, 16 }
  0x38   : > { %877 = vmatpush.bf16.msrb.mxu2 %v4918_v62  ;;  %715 = vmatpush.bf16.msrb.mxu1 %v4942_v63  ;;  %v486_v62 = vshll.u32 %v5455_v60, 16  ;;  %v465_v63 = vsel %vm425_vm0, %v460_v58, %v464_v59 }
  0x39   : > { %1682 = vmatpush.bf16.msrb.mxu3 %v4988_v1  ;;  %v5547_v1 = vld [vmem:[%s5280_s18 + $0x8] sm:$0xee] }
  0x3b   : > { %702 = vmatmul.bf16.gmra.mxu1 %v537_v10 }
  0x3c   : > { %878 = vmatpush.bf16.msrb.mxu2 %v4917_v4  ;;  %716 = vmatpush.bf16.msrb.mxu1 %v4941_v5  ;;  %v488_v4 = vrot.slane %v486_v62, 1  ;;  %v4906_v5 = vld [vmem:[%s5280_s18 + $0x34] sm:$0xf]  ;;  %v408_v62 = vunpack.c.h.b16 %v5289_v8 }
  0x3d   : > { %677 = vmatmul.bf16.gmra.mxu0 %v457_v20  ;;  %v3987_v10 = vor.u32 %v4906_v5, %v3984_v6  ;;  %v1035_v5 = vunpack.c.l.b16 %v5547_v1  ;;  %v4968_v6 = vld [vmem:[%s6519_s1 + $0x140] sm:$0xff] }
  0x3e   : > { %935 = vmatmul.bf16.gmra.mxu3 %v3971_v23  ;;  %v4987_v23 = vld [vmem:[%s6519_s1 + $0x1d8] sm:$0xff] }
  0x3f   : > { %v478_v16 = vshll.u32 %v3987_v10, 16  ;;  %1683 = vmatpush.bf16.msrb.mxu3 %v4987_v23 }
  0x40   : > { %879 = vmatpush.bf16.msrb.mxu2 %v4916_v11  ;;  %717 = vmatpush.bf16.msrb.mxu1 %v4940_v17  ;;  %v489_v11 = vsel %vm425_vm0, %v484_v2, %v488_v4  ;;  %v476_v17 = vor.u32 %v474_v14, %v464_v59  ;;  %v5550_v2 = vld [vmem:[%s5280_s18 + $0x10] sm:$0xff] }
  0x41   : > { %v480_v18 = vrot.slane %v478_v16, 1  ;;  %v1037_v8 = vunpack.c.l.b16 %v5550_v2 }
  0x43   : > { %v481_v20 = vsel %vm425_vm0, %v476_v17, %v480_v18 }
  0x44   : > { %880 = vmatpush.bf16.msrb.mxu2 %v4915_v24  ;;  %718 = vmatpush.bf16.msrb.mxu1 %v4939_v25  ;;  %v500_v24 = vor.u32 %v498_v19, %v488_v4  ;;  %v4908_v25 = vld [vmem:[%s5280_s18 + $0x44] sm:$0xf]  ;;  %v4174_v4 = vld [vmem:[%s5280_s18 + $0x18] sm:$0xf] }
  0x45   : > { %v3995_v29 = vor.u32 %v4908_v25, %v3992_v27  ;;  %v4946_v25 = vld [vmem:[%s5280_s18 + $0x1c] sm:$0xf]  ;;  %v4176_v27 = vld [vmem:[%s5280_s18 + $0x20] sm:$0xf0] }
  0x48   : > { %881 = vmatpush.bf16.msrb.mxu2 %v4914_v30  ;;  %719 = vmatpush.bf16.msrb.mxu1 %v4938_v31  ;;  %v505_v30 = vsel %vm425_vm0, %v500_v24, %v5323_v26  ;;  %v490_v31 = vshrl.u32 %v3987_v10, 16  ;;  %v4986_v26 = vld [vmem:[%s6519_s1 + $0x1d0] sm:$0xff] }
  0x49   : > { %1684 = vmatpush.bf16.msrb.mxu3 %v4986_v26 }
  0x4b   : > { %882 = vmatmul.bf16.vlgmr.msrb.gmra.mxu2 %v5334_v34  ;;  %720 = vmatmul.bf16.vlgmr.msrb.gmra.mxu1 %v449_v45  ;;  %v4973_v34 = vld [vmem:[%s6519_s1 + $0x168] sm:$0xff]  ;;  %v506_v45 = vshrl.u32 %v3995_v29, 16 }
  0x4c   : > { %1631 = vmatpush.bf16.msra.mxu2 %v4983_v32  ;;  %1386 = vmatpush.bf16.msra.mxu1 %v4975_v33  ;;  %v494_v32 = vshll.u32 %v3995_v29, 16  ;;  %v492_v33 = vor.u32 %v490_v31, %v480_v18  ;;  %v1038_v18 = vunpack.c.h.b16 %v5550_v2  ;;  %v4179_v31 = vor.u32 %v4946_v25, %v4176_v27  ;;  %v4950_v25 = vld [vmem:[%s5280_s18 + $0x3c] sm:$0xf]  ;;  %v4192_v27 = vld [vmem:[%s5280_s18 + $0x40] sm:$0xf0] }
  0x4d   : > { %682 = vmatmul.bf16.gmra.mxu0 %v473_v53  ;;  %v4969_v53 = vld [vmem:[%s6519_s1 + $0x148] sm:$0xff] }
  0x4e   : > { %940 = vmatmul.bf16.gmra.mxu3 %v3979_v52  ;;  %v496_v35 = vrot.slane %v494_v32, 1  ;;  %v4008_v52 = vld [vmem:[%s5280_s18 + $0x68] sm:$0xf0] }
  0x50   : > { %1632 = vmatpush.bf16.msra.mxu2 %v4982_v41  ;;  %1387 = vmatpush.bf16.msra.mxu1 %v4974_v42  ;;  %v497_v36 = vsel %vm425_vm0, %v492_v33, %v496_v35  ;;  %v4910_v41 = vld [vmem:[%s5280_s18 + $0x54] sm:$0xf]  ;;  %v4000_v42 = vld [vmem:[%s5280_s18 + $0x58] sm:$0xf0]  ;;  %v508_v47 = vor.u32 %v506_v45, %v496_v35  ;;  %v4949_v45 = vld [vmem:[%s5280_s18 + $0x2c] sm:$0xf0] }
  0x51   : > { %v4003_v44 = vor.u32 %v4910_v41, %v4000_v42  ;;  %v1493_v41 = vrot.slane %v4179_v31, 2 }
  0x53   : > { %v510_v46 = vshll.u32 %v4003_v44, 16  ;;  %v522_v56 = vshrl.u32 %v4003_v44, 16 }
  0x54   : > { %1633 = vmatpush.bf16.msra.mxu2 %v4981_v51  ;;  %1388 = vmatpush.bf16.msra.mxu1 %v4973_v34  ;;  %v4985_v51 = vld [vmem:[%s6519_s1 + $0x1c8] sm:$0xff]  ;;  %v4912_v34 = vld [vmem:[%s5280_s18 + $0x64] sm:$0xf] }
  0x55   : > { %v512_v48 = vrot.slane %v510_v46, 1  ;;  %1685 = vmatpush.bf16.msrb.mxu3 %v4985_v51  ;;  %v4011_v55 = vor.u32 %v4912_v34, %v4008_v52  ;;  %v4184_v51 = vld [vmem:[%s5280_s18 + $0x30] sm:$0xf0] }
  0x57   : > { %v513_v49 = vsel %vm425_vm0, %v508_v47, %v512_v48  ;;  %v526_v57 = vshll.u32 %v4011_v55, 16  ;;  %v524_v58 = vor.u32 %v522_v56, %v512_v48  ;;  %v538_v14 = vshrl.u32 %v4011_v55, 16 }
  0x58   : > { %1634 = vmatpush.bf16.msra.mxu2 %v4980_v0  ;;  %1389 = vmatpush.bf16.msra.mxu1 %v4972_v9  ;;  %v4976_v0 = vld [vmem:[%s6519_s1 + $0x180] sm:$0xff]  ;;  %v5559_v9 = vpack.c.b16 %v408_v62, %v406_v61 }
  0x59   : > { %v528_v59 = vrot.slane %v526_v57, 1 }
  0x5a   : > { %v542_v24 = vshll.u32 %v5559_v9, 16  ;;  %v549_v56 = vshrl.u32 %v5559_v9, 16 }
  0x5b   : > { %887 = vmatmul.bf16.gmra.mxu2 %v5342_v40  ;;  %725 = vmatmul.bf16.gmra.mxu1 %v465_v63  ;;  %v4967_v40 = vld [vmem:[%s6519_s1 + $0x138] sm:$0xff]  ;;  %v4961_v63 = vld [vmem:[%s6519_s1 + $0x108] sm:$0xff] }
  0x5c   : > { %1338 = vmatpush.bf16.msrb.mxu0 %v4967_v40  ;;  %1635 = vmatpush.bf16.msra.mxu2 %v4979_v22  ;;  %v4947_v40 = vld [vmem:[%s5280_s18 + $0x1c] sm:$0xf0] }
  0x5d   : > { %687 = vmatmul.bf16.gmra.mxu0 %v489_v11  ;;  %v1067_v11 = vpack.c.b16 %v1037_v8, %v1035_v5  ;;  %v4190_v5 = vld [vmem:[%s5280_s18 + $0x38] sm:$0xf] }
  0x5e   : > { %945 = vmatmul.bf16.gmra.mxu3 %v3987_v10  ;;  %v5562_v10 = vld [vmem:[%s5280_s18 + $0x8] sm:$0xcc] }
  0x5f   : > { %v1085_v16 = vshrl.u32 %v1067_v11, 16  ;;  %v1088_v17 = vshll.u32 %v1067_v11, 16  ;;  %v1485_v19 = vunpack.c.h.b16 %v5562_v10  ;;  %v4951_v11 = vld [vmem:[%s5280_s18 + $0x3c] sm:$0xf0] }
  0x60   : > { %1339 = vmatpush.bf16.msrb.mxu0 %v4966_v13  ;;  %1636 = vmatpush.bf16.msra.mxu2 %v4978_v37  ;;  %v5566_v13 = vor.u32 %v4947_v40, %v4174_v4  ;;  %v544_v37 = vrot.slane %v542_v24, 1  ;;  %v1113_v40 = vshll.u32 %v4179_v31, 16 }
  0x61   : > { %v1487_v32 = vpack.c.b16 %v1038_v18, %v1485_v19 }
  0x62   : > { %v1093_v22 = vshrl.u32 %v5566_v13, 16  ;;  %v1096_v23 = vshll.u32 %v5566_v13, 16  ;;  %v1490_v2 = vrot.slane %v5566_v13, 2 }
  0x64   : > { %1340 = vmatpush.bf16.msrb.mxu0 %v4965_v28  ;;  %1637 = vmatpush.bf16.msra.mxu2 %v4977_v50  ;;  %v1090_v28 = vrot.slane %v1088_v17, 2 }
  0x68   : > { %1341 = vmatpush.bf16.msrb.mxu0 %v4964_v38  ;;  %1638 = vmatpush.bf16.msra.mxu2 %v4976_v0  ;;  %v1492_v38 = vrot.slane %v1487_v32, 2 }
  0x6b   : > { %892 = vmatmul.bf16.gmra.mxu2 %v5385_v3  ;;  %730 = vmatmul.bf16.gmra.mxu1 %v481_v20  ;;  %v4971_v3 = vld [vmem:[%s6519_s1 + $0x158] sm:$0xff]  ;;  %v4960_v20 = vld [vmem:[%s6519_s1 + $0x100] sm:$0xff] }
  0x6c   : > { %1390 = vmatpush.bf16.msra.mxu1 %v4971_v3  ;;  %1342 = vmatpush.bf16.msrb.mxu0 %v4963_v43  ;;  %v1087_v3 = vrot.slane %v1085_v16, 1  ;;  %v4182_v43 = vld [vmem:[%s5280_s18 + $0x28] sm:$0xf] }
  0x6d   : > { %692 = vmatmul.bf16.gmra.mxu0 %v505_v30  ;;  %v1098_v30 = vrot.slane %v1096_v23, 2  ;;  %v5586_v46 = vor.u32 %v4949_v45, %v4182_v43  ;;  %v4198_v43 = vld [vmem:[%s5280_s18 + $0x48] sm:$0xf] }
  0x6e   : > { %950 = vmatmul.bf16.gmra.mxu3 %v3995_v29  ;;  %v1095_v29 = vrot.slane %v1093_v22, 1  ;;  %v1091_v33 = vor.u32 %v1090_v28, %v1087_v3  ;;  %v1115_v22 = vrot.slane %v1113_v40, 2 }
  0x6f   : > { %v1119_v48 = vshrl.u32 %v5586_v46, 16 }
  0x70   : > { %1343 = vmatpush.bf16.msrb.mxu0 %v4962_v54  ;;  %v1099_v35 = vor.u32 %v1098_v30, %v1095_v29  ;;  %v1036_v54 = vunpack.c.h.b16 %v5547_v1  ;;  %v1484_v1 = vunpack.c.l.b16 %v5562_v10 }
  0x71   : > { %v1121_v34 = vrot.slane %v1119_v48, 1 }
  0x72   : > { %v1100_v26 = vsel %vm1083_vm1, %v1091_v33, %v1099_v35  ;;  %v1068_v61 = vpack.c.b16 %v1038_v18, %v1036_v54  ;;  %v1486_v16 = vpack.c.b16 %v1037_v8, %v1484_v1 }
  0x74   : > { %1344 = vmatpush.bf16.msrb.mxu0 %v4961_v63  ;;  %v551_v63 = vor.u32 %v549_v56, %v544_v37  ;;  %v1102_v4 = vshrl.u32 %v1068_v61, 16  ;;  %v1489_v29 = vrot.slane %v1486_v16, 2 }
  0x76   : > { %v1104_v18 = vrot.slane %v1102_v4, 1 }
  0x78   : > { %1345 = vmatpush.bf16.msrb.mxu0 %v4960_v20 }
  0x7b   : > { %897 = vmatmul.bf16.gmra.mxu2 %v5429_v39  ;;  %735 = vmatmul.bf16.gmra.mxu1 %v497_v36  ;;  %v4970_v39 = vld [vmem:[%s6519_s1 + $0x150] sm:$0xff]  ;;  %v540_v36 = vor.u32 %v538_v14, %v528_v59  ;;  %v5614_v14 = vor.u32 %v4951_v11, %v4190_v5 }
  0x7c   : > { %1391 = vmatpush.bf16.msra.mxu1 %v4970_v39 }
  0x7d   : > { %1346 = vmatmul.bf16.vlgmr.msrb.gmra.mxu0 %v1100_v26  ;;  %v545_v39 = vsel %vm425_vm0, %v540_v36, %v544_v37  ;;  %v1137_v10 = vshrl.u32 %v5614_v14, 16  ;;  %v1140_v17 = vshll.u32 %v5614_v14, 16  ;;  %v1491_v36 = vsel %vm1488_vm2, %v1489_v29, %v1490_v2 }
  0x7e   : > { %955 = vmatmul.bf16.gmra.mxu3 %v4003_v44  ;;  %v1494_v44 = vsel %vm1488_vm2, %v1492_v38, %v1493_v41 }
  0x7f   : > { %v1139_v3 = vrot.slane %v1137_v10, 1  ;;  %v1142_v28 = vrot.slane %v1140_v17, 2 }
  0x80   : > { %1392 = vmatpush.bf16.msra.mxu1 %v4969_v53 }
  0x81   : > { %v1143_v30 = vor.u32 %v1142_v28, %v1139_v3 }
  0x84   : > { %1393 = vmatpush.bf16.msra.mxu1 %v4968_v6  ;;  %v1110_v6 = vshrl.u32 %v4179_v31, 16  ;;  %v5627_v31 = vor.u32 %v4950_v25, %v4192_v27  ;;  %v4955_v27 = vld [vmem:[%s5280_s18 + $0x5c] sm:$0xf0] }
  0x86   : > { %v1112_v20 = vrot.slane %v1110_v6, 1  ;;  %v1501_v37 = vrot.slane %v5627_v31, 2 }
  0x88   : > { %v1116_v33 = vor.u32 %v1115_v22, %v1112_v20  ;;  %v4206_v20 = vld [vmem:[%s5280_s18 + $0x58] sm:$0xf] }
  0x89   : > { %v5668_v28 = vor.u32 %v4955_v27, %v4206_v20 }
  0x8b   : > { %902 = vmatmul.bf16.gmra.mxu2 %v5455_v60  ;;  %740 = vmatmul.bf16.gmra.mxu1 %v513_v49  ;;  %v529_v60 = vsel %vm425_vm0, %v524_v58, %v528_v59  ;;  %v1122_v49 = vshll.u32 %v5586_v46, 16  ;;  %v760_v58 = vpack.c.b16 %v5297_v12, %v5297_v12  ;;  %v1105_v12 = vshll.u32 %v1068_v61, 16  ;;  %v4200_v61 = vld [vmem:[%s5280_s18 + $0x50] sm:$0xf0] }
  0x8d   : > { %v1124_v52 = vrot.slane %v1122_v49, 2  ;;  %v1107_v19 = vrot.slane %v1105_v12, 2 }
  0x8e   : > { %960 = vmatmul.bf16.gmra.mxu3 %v4011_v55 }
  0x8f   : > { %v1125_v55 = vor.u32 %v1124_v52, %v1121_v34  ;;  %v1108_v32 = vor.u32 %v1107_v19, %v1104_v18 }
  0x91   : > { %v1126_v59 = vsel %vm1083_vm1, %v1099_v35, %v1125_v55  ;;  %v1144_v35 = vsel %vm1083_vm1, %v1125_v55, %v1143_v30  ;;  %v1117_v13 = vsel %vm1083_vm1, %v1108_v32, %v1116_v33  ;;  %v1176_v32 = vshll.u32 %v5668_v28, 16 }
  0x92   : > { %1351 = vmatmul.bf16.gmra.mxu0 %v1126_v59 }
  0x9b   : > { %907 = vmatmul.bf16.gmra.mxu2 %v5303_v15  ;;  %v4984_v15 = vld [vmem:[%s6519_s1 + $0x1c0] sm:$0xff]  ;;  %745 = vmatmul.bf16.gmra.mxu1 %v529_v60 }
  0x9c   : > { %1686 = vmatpush.bf16.msrb.mxu3 %v4984_v15 }
  0x9e   : > { %965 = vmatmul.bf16.gmra.mxu3 %v761_v7 }
  0xa2   : > { %1356 = vmatmul.bf16.gmra.mxu0 %v1144_v35 }
  0xa8   : > { %v5579_v42 = vpop.f32.mrf.mxu1 }
  0xaa   : > { %v673_v62 = vpop.f32.mrf.mxu0 }
  0xab   : > { %912 = vmatmul.bf16.gmra.mxu2 %v5314_v21  ;;  %750 = vmatmul.bf16.gmra.mxu1 %v545_v39  ;;  %v4948_v21 = vld [vmem:[%s5280_s18 + $0x2c] sm:$0xf] }
  0xac   : > { %v5600_v57 = vor.u32 %v4948_v21, %v4184_v51  ;;  %v4953_v21 = vld [vmem:[%s5280_s18 + $0x4c] sm:$0xf0] }
  0xad   : > { %v5640_v34 = vor.u32 %v4953_v21, %v4198_v43 }
  0xae   : > { %v5588_v47 = vpop.f32.mrf.mxu2  ;;  %1687 = vmatmul.bf16.vlgmr.msrb.gmra.mxu3 %v1494_v44  ;;  %v1497_v0 = vrot.slane %v5600_v57, 2  ;;  %v1128_v45 = vshrl.u32 %v5600_v57, 16  ;;  %v1131_v48 = vshll.u32 %v5600_v57, 16 }
  0xaf   : > { %v1155_v54 = vshrl.u32 %v5640_v34, 16  ;;  %v1158_v55 = vshll.u32 %v5640_v34, 16 }
  0xb0   : > { %v5592_v50 = vpop.f32.mrf.mxu1  ;;  %v1498_v9 = vsel %vm1488_vm2, %v1493_v41, %v1497_v0  ;;  %v1502_v49 = vsel %vm1488_vm2, %v1497_v0, %v1501_v37  ;;  %v1130_v56 = vrot.slane %v1128_v45, 1  ;;  %v1495_v0 = vrot.slane %v5586_v46, 2 }
  0xb1   : > { %v5596_v53 = vpop.f32.mrf.mxu3  ;;  %v1157_v57 = vrot.slane %v1155_v54, 1 }
  0xb2   : > { %v675_v24 = vpop.f32.mrf.mxu0  ;;  %v1496_v11 = vsel %vm1488_vm2, %v1490_v2, %v1495_v0 }
  0xb6   : > { %v710_v60 = vpop.f32.mrf.mxu2 }
  0xb7   : > { %v4952_v60 = vld [vmem:[%s5280_s18 + $0x4c] sm:$0xf] }
  0xb8   : > { %v5606_v15 = vpop.f32.mrf.mxu1  ;;  %v5652_v5 = vor.u32 %v4952_v60, %v4200_v61  ;;  %v4214_v61 = vld [vmem:[%s5280_s18 + $0x68] sm:$0xf] }
  0xb9   : > { %v5609_v7 = vpop.f32.mrf.mxu3 }
  0xba   : > { %v678_v39 = vpop.f32.mrf.mxu0  ;;  %v1505_v46 = vrot.slane %v5652_v5, 2 }
  0xbb   : > { %917 = vmatmul.bf16.gmra.mxu2 %v760_v58  ;;  %755 = vmatmul.bf16.gmra.mxu1 %v551_v63  ;;  %v1133_v58 = vrot.slane %v1131_v48, 2 }
  0xbc   : > { %v1506_v25 = vsel %vm1488_vm2, %v1501_v37, %v1505_v46  ;;  %v1178_v37 = vrot.slane %v1176_v32, 2 }
  0xbd   : > { %v1134_v6 = vor.u32 %v1133_v58, %v1130_v56 }
  0xbe   : > { %1692 = vmatmul.bf16.gmra.mxu3 %v1498_v9 }
  0xbf   : > { %v1135_v17 = vsel %vm1083_vm1, %v1116_v33, %v1134_v6 }
  0xc0   : > { %v5620_v23 = vpop.f32.mrf.mxu1 }
  0xc1   : > { %v5625_v8 = vpop.f32.mrf.mxu3 }
  0xc2   : > { %v680_v40 = vpop.f32.mrf.mxu0 }
  0xc8   : > { %v721_v26 = vpop.f32.mrf.mxu1 }
  0xc9   : > { %v722_v38 = vadd.f32 %v721_v26, %v673_v62  ;;  %v5633_v41 = vpop.f32.mrf.mxu3  ;;  %v1160_v62 = vrot.slane %v1158_v55, 2  ;;  %v4954_v26 = vld [vmem:[%s5280_s18 + $0x5c] sm:$0xf] }
  0xca   : > { %v683_v2 = vpop.f32.mrf.mxu0 }
  0xcb   : > { %1639 = vmatmul.bf16.vlgmr.msra.gmra.mxu2 %v1491_v36  ;;  %1394 = vmatmul.bf16.vlgmr.msra.gmra.mxu1 %v1117_v13  ;;  %v1161_v4 = vor.u32 %v1160_v62, %v1157_v57  ;;  %v1164_v62 = vshrl.u32 %v5652_v5, 16 }
  0xcd   : > { %v1162_v9 = vsel %vm1083_vm1, %v1143_v30, %v1161_v4  ;;  %v1173_v30 = vshrl.u32 %v5668_v28, 16 }
  0xce   : > { %v883_v44 = vpop.f32.mrf.mxu2  ;;  %1697 = vmatmul.bf16.gmra.mxu3 %v1502_v49  ;;  %1361 = vmatmul.bf16.gmra.mxu0 %v1162_v9 }
  0xcf   : > { %v884_v51 = vadd.f32 %v883_v44, %v722_v38  ;;  %v1175_v13 = vrot.slane %v1173_v30, 1 }
  0xd0   : > { %v723_v59 = vpop.f32.mrf.mxu1 }
  0xd1   : > { %v5643_v52 = vadd.f32 %v5596_v53, %v884_v51  ;;  %v724_v63 = vadd.f32 %v723_v59, %v675_v24  ;;  %v5650_v1 = vpop.f32.mrf.mxu3  ;;  %v1146_v24 = vshrl.u32 %v5627_v31, 16 }
  0xd2   : > { %v685_v58 = vpop.f32.mrf.mxu0 }
  0xd3   : > { %v1148_v33 = vrot.slane %v1146_v24, 1 }
  0xd6   : > { %v885_v53 = vpop.f32.mrf.mxu2 }
  0xd7   : > { %v886_v12 = vadd.f32 %v885_v53, %v724_v63 }
  0xd8   : > { %v726_v10 = vpop.f32.mrf.mxu1 }
  0xd9   : > { %v5657_v16 = vadd.f32 %v5609_v7, %v886_v12  ;;  %v727_v18 = vadd.f32 %v726_v10, %v678_v39  ;;  %v5661_v19 = vpop.f32.mrf.mxu3  ;;  %v1149_v7 = vshll.u32 %v5627_v31, 16  ;;  %v4208_v31 = vld [vmem:[%s5280_s18 + $0x60] sm:$0xf0]  ;;  %v1499_v39 = vrot.slane %v5614_v14, 2 }
  0xda   : > { %v5680_v45 = vor.u32 %v4954_v26, %v4208_v31  ;;  %v5005_v26 = vld [vmem:[%s6521_s3 + $0x38] sm:$0xff] }
  0xdb   : > { %1644 = vmatmul.bf16.gmra.mxu2 %v1496_v11  ;;  %1399 = vmatmul.bf16.gmra.mxu1 %v1135_v17  ;;  %v1151_v35 = vrot.slane %v1149_v7, 2  ;;  %v1500_v51 = vsel %vm1488_vm2, %v1495_v0, %v1499_v39  ;;  %v4957_v0 = vld [vmem:[%s5280_s18 + $0x6c] sm:$0xf0]  ;;  %v1166_v11 = vrot.slane %v1164_v62, 1  ;;  %v4216_v17 = vld [vmem:[%s5280_s18 + $0x70] sm:$0xf0] }
  0xdc   : > { %v1509_v14 = vrot.slane %v5680_v45, 2  ;;  %v5696_v53 = vor.u32 %v4957_v0, %v4214_v61  ;;  %v5035_v7 = vld [vmem:[%s6521_s3 + $0xf8] sm:$0xff]  ;;  %2097 = vmatpush.bf16.msrb.mxu1 %v5005_v26 }
  0xdd   : > { %v1152_v49 = vor.u32 %v1151_v35, %v1148_v33  ;;  %2468 = vmatpush.bf16.msra.mxu3 %v5035_v7 }
  0xde   : > { %v888_v22 = vpop.f32.mrf.mxu2  ;;  %1702 = vmatmul.bf16.gmra.mxu3 %v1506_v25  ;;  %v1510_v63 = vsel %vm1488_vm2, %v1505_v46, %v1509_v14  ;;  %v1194_v9 = vshll.u32 %v5696_v53, 16  ;;  %v4956_v46 = vld [vmem:[%s5280_s18 + $0x6c] sm:$0xf]  ;;  %v688_v25 = vpop.f32.mrf.mxu0 }
  0xdf   : > { %v889_v3 = vadd.f32 %v888_v22, %v727_v18  ;;  %v1153_v56 = vsel %vm1083_vm1, %v1134_v6, %v1152_v49  ;;  %v5027_v6 = vld [vmem:[%s6521_s3 + $0xb8] sm:$0xff] }
  0xe0   : > { %v728_v36 = vpop.f32.mrf.mxu1  ;;  %2323 = vmatpush.bf16.msrb.mxu2 %v5027_v6  ;;  %v1196_v20 = vrot.slane %v1194_v9, 2  ;;  %v5034_v9 = vld [vmem:[%s6521_s3 + $0xf0] sm:$0xff] }
  0xe1   : > { %v5671_v29 = vadd.f32 %v5625_v8, %v889_v3  ;;  %v729_v38 = vadd.f32 %v728_v36, %v680_v40  ;;  %v5678_v43 = vpop.f32.mrf.mxu3  ;;  %v1179_v8 = vor.u32 %v1178_v37, %v1175_v13  ;;  %v1191_v40 = vshrl.u32 %v5696_v53, 16  ;;  %v5013_v36 = vld [vmem:[%s6521_s3 + $0x78] sm:$0xff]  ;;  %2469 = vmatpush.bf16.msra.mxu3 %v5034_v9 }
  0xe2   : > { %1998 = vmatpush.bf16.msra.mxu0 %v5013_v36 }
  0xe3   : > { %v1180_v21 = vsel %vm1083_vm1, %v1161_v4, %v1179_v8  ;;  %v1193_v18 = vrot.slane %v1191_v40, 1 }
  0xe4   : > { %1366 = vmatmul.bf16.gmra.mxu0 %v1180_v21 }
  0xe5   : > { %v1197_v27 = vor.u32 %v1196_v20, %v1193_v18 }
  0xe6   : > { %v890_v44 = vpop.f32.mrf.mxu2 }
  0xe7   : > { %v891_v48 = vadd.f32 %v890_v44, %v729_v38  ;;  %v1198_v33 = vsel %vm1083_vm1, %v1179_v8, %v1197_v27  ;;  %v1182_v44 = vshrl.u32 %v5680_v45, 16 }
  0xe8   : > { %v731_v55 = vpop.f32.mrf.mxu1 }
  0xe9   : > { %v5685_v54 = vadd.f32 %v5633_v41, %v891_v48  ;;  %v732_v59 = vadd.f32 %v731_v55, %v683_v2  ;;  %v5689_v60 = vpop.f32.mrf.mxu3  ;;  %v1167_v41 = vshll.u32 %v5652_v5, 16  ;;  %v5714_v2 = vor.u32 %v4956_v46, %v4216_v17 }
  0xea   : > { %v1185_v48 = vshll.u32 %v5680_v45, 16 }
  0xeb   : > { %1649 = vmatmul.bf16.gmra.mxu2 %v1500_v51  ;;  %1404 = vmatmul.bf16.gmra.mxu1 %v1153_v56  ;;  %v1169_v5 = vrot.slane %v1167_v41, 2  ;;  %v1513_v31 = vrot.slane %v5714_v2, 2  ;;  %v4959_v51 = vld [vmem:[%s5280_s18 + $0x7c] sm:$0x30]  ;;  %v690_v56 = vpop.f32.mrf.mxu0  ;;  %v4958_v41 = vld [vmem:[%s5280_s18 + $0x7c] sm:$0xf] }
  0xec   : > { %v1187_v62 = vrot.slane %v1185_v48, 2  ;;  %v1200_v26 = vshrl.u32 %v5714_v2, 16 }
  0xed   : > { %v1170_v32 = vor.u32 %v1169_v5, %v1166_v11  ;;  %v1514_v21 = vsel %vm1488_vm2, %v1509_v14, %v1513_v31 }
  0xee   : > { %v893_v57 = vpop.f32.mrf.mxu2  ;;  %1707 = vmatmul.bf16.gmra.mxu3 %v1510_v63  ;;  %v4224_v63 = vld [vmem:[%s5280_s18 + $0x80] sm:$0x30] }
  0xef   : > { %v894_v4 = vadd.f32 %v893_v57, %v732_v59  ;;  %v1171_v37 = vsel %vm1083_vm1, %v1152_v49, %v1170_v32  ;;  %v5026_v59 = vld [vmem:[%s6521_s3 + $0xb0] sm:$0xff]  ;;  %v1184_v57 = vrot.slane %v1182_v44, 1 }
  0xf0   : > { %v733_v10 = vpop.f32.mrf.mxu1  ;;  %2324 = vmatpush.bf16.msrb.mxu2 %v5026_v59 }
  0xf1   : > { %v5699_v12 = vadd.f32 %v5650_v1, %v894_v4  ;;  %v734_v22 = vadd.f32 %v733_v10, %v685_v58  ;;  %v1503_v1 = vrot.slane %v5640_v34, 2  ;;  %v5709_v24 = vpop.f32.mrf.mxu3  ;;  %v4227_v10 = vor.u32 %v4958_v41, %v4224_v63 }
  0xf2   : > { %v1188_v17 = vor.u32 %v1187_v62, %v1184_v57 }
  0xf3   : > { %v1504_v35 = vsel %vm1488_vm2, %v1499_v39, %v1503_v1  ;;  %v4222_v39 = vld [vmem:[%s5280_s18 + $0x78] sm:$0xf]  ;;  %v693_v7 = vpop.f32.mrf.mxu0  ;;  %v1221_v41 = vshll.u32 %v4227_v10, 16 }
  0xf4   : > { %1371 = vmatmul.bf16.gmra.mxu0 %v1198_v33  ;;  %v5736_v49 = vor.u32 %v4959_v51, %v4222_v39  ;;  %v1202_v39 = vrot.slane %v1200_v26, 1  ;;  %v5011_v51 = vld [vmem:[%s6521_s3 + $0x68] sm:$0xff] }
  0xf6   : > { %v895_v3 = vpop.f32.mrf.mxu2  ;;  %v1209_v61 = vshrl.u32 %v5736_v49, 16  ;;  %v1212_v45 = vshll.u32 %v5736_v49, 16  ;;  %v1515_v9 = vrot.slane %v5736_v49, 2 }
  0xf7   : > { %v896_v30 = vadd.f32 %v895_v3, %v734_v22  ;;  %v1517_v3 = vrot.slane %v4227_v10, 2 }
  0xf8   : > { %v736_v13 = vpop.f32.mrf.mxu1  ;;  %v1211_v0 = vrot.slane %v1209_v61, 1  ;;  %v1214_v4 = vrot.slane %v1212_v45, 2 }
  0xf9   : > { %v5719_v34 = vadd.f32 %v5661_v19, %v896_v30  ;;  %v737_v38 = vadd.f32 %v736_v13, %v688_v25  ;;  %v5729_v19 = vpop.f32.mrf.mxu3  ;;  %v5004_v25 = vld [vmem:[%s6521_s3 + $0x30] sm:$0xff]  ;;  %v1203_v13 = vshll.u32 %v5714_v2, 16  ;;  %v5033_v2 = vld [vmem:[%s6521_s3 + $0xe8] sm:$0xff] }
  0xfa   : > { %v1215_v11 = vor.u32 %v1214_v4, %v1211_v0  ;;  %2098 = vmatpush.bf16.msrb.mxu1 %v5004_v25  ;;  %2470 = vmatpush.bf16.msra.mxu3 %v5033_v2  ;;  %v5024_v0 = vld [vmem:[%s6521_s3 + $0xa0] sm:$0xff] }
  0xfb   : > { %1654 = vmatmul.bf16.gmra.mxu2 %v1504_v35  ;;  %1409 = vmatmul.bf16.gmra.mxu1 %v1171_v37  ;;  %v1518_v35 = vsel %vm1488_vm2, %v1513_v31, %v1517_v3  ;;  %v1511_v31 = vrot.slane %v5696_v53, 2  ;;  %v5794_v45 = vpop.f32.mrf.mxu0 }
  0xfc   : > { %v1216_v18 = vsel %vm1083_vm1, %v1197_v27, %v1215_v11  ;;  %v1189_v27 = vsel %vm1083_vm1, %v1170_v32, %v1188_v17  ;;  %v5025_v32 = vld [vmem:[%s6521_s3 + $0xa8] sm:$0xff] }
  0xfd   : > { %2325 = vmatpush.bf16.msrb.mxu2 %v5025_v32 }
  0xfe   : > { %v898_v8 = vpop.f32.mrf.mxu2  ;;  %1712 = vmatmul.bf16.gmra.mxu3 %v1514_v21 }
  0xff   : > { %v899_v55 = vadd.f32 %v898_v8, %v737_v38  ;;  %v1205_v8 = vrot.slane %v1203_v13, 2  ;;  %v5001_v13 = vld [vmem:[%s6521_s3 + $0x18] sm:$0xff] }
 0x100   : > { %v738_v14 = vpop.f32.mrf.mxu1 }
 0x101   : > { %v5739_v58 = vadd.f32 %v5678_v43, %v899_v55  ;;  %v739_v6 = vadd.f32 %v738_v14, %v690_v56  ;;  %v1507_v43 = vrot.slane %v5668_v28, 2  ;;  %v956_v40 = vpop.f32.mrf.mxu3  ;;  %v5012_v28 = vld [vmem:[%s6521_s3 + $0x70] sm:$0xff]  ;;  %v5003_v55 = vld [vmem:[%s6521_s3 + $0x28] sm:$0xff]  ;;  %v1218_v14 = vshrl.u32 %v4227_v10, 16  ;;  %2326 = vmatpush.bf16.msrb.mxu2 %v5024_v0  ;;  %v5010_v10 = vld [vmem:[%s6521_s3 + $0x60] sm:$0xff] }
 0x102   : > { %1999 = vmatpush.bf16.msra.mxu0 %v5012_v28  ;;  %2099 = vmatpush.bf16.msrb.mxu1 %v5003_v55 }
 0x103   : > { %v1508_v20 = vsel %vm1488_vm2, %v1503_v1, %v1507_v43  ;;  %v1512_v21 = vsel %vm1488_vm2, %v1507_v43, %v1511_v31  ;;  %v5032_v43 = vld [vmem:[%s6521_s3 + $0xe0] sm:$0xff] }
 0x104   : > { %1376 = vmatmul.bf16.gmra.mxu0 %v1216_v18  ;;  %2471 = vmatpush.bf16.msra.mxu3 %v5032_v43  ;;  %v1516_v18 = vsel %vm1488_vm2, %v1511_v31, %v1515_v9  ;;  %v5000_v31 = vld [vmem:[%s6521_s3 + $0x10] sm:$0xff] }
 0x106   : > { %v900_v5 = vpop.f32.mrf.mxu2  ;;  %2000 = vmatpush.bf16.msra.mxu0 %v5011_v51  ;;  %v5009_v51 = vld [vmem:[%s6521_s3 + $0x58] sm:$0xff] }
 0x107   : > { %v901_v46 = vadd.f32 %v900_v5, %v739_v6  ;;  %v1223_v6 = vrot.slane %v1221_v41, 2  ;;  %v1347_v5 = vpop.f32.mrf.mxu0 }
 0x108   : > { %v741_v30 = vpop.f32.mrf.mxu1 }
 0x109   : > { %v5755_v22 = vadd.f32 %v5689_v60, %v901_v46  ;;  %v742_v1 = vadd.f32 %v741_v30, %v693_v7  ;;  %v5764_v33 = vpop.f32.mrf.mxu3  ;;  %v5002_v46 = vld [vmem:[%s6521_s3 + $0x20] sm:$0xff] }
 0x10a   : > { %2001 = vmatpush.bf16.msra.mxu0 %v5010_v10  ;;  %2100 = vmatpush.bf16.msrb.mxu1 %v5002_v46  ;;  %v5008_v10 = vld [vmem:[%s6521_s3 + $0x50] sm:$0xff] }
 0x10b   : > { %1659 = vmatmul.bf16.gmra.mxu2 %v1508_v20  ;;  %1414 = vmatmul.bf16.gmra.mxu1 %v1189_v27 }
 0x10e   : > { %v903_v60 = vpop.f32.mrf.mxu2  ;;  %1717 = vmatmul.bf16.gmra.mxu3 %v1518_v35  ;;  %v5023_v35 = vld [vmem:[%s6521_s3 + $0x98] sm:$0xff]  ;;  %2101 = vmatpush.bf16.msrb.mxu1 %v5001_v13 }
 0x10f   : > { %v904_v36 = vadd.f32 %v903_v60, %v742_v1  ;;  %2327 = vmatpush.bf16.msrb.mxu2 %v5023_v35  ;;  %2002 = vmatpush.bf16.msra.mxu0 %v5009_v51 }
 0x110   : > { %v5775_v38 = vpop.f32.mrf.mxu1 }
 0x111   : > { %v5770_v37 = vadd.f32 %v5709_v24, %v904_v36  ;;  %v961_v44 = vpop.f32.mrf.mxu3  ;;  %v1206_v24 = vor.u32 %v1205_v8, %v1202_v39 }
 0x112   : > { %2102 = vmatpush.bf16.msrb.mxu1 %v5000_v31 }
 0x113   : > { %v1207_v56 = vsel %vm1083_vm1, %v1188_v17, %v1206_v24  ;;  %2003 = vmatpush.bf16.msra.mxu0 %v5008_v10 }
 0x114   : > { %1381 = vmatmul.bf16.gmra.mxu0 %v1215_v11 }
 0x116   : > { %v5781_v48 = vpop.f32.mrf.mxu2 }
 0x118   : > { %v746_v53 = vpop.f32.mrf.mxu1 }
 0x119   : > { %v747_v59 = vadd.f32 %v746_v53, %v5579_v42  ;;  %v5792_v61 = vpop.f32.mrf.mxu3  ;;  %v1220_v42 = vrot.slane %v1218_v14, 1  ;;  %v5030_v14 = vld [vmem:[%s6521_s3 + $0xd0] sm:$0xff] }
 0x11b   : > { %1664 = vmatmul.bf16.gmra.mxu2 %v1512_v21  ;;  %1419 = vmatmul.bf16.gmra.mxu1 %v1207_v56  ;;  %v1224_v17 = vor.u32 %v1223_v6, %v1220_v42  ;;  %v5022_v56 = vld [vmem:[%s6521_s3 + $0x90] sm:$0xff] }
 0x11c   : > { %2328 = vmatpush.bf16.msrb.mxu2 %v5022_v56 }
 0x11d   : > { %v1225_v49 = vsel %vm1083_vm1, %v1206_v24, %v1224_v17 }
 0x11e   : > { %v908_v57 = vpop.f32.mrf.mxu2  ;;  %1722 = vmatmul.bf16.gmra.mxu3 %v1517_v3  ;;  %v1349_v3 = vpop.f32.mrf.mxu0 }
 0x11f   : > { %v909_v62 = vadd.f32 %v908_v57, %v747_v59  ;;  %v4998_v59 = vld [vmem:[%s6521_s3] sm:$0xff] }
 0x120   : > { %v5801_v4 = vpop.f32.mrf.mxu1 }
 0x121   : > { %v5796_v63 = vadd.f32 %v956_v40, %v909_v62  ;;  %v966_v11 = vpop.f32.mrf.mxu3 }
 0x126   : > { %v5807_v40 = vpop.f32.mrf.mxu2  ;;  %v5827_v26 = vpop.f32.mrf.mxu0 }
 0x128   : > { %v751_v20 = vpop.f32.mrf.mxu1 }
 0x129   : > { %v752_v7 = vadd.f32 %v751_v20, %v5606_v15  ;;  %v968_v28 = vpop.f32.mrf.mxu3  ;;  %v5031_v15 = vld [vmem:[%s6521_s3 + $0xd8] sm:$0xff] }
 0x12a   : > { %2472 = vmatpush.bf16.msra.mxu3 %v5031_v15 }
 0x12b   : > { %1669 = vmatmul.bf16.gmra.mxu2 %v1516_v18  ;;  %1424 = vmatmul.bf16.gmra.mxu1 %v1225_v49  ;;  %v5867_v49 = vld [vmem:[%s6520_s2] ss:$0 sm:$0xff] }
 0x12e   : > { %v913_v25 = vpop.f32.mrf.mxu2  ;;  %v1354_v2 = vpop.f32.mrf.mxu0  ;;  %2473 = vmatpush.bf16.msra.mxu3 %v5030_v14 }
 0x12f   : > { %v914_v30 = vadd.f32 %v913_v25, %v752_v7  ;;  %v5029_v25 = vld [vmem:[%s6521_s3 + $0xc8] sm:$0xff] }
 0x130   : > { %v5820_v1 = vpop.f32.mrf.mxu1 }
 0x131   : > { %v5818_v27 = vadd.f32 %v961_v44, %v914_v30  ;;  %v1688_v60 = vpop.f32.mrf.mxu3 }
 0x132   : > { %2474 = vmatpush.bf16.msra.mxu3 %v5029_v25 }
 0x136   : > { %v5825_v36 = vpop.f32.mrf.mxu2  ;;  %v5853_v62 = vpop.f32.mrf.mxu0 }
 0x138   : > { %v756_v32 = vpop.f32.mrf.mxu1 }
 0x139   : > { %v757_v39 = vadd.f32 %v756_v32, %v5588_v47  ;;  %v1690_v8 = vpop.f32.mrf.mxu3  ;;  %v4999_v47 = vld [vmem:[%s6521_s3 + $0x8] sm:$0xff] }
 0x13a   : > { %2103 = vmatpush.bf16.msrb.mxu1 %v4999_v47 }
 0x13b   : > { %1674 = vmatmul.bf16.gmra.mxu2 %v1515_v9  ;;  %1429 = vmatmul.bf16.gmra.mxu1 %v1224_v17 }
 0x13e   : > { %v918_v44 = vpop.f32.mrf.mxu2  ;;  %2104 = vmatpush.bf16.msrb.mxu1 %v4998_v59  ;;  %v5858_v43 = vpop.f32.mrf.mxu0 }
 0x13f   : > { %v919_v24 = vadd.f32 %v918_v44, %v757_v39 }
 0x140   : > { %v758_v55 = vpop.f32.mrf.mxu1 }
 0x141   : > { %v5839_v21 = vadd.f32 %v966_v11, %v919_v24  ;;  %v1693_v53 = vpop.f32.mrf.mxu3 }
 0x146   : > { %v920_v57 = vpop.f32.mrf.mxu2 }
 0x148   : > { %v1395_v41 = vpop.f32.mrf.mxu1 }
 0x149   : > { %v1695_v0 = vpop.f32.mrf.mxu3  ;;  %v1396_v42 = vadd.f32 %v1395_v41, %v1347_v5  ;;  %v5021_v5 = vld [vmem:[%s6521_s3 + $0x88] sm:$0xff]  ;;  %v5020_v41 = vld [vmem:[%s6521_s3 + $0x80] sm:$0xff] }
 0x14a   : > { %2329 = vmatpush.bf16.msrb.mxu2 %v5021_v5 }
 0x14b   : > { %v1434_v9 = vadd.f32 %v1396_v42, %v5643_v52  ;;  %v5873_v28 = vpop.f32.mrf.mxu0 }
 0x14e   : > { %v1640_v6 = vpop.f32.mrf.mxu2  ;;  %2330 = vmatpush.bf16.msrb.mxu2 %v5020_v41 }
 0x14f   : > { %v1689_v11 = vadd.f32 %v1688_v60, %v1640_v6 }
 0x150   : > { %v1397_v46 = vpop.f32.mrf.mxu1 }
 0x151   : > { %v1398_v17 = vadd.f32 %v1397_v46, %v1349_v3  ;;  %v1698_v18 = vpop.f32.mrf.mxu3  ;;  %v1727_v20 = vadd.f32 %v1689_v11, %v1434_v9  ;;  %v5007_v3 = vld [vmem:[%s6521_s3 + $0x48] sm:$0xff]  ;;  %v5028_v9 = vld [vmem:[%s6521_s3 + $0xc0] sm:$0xff] }
 0x152   : > { %2004 = vmatpush.bf16.msra.mxu0 %v5007_v3  ;;  %2475 = vmatpush.bf16.msra.mxu3 %v5028_v9 }
 0x153   : > { %v1435_v52 = vadd.f32 %v1398_v17, %v5657_v16  ;;  %v1746_v60 = vadd.f32 %v5867_v49, %v1727_v20  ;;  %v5006_v16 = vld [vmem:[%s6521_s3 + $0x40] sm:$0xff]  ;;  %v5887_v24 = vpop.f32.mrf.mxu0 }
 0x155   : > { %v1761_v39 = vmax.f32 %v1746_v60, 0.0 }
 0x156   : > { %v1642_v7 = vpop.f32.mrf.mxu2  ;;  %2005 = vmatpush.bf16.msra.mxu0 %v5006_v16 }
 0x157   : > { %v1691_v30 = vadd.f32 %v1690_v8, %v1642_v7 }
 0x158   : > { %v1400_v13 = vpop.f32.mrf.mxu1 }
 0x159   : > { %v1728_v35 = vadd.f32 %v1691_v30, %v1435_v52  ;;  %v1700_v32 = vpop.f32.mrf.mxu3  ;;  %v1401_v44 = vadd.f32 %v1400_v13, %v5827_v26 }
 0x15b   : > { %v1747_v15 = vadd.f32 %v5867_v49, %v1728_v35  ;;  %v1436_v47 = vadd.f32 %v1401_v44, %v5671_v29 }
 0x15d   : > { %v1762_v31 = vmax.f32 %v1747_v15, 0.0 }
 0x15e   : > { %v1645_v8 = vpop.f32.mrf.mxu2 }
 0x15f   : > { %v5083_v51 = vpack.c.bf16 %v1762_v31, %v1761_v39  ;;  %v1694_v55 = vadd.f32 %v1693_v53, %v1645_v8 }
 0x160   : > { %v1402_v56 = vpop.f32.mrf.mxu1 }
 0x161   : > { %5084 = vst [vmem:[#allocation2] sm:$0xff] %v5083_v51   ;;  %v1403_v59 = vadd.f32 %v1402_v56, %v1354_v2  ;;  %v1703_v57 = vpop.f32.mrf.mxu3  ;;  %v1729_v14 = vadd.f32 %v1694_v55, %v1436_v47  ;;  %v5894_v26 = vpop.f32.mrf.mxu0 }
 0x163   : > { %v1437_v42 = vadd.f32 %v1403_v59, %v5685_v54  ;;  %v1748_v2 = vadd.f32 %v5867_v49, %v1729_v14 }
 0x165   : > { %v1763_v54 = vmax.f32 %v1748_v2, 0.0 }
 0x166   : > { %v1647_v6 = vpop.f32.mrf.mxu2 }
 0x167   : > { %v1696_v11 = vadd.f32 %v1695_v0, %v1647_v6 }
 0x168   : > { %v4992_v29 = vld [vmem:[#allocation2] sm:$0xff]  ;;  %v1405_v46 = vpop.f32.mrf.mxu1 }
 0x169   : > { %v1730_v53 = vadd.f32 %v1696_v11, %v1437_v42  ;;  %2105 = vmatmul.bf16.vlgmr.msrb.gmra.mxu1 %v4992_v29  ;;  %v1705_v17 = vpop.f32.mrf.mxu3  ;;  %v1406_v5 = vadd.f32 %v1405_v46, %v5853_v62  ;;  %v5902_v7 = vpop.f32.mrf.mxu0  ;;  %v1891_v35 = vshll.u32 %v4992_v29, 16  ;;  %v2140_v11 = vld [vmem:[#allocation2 + $0x4] sm:$0xe] }
 0x16b   : > { %v1749_v10 = vadd.f32 %v5867_v49, %v1730_v53  ;;  %v1438_v0 = vadd.f32 %v1406_v5, %v5699_v12  ;;  %v1893_v8 = vrot.slane %v1891_v35, 1 }
 0x16d   : > { %v1764_v20 = vmax.f32 %v1749_v10, 0.0 }
 0x16e   : > { %v1650_v52 = vpop.f32.mrf.mxu2 }
 0x16f   : > { %v5088_v25 = vpack.c.bf16 %v1764_v20, %v1763_v54  ;;  %v1699_v3 = vadd.f32 %v1698_v18, %v1650_v52  ;;  %v1889_v18 = vshrl.u32 %v4992_v29, 16  ;;  %v2379_v29 = vld [vmem:[#allocation2 + $0x4] sm:$0xc]  ;;  %v2185_v20 = vunpack.c.l.b16 %v2140_v11 }
 0x170   : > { %v1407_v30 = vpop.f32.mrf.mxu1  ;;  %v2398_v52 = vunpack.c.l.b16 %v2379_v29 }
 0x171   : > { %5135 = vst [vmem:[#allocation2 + $0x8] sm:$0xff] %v5088_v25   ;;  %v1408_v60 = vadd.f32 %v1407_v30, %v5858_v43  ;;  %v5906_v16 = vpop.f32.mrf.mxu3  ;;  %v1731_v15 = vadd.f32 %v1699_v3, %v1438_v0  ;;  %v5909_v31 = vpop.f32.mrf.mxu0  ;;  %v1894_v59 = vor.u32 %v1893_v8, %v1889_v18 }
 0x173   : > { %v1439_v13 = vadd.f32 %v1408_v60, %v5719_v34  ;;  %v1750_v51 = vadd.f32 %v5867_v49, %v1731_v15 }
 0x175   : > { %v1765_v41 = vmax.f32 %v1750_v51, 0.0 }
 0x176   : > { %v1652_v39 = vpop.f32.mrf.mxu2 }
 0x177   : > { %v1701_v62 = vadd.f32 %v1700_v32, %v1652_v39 }
 0x178   : > { %v4993_v44 = vld [vmem:[#allocation2 + $0x8] sm:$0xff]  ;;  %v1410_v55 = vpop.f32.mrf.mxu1 }
 0x179   : > { %v1732_v47 = vadd.f32 %v1701_v62, %v1439_v13  ;;  %v1896_v12 = vshll.u32 %v4993_v44, 16  ;;  %2110 = vmatmul.bf16.gmra.mxu1 %v4993_v44  ;;  %v5913_v14 = vpop.f32.mrf.mxu3  ;;  %v2141_v34 = vld [vmem:[#allocation2 + $0x8] sm:$0xf]  ;;  %v1411_v32 = vadd.f32 %v1410_v55, %v5873_v28  ;;  %v5917_v10 = vpop.f32.mrf.mxu0 }
 0x17a   : > { %v2186_v53 = vunpack.c.l.b16 %v2141_v34 }
 0x17b   : > { %v1751_v43 = vadd.f32 %v5867_v49, %v1732_v47  ;;  %v1898_v56 = vrot.slane %v1896_v12, 1  ;;  %v1440_v46 = vadd.f32 %v1411_v32, %v5739_v58  ;;  %v1900_v47 = vshrl.u32 %v4993_v44, 16 }
 0x17c   : > { %v2199_v25 = vpack.c.b16 %v2186_v53, %v2185_v20  ;;  %v2399_v30 = vpack.c.b16 %v2186_v53, %v2398_v52 }
 0x17d   : > { %v1766_v42 = vmax.f32 %v1751_v43, 0.0  ;;  %v1899_v9 = vsel %vm425_vm0, %v1894_v59, %v1898_v56  ;;  %v1902_v44 = vor.u32 %v1900_v47, %v1898_v56  ;;  %v749_v47 = vadd.f32 %v5801_v4, %v5592_v50 }
 0x17e   : > { %v1655_v6 = vpop.f32.mrf.mxu2  ;;  %2006 = vmatmul.bf16.vlgmr.msra.gmra.mxu0 %v1899_v9  ;;  %v2207_v13 = vshrl.u32 %v2199_v25, 16  ;;  %v2210_v39 = vshll.u32 %v2199_v25, 16  ;;  %v2400_v51 = vrot.slane %v2399_v30, 2 }
 0x17f   : > { %v5093_v2 = vpack.c.bf16 %v1766_v42, %v1765_v41  ;;  %v1704_v54 = vadd.f32 %v1703_v57, %v1655_v6 }
 0x180   : > { %v1412_v5 = vpop.f32.mrf.mxu1  ;;  %v2209_v34 = vrot.slane %v2207_v13, 1  ;;  %v2212_v41 = vrot.slane %v2210_v39, 2 }
 0x181   : > { %5136 = vst [vmem:[#allocation2 + $0x10] sm:$0xff] %v5093_v2   ;;  %v1413_v28 = vadd.f32 %v1412_v5, %v5887_v24  ;;  %v5921_v0 = vpop.f32.mrf.mxu3  ;;  %v1733_v3 = vadd.f32 %v1704_v54, %v1440_v46 }
 0x182   : > { %v2213_v54 = vor.u32 %v2212_v41, %v2209_v34 }
 0x183   : > { %v1441_v60 = vadd.f32 %v1413_v28, %v5755_v22  ;;  %v1752_v57 = vadd.f32 %v5867_v49, %v1733_v3  ;;  %v5929_v22 = vpop.f32.mrf.mxu0 }
 0x185   : > { %v1767_v11 = vmax.f32 %v1752_v57, 0.0 }
 0x186   : > { %v1657_v35 = vpop.f32.mrf.mxu2 }
 0x187   : > { %v1706_v15 = vadd.f32 %v1705_v17, %v1657_v35  ;;  %v744_v17 = vadd.f32 %v5775_v38, %v5794_v45 }
 0x188   : > { %v5924_v62 = vld [vmem:[#allocation2 + $0x10] sm:$0xff]  ;;  %v1415_v59 = vpop.f32.mrf.mxu1 }
 0x189   : > { %v5014_v58 = vld [vmem:[#allocation2 + $0xc] sm:$0xff]  ;;  %v1734_v8 = vadd.f32 %v1706_v15, %v1441_v60  ;;  %2115 = vmatmul.bf16.gmra.mxu1 %v5924_v62  ;;  %v1904_v12 = vshll.u32 %v5924_v62, 16  ;;  %v5935_v9 = vpop.f32.mrf.mxu3  ;;  %v1416_v53 = vadd.f32 %v1415_v59, %v5894_v26  ;;  %v906_v5 = vadd.f32 %v5781_v48, %v744_v17 }
 0x18a   : > { %v2401_v24 = vrot.slane %v5014_v58, 2  ;;  %v2215_v18 = vshrl.u32 %v5014_v58, 16  ;;  %v2218_v43 = vshll.u32 %v5014_v58, 16  ;;  %v1908_v57 = vshrl.u32 %v5924_v62, 16 }
 0x18b   : > { %v1753_v55 = vadd.f32 %v5867_v49, %v1734_v8  ;;  %v1906_v32 = vrot.slane %v1904_v12, 1  ;;  %v1442_v56 = vadd.f32 %v1416_v53, %v5770_v37  ;;  %v954_v28 = vadd.f32 %v5729_v19, %v906_v5  ;;  %v5947_v60 = vpop.f32.mrf.mxu0 }
 0x18c   : > { %v2402_v42 = vsel %vm1488_vm2, %v2400_v51, %v2401_v24  ;;  %v2217_v6 = vrot.slane %v2215_v18, 1  ;;  %v2220_v29 = vrot.slane %v2218_v43, 2 }
 0x18d   : > { %v1768_v2 = vmax.f32 %v1753_v55, 0.0  ;;  %2476 = vmatmul.bf16.vlgmr.msra.gmra.mxu3 %v2402_v42  ;;  %v1907_v38 = vsel %vm425_vm0, %v1902_v44, %v1906_v32  ;;  %v1910_v43 = vor.u32 %v1908_v57, %v1906_v32 }
 0x18e   : > { %v1660_v46 = vpop.f32.mrf.mxu2  ;;  %2011 = vmatmul.bf16.gmra.mxu0 %v1907_v38  ;;  %v2221_v20 = vor.u32 %v2220_v29, %v2217_v6 }
 0x18f   : > { %v5098_v45 = vpack.c.bf16 %v1768_v2, %v1767_v11  ;;  %v1709_v52 = vadd.f32 %v5906_v16, %v1660_v46 }
 0x190   : > { %v2222_v25 = vsel %vm1083_vm1, %v2213_v54, %v2221_v20  ;;  %v1417_v26 = vpop.f32.mrf.mxu1 }
 0x191   : > { %5137 = vst [vmem:[#allocation2 + $0x18] sm:$0xff] %v5098_v45   ;;  %2331 = vmatmul.bf16.vlgmr.msrb.gmra.mxu2 %v2222_v25  ;;  %v1418_v3 = vadd.f32 %v1417_v26, %v5902_v7  ;;  %v5945_v30 = vpop.f32.mrf.mxu3  ;;  %v1735_v35 = vadd.f32 %v1709_v52, %v1442_v56 }
 0x193   : > { %v1443_v15 = vadd.f32 %v1418_v3, %v954_v28  ;;  %v1754_v16 = vadd.f32 %v5867_v49, %v1735_v35  ;;  %v5958_v34 = vpop.f32.mrf.mxu0 }
 0x195   : > { %v1769_v62 = vmax.f32 %v1754_v16, 0.0 }
 0x196   : > { %v1662_v48 = vpop.f32.mrf.mxu2 }
 0x197   : > { %v1711_v13 = vadd.f32 %v5913_v14, %v1662_v48 }
 0x198   : > { %v4995_v37 = vld [vmem:[#allocation2 + $0x18] sm:$0xff]  ;;  %v1420_v18 = vpop.f32.mrf.mxu1 }
 0x199   : > { %v5015_v39 = vld [vmem:[#allocation2 + $0x14] sm:$0xff]  ;;  %v1736_v58 = vadd.f32 %v1711_v13, %v1443_v15  ;;  %2120 = vmatmul.bf16.gmra.mxu1 %v4995_v37  ;;  %v1912_v8 = vshll.u32 %v4995_v37, 16  ;;  %v5956_v59 = vpop.f32.mrf.mxu3  ;;  %v1421_v42 = vadd.f32 %v1420_v18, %v5909_v31 }
 0x19a   : > { %v2403_v19 = vrot.slane %v5015_v39, 2  ;;  %v2224_v7 = vshrl.u32 %v5015_v39, 16  ;;  %v2227_v51 = vshll.u32 %v5015_v39, 16 }
 0x19b   : > { %v1755_v12 = vadd.f32 %v5867_v49, %v1736_v58  ;;  %v1914_v17 = vrot.slane %v1912_v8, 1  ;;  %v1444_v32 = vadd.f32 %v1421_v42, %v5796_v63  ;;  %v1384_v45 = vpop.f32.mrf.mxu0 }
 0x19c   : > { %v2404_v14 = vsel %vm1488_vm2, %v2401_v24, %v2403_v19  ;;  %v2226_v55 = vrot.slane %v2224_v7, 1  ;;  %v2229_v44 = vrot.slane %v2227_v51, 2  ;;  %v911_v24 = vadd.f32 %v5807_v40, %v749_v47 }
 0x19d   : > { %v1770_v41 = vmax.f32 %v1755_v12, 0.0  ;;  %2481 = vmatmul.bf16.gmra.mxu3 %v2404_v14  ;;  %v1915_v50 = vsel %vm425_vm0, %v1910_v43, %v1914_v17 }
 0x19e   : > { %v1665_v6 = vpop.f32.mrf.mxu2  ;;  %2016 = vmatmul.bf16.gmra.mxu0 %v1915_v50  ;;  %v2230_v11 = vor.u32 %v2229_v44, %v2226_v55  ;;  %v959_v31 = vadd.f32 %v5764_v33, %v911_v24 }
 0x19f   : > { %v5103_v4 = vpack.c.bf16 %v1770_v41, %v1769_v62  ;;  %v1714_v2 = vadd.f32 %v5921_v0, %v1665_v6 }
 0x1a0   : > { %v2231_v53 = vsel %vm1083_vm1, %v2221_v20, %v2230_v11  ;;  %v1422_v29 = vpop.f32.mrf.mxu1  ;;  %v1916_v20 = vshrl.u32 %v4995_v37, 16 }
 0x1a1   : > { %5138 = vst [vmem:[#allocation2 + $0x20] sm:$0xff] %v5103_v4   ;;  %2336 = vmatmul.bf16.gmra.mxu2 %v2231_v53  ;;  %v1423_v46 = vadd.f32 %v1422_v29, %v5917_v10  ;;  %v5968_v38 = vpop.f32.mrf.mxu3  ;;  %v1737_v54 = vadd.f32 %v1714_v2, %v1444_v32  ;;  %v754_v10 = vadd.f32 %v5820_v1, %v5620_v23 }
 0x1a3   : > { %v1445_v5 = vadd.f32 %v1423_v46, %v959_v31  ;;  %v1756_v0 = vadd.f32 %v5867_v49, %v1737_v54  ;;  %v916_v1 = vadd.f32 %v5825_v36, %v754_v10 }
 0x1a5   : > { %v1771_v58 = vmax.f32 %v1756_v0, 0.0  ;;  %v964_v43 = vadd.f32 %v5792_v61, %v916_v1 }
 0x1a6   : > { %v1667_v56 = vpop.f32.mrf.mxu2 }
 0x1a7   : > { %v1716_v40 = vadd.f32 %v5935_v9, %v1667_v56  ;;  %v1918_v9 = vor.u32 %v1916_v20, %v1914_v17 }
 0x1a8   : > { %v4996_v52 = vld [vmem:[#allocation2 + $0x20] sm:$0xff]  ;;  %v1425_v15 = vpop.f32.mrf.mxu1 }
 0x1a9   : > { %v5016_v63 = vld [vmem:[#allocation2 + $0x1c] sm:$0xff]  ;;  %v1738_v25 = vadd.f32 %v1716_v40, %v1445_v5  ;;  %2125 = vmatmul.bf16.gmra.mxu1 %v4996_v52  ;;  %v1920_v28 = vshll.u32 %v4996_v52, 16  ;;  %v1725_v16 = vpop.f32.mrf.mxu3  ;;  %v1426_v37 = vadd.f32 %v1425_v15, %v5929_v22  ;;  %v1924_v6 = vshrl.u32 %v4996_v52, 16 }
 0x1aa   : > { %v2405_v26 = vrot.slane %v5016_v63, 2  ;;  %v2233_v33 = vshrl.u32 %v5016_v63, 16  ;;  %v2236_v3 = vshll.u32 %v5016_v63, 16  ;;  %v5047_v22 = vld [vmem:[%s6523_s5 + $0x38] sm:$0xff] }
 0x1ab   : > { %v1757_v35 = vadd.f32 %v5867_v49, %v1738_v25  ;;  %v1922_v13 = vrot.slane %v1920_v28, 1  ;;  %2725 = vmatpush.bf16.msrb.mxu0 %v5047_v22 }
 0x1ac   : > { %v2406_v48 = vsel %vm1488_vm2, %v2403_v19, %v2405_v26  ;;  %v2235_v39 = vrot.slane %v2233_v33, 1  ;;  %v2238_v8 = vrot.slane %v2236_v3, 2  ;;  %v1446_v19 = vadd.f32 %v1426_v37, %v5818_v27 }
 0x1ad   : > { %v1772_v57 = vmax.f32 %v1757_v35, 0.0  ;;  %2486 = vmatmul.bf16.gmra.mxu3 %v2406_v48  ;;  %v1923_v51 = vsel %vm425_vm0, %v1918_v9, %v1922_v13  ;;  %v1926_v32 = vor.u32 %v1924_v6, %v1922_v13 }
 0x1ae   : > { %v1670_v7 = vpop.f32.mrf.mxu2  ;;  %2021 = vmatmul.bf16.gmra.mxu0 %v1923_v51  ;;  %v2239_v23 = vor.u32 %v2238_v8, %v2235_v39 }
 0x1af   : > { %v5108_v47 = vpack.c.bf16 %v1772_v57, %v1771_v58  ;;  %v1719_v12 = vadd.f32 %v5945_v30, %v1670_v7 }
 0x1b0   : > { %v2240_v18 = vsel %vm1083_vm1, %v2230_v11, %v2239_v23  ;;  %v1427_v14 = vpop.f32.mrf.mxu1 }
 0x1b1   : > { %5139 = vst [vmem:[#allocation2 + $0x28] sm:$0xff] %v5108_v47   ;;  %2341 = vmatmul.bf16.gmra.mxu2 %v2240_v18  ;;  %v1428_v17 = vadd.f32 %v1427_v14, %v5947_v60  ;;  %v1739_v55 = vadd.f32 %v1719_v12, %v1446_v19  ;;  %v5046_v18 = vld [vmem:[%s6523_s5 + $0x30] sm:$0xff] }
 0x1b2   : > { %2726 = vmatpush.bf16.msrb.mxu0 %v5046_v18 }
 0x1b3   : > { %v1447_v36 = vadd.f32 %v1428_v17, %v964_v43  ;;  %v1758_v42 = vadd.f32 %v5867_v49, %v1739_v55 }
 0x1b5   : > { %v1773_v31 = vmax.f32 %v1758_v42, 0.0 }
 0x1b6   : > { %v1672_v62 = vpop.f32.mrf.mxu2 }
 0x1b7   : > { %v1721_v27 = vadd.f32 %v5956_v59, %v1672_v62 }
 0x1b8   : > { %v4997_v41 = vld [vmem:[#allocation2 + $0x28] sm:$0xff]  ;;  %v1430_v60 = vpop.f32.mrf.mxu1 }
 0x1b9   : > { %v5017_v30 = vld [vmem:[#allocation2 + $0x24] sm:$0xff]  ;;  %v1740_v44 = vadd.f32 %v1721_v27, %v1447_v36  ;;  %2130 = vmatmul.bf16.gmra.mxu1 %v4997_v41  ;;  %v1928_v4 = vshll.u32 %v4997_v41, 16  ;;  %v1431_v2 = vadd.f32 %v1430_v60, %v5958_v34 }
 0x1ba   : > { %v2407_v50 = vrot.slane %v5017_v30, 2  ;;  %v2242_v11 = vshrl.u32 %v5017_v30, 16  ;;  %v2245_v24 = vshll.u32 %v5017_v30, 16 }
 0x1bb   : > { %v1759_v61 = vadd.f32 %v5867_v49, %v1740_v44  ;;  %v1930_v59 = vrot.slane %v1928_v4, 1  ;;  %v1448_v54 = vadd.f32 %v1431_v2, %v5839_v21  ;;  %v5045_v44 = vld [vmem:[%s6523_s5 + $0x28] sm:$0xff] }
 0x1bc   : > { %v2408_v53 = vsel %vm1488_vm2, %v2405_v26, %v2407_v50  ;;  %v2244_v29 = vrot.slane %v2242_v11, 1  ;;  %v2247_v45 = vrot.slane %v2245_v24, 2  ;;  %2727 = vmatpush.bf16.msrb.mxu0 %v5045_v44  ;;  %v5043_v24 = vld [vmem:[%s6523_s5 + $0x18] sm:$0xff]  ;;  %v5041_v2 = vld [vmem:[%s6523_s5 + $0x8] sm:$0xff] }
 0x1bd   : > { %v1774_v46 = vmax.f32 %v1759_v61, 0.0  ;;  %2491 = vmatmul.bf16.gmra.mxu3 %v2408_v53  ;;  %v1931_v56 = vsel %vm425_vm0, %v1926_v32, %v1930_v59  ;;  %2793 = vmatpush.bf16.msra.mxu1 %v5043_v24  ;;  %v5042_v61 = vld [vmem:[%s6523_s5 + $0x10] sm:$0xff]  ;;  %v5051_v53 = vld [vmem:[%s6523_s5 + $0x58] sm:$0xff] }
 0x1be   : > { %v1675_v5 = vpop.f32.mrf.mxu2  ;;  %2026 = vmatmul.bf16.gmra.mxu0 %v1931_v56  ;;  %v2248_v63 = vor.u32 %v2247_v45, %v2244_v29  ;;  %2891 = vmatpush.bf16.msra.mxu2 %v5051_v53  ;;  %v5040_v29 = vld [vmem:[%s6523_s5] sm:$0xff] }
 0x1bf   : > { %v5113_v40 = vpack.c.bf16 %v1774_v46, %v1773_v31  ;;  %v1724_v52 = vadd.f32 %v5968_v38, %v1675_v5 }
 0x1c0   : > { %v2249_v0 = vsel %vm1083_vm1, %v2239_v23, %v2248_v63  ;;  %v1432_v20 = vpop.f32.mrf.mxu1 }
 0x1c1   : > { %5140 = vst [vmem:[#allocation2 + $0x30] sm:$0xff] %v5113_v40   ;;  %v1741_v34 = vadd.f32 %v1724_v52, %v1448_v54  ;;  %2346 = vmatmul.bf16.gmra.mxu2 %v2249_v0  ;;  %2794 = vmatpush.bf16.msra.mxu1 %v5042_v61  ;;  %v5044_v54 = vld [vmem:[%s6523_s5 + $0x20] sm:$0xff]  ;;  %v5050_v0 = vld [vmem:[%s6523_s5 + $0x50] sm:$0xff] }
 0x1c2   : > { %2728 = vmatpush.bf16.msrb.mxu0 %v5044_v54  ;;  %2892 = vmatpush.bf16.msra.mxu2 %v5050_v0 }
 0x1c3   : > { %v1760_v25 = vadd.f32 %v5867_v49, %v1741_v34  ;;  %v1932_v49 = vshrl.u32 %v4997_v41, 16 }
 0x1c5   : > { %v1775_v26 = vmax.f32 %v1760_v25, 0.0  ;;  %v1934_v7 = vor.u32 %v1932_v49, %v1930_v59  ;;  %v5059_v59 = vld [vmem:[%s6523_s5 + $0x78] sm:$0xff]  ;;  %2795 = vmatpush.bf16.msra.mxu1 %v5041_v2 }
 0x1c6   : > { %v1677_v28 = vpop.f32.mrf.mxu2  ;;  %3075 = vmatpush.bf16.msrb.mxu3 %v5059_v59 }
 0x1c7   : > { %v1790_v33 = vpack.c.bf16 %v1775_v26, %v1775_v26  ;;  %v5049_v28 = vld [vmem:[%s6523_s5 + $0x48] sm:$0xff] }
 0x1c8   : > { %v1818_v21 = vld [vmem:[#allocation2 + $0x30] sm:$0xf]  ;;  %v1835_v3 = vld [vmem:[#allocation2 + $0x34] sm:$0x1]  ;;  %2893 = vmatpush.bf16.msra.mxu2 %v5049_v28 }
 0x1c9   : > { %v5018_v10 = vld [vmem:[#allocation2 + $0x2c] sm:$0xff]  ;;  %1805 = vst [vmem:[#allocation2 + $0x38] sm:$0xf] %v1790_v33  ;;  %v1879_v35 = vunpack.c.l.b16 %v1818_v21  ;;  %v1880_v15 = vunpack.c.l.b16 %v1835_v3  ;;  %v4530_v23 = vld [vmem:[#allocation2 + $0x34] sm:$0xf]  ;;  %2796 = vmatpush.bf16.msra.mxu1 %v5040_v29 }
 0x1ca   : > { %v2409_v38 = vrot.slane %v5018_v10, 2  ;;  %v2251_v48 = vshrl.u32 %v5018_v10, 16  ;;  %v2254_v9 = vshll.u32 %v5018_v10, 16 }
 0x1cb   : > { %v1887_v13 = vpack.c.b16 %v1880_v15, %v1879_v35  ;;  %v2041_v39 = vpack.c.b16 %v1879_v35, %v1879_v35 }
 0x1cc   : > { %v2410_v16 = vsel %vm1488_vm2, %v2407_v50, %v2409_v38  ;;  %v2253_v58 = vrot.slane %v2251_v48, 1  ;;  %v2256_v57 = vrot.slane %v2254_v9, 2  ;;  %v5048_v48 = vld [vmem:[%s6523_s5 + $0x40] sm:$0xff] }
 0x1cd   : > { %2135 = vmatmul.bf16.gmra.mxu1 %v2041_v39  ;;  %2496 = vmatmul.bf16.gmra.mxu3 %v2410_v16  ;;  %v1936_v37 = vshll.u32 %v1887_v13, 16  ;;  %v1940_v27 = vshrl.u32 %v1887_v13, 16  ;;  %v5058_v39 = vld [vmem:[%s6523_s5 + $0x70] sm:$0xff] }
 0x1ce   : > { %v2257_v8 = vor.u32 %v2256_v57, %v2253_v58  ;;  %2894 = vmatpush.bf16.msra.mxu2 %v5048_v48  ;;  %3076 = vmatpush.bf16.msrb.mxu3 %v5058_v39 }
 0x1cf   : > { %v1938_v51 = vrot.slane %v1936_v37, 1 }
 0x1d0   : > { %v2258_v47 = vsel %vm1083_vm1, %v2248_v63, %v2257_v8  ;;  %v5019_v1 = vld [vmem:[#allocation2 + $0x34] sm:$0x30]  ;;  %v6038_v63 = vld [vmem:[%s6522_s4] ss:$0 sm:$0xff] }
 0x1d1   : > { %v1939_v19 = vsel %vm425_vm0, %v1934_v7, %v1938_v51  ;;  %v4531_v12 = vor.u32 %v5019_v1, %v4530_v23  ;;  %2351 = vmatmul.bf16.gmra.mxu2 %v2258_v47  ;;  %v1942_v41 = vor.u32 %v1940_v27, %v1938_v51  ;;  %v5057_v47 = vld [vmem:[%s6523_s5 + $0x68] sm:$0xff] }
 0x1d2   : > { %2031 = vmatmul.bf16.gmra.mxu0 %v1939_v19  ;;  %3077 = vmatpush.bf16.msrb.mxu3 %v5057_v47 }
 0x1d3   : > { %v2260_v22 = vshrl.u32 %v4531_v12, 16  ;;  %v2263_v14 = vshll.u32 %v4531_v12, 16  ;;  %v2411_v43 = vrot.slane %v4531_v12, 2  ;;  %v5056_v12 = vld [vmem:[%s6523_s5 + $0x60] sm:$0xff] }
 0x1d5   : > { %v2262_v17 = vrot.slane %v2260_v22, 1  ;;  %v2265_v55 = vrot.slane %v2263_v14, 2  ;;  %v2412_v36 = vsel %vm1488_vm2, %v2409_v38, %v2411_v43 }
 0x1d6   : > { %3078 = vmatpush.bf16.msrb.mxu3 %v5056_v12 }
 0x1d7   : > { %v2266_v62 = vor.u32 %v2265_v55, %v2262_v17 }
 0x1d9   : > { %v2267_v30 = vsel %vm1083_vm1, %v2257_v8, %v2266_v62 }
 0x1dd   : > { %2501 = vmatmul.bf16.gmra.mxu3 %v2412_v36 }
 0x1e1   : > { %2356 = vmatmul.bf16.gmra.mxu2 %v2267_v30  ;;  %v5063_v30 = vld [vmem:[%s6523_s5 + $0x98] sm:$0xff] }
 0x1e2   : > { %2036 = vmatmul.bf16.gmra.mxu0 %v1942_v41 }
 0x1e3   : > { %3182 = vmatpush.bf16.msra.mxu0 %v5063_v30 }
 0x1e6   : > { %v2106_v42 = vpop.f32.mrf.mxu1 }
 0x1ed   : > { %2506 = vmatmul.bf16.gmra.mxu3 %v2411_v43 }
 0x1ee   : > { %v2108_v6 = vpop.f32.mrf.mxu1 }
 0x1f1   : > { %2361 = vmatmul.bf16.gmra.mxu2 %v2266_v62 }
 0x1f6   : > { %v2111_v50 = vpop.f32.mrf.mxu1 }
 0x1fb   : > { %v2007_v4 = vpop.f32.mrf.mxu0 }
 0x1fc   : > { %v2107_v5 = vadd.f32 %v2106_v42, %v2007_v4 }
 0x1fe   : > { %v6008_v11 = vpop.f32.mrf.mxu1 }
 0x203   : > { %v2009_v60 = vpop.f32.mrf.mxu0 }
 0x204   : > { %v2109_v33 = vadd.f32 %v2108_v6, %v2009_v60 }
 0x206   : > { %v6016_v32 = vpop.f32.mrf.mxu1 }
 0x20b   : > { %v2012_v31 = vpop.f32.mrf.mxu0 }
 0x20c   : > { %v2112_v58 = vadd.f32 %v2111_v50, %v2012_v31 }
 0x20e   : > { %v6030_v46 = vpop.f32.mrf.mxu1 }
 0x210   : > { %v2477_v45 = vpop.f32.mrf.mxu3 }
 0x213   : > { %v2014_v56 = vpop.f32.mrf.mxu0 }
 0x214   : > { %v2332_v40 = vpop.f32.mrf.mxu2  ;;  %v2114_v18 = vadd.f32 %v6008_v11, %v2014_v56 }
 0x215   : > { %v2366_v52 = vadd.f32 %v2332_v40, %v2107_v5 }
 0x216   : > { %v6040_v34 = vpop.f32.mrf.mxu1 }
 0x217   : > { %v2511_v25 = vadd.f32 %v2477_v45, %v2366_v52 }
 0x218   : > { %v2479_v20 = vpop.f32.mrf.mxu3 }
 0x219   : > { %v2528_v26 = vadd.f32 %v6038_v63, %v2511_v25 }
 0x21b   : > { %v2541_v21 = vmax.f32 %v2528_v26, 0.0  ;;  %v2017_v3 = vpop.f32.mrf.mxu0 }
 0x21c   : > { %v2334_v10 = vpop.f32.mrf.mxu2  ;;  %v2117_v44 = vadd.f32 %v6016_v32, %v2017_v3  ;;  %v5062_v3 = vld [vmem:[%s6523_s5 + $0x90] sm:$0xff] }
 0x21d   : > { %v2554_v35 = vpack.c.bf16 %v2541_v21, %v2541_v21  ;;  %v2367_v15 = vadd.f32 %v2334_v10, %v2109_v33  ;;  %3183 = vmatpush.bf16.msra.mxu0 %v5062_v3 }
 0x21e   : > { %v6049_v38 = vpop.f32.mrf.mxu1 }
 0x21f   : > { %2568 = vst.msk [vmem:[#allocation3] sm:$0xf] %vm2567_vm3, %v2554_v35  ;;  %v2512_v9 = vadd.f32 %v2479_v20, %v2367_v15 }
 0x220   : > { %v2482_v13 = vpop.f32.mrf.mxu3 }
 0x221   : > { %v2529_v16 = vadd.f32 %v6038_v63, %v2512_v9 }
 0x223   : > { %v2542_v57 = vmax.f32 %v2529_v16, 0.0  ;;  %v2019_v49 = vpop.f32.mrf.mxu0 }
 0x224   : > { %v2337_v37 = vpop.f32.mrf.mxu2  ;;  %v2119_v31 = vadd.f32 %v6030_v46, %v2019_v49 }
 0x225   : > { %v2555_v8 = vpack.c.bf16 %v2542_v57, %v2542_v57  ;;  %v2368_v7 = vadd.f32 %v2337_v37, %v2112_v58 }
 0x226   : > { %v6059_v51 = vpop.f32.mrf.mxu1  ;;  %v5142_v32 = vld [vmem:[#allocation3] sm:$0xe] }
 0x227   : > { %2569 = vst.msk [vmem:[#allocation3 + $0x4] sm:$0xf] %vm2567_vm3, %v2555_v8  ;;  %v2513_v23 = vadd.f32 %v2482_v13, %v2368_v7 }
 0x228   : > { %v2484_v1 = vpop.f32.mrf.mxu3 }
 0x229   : > { %v2530_v19 = vadd.f32 %v6038_v63, %v2513_v23 }
 0x22b   : > { %v2543_v22 = vmax.f32 %v2530_v19, 0.0  ;;  %v2022_v14 = vpop.f32.mrf.mxu0 }
 0x22c   : > { %v2339_v43 = vpop.f32.mrf.mxu2  ;;  %v2122_v49 = vadd.f32 %v6040_v34, %v2022_v14 }
 0x22d   : > { %v2556_v17 = vpack.c.bf16 %v2543_v22, %v2543_v22  ;;  %v2369_v55 = vadd.f32 %v2339_v43, %v2114_v18 }
 0x22e   : > { %v6070_v36 = vpop.f32.mrf.mxu1  ;;  %v5116_v62 = vld [vmem:[#allocation3] sm:$0xff]  }
 0x22f   : > { %2570 = vst.msk [vmem:[#allocation3 + $0x8] sm:$0xf] %vm2567_vm3, %v2556_v17  ;;  %v2514_v27 = vadd.f32 %v2484_v1, %v2369_v55  ;;  %4673 = vmatmul.msk.bf16.vlgmr.msra.gmra.mxu1 %vm2705_vm4, %v5116_v62  ;;  %v5141_v59 = vld [vmem:[#allocation3] sm:$0xf0]  ;;  %v2640_v29 = vshll.u32 %v5116_v62, 16  ;;  %v2638_v10 = vshrl.u32 %v5116_v62, 16 }
 0x230   : > { %v2487_v41 = vpop.f32.mrf.mxu3  ;;  %v5143_v56 = vor.u32 %v5142_v32, %v5141_v59  ;;  %v2931_v40 = vld [vmem:[#allocation3 + $0x4] sm:$0xe] }
 0x231   : > { %v2531_v42 = vadd.f32 %v6038_v63, %v2514_v27  ;;  %v2642_v25 = vrot.slane %v2640_v29, 1  ;;  %v2962_v46 = vunpack.c.l.b16 %v2931_v40 }
 0x232   : > { %v2837_v35 = vrot.slane %v5143_v56, 1 }
 0x233   : > { %v2544_v6 = vmax.f32 %v2531_v42, 0.0  ;;  %v6079_v50 = vpop.f32.mrf.mxu0  ;;  %v2643_v16 = vor.u32 %v2642_v25, %v2638_v10 }
 0x234   : > { %v2342_v4 = vpop.f32.mrf.mxu2  ;;  %v2124_v42 = vadd.f32 %v6049_v38, %v6079_v50 }
 0x235   : > { %v2557_v11 = vpack.c.bf16 %v2544_v6, %v2544_v6  ;;  %v2370_v24 = vadd.f32 %v2342_v4, %v2117_v44 }
 0x236   : > { %v6082_v60 = vpop.f32.mrf.mxu1 }
 0x237   : > { %2571 = vst.msk [vmem:[#allocation3 + $0xc] sm:$0xf] %vm2567_vm3, %v2557_v11  ;;  %v2515_v61 = vadd.f32 %v2487_v41, %v2370_v24 }
 0x238   : > { %v2489_v2 = vpop.f32.mrf.mxu3 }
 0x239   : > { %v2532_v53 = vadd.f32 %v6038_v63, %v2515_v61 }
 0x23b   : > { %v2545_v45 = vmax.f32 %v2532_v53, 0.0  ;;  %v6086_v54 = vpop.f32.mrf.mxu0 }
 0x23c   : > { %v2344_v5 = vpop.f32.mrf.mxu2 }
 0x23d   : > { %v2558_v52 = vpack.c.bf16 %v2545_v45, %v2545_v45  ;;  %v2371_v0 = vadd.f32 %v2344_v5, %v2119_v31  ;;  %v5067_v5 = vld [vmem:[%s6523_s5 + $0xb8] sm:$0xff] }
 0x23e   : > { %v6088_v20 = vld [vmem:[#allocation3 + $0x8] sm:$0xff]  ;;  %v6102_v13 = vpop.f32.mrf.mxu1  ;;  %3312 = vmatpush.bf16.msrb.mxu1 %v5067_v5 }
 0x23f   : > { %v6090_v26 = vld [vmem:[#allocation3 + $0x8] sm:$0xff]   ;;  %2572 = vst.msk [vmem:[#allocation3 + $0x10] sm:$0xf] %vm2567_vm3, %v2558_v52  ;;  %v2516_v28 = vadd.f32 %v2489_v2, %v2371_v0  ;;  %4674 = vmatmul.msk.bf16.gmra.mxu1 %vm2705_vm4, %v6088_v20  ;;  %v2838_v15 = vrot.slane %v6088_v20, 1  ;;  %v2645_v48 = vshll.u32 %v6088_v20, 16  ;;  %v2649_v50 = vshrl.u32 %v6088_v20, 16 }
 0x240   : > { %v2492_v33 = vpop.f32.mrf.mxu3  ;;  %v2963_v21 = vunpack.c.l.b16 %v6090_v26  ;;  %v3384_v52 = vunpack.c.h.b16 %v6090_v26  ;;  %v2127_v20 = vadd.f32 %v6059_v51, %v6086_v54 }
 0x241   : > { %v2533_v9 = vadd.f32 %v6038_v63, %v2516_v28  ;;  %v2839_v58 = vsel %vm2836_vm5, %v2837_v35, %v2838_v15  ;;  %v2647_v57 = vrot.slane %v2645_v48, 1 }
 0x242   : > { %v2973_v39 = vpack.c.b16 %v2963_v21, %v2962_v46  ;;  %4702 = vmatmul.msk.bf16.vlgmr.msra.gmra.mxu2 %vm2705_vm4, %v2839_v58  ;;  %v5061_v58 = vld [vmem:[%s6523_s5 + $0x88] sm:$0xff] }
 0x243   : > { %v2546_v37 = vmax.f32 %v2533_v9, 0.0  ;;  %v2648_v7 = vsel %vm425_vm0, %v2643_v16, %v2647_v57  ;;  %v6111_v12 = vpop.f32.mrf.mxu0  ;;  %v2651_v28 = vor.u32 %v2649_v50, %v2647_v57  ;;  %3184 = vmatpush.bf16.msra.mxu0 %v5061_v58 }
 0x244   : > { %v2347_v8 = vpop.f32.mrf.mxu2  ;;  %v2980_v47 = vshrl.u32 %v2973_v39, 16  ;;  %v2983_v23 = vshll.u32 %v2973_v39, 16  ;;  %4652 = vmatmul.msk.bf16.vlgmr.msrb.gmra.mxu0 %vm2705_vm4, %v2648_v7 }
 0x245   : > { %v2559_v1 = vpack.c.bf16 %v2546_v37, %v2546_v37  ;;  %v2372_v19 = vadd.f32 %v2347_v8, %v2122_v49  ;;  %v5065_v37 = vld [vmem:[%s6523_s5 + $0xa8] sm:$0xff] }
 0x246   : > { %v6113_v18 = vld [vmem:[#allocation3 + $0xc] sm:$0xff]  ;;  %v2982_v14 = vrot.slane %v2980_v47, 1  ;;  %v2985_v43 = vrot.slane %v2983_v23, 2 }
 0x247   : > { %2573 = vst.msk [vmem:[#allocation3 + $0x14] sm:$0xf] %vm2567_vm3, %v2559_v1  ;;  %v2517_v22 = vadd.f32 %v2492_v33, %v2372_v19  ;;  %v2988_v17 = vshrl.u32 %v6113_v18, 16  ;;  %v2991_v55 = vshll.u32 %v6113_v18, 16  ;;  %v3129_v47 = vrot.slane %v6113_v18, 2 }
 0x248   : > { %v2494_v34 = vpop.f32.mrf.mxu3  ;;  %v2986_v4 = vor.u32 %v2985_v43, %v2982_v14  ;;  %v2129_v19 = vadd.f32 %v6070_v36, %v6111_v12 }
 0x249   : > { %v2534_v62 = vadd.f32 %v6038_v63, %v2517_v22  ;;  %v2990_v41 = vrot.slane %v2988_v17, 1  ;;  %v2993_v30 = vrot.slane %v2991_v55, 2 }
 0x24a   : > { %v6119_v27 = vpop.f32.mrf.mxu1 }
 0x24b   : > { %v2547_v44 = vmax.f32 %v2534_v62, 0.0  ;;  %v2994_v11 = vor.u32 %v2993_v30, %v2990_v41  ;;  %v5064_v62 = vld [vmem:[%s6523_s5 + $0xa0] sm:$0xff] }
 0x24c   : > { %v2349_v6 = vpop.f32.mrf.mxu2 }
 0x24d   : > { %v2560_v24 = vpack.c.bf16 %v2547_v44, %v2547_v44  ;;  %v2373_v61 = vadd.f32 %v2349_v6, %v2124_v42  ;;  %v2995_v53 = vsel %vm1083_vm1, %v2986_v4, %v2994_v11 }
 0x24e   : > { %v6130_v59 = vld [vmem:[#allocation3 + $0x10] sm:$0xff]  ;;  %4747 = vmatmul.msk.bf16.vlgmr.msrb.gmra.mxu3 %vm2705_vm4, %v2995_v53 }
 0x24f   : > { %v6127_v2 = vpop.f32.mrf.mxu0  ;;  %v6132_v29 = vld [vmem:[#allocation3 + $0x10] sm:$0xff]   ;;  %2574 = vst.msk [vmem:[#allocation3 + $0x18] sm:$0xf] %vm2567_vm3, %v2560_v24  ;;  %v2518_v31 = vadd.f32 %v2494_v34, %v2373_v61  ;;  %4675 = vmatmul.msk.bf16.gmra.mxu1 %vm2705_vm4, %v6130_v59  ;;  %v2840_v38 = vrot.slane %v6130_v59, 1  ;;  %v2653_v32 = vshll.u32 %v6130_v59, 16  ;;  %v2657_v24 = vshrl.u32 %v6130_v59, 16 }
 0x250   : > { %v2497_v45 = vpop.f32.mrf.mxu3  ;;  %v5121_v0 = vunpack.c.l.b16 %v6132_v29  ;;  %v5071_v59 = vld [vmem:[%s6523_s5 + $0xd8] sm:$0xff]  ;;  %v3521_v26 = vshll.u32 %v6132_v29, 16 }
 0x251   : > { %v2535_v56 = vadd.f32 %v6038_v63, %v2518_v31  ;;  %v2841_v25 = vsel %vm2836_vm5, %v2838_v15, %v2840_v38  ;;  %v2655_v33 = vrot.slane %v2653_v32, 1  ;;  %v5066_v15 = vld [vmem:[%s6523_s5 + $0xb0] sm:$0xff]  ;;  %v2132_v32 = vadd.f32 %v6082_v60, %v6127_v2  ;;  %3455 = vmatpush.bf16.msrb.mxu2 %v5071_v59  ;;  %v5075_v60 = vld [vmem:[%s6523_s5 + $0xf8] sm:$0xff] }
 0x252   : > { %v2138_v40 = vpop.f32.mrf.mxu1  ;;  %4703 = vmatmul.msk.bf16.gmra.mxu2 %vm2705_vm4, %v2841_v25  ;;  %v6153_v3 = vpack.c.b16 %v5121_v0, %v3384_v52  ;;  %3313 = vmatpush.bf16.msrb.mxu1 %v5066_v15 }
 0x253   : > { %v2548_v46 = vmax.f32 %v2535_v56, 0.0  ;;  %v2656_v35 = vsel %vm425_vm0, %v2651_v28, %v2655_v33  ;;  %3605 = vmatpush.bf16.msra.mxu3 %v5075_v60 }
 0x254   : > { %v2352_v10 = vpop.f32.mrf.mxu2  ;;  %4653 = vmatmul.msk.bf16.gmra.mxu0 %vm2705_vm4, %v2656_v35 }
 0x255   : > { %v2561_v48 = vpack.c.bf16 %v2548_v46, %v2548_v46  ;;  %v2374_v9 = vadd.f32 %v2352_v10, %v2127_v20 }
 0x256   : > { %v6162_v51 = vld [vmem:[#allocation3 + $0x14] sm:$0xff]  ;;  %3314 = vmatpush.bf16.msrb.mxu1 %v5065_v37 }
 0x257   : > { %v6160_v39 = vpop.f32.mrf.mxu0  ;;  %2575 = vst.msk [vmem:[#allocation3 + $0x1c] sm:$0xf] %vm2567_vm3, %v2561_v48  ;;  %v2519_v54 = vadd.f32 %v2497_v45, %v2374_v9  ;;  %v2997_v57 = vshrl.u32 %v6162_v51, 16  ;;  %v3000_v49 = vshll.u32 %v6162_v51, 16  ;;  %v3131_v8 = vrot.slane %v6162_v51, 2  ;;  %v5069_v48 = vld [vmem:[%s6523_s5 + $0xc8] sm:$0xff] }
 0x258   : > { %v2499_v16 = vpop.f32.mrf.mxu3  ;;  %v2659_v45 = vor.u32 %v2657_v24, %v2655_v33  ;;  %v3402_v51 = vrot.slane %v6132_v29, 3 }
 0x259   : > { %v2536_v7 = vadd.f32 %v6038_v63, %v2519_v54  ;;  %v2999_v23 = vrot.slane %v2997_v57, 1  ;;  %v3002_v1 = vrot.slane %v3000_v49, 2  ;;  %v6185_v34 = vsel %vm1488_vm2, %v3129_v47, %v3131_v8 }
 0x25a   : > { %3315 = vmatpush.bf16.msrb.mxu1 %v5064_v62 }
 0x25b   : > { %v2549_v22 = vmax.f32 %v2536_v7, 0.0  ;;  %v3003_v43 = vor.u32 %v3002_v1, %v2999_v23  ;;  %v3115_v1 = vld [vmem:[#allocation3 + $0x4] sm:$0xc] }
 0x25c   : > { %v2354_v14 = vpop.f32.mrf.mxu2 }
 0x25d   : > { %v2562_v41 = vpack.c.bf16 %v2549_v22, %v2549_v22  ;;  %v2375_v30 = vadd.f32 %v2354_v14, %v2129_v19  ;;  %v3004_v44 = vsel %vm1083_vm1, %v2994_v11, %v3003_v43  ;;  %v5060_v11 = vld [vmem:[%s6523_s5 + $0x80] sm:$0xff] }
 0x25e   : > { %v6193_v6 = vld [vmem:[#allocation3 + $0x18] sm:$0xff]  ;;  %4748 = vmatmul.msk.bf16.gmra.mxu3 %vm2705_vm4, %v3004_v44  ;;  %3185 = vmatpush.bf16.msra.mxu0 %v5060_v11 }
 0x25f   : > { %v6190_v42 = vpop.f32.mrf.mxu0  ;;  %2576 = vst.msk [vmem:[#allocation3 + $0x20] sm:$0xf] %vm2567_vm3, %v2562_v41  ;;  %v2520_v36 = vadd.f32 %v2499_v16, %v2375_v30  ;;  %4676 = vmatmul.msk.bf16.gmra.mxu1 %vm2705_vm4, %v6193_v6  ;;  %v2842_v4 = vrot.slane %v6193_v6, 1  ;;  %v2661_v61 = vshll.u32 %v6193_v6, 16  ;;  %v2134_v16 = vadd.f32 %v6102_v13, %v6160_v39  ;;  %v5145_v18 = vld [vmem:[#allocation3 + $0x18] sm:$0xff]  }
 0x260   : > { %v2502_v12 = vpop.f32.mrf.mxu3  ;;  %v2665_v30 = vshrl.u32 %v6193_v6, 16  ;;  %v2137_v6 = vadd.f32 %v6119_v27, %v6190_v42  ;;  %v5079_v27 = vld [vmem:[%s6523_s5 + $0x118] sm:$0xff]  ;;  %v5073_v42 = vld [vmem:[%s6523_s5 + $0xe8] sm:$0xff] }
 0x261   : > { %v2537_v53 = vadd.f32 %v6038_v63, %v2520_v36  ;;  %v2843_v31 = vsel %vm2836_vm5, %v2840_v38, %v2842_v4  ;;  %v2663_v50 = vrot.slane %v2661_v61, 1  ;;  %v5070_v38 = vld [vmem:[%s6523_s5 + $0xd0] sm:$0xff] }
 0x262   : > { %4704 = vmatmul.msk.bf16.gmra.mxu2 %vm2705_vm4, %v2843_v31  ;;  %v5074_v31 = vld [vmem:[%s6523_s5 + $0xf0] sm:$0xff]  ;;  %3702 = vmatpush.bf16.msrb.mxu0 %v5079_v27  ;;  %v3352_v27 = vld [vmem:[#allocation3 + $0x8] sm:$0x8] }
 0x263   : > { %v2550_v5 = vmax.f32 %v2537_v53, 0.0  ;;  %v2664_v40 = vsel %vm425_vm0, %v2659_v45, %v2663_v50  ;;  %3456 = vmatpush.bf16.msrb.mxu2 %v5070_v38  ;;  %v2667_v61 = vor.u32 %v2665_v30, %v2663_v50  ;;  %3606 = vmatpush.bf16.msra.mxu3 %v5074_v31  ;;  %v3245_v38 = vrot.slane %v2991_v55, 3 }
 0x264   : > { %v2357_v56 = vpop.f32.mrf.mxu2  ;;  %4654 = vmatmul.msk.bf16.gmra.mxu0 %vm2705_vm4, %v2664_v40 }
 0x265   : > { %v2563_v0 = vpack.c.bf16 %v2550_v5, %v2550_v5  ;;  %v2376_v25 = vadd.f32 %v2357_v56, %v2132_v32 }
 0x266   : > { %v6221_v28 = vld [vmem:[#allocation3 + $0x1c] sm:$0xff] }
 0x267   : > { %v2039_v2 = vpop.f32.mrf.mxu0  ;;  %2577 = vst.msk [vmem:[#allocation3 + $0x24] sm:$0xf] %vm2567_vm3, %v2563_v0  ;;  %v2521_v33 = vadd.f32 %v2502_v12, %v2376_v25  ;;  %v3006_v46 = vshrl.u32 %v6221_v28, 16  ;;  %v3009_v10 = vshll.u32 %v6221_v28, 16  ;;  %v3133_v35 = vrot.slane %v6221_v28, 2  ;;  %3457 = vmatpush.bf16.msrb.mxu2 %v5069_v48  ;;  %3607 = vmatpush.bf16.msra.mxu3 %v5073_v42 }
 0x268   : > { %v2504_v20 = vpop.f32.mrf.mxu3  ;;  %v3244_v25 = vrot.slane %v2988_v17, 2  ;;  %v5072_v17 = vld [vmem:[%s6523_s5 + $0xe0] sm:$0xff] }
 0x269   : > { %v2538_v15 = vadd.f32 %v6038_v63, %v2521_v33  ;;  %v3008_v9 = vrot.slane %v3006_v46, 1  ;;  %v3011_v54 = vrot.slane %v3009_v10, 2  ;;  %v6240_v37 = vsel %vm1488_vm2, %v3131_v8, %v3133_v35 }
 0x26a   : > { %v3126_v8 = vunpack.c.l.b16 %v3115_v1 }
 0x26b   : > { %v2551_v58 = vmax.f32 %v2538_v15, 0.0  ;;  %v6242_v23 = vor.u32 %v3011_v54, %v3008_v9  ;;  %3608 = vmatpush.bf16.msra.mxu3 %v5072_v17 }
 0x26c   : > { %v2359_v7 = vpop.f32.mrf.mxu2  ;;  %v6261_v12 = vpack.c.b16 %v2963_v21, %v3126_v8 }
 0x26d   : > { %v2564_v19 = vpack.c.bf16 %v2551_v58, %v2551_v58  ;;  %v2377_v22 = vadd.f32 %v2359_v7, %v2134_v16  ;;  %v3013_v14 = vsel %vm1083_vm1, %v3003_v43, %v6242_v23  ;;  %v5068_v43 = vld [vmem:[%s6523_s5 + $0xc0] sm:$0xff]  ;;  %v3246_v7 = vor.u32 %v3245_v38, %v3244_v25 }
 0x26e   : > { %v6246_v62 = vld [vmem:[#allocation3 + $0x20] sm:$0xff]  ;;  %4749 = vmatmul.msk.bf16.gmra.mxu3 %vm2705_vm4, %v3013_v14  ;;  %3458 = vmatpush.bf16.msrb.mxu2 %v5068_v43  ;;  %v3240_v50 = vshll.u32 %v6261_v12, 16 }
 0x26f   : > { %2578 = vst.msk [vmem:[#allocation3 + $0x28] sm:$0xf] %vm2567_vm3, %v2564_v19  ;;  %v2522_v13 = vadd.f32 %v2504_v20, %v2377_v22  ;;  %4677 = vmatmul.msk.bf16.gmra.mxu1 %vm2705_vm4, %v6246_v62  ;;  %v2844_v41 = vrot.slane %v6246_v62, 1  ;;  %v2669_v44 = vshll.u32 %v6246_v62, 16  ;;  %v2673_v43 = vshrl.u32 %v6246_v62, 16 }
 0x270   : > { %v2507_v39 = vpop.f32.mrf.mxu3  ;;  %v3242_v9 = vrot.slane %v3240_v50, 3  ;;  %v3249_v50 = vrot.slane %v3000_v49, 3 }
 0x271   : > { %v2539_v36 = vadd.f32 %v6038_v63, %v2522_v13  ;;  %v2845_v24 = vsel %vm2836_vm5, %v2842_v4, %v2844_v41  ;;  %v2671_v11 = vrot.slane %v2669_v44, 1  ;;  %v3237_v4 = vshrl.u32 %v6261_v12, 16 }
 0x272   : > { %4705 = vmatmul.msk.bf16.gmra.mxu2 %vm2705_vm4, %v2845_v24 }
 0x273   : > { %v2552_v53 = vmax.f32 %v2539_v36, 0.0  ;;  %v2672_v21 = vsel %vm425_vm0, %v2667_v61, %v2671_v11  ;;  %v3239_v48 = vrot.slane %v3237_v4, 2  ;;  %v3248_v4 = vrot.slane %v2997_v57, 2 }
 0x274   : > { %v2362_v45 = vpop.f32.mrf.mxu2  ;;  %4655 = vmatmul.msk.bf16.gmra.mxu0 %vm2705_vm4, %v2672_v21  ;;  %v5078_v21 = vld [vmem:[%s6523_s5 + $0x110] sm:$0xff] }
 0x275   : > { %v2565_v32 = vpack.c.bf16 %v2552_v53, %v2552_v53  ;;  %v2378_v5 = vadd.f32 %v2362_v45, %v2137_v6  ;;  %v3243_v13 = vor.u32 %v3242_v9, %v3239_v48  ;;  %3703 = vmatpush.bf16.msrb.mxu0 %v5078_v21  ;;  %v3250_v38 = vor.u32 %v3249_v50, %v3248_v4 }
 0x276   : > { %v6282_v59 = vld [vmem:[#allocation3 + $0x24] sm:$0xff]  ;;  %v3128_v48 = vrot.slane %v6261_v12, 2  ;;  %v3518_v9 = vshrl.u32 %v6132_v29, 16  ;;  %v3253_v12 = vrot.slane %v3009_v10, 3  ;;  %v3527_v10 = vshrl.u32 %v5145_v18, 16 }
 0x277   : > { %v2599_v56 = vld [vmem:[#allocation3 + $0x28] sm:$0x1]  ;;  %2579 = vst.msk [vmem:[#allocation3 + $0x2c] sm:$0xf] %vm2567_vm3, %v2565_v32  ;;  %v2523_v40 = vadd.f32 %v2507_v39, %v2378_v5  ;;  %v3015_v2 = vshrl.u32 %v6282_v59, 16  ;;  %v3018_v33 = vshll.u32 %v6282_v59, 16  ;;  %v3247_v44 = vsel %vm3235_vm6, %v3243_v13, %v3246_v7 }
 0x278   : > { %v2509_v0 = vpop.f32.mrf.mxu3  ;;  %v2630_v60 = vunpack.c.l.b16 %v2599_v56  ;;  %v3135_v20 = vrot.slane %v6282_v59, 2  ;;  %v3251_v49 = vsel %vm3235_vm6, %v3246_v7, %v3250_v38  ;;  %v3404_v13 = vrot.slane %v5145_v18, 3 }
 0x279   : > { %v2540_v15 = vadd.f32 %v6038_v63, %v2523_v40  ;;  %v3017_v55 = vrot.slane %v3015_v2, 1  ;;  %v3020_v16 = vrot.slane %v3018_v33, 2  ;;  %v3383_v0 = vunpack.c.l.b16 %v3352_v27 }
 0x27a   : > { %v2636_v54 = vpack.c.b16 %v2630_v60, %v2630_v60  ;;  %v6303_v63 = vsel %vm1488_vm2, %v3133_v35, %v3135_v20  ;;  %v3405_v28 = vsel %vm3400_vm7, %v3402_v51, %v3404_v13 }
 0x27b   : > { %v2553_v58 = vmax.f32 %v2540_v15, 0.0  ;;  %v3021_v19 = vor.u32 %v3020_v16, %v3017_v55  ;;  %v3394_v60 = vpack.c.b16 %v3384_v52, %v3383_v0  ;;  %v3130_v52 = vsel %vm1488_vm2, %v3128_v48, %v3129_v47  ;;  %v5077_v47 = vld [vmem:[%s6523_s5 + $0x108] sm:$0xff] }
 0x27c   : > { %v2364_v1 = vpop.f32.mrf.mxu2  ;;  %v2677_v22 = vshll.u32 %v2636_v54, 16  ;;  %v2846_v8 = vrot.slane %v2636_v54, 1  ;;  %v3520_v55 = vrot.slane %v3518_v9, 3  ;;  %v3523_v16 = vrot.slane %v3521_v26, 4  ;;  %3704 = vmatpush.bf16.msrb.mxu0 %v5077_v47 }
 0x27d   : > { %v2566_v14 = vpack.c.bf16 %v2553_v58, %v2553_v58  ;;  %v3022_v39 = vsel %vm1083_vm1, %v6242_v23, %v3021_v19  ;;  %v2675_v23 = vor.u32 %v2673_v43, %v2671_v11  ;;  %v3510_v54 = vshrl.u32 %v3394_v60, 16 }
 0x27e   : > { %v2941_v30 = vld [vmem:[#allocation3 + $0x2c] sm:$0x3]  ;;  %4750 = vmatmul.msk.bf16.gmra.mxu3 %vm2705_vm4, %v3022_v39  ;;  %v2679_v36 = vrot.slane %v2677_v22, 1  ;;  %v2847_v61 = vsel %vm2836_vm5, %v2844_v41, %v2846_v8  ;;  %v3513_v17 = vshll.u32 %v3394_v60, 16  ;;  %v3252_v58 = vrot.slane %v3006_v46, 2 }
 0x27f   : > { %2580 = vst.msk [vmem:[#allocation3 + $0x30] sm:$0xf] %vm2567_vm3, %v2566_v14  ;;  %v2972_v35 = vunpack.c.l.b16 %v2941_v30  ;;  %4805 = vmatmul.msk.bf16.vlgmr.msrb.gmra.mxu1 %vm2705_vm4, %v3247_v44  ;;  %v6321_v32 = vld [vmem:[#allocation3 + $0x28] sm:$0xff]   ;;  %v3512_v7 = vrot.slane %v3510_v54, 3  ;;  %v3524_v1 = vor.u32 %v3523_v16, %v3520_v55  ;;  %v3530_v39 = vshll.u32 %v5145_v18, 16 }
 0x280   : > { %v2680_v31 = vsel %vm425_vm0, %v2675_v23, %v2679_v36  ;;  %v5134_v56 = vunpack.c.h.b16 %v6321_v32  ;;  %v3515_v29 = vrot.slane %v3513_v17, 4  ;;  %v3529_v8 = vrot.slane %v3527_v10, 3  ;;  %v3222_v43 = vld [vmem:[#allocation3 + $0x2c] sm:$0x7]  ;;  %vm6467_vm0 = vmor %vm3785_vm14, %vm3786_vm15 }
 0x281   : > { %v2978_v24 = vpack.c.b16 %v2972_v35, %v2972_v35  ;;  %v3532_v30 = vrot.slane %v3530_v39, 4  ;;  %v3256_v44 = vrot.slane %v3015_v2, 2  ;;  %v3257_v35 = vrot.slane %v3018_v33, 3  ;;  %v5076_v2 = vld [vmem:[%s6523_s5 + $0x100] sm:$0xff] }
 0x282   : > { %4706 = vmatmul.msk.bf16.gmra.mxu2 %vm2705_vm4, %v2847_v61  ;;  %v3516_v22 = vor.u32 %v3515_v29, %v3512_v7  ;;  %v5146_v61 = vld [vmem:[#allocation3 + $0x20] sm:$0xff]   ;;  %v3233_v23 = vunpack.c.l.b16 %v3222_v43  ;;  %3705 = vmatpush.bf16.msrb.mxu0 %v5076_v2  ;;  %vm3818_vm5 = vsmask.f32 7946  ;;  %vm3857_vm14 = vsmask.f32 256 }
 0x283   : > { %v3024_v6 = vshrl.u32 %v2978_v24, 16  ;;  %v3027_v53 = vshll.u32 %v2978_v24, 16  ;;  %v3137_v45 = vrot.slane %v2978_v24, 2  ;;  %v3533_v36 = vor.u32 %v3532_v30, %v3529_v8 }
 0x284   : > { %4656 = vmatmul.msk.bf16.gmra.mxu0 %vm2705_vm4, %v2680_v31  ;;  %v3525_v14 = vsel %vm3508_vm8, %v3516_v22, %v3524_v1  ;;  %v3258_v24 = vor.u32 %v3257_v35, %v3256_v44  ;;  %v3536_v33 = vshrl.u32 %v5146_v61, 16  ;;  %v3539_v21 = vshll.u32 %v5146_v61, 16 }
 0x285   : > { %v3026_v5 = vrot.slane %v3024_v6, 1  ;;  %v3029_v62 = vrot.slane %v3027_v53, 2  ;;  %v6324_v41 = vsel %vm1488_vm2, %v3135_v20, %v3137_v45  ;;  %v3401_v20 = vrot.slane %v3394_v60, 3 }
 0x286   : > { %v3495_v11 = vld [vmem:[#allocation3 + $0x30] sm:$0xf]  ;;  %v3534_v6 = vsel %vm3508_vm8, %v3524_v1, %v3533_v36  ;;  %v3406_v53 = vrot.slane %v5146_v61, 3  ;;  %v3234_v45 = vpack.c.b16 %v3233_v23, %v3233_v23  ;;  %v3541_v4 = vrot.slane %v3539_v21, 4 }
 0x287   : > { %v6330_v42 = vunpack.c.l.b16 %v3495_v11  ;;  %v3030_v40 = vor.u32 %v3029_v62, %v3026_v5  ;;  %v3403_v15 = vsel %vm3400_vm7, %v3401_v20, %v3402_v51  ;;  %v3538_v11 = vrot.slane %v3536_v33, 3  ;;  %v3362_v9 = vld [vmem:[#allocation3 + $0x30] sm:$0x7] }
 0x288   : > { %v3407_v59 = vsel %vm3400_vm7, %v3404_v13, %v3406_v53  ;;  %v3261_v5 = vshrl.u32 %v3234_v45, 16  ;;  %v3264_v62 = vshll.u32 %v3234_v45, 16  ;;  %v3408_v60 = vrot.slane %v6321_v32, 3 }
 0x289   : > { %v6334_v25 = vpack.c.b16 %v6330_v42, %v5134_v56  ;;  %v3031_v57 = vsel %vm1083_vm1, %v3021_v19, %v3030_v40  ;;  %v3254_v19 = vor.u32 %v3253_v12, %v3252_v58  ;;  %v3542_v40 = vor.u32 %v3541_v4, %v3538_v11 }
 0x28a   : > { %v3263_v50 = vrot.slane %v3261_v5, 2  ;;  %v3266_v27 = vrot.slane %v3264_v62, 3  ;;  %v3548_v20 = vshll.u32 %v6321_v32, 16  ;;  %v3393_v17 = vunpack.c.l.b16 %v3362_v9 }
 0x28b   : > { %v3255_v46 = vsel %vm3235_vm6, %v3250_v38, %v3254_v19  ;;  %v3543_v38 = vsel %vm3508_vm8, %v3533_v36, %v3542_v40  ;;  %v3507_v18 = vpack.c.b16 %v6330_v42, %v6330_v42  ;;  %vm3800_vm1 = vcmask 518144  }
 0x28c   : > { %v3267_v0 = vor.u32 %v3266_v27, %v3263_v50  ;;  %v3550_v54 = vrot.slane %v3548_v20, 4  ;;  %v3399_v12 = vpack.c.b16 %v3393_v17, %v3393_v17  ;;  %vm3806_vm2 = vsmask.f32 2304 }
 0x28d   : > { %v3554_v13 = vshrl.u32 %v3507_v18, 16 }
 0x28e   : > { %4751 = vmatmul.msk.bf16.gmra.mxu3 %vm2705_vm4, %v3031_v57  ;;  %v3268_v57 = vsel %vm3235_vm6, %v3258_v24, %v3267_v0 }
 0x28f   : > { %4806 = vmatmul.msk.bf16.gmra.mxu1 %vm2705_vm4, %v3251_v49  ;;  %v3545_v49 = vshrl.u32 %v6321_v32, 16  ;;  %v3556_v8 = vrot.slane %v3554_v13, 3 }
 0x292   : > { %4834 = vmatmul.msk.bf16.vlgmr.msrb.gmra.mxu2 %vm2705_vm4, %v3403_v15 }
 0x294   : > { %4776 = vmatmul.msk.bf16.vlgmr.msra.gmra.mxu0 %vm2705_vm4, %v3130_v52  ;;  %v3547_v52 = vrot.slane %v3545_v49, 3 }
 0x296   : > { %v3551_v58 = vor.u32 %v3550_v54, %v3547_v52 }
 0x298   : > { %v3552_v32 = vsel %vm3508_vm8, %v3542_v40, %v3551_v58 }
 0x29e   : > { %4863 = vmatmul.msk.bf16.vlgmr.msra.gmra.mxu3 %vm2705_vm4, %v3525_v14 }
 0x29f   : > { %4807 = vmatmul.msk.bf16.gmra.mxu1 %vm2705_vm4, %v3255_v46  ;;  %v3557_v46 = vshll.u32 %v3507_v18, 16 }
 0x2a1   : > { %v3559_v42 = vrot.slane %v3557_v46, 4  ;;  %v5168_v46 = vld [vmem:[#allocation3 + $0x24] sm:$0xff]  }
 0x2a2   : > { %4835 = vmatmul.msk.bf16.gmra.mxu2 %vm2705_vm4, %v3405_v28 }
 0x2a3   : > { %v3560_v36 = vor.u32 %v3559_v42, %v3556_v8 }
 0x2a4   : > { %4777 = vmatmul.msk.bf16.gmra.mxu0 %vm2705_vm4, %v6185_v34  ;;  %v3259_v34 = vsel %vm3235_vm6, %v3254_v19, %v3258_v24  ;;  %v3410_v19 = vrot.slane %v3399_v12, 3 }
 0x2a6   : > { %v3411_v14 = vsel %vm3400_vm7, %v3408_v60, %v3410_v19 }
 0x2ac   : > { %v2798_v31 = vpop.f32.mrf.mxu1 }
 0x2ae   : > { %4864 = vmatmul.msk.bf16.gmra.mxu3 %vm2705_vm4, %v3534_v6  ;;  %v3561_v6 = vsel %vm3508_vm8, %v3551_v58, %v3560_v36  ;;  %vm3823_vm8 = vcmask 517120  }
 0x2af   : > { %4808 = vmatmul.msk.bf16.gmra.mxu1 %vm2705_vm4, %v3259_v34 }
 0x2b2   : > { %4836 = vmatmul.msk.bf16.gmra.mxu2 %vm2705_vm4, %v3407_v59 }
 0x2b4   : > { %4778 = vmatmul.msk.bf16.gmra.mxu0 %vm2705_vm4, %v6240_v37  ;;  %v2800_v56 = vpop.f32.mrf.mxu1  ;;  %v3409_v37 = vsel %vm3400_vm7, %v3406_v53, %v3408_v60  ;;  %v5165_v60 = vld [vmem:[#allocation3 + $0x14] sm:$0xff]   ;;  %vm3772_vm7 = vcmask 516096  }
 0x2b5   : > { %vm3858_vm15 = vmand %vm3772_vm7, %vm3857_vm14 }
 0x2bc   : > { %v2803_v15 = vpop.f32.mrf.mxu1 }
 0x2be   : > { %4865 = vmatmul.msk.bf16.gmra.mxu3 %vm2705_vm4, %v3543_v38 }
 0x2bf   : > { %4809 = vmatmul.msk.bf16.gmra.mxu1 %vm2705_vm4, %v3268_v57 }
 0x2c1   : > { %v2730_v51 = vpop.f32.mrf.mxu0 }
 0x2c2   : > { %v2799_v48 = vadd.f32 %v2798_v31, %v2730_v51  ;;  %4837 = vmatmul.msk.bf16.gmra.mxu2 %vm2705_vm4, %v3409_v37 }
 0x2c4   : > { %4779 = vmatmul.msk.bf16.gmra.mxu0 %vm2705_vm4, %v6303_v63  ;;  %v2805_v29 = vpop.f32.mrf.mxu1 }
 0x2c5   : > { %v2896_v26 = vpop.f32.mrf.mxu2 }
 0x2c6   : > { %v2921_v55 = vadd.f32 %v2896_v26, %v2799_v48 }
 0x2c9   : > { %v2732_v16 = vpop.f32.mrf.mxu0 }
 0x2ca   : > { %v2801_v7 = vadd.f32 %v2800_v56, %v2732_v16  ;;  %v5167_v16 = vld [vmem:[#allocation3 + $0x1c] sm:$0xff]  }
 0x2cc   : > { %v2808_v30 = vpop.f32.mrf.mxu1 }
 0x2cd   : > { %v2898_v1 = vpop.f32.mrf.mxu2 }
 0x2ce   : > { %v2922_v22 = vadd.f32 %v2898_v1, %v2801_v7  ;;  %4866 = vmatmul.msk.bf16.gmra.mxu3 %vm2705_vm4, %v3552_v32 }
 0x2d1   : > { %v2735_v63 = vpop.f32.mrf.mxu0  ;;  %v3080_v47 = vpop.f32.mrf.mxu3 }
 0x2d2   : > { %v2804_v28 = vadd.f32 %v2803_v15, %v2735_v63  ;;  %v6398_v10 = vadd.f32 %v3080_v47, %v2921_v55  ;;  %4838 = vmatmul.msk.bf16.gmra.mxu2 %vm2705_vm4, %v3411_v14 }
 0x2d4   : > { %4780 = vmatmul.msk.bf16.gmra.mxu0 %vm2705_vm4, %v6324_v41  ;;  %v2810_v31 = vpop.f32.mrf.mxu1 }
 0x2d5   : > { %v2901_v39 = vpop.f32.mrf.mxu2 }
 0x2d6   : > { %v2923_v44 = vadd.f32 %v2901_v39, %v2804_v28 }
 0x2d9   : > { %v2737_v35 = vpop.f32.mrf.mxu0  ;;  %v3082_v43 = vpop.f32.mrf.mxu3 }
 0x2da   : > { %v2806_v24 = vadd.f32 %v2805_v29, %v2737_v35  ;;  %v3106_v61 = vadd.f32 %v3082_v43, %v2922_v22 }
 0x2dc   : > { %v2813_v62 = vpop.f32.mrf.mxu1 }
 0x2dd   : > { %v2903_v23 = vpop.f32.mrf.mxu2 }
 0x2de   : > { %v2924_v53 = vadd.f32 %v2903_v23, %v2806_v24  ;;  %4867 = vmatmul.msk.bf16.gmra.mxu3 %vm2705_vm4, %v3561_v6 }
 0x2e1   : > { %v2740_v34 = vpop.f32.mrf.mxu0  ;;  %v3085_v45 = vpop.f32.mrf.mxu3 }
 0x2e2   : > { %v2809_v41 = vadd.f32 %v2808_v30, %v2740_v34  ;;  %v3107_v2 = vadd.f32 %v3085_v45, %v2923_v44 }
 0x2e4   : > { %4892 = vmatmul.msk.bf16.vlgmr.msrb.gmra.mxu0 %vm2705_vm4, %v6153_v3  ;;  %v2815_v57 = vpop.f32.mrf.mxu1 }
 0x2e5   : > { %v2906_v59 = vpop.f32.mrf.mxu2 }
 0x2e6   : > { %v2925_v33 = vadd.f32 %v2906_v59, %v2809_v41 }
 0x2e9   : > { %v2742_v21 = vpop.f32.mrf.mxu0  ;;  %v3087_v5 = vpop.f32.mrf.mxu3 }
 0x2ea   : > { %v2811_v11 = vadd.f32 %v2810_v31, %v2742_v21  ;;  %v3108_v4 = vadd.f32 %v3087_v5, %v2924_v53 }
 0x2ec   : > { %v2818_v9 = vpop.f32.mrf.mxu1 }
 0x2ed   : > { %v2908_v50 = vpop.f32.mrf.mxu2 }
 0x2ee   : > { %v2926_v27 = vadd.f32 %v2908_v50, %v2811_v11 }
 0x2f1   : > { %v2745_v56 = vpop.f32.mrf.mxu0  ;;  %v3090_v40 = vpop.f32.mrf.mxu3 }
 0x2f2   : > { %v2814_v0 = vadd.f32 %v2813_v62, %v2745_v56  ;;  %v3109_v38 = vadd.f32 %v3090_v40, %v2925_v33 }
 0x2f4   : > { %4893 = vmatmul.msk.bf16.gmra.mxu0 %vm2705_vm4, %v5165_v60  ;;  %v2820_v7 = vpop.f32.mrf.mxu1 }
 0x2f5   : > { %v2911_v51 = vpop.f32.mrf.mxu2 }
 0x2f6   : > { %v2927_v37 = vadd.f32 %v2911_v51, %v2814_v0 }
 0x2f9   : > { %v2747_v3 = vpop.f32.mrf.mxu0  ;;  %v3092_v49 = vpop.f32.mrf.mxu3 }
 0x2fa   : > { %v2816_v20 = vadd.f32 %v2815_v57, %v2747_v3  ;;  %v3110_v15 = vadd.f32 %v3092_v49, %v2926_v27 }
 0x2fd   : > { %v2913_v48 = vpop.f32.mrf.mxu2 }
 0x2fe   : > { %v2928_v26 = vadd.f32 %v2913_v48, %v2816_v20 }
 0x301   : > { %v2750_v52 = vpop.f32.mrf.mxu0  ;;  %v3095_v54 = vpop.f32.mrf.mxu3 }
 0x302   : > { %v2819_v17 = vadd.f32 %v2818_v9, %v2750_v52  ;;  %v3111_v55 = vadd.f32 %v3095_v54, %v2927_v37 }
 0x304   : > { %4894 = vmatmul.msk.bf16.gmra.mxu0 %vm2705_vm4, %v5167_v16 }
 0x305   : > { %v2916_v58 = vpop.f32.mrf.mxu2 }
 0x306   : > { %v2929_v12 = vadd.f32 %v2916_v58, %v2819_v17 }
 0x309   : > { %v2752_v29 = vpop.f32.mrf.mxu0  ;;  %v3097_v1 = vpop.f32.mrf.mxu3 }
 0x30a   : > { %v2821_v32 = vadd.f32 %v2820_v7, %v2752_v29  ;;  %v3112_v19 = vadd.f32 %v3097_v1, %v2928_v26 }
 0x30d   : > { %v2918_v18 = vpop.f32.mrf.mxu2 }
 0x30e   : > { %v2930_v22 = vadd.f32 %v2918_v18, %v2821_v32 }
 0x311   : > { %v3100_v63 = vpop.f32.mrf.mxu3  ;;  %v3187_v47 = vpop.f32.mrf.mxu0 }
 0x312   : > { %v3113_v14 = vadd.f32 %v3100_v63, %v2929_v12  ;;  %v3212_v13 = vadd.f32 %v3187_v47, %v6398_v10 }
 0x314   : > { %4895 = vmatmul.msk.bf16.gmra.mxu0 %vm2705_vm4, %v5168_v46 }
 0x315   : > { %v3460_v31 = vpop.f32.mrf.mxu2 }
 0x319   : > { %v3102_v28 = vpop.f32.mrf.mxu3  ;;  %v3189_v39 = vpop.f32.mrf.mxu0 }
 0x31a   : > { %v3114_v8 = vadd.f32 %v3102_v28, %v2930_v22  ;;  %v3213_v42 = vadd.f32 %v3189_v39, %v3106_v61  ;;  %v3317_v61 = vpop.f32.mrf.mxu1 }
 0x31b   : > { %v3342_v11 = vadd.f32 %v3317_v61, %v3212_v13 }
 0x31d   : > { %v3462_v21 = vpop.f32.mrf.mxu2  ;;  %v3485_v56 = vadd.f32 %v3460_v31, %v3342_v11 }
 0x321   : > { %v3192_v30 = vpop.f32.mrf.mxu0  ;;  %v3610_v41 = vpop.f32.mrf.mxu3 }
 0x322   : > { %v3214_v44 = vadd.f32 %v3192_v30, %v3107_v2  ;;  %v3319_v2 = vpop.f32.mrf.mxu1  ;;  %v3635_v0 = vadd.f32 %v3610_v41, %v3485_v56 }
 0x323   : > { %v3343_v57 = vadd.f32 %v3319_v2, %v3213_v42 }
 0x324   : > { %4896 = vmatmul.msk.bf16.gmra.mxu0 %vm2705_vm4, %v6334_v25  ;;  %v5207_v25 = vmov 0   ;;  %vm3817_vm4 = vcmask 519170  }
 0x325   : > { %3766 = vst.msk [vmem:[%s6425_s10] sm:$0xf] %vm2567_vm3, %v5207_v25  ;;  %v3465_v27 = vpop.f32.mrf.mxu2  ;;  %v3486_v49 = vadd.f32 %v3462_v21, %v3343_v57  ;;  %vm3819_vm6 = vmand %vm3817_vm4, %vm3818_vm5 }
 0x326   : > { %3767 = vst.msk [vmem:[%s6425_s10 + $0x4] sm:$0xf] %vm2567_vm3, %v5207_v25 }
 0x327   : > { %3768 = vst.msk [vmem:[%s6425_s10 + $0x8] sm:$0xf] %vm2567_vm3, %v5207_v25 }
 0x328   : > { %3769 = vst.msk [vmem:[%s6425_s10 + $0xc] sm:$0xf] %vm2567_vm3, %v5207_v25 }
 0x329   : > { %v3194_v35 = vpop.f32.mrf.mxu0  ;;  %3770 = vst.msk [vmem:[%s6425_s10 + $0x10] sm:$0xf] %vm2567_vm3, %v5207_v25  ;;  %v3612_v5 = vpop.f32.mrf.mxu3 }
 0x32a   : > { %v6413_v43 = vadd.f32 %v3194_v35, %v3108_v4  ;;  %3771 = vst.msk [vmem:[%s6425_s10 + $0x14] sm:$0xf] %vm2567_vm3, %v5207_v25  ;;  %v3322_v50 = vpop.f32.mrf.mxu1  ;;  %v3636_v9 = vadd.f32 %v3612_v5, %v3486_v49  ;;  %vm3807_vm3 = vmand %vm3800_vm1, %vm3806_vm2 }
 0x32b   : > { %v3344_v17 = vadd.f32 %v3322_v50, %v3214_v44  ;;  %3773 = vst.msk [vmem:[%s6425_s10 + $0x18] sm:$0x1] %vm3772_vm7, %v5207_v25 }
 0x32c   : > { %v3778_v48 = vld [vmem:[%s6425_s10] sm:$0xf] }
 0x32d   : > { %v3487_v12 = vadd.f32 %v3465_v27, %v3344_v17 }
 0x32e   : > { %v3808_v21 = vld [vmem:[%s6425_s10 + $0x8] sm:$0x7] }
 0x331   : > { %v3197_v36 = vpop.f32.mrf.mxu0  ;;  %v3615_v40 = vpop.f32.mrf.mxu3 }
 0x332   : > { %v6415_v24 = vadd.f32 %v3197_v36, %v3109_v38  ;;  %v6454_v38 = vld [vmem:[%s6524_s6] ss:$0 sm:$0xff]  ;;  %v3324_v3 = vpop.f32.mrf.mxu1  ;;  %v3637_v1 = vadd.f32 %v3615_v40, %v3487_v12 }
 0x333   : > { %v3345_v22 = vadd.f32 %v3324_v3, %v6413_v43 }
 0x339   : > { %v3199_v10 = vpop.f32.mrf.mxu0  ;;  %v3617_v52 = vpop.f32.mrf.mxu3 }
 0x33a   : > { %v6417_v23 = vadd.f32 %v3199_v10, %v3110_v15  ;;  %v3467_v15 = vpop.f32.mrf.mxu2  ;;  %v3327_v29 = vpop.f32.mrf.mxu1 }
 0x33b   : > { %v3488_v39 = vadd.f32 %v3467_v15, %v3345_v22  ;;  %v3346_v35 = vadd.f32 %v3327_v29, %v6415_v24 }
 0x33d   : > { %v3638_v42 = vadd.f32 %v3617_v52, %v3488_v39 }
 0x341   : > { %v3202_v6 = vpop.f32.mrf.mxu0  ;;  %v3620_v13 = vpop.f32.mrf.mxu3 }
 0x342   : > { %v6420_v53 = vadd.f32 %v3202_v6, %v3111_v55  ;;  %v3329_v44 = vpop.f32.mrf.mxu1 }
 0x343   : > { %v3347_v50 = vadd.f32 %v3329_v44, %v6417_v23 }
 0x349   : > { %v3204_v34 = vpop.f32.mrf.mxu0  ;;  %v3622_v24 = vpop.f32.mrf.mxu3 }
 0x34a   : > { %v6439_v45 = vadd.f32 %v3204_v34, %v3112_v19  ;;  %v3470_v19 = vpop.f32.mrf.mxu2  ;;  %v3332_v40 = vpop.f32.mrf.mxu1 }
 0x34b   : > { %v3489_v2 = vadd.f32 %v3470_v19, %v3346_v35 }
 0x34d   : > { %v3639_v5 = vadd.f32 %v3620_v13, %v3489_v2 }
 0x351   : > { %v3207_v59 = vpop.f32.mrf.mxu0 }
 0x352   : > { %v6447_v33 = vadd.f32 %v3207_v59, %v3113_v14  ;;  %v3472_v31 = vpop.f32.mrf.mxu2  ;;  %v3334_v17 = vpop.f32.mrf.mxu1 }
 0x353   : > { %v3490_v57 = vadd.f32 %v3472_v31, %v3347_v50  ;;  %v3349_v25 = vadd.f32 %v3334_v17, %v6439_v45 }
 0x355   : > { %v3640_v3 = vadd.f32 %v3622_v24, %v3490_v57 }
 0x359   : > { %v3209_v62 = vpop.f32.mrf.mxu0 }
 0x35a   : > { %v6449_v4 = vadd.f32 %v3209_v62, %v3114_v8  ;;  %v3337_v22 = vpop.f32.mrf.mxu1 }
 0x361   : > { %v3707_v60 = vpop.f32.mrf.mxu0 }
 0x362   : > { %v3732_v51 = vadd.f32 %v3707_v60, %v3635_v0  ;;  %v3475_v60 = vpop.f32.mrf.mxu2 }
 0x364   : > { %v3746_v37 = vadd.f32 %v6454_v38, %v3732_v51 }
 0x366   : > { %v3756_v20 = vmax.f32 %v3746_v37, 0.0  ;;  %v3625_v37 = vpop.f32.mrf.mxu3 }
 0x368   : > { %v3774_v26 = vpack.c.bf16 %v3756_v20, %v3756_v20  ;;  %v3348_v20 = vadd.f32 %v3332_v40, %v6420_v53 }
 0x369   : > { %v3709_v54 = vpop.f32.mrf.mxu0 }
 0x36a   : > { %v3779_v55 = vsel %vm3777_vm10, %v3774_v26, %v3778_v48  ;;  %v3733_v16 = vadd.f32 %v3709_v54, %v3636_v9  ;;  %v3477_v53 = vpop.f32.mrf.mxu2  ;;  %vm3831_vm10 = vmand %vm3823_vm8, %vm3830_vm9 }
 0x36b   : > { %3780 = vst [vmem:[%s6425_s10] sm:$0xf] %v3779_v55  ;;  %v3491_v55 = vadd.f32 %v3475_v60, %v3348_v20  ;;  %v3492_v19 = vadd.f32 %v3477_v53, %v3349_v25  ;;  %v3859_v60 = vld [vmem:[%s6425_s10 + $0x18] sm:$0x1] }
 0x36c   : > { %v3747_v58 = vadd.f32 %v6454_v38, %v3733_v16 }
 0x36e   : > { %v3757_v7 = vmax.f32 %v3747_v58, 0.0  ;;  %v3641_v58 = vadd.f32 %v3625_v37, %v3491_v55 }
 0x370   : > { %v3781_v32 = vpack.c.bf16 %v3757_v7, %v3757_v7  ;;  %v3627_v7 = vpop.f32.mrf.mxu3 }
 0x371   : > { %v3712_v18 = vpop.f32.mrf.mxu0 }
 0x372   : > { %v3788_v63 = vrot.slane %v3781_v32, 6  ;;  %v3797_v47 = vld [vmem:[%s6425_s10] sm:$0x8]  ;;  %v3734_v14 = vadd.f32 %v3712_v18, %v3637_v1  ;;  %v3480_v13 = vpop.f32.mrf.mxu2 }
 0x374   : > { %v3798_v46 = vsel %vm3796_vm13, %v3788_v63, %v3797_v47  ;;  %v3748_v28 = vadd.f32 %v6454_v38, %v3734_v14  ;;  %v3789_v10 = vrot.slane %v3788_v63, 4  ;;  %v3832_v63 = vld [vmem:[%s6425_s10 + $0x10] sm:$0x3]  ;;  %v3642_v47 = vadd.f32 %v3627_v7, %v3492_v19 }
 0x375   : > { %3799 = vst [vmem:[%s6425_s10] sm:$0x8] %v3798_v46 }
 0x376   : > { %v3758_v8 = vmax.f32 %v3748_v28, 0.0  ;;  %v3350_v28 = vadd.f32 %v3337_v22, %v6447_v33 }
 0x378   : > { %v3782_v30 = vpack.c.bf16 %v3758_v8, %v3758_v8  ;;  %v3630_v8 = vpop.f32.mrf.mxu3 }
 0x379   : > { %v3714_v36 = vpop.f32.mrf.mxu0 }
 0x37a   : > { %v3790_v6 = vrot.slane %v3782_v30, 6  ;;  %3804 = vst.msk [vmem:[%s6425_s10 + $0x4] sm:$0x8] %vm3794_vm11, %v3782_v30  ;;  %v3735_v61 = vadd.f32 %v3714_v36, %v3638_v42  ;;  %v3493_v30 = vadd.f32 %v3480_v13, %v3350_v28  ;;  %vm3845_vm11 = vcmask 519169  }
 0x37b   : > { %vm3847_vm13 = vmand %vm3845_vm11, %vm3846_vm12 }
 0x37c   : > { %v3791_v34 = vsel %vm6467_vm0, %v3789_v10, %v3790_v6  ;;  %v3749_v41 = vadd.f32 %v6454_v38, %v3735_v61  ;;  %v3643_v35 = vadd.f32 %v3630_v8, %v3493_v30  ;;  %v3339_v10 = vpop.f32.mrf.mxu1 }
 0x37d   : > { %3801 = vst.msk [vmem:[%s6425_s10 + $0x4] sm:$0x7] %vm3800_vm1, %v3791_v34  ;;  %v3351_v61 = vadd.f32 %v3339_v10, %v6449_v4 }
 0x37e   : > { %v3759_v59 = vmax.f32 %v3749_v41, 0.0  ;;  %v3482_v41 = vpop.f32.mrf.mxu2 }
 0x380   : > { %v3802_v62 = vpack.c.bf16 %v3759_v59, %v3759_v59 }
 0x381   : > { %v3717_v11 = vpop.f32.mrf.mxu0 }
 0x382   : > { %v3809_v27 = vsel %vm3807_vm3, %v3802_v62, %v3808_v21  ;;  %v3736_v56 = vadd.f32 %v3717_v11, %v3639_v5  ;;  %v3632_v5 = vpop.f32.mrf.mxu3  ;;  %v3494_v11 = vadd.f32 %v3482_v41, %v3351_v61 }
 0x383   : > { %3810 = vst [vmem:[%s6425_s10 + $0x8] sm:$0x7] %v3809_v27 }
 0x384   : > { %v3750_v0 = vadd.f32 %v6454_v38, %v3736_v56  ;;  %v3644_v50 = vadd.f32 %v3632_v5, %v3494_v11 }
 0x386   : > { %v3760_v51 = vmax.f32 %v3750_v0, 0.0 }
 0x388   : > { %v3811_v49 = vpack.c.bf16 %v3760_v51, %v3760_v51 }
 0x389   : > { %v3719_v23 = vpop.f32.mrf.mxu0 }
 0x38a   : > { %v3813_v15 = vrot.slane %v3811_v49, 6  ;;  %v3820_v48 = vld [vmem:[%s6425_s10 + $0x8] sm:$0xc]  ;;  %v3737_v9 = vadd.f32 %v3719_v23, %v3640_v3 }
 0x38c   : > { %v3814_v26 = vrot.slane %v3813_v15, 4  ;;  %v3821_v52 = vsel %vm3819_vm6, %v3813_v15, %v3820_v48  ;;  %v3751_v54 = vadd.f32 %v6454_v38, %v3737_v9 }
 0x38d   : > { %3822 = vst [vmem:[%s6425_s10 + $0x8] sm:$0xc] %v3821_v52 }
 0x38e   : > { %v3761_v16 = vmax.f32 %v3751_v54, 0.0  ;;  %3824 = vst.msk [vmem:[%s6425_s10 + $0xc] sm:$0x3] %vm3823_vm8, %v3814_v26 }
 0x390   : > { %v3825_v12 = vpack.c.bf16 %v3761_v16, %v3761_v16 }
 0x391   : > { %v3722_v29 = vpop.f32.mrf.mxu0 }
 0x392   : > { %3828 = vst.msk [vmem:[%s6425_s10 + $0xc] sm:$0xc] %vm3817_vm4, %v3825_v12  ;;  %v3738_v1 = vadd.f32 %v3722_v29, %v3641_v58 }
 0x394   : > { %v3752_v32 = vadd.f32 %v6454_v38, %v3738_v1 }
 0x396   : > { %v3762_v18 = vmax.f32 %v3752_v32, 0.0 }
 0x398   : > { %v3826_v14 = vpack.c.bf16 %v3762_v18, %v3762_v18 }
 0x399   : > { %v3724_v46 = vpop.f32.mrf.mxu0 }
 0x39a   : > { %v3833_v45 = vsel %vm3831_vm10, %v3826_v14, %v3832_v63  ;;  %v3739_v39 = vadd.f32 %v3724_v46, %v3642_v47  ;;  %v4897_v33 = vrot.slane %v3826_v14, 10 }
 0x39b   : > { %3834 = vst [vmem:[%s6425_s10 + $0x10] sm:$0x3] %v3833_v45 }
 0x39c   : > { %v3753_v42 = vadd.f32 %v6454_v38, %v3739_v39 }
 0x39e   : > { %v3763_v44 = vmax.f32 %v3753_v42, 0.0 }
 0x3a0   : > { %v3835_v36 = vpack.c.bf16 %v3763_v44, %v3763_v44 }
 0x3a1   : > { %v3727_v6 = vpop.f32.mrf.mxu0 }
 0x3a2   : > { %v3840_v31 = vrot.slane %v3835_v36, 6  ;;  %v3740_v34 = vadd.f32 %v3727_v6, %v3643_v35  ;;  %v3848_v59 = vld [vmem:[%s6425_s10 + $0x10] sm:$0xe] }
 0x3a4   : > { %v3841_v24 = vsel %vm6467_vm0, %v4897_v33, %v3840_v31  ;;  %v3842_v2 = vrot.slane %v3840_v31, 4  ;;  %v3754_v21 = vadd.f32 %v6454_v38, %v3740_v34 }
 0x3a5   : > { %v3849_v62 = vsel %vm3847_vm13, %v3841_v24, %v3848_v59 }
 0x3a6   : > { %3850 = vst [vmem:[%s6425_s10 + $0x10] sm:$0xe] %v3849_v62  ;;  %v3764_v4 = vmax.f32 %v3754_v21, 0.0 }
 0x3a7   : > { %3851 = vst.msk [vmem:[%s6425_s10 + $0x14] sm:$0x1] %vm3772_vm7, %v3842_v2 }
 0x3a8   : > { %v3852_v27 = vpack.c.bf16 %v3764_v4, %v3764_v4 }
 0x3a9   : > { %v3729_v56 = vpop.f32.mrf.mxu0 }
 0x3aa   : > { %3855 = vst.msk [vmem:[%s6425_s10 + $0x14] sm:$0xe] %vm3845_vm11, %v3852_v27  ;;  %v3741_v43 = vadd.f32 %v3729_v56, %v3644_v50 }
 0x3ac   : > { %v3755_v40 = vadd.f32 %v6454_v38, %v3741_v43 }
 0x3ae   : > { %v3765_v0 = vmax.f32 %v3755_v40, 0.0 }
 0x3b0   : > { %v3853_v57 = vpack.c.bf16 %v3765_v0, %v3765_v0 }
 0x3b2   : > { %v3860_v51 = vsel %vm3858_vm15, %v3853_v57, %v3859_v60 }
 0x3b3   : > { %3861 = vst [vmem:[%s6425_s10 + $0x18] sm:$0x1] %v3860_v51 }
 0x3b4 PF: > { %s17_s24 = sadd.s32 1, %s5205_s24  }
 0x3b5   : > { %p14_p4 = scmp.ge.s32.totalorder %s17_s24, 4  }
 0x3b7   :  { %16 = sbr.rel (!%p14_p4) target bundleno = 1 (0x1), region = 92 }

// kernel: network_forward.3
= control target key start
LH: loop header
LB: loop body
LE: loop exit
PB: predicated region body
PF: predicated region fallthrough
CT: control target
= control target key end

     0   :  { %s15922_s1 = inlined_call_operand.vmem [shape: bf16[3200,512], index: 1, kind: input, shape index: {}]   ;;  %s15923_s0 = inlined_call_operand.vmem [shape: bf16[8,3200], index: 0, kind: input, shape index: {}]   ;;  %s15924_s2 = inlined_call_operand.vmem [shape: f32[1,512], index: 2, kind: input, shape index: {}]   ;;  %s15925_s3 = inlined_call_operand.vmem [shape: bf16[512,128], index: 3, kind: input, shape index: {}]   ;;  %s15926_s4 = inlined_call_operand.vmem [shape: f32[1,128], index: 4, kind: input, shape index: {}]   ;;  %s15927_s5 = inlined_call_operand.vmem [shape: f32[8,128], index: 5, kind: output, shape index: {}]  }
   0x1   :  { %v6670_v0 = vld [vmem:[%s15922_s1 + $0xe0] sm:$0xf]  ;;  %v9914_v1 = vld [vmem:[%s15922_s1 + $0xec] sm:$0xf0] }
   0x2   :  { %v6798_v2 = vld [vmem:[%s15922_s1 + $0x1e0] sm:$0xf]  ;;  %v6671_v3 = vor.u32 %v9914_v1, %v6670_v0  ;;  %v9946_v4 = vld [vmem:[%s15922_s1 + $0x1ec] sm:$0xf0] }
   0x3   :  { %v6926_v5 = vld [vmem:[%s15922_s1 + $0x2e0] sm:$0xf]  ;;  %v9978_v6 = vld [vmem:[%s15922_s1 + $0x2ec] sm:$0xf0]  ;;  %v6799_v7 = vor.u32 %v9946_v4, %v6798_v2 }
   0x4   :  { %v6927_v8 = vor.u32 %v9978_v6, %v6926_v5  ;;  %v7054_v9 = vld [vmem:[%s15922_s1 + $0x3e0] sm:$0xf]  ;;  %v10010_v10 = vld [vmem:[%s15922_s1 + $0x3ec] sm:$0xf0]  ;;  %4931 = vmatpush.bf16.msra.mxu0 %v6671_v3 }
   0x5   :  { %v6654_v11 = vld [vmem:[%s15922_s1 + $0xc0] sm:$0xf]  ;;  %v7055_v12 = vor.u32 %v10010_v10, %v7054_v9  ;;  %v9910_v13 = vld [vmem:[%s15922_s1 + $0xcc] sm:$0xf0]  ;;  %4944 = vmatpush.bf16.msra.mxu1 %v6799_v7 }
   0x6   :  { %v6782_v14 = vld [vmem:[%s15922_s1 + $0x1c0] sm:$0xf]  ;;  %v9942_v15 = vld [vmem:[%s15922_s1 + $0x1cc] sm:$0xf0]  ;;  %4957 = vmatpush.bf16.msra.mxu2 %v6927_v8  ;;  %v6655_v16 = vor.u32 %v9910_v13, %v6654_v11 }
   0x7   :  { %v6783_v17 = vor.u32 %v9942_v15, %v6782_v14  ;;  %v6910_v18 = vld [vmem:[%s15922_s1 + $0x2c0] sm:$0xf]  ;;  %v9974_v19 = vld [vmem:[%s15922_s1 + $0x2cc] sm:$0xf0]  ;;  %4970 = vmatpush.bf16.msra.mxu3 %v7055_v12 }
   0x8   :  { %v7038_v20 = vld [vmem:[%s15922_s1 + $0x3c0] sm:$0xf]  ;;  %v6911_v21 = vor.u32 %v9974_v19, %v6910_v18  ;;  %v10006_v22 = vld [vmem:[%s15922_s1 + $0x3cc] sm:$0xf0]  ;;  %4932 = vmatpush.bf16.msra.mxu0 %v6655_v16 }
   0x9   :  { %v6638_v23 = vld [vmem:[%s15922_s1 + $0xa0] sm:$0xf]  ;;  %v9906_v24 = vld [vmem:[%s15922_s1 + $0xac] sm:$0xf0]  ;;  %v7039_v25 = vor.u32 %v10006_v22, %v7038_v20  ;;  %4945 = vmatpush.bf16.msra.mxu1 %v6783_v17 }
   0xa   :  { %v6766_v26 = vld [vmem:[%s15922_s1 + $0x1a0] sm:$0xf]  ;;  %v9938_v27 = vld [vmem:[%s15922_s1 + $0x1ac] sm:$0xf0]  ;;  %v6639_v29 = vor.u32 %v9906_v24, %v6638_v23  ;;  %4958 = vmatpush.bf16.msra.mxu2 %v6911_v21 }
   0xb   :  { %v6894_v28 = vld [vmem:[%s15922_s1 + $0x2a0] sm:$0xf]  ;;  %v9970_v30 = vld [vmem:[%s15922_s1 + $0x2ac] sm:$0xf0]  ;;  %v6767_v33 = vor.u32 %v9938_v27, %v6766_v26  ;;  %4971 = vmatpush.bf16.msra.mxu3 %v7039_v25 }
   0xc   :  { %v7022_v31 = vld [vmem:[%s15922_s1 + $0x3a0] sm:$0xf]  ;;  %v10002_v32 = vld [vmem:[%s15922_s1 + $0x3ac] sm:$0xf0]  ;;  %v6895_v34 = vor.u32 %v9970_v30, %v6894_v28  ;;  %4933 = vmatpush.bf16.msra.mxu0 %v6639_v29 }
   0xd   :  { %v6622_v35 = vld [vmem:[%s15922_s1 + $0x80] sm:$0xf]  ;;  %v9902_v36 = vld [vmem:[%s15922_s1 + $0x8c] sm:$0xf0]  ;;  %v7023_v38 = vor.u32 %v10002_v32, %v7022_v31  ;;  %4946 = vmatpush.bf16.msra.mxu1 %v6767_v33 }
   0xe   :  { %v6750_v37 = vld [vmem:[%s15922_s1 + $0x180] sm:$0xf]  ;;  %v9934_v39 = vld [vmem:[%s15922_s1 + $0x18c] sm:$0xf0]  ;;  %v6623_v44 = vor.u32 %v9902_v36, %v6622_v35  ;;  %4959 = vmatpush.bf16.msra.mxu2 %v6895_v34 }
   0xf   :  { %v6878_v40 = vld [vmem:[%s15922_s1 + $0x280] sm:$0xf]  ;;  %v9966_v41 = vld [vmem:[%s15922_s1 + $0x28c] sm:$0xf0]  ;;  %v6751_v45 = vor.u32 %v9934_v39, %v6750_v37  ;;  %4972 = vmatpush.bf16.msra.mxu3 %v7023_v38 }
  0x10   :  { %v7006_v42 = vld [vmem:[%s15922_s1 + $0x380] sm:$0xf]  ;;  %v9998_v43 = vld [vmem:[%s15922_s1 + $0x38c] sm:$0xf0]  ;;  %v6879_v46 = vor.u32 %v9966_v41, %v6878_v40  ;;  %4934 = vmatpush.bf16.msra.mxu0 %v6623_v44 }
  0x11   :  { %v6606_v47 = vld [vmem:[%s15922_s1 + $0x60] sm:$0xf]  ;;  %v9898_v48 = vld [vmem:[%s15922_s1 + $0x6c] sm:$0xf0]  ;;  %v7007_v50 = vor.u32 %v9998_v43, %v7006_v42  ;;  %4947 = vmatpush.bf16.msra.mxu1 %v6751_v45 }
  0x12   :  { %v6734_v49 = vld [vmem:[%s15922_s1 + $0x160] sm:$0xf]  ;;  %v9930_v51 = vld [vmem:[%s15922_s1 + $0x16c] sm:$0xf0]  ;;  %v6607_v56 = vor.u32 %v9898_v48, %v6606_v47  ;;  %4960 = vmatpush.bf16.msra.mxu2 %v6879_v46 }
  0x13   :  { %v6862_v52 = vld [vmem:[%s15922_s1 + $0x260] sm:$0xf]  ;;  %v9962_v53 = vld [vmem:[%s15922_s1 + $0x26c] sm:$0xf0]  ;;  %v6735_v57 = vor.u32 %v9930_v51, %v6734_v49  ;;  %4973 = vmatpush.bf16.msra.mxu3 %v7007_v50 }
  0x14   :  { %v6990_v54 = vld [vmem:[%s15922_s1 + $0x360] sm:$0xf]  ;;  %v9994_v55 = vld [vmem:[%s15922_s1 + $0x36c] sm:$0xf0]  ;;  %v6863_v58 = vor.u32 %v9962_v53, %v6862_v52  ;;  %4935 = vmatpush.bf16.msra.mxu0 %v6607_v56 }
  0x15   :  { %v6590_v59 = vld [vmem:[%s15922_s1 + $0x40] sm:$0xf]  ;;  %v9894_v60 = vld [vmem:[%s15922_s1 + $0x4c] sm:$0xf0]  ;;  %v6991_v62 = vor.u32 %v9994_v55, %v6990_v54  ;;  %4948 = vmatpush.bf16.msra.mxu1 %v6735_v57 }
  0x16   :  { %v6718_v61 = vld [vmem:[%s15922_s1 + $0x140] sm:$0xf]  ;;  %v9926_v63 = vld [vmem:[%s15922_s1 + $0x14c] sm:$0xf0]  ;;  %v6591_v4 = vor.u32 %v9894_v60, %v6590_v59  ;;  %4961 = vmatpush.bf16.msra.mxu2 %v6863_v58 }
  0x17   :  { %v6846_v0 = vld [vmem:[%s15922_s1 + $0x240] sm:$0xf]  ;;  %v9958_v1 = vld [vmem:[%s15922_s1 + $0x24c] sm:$0xf0]  ;;  %v6719_v5 = vor.u32 %v9926_v63, %v6718_v61  ;;  %4974 = vmatpush.bf16.msra.mxu3 %v6991_v62 }
  0x18   :  { %v6974_v2 = vld [vmem:[%s15922_s1 + $0x340] sm:$0xf]  ;;  %v9990_v3 = vld [vmem:[%s15922_s1 + $0x34c] sm:$0xf0]  ;;  %v6847_v6 = vor.u32 %v9958_v1, %v6846_v0  ;;  %4936 = vmatpush.bf16.msra.mxu0 %v6591_v4 }
  0x19   :  { %v6574_v7 = vld [vmem:[%s15922_s1 + $0x20] sm:$0xf]  ;;  %v9890_v8 = vld [vmem:[%s15922_s1 + $0x2c] sm:$0xf0]  ;;  %v6975_v10 = vor.u32 %v9990_v3, %v6974_v2  ;;  %4949 = vmatpush.bf16.msra.mxu1 %v6719_v5  ;;  %v21_v2 = vld [vmem:[%s15923_s0 + $0x8] sm:$0xff] }
  0x1a   :  { %v6702_v9 = vld [vmem:[%s15922_s1 + $0x120] sm:$0xf]  ;;  %v9922_v11 = vld [vmem:[%s15922_s1 + $0x12c] sm:$0xf0]  ;;  %v6575_v16 = vor.u32 %v9890_v8, %v6574_v7  ;;  %4962 = vmatpush.bf16.msra.mxu2 %v6847_v6  ;;  %v858_v8 = vunpack.c.l.b16 %v21_v2 }
  0x1b   :  { %v6830_v12 = vld [vmem:[%s15922_s1 + $0x220] sm:$0xf]  ;;  %v9954_v13 = vld [vmem:[%s15922_s1 + $0x22c] sm:$0xf0]  ;;  %v6703_v19 = vor.u32 %v9922_v11, %v6702_v9  ;;  %4975 = vmatpush.bf16.msra.mxu3 %v6975_v10  ;;  %v859_v10 = vunpack.c.h.b16 %v21_v2 }
  0x1c   :  { %v6958_v14 = vld [vmem:[%s15922_s1 + $0x320] sm:$0xf]  ;;  %v9986_v15 = vld [vmem:[%s15922_s1 + $0x32c] sm:$0xf0]  ;;  %v6831_v20 = vor.u32 %v9954_v13, %v6830_v12  ;;  %4937 = vmatpush.bf16.msra.mxu0 %v6575_v16 }
  0x1d   :  { %v6558_v17 = vld [vmem:[%s15922_s1] sm:$0xf]  ;;  %v9886_v18 = vld [vmem:[%s15922_s1 + $0xc] sm:$0xf0]  ;;  %v6959_v24 = vor.u32 %v9986_v15, %v6958_v14  ;;  %4950 = vmatpush.bf16.msra.mxu1 %v6703_v19 }
  0x1e   :  { %v6686_v21 = vld [vmem:[%s15922_s1 + $0x100] sm:$0xf]  ;;  %v9918_v22 = vld [vmem:[%s15922_s1 + $0x10c] sm:$0xf0]  ;;  %v6559_v31 = vor.u32 %v9886_v18, %v6558_v17  ;;  %4963 = vmatpush.bf16.msra.mxu2 %v6831_v20  ;;  %v11044_v18 = vpack.c.b16 %v858_v8, %v858_v8  ;;  %v11048_v20 = vpack.c.b16 %v859_v10, %v859_v10 }
  0x1f   :  { %v6814_v23 = vld [vmem:[%s15922_s1 + $0x200] sm:$0xf]  ;;  %v9950_v25 = vld [vmem:[%s15922_s1 + $0x20c] sm:$0xf0]  ;;  %v6687_v35 = vor.u32 %v9918_v22, %v6686_v21  ;;  %4976 = vmatpush.bf16.msra.mxu3 %v6959_v24 }
  0x20   :  { %v6942_v26 = vld [vmem:[%s15922_s1 + $0x300] sm:$0xf]  ;;  %v9982_v27 = vld [vmem:[%s15922_s1 + $0x30c] sm:$0xf0]  ;;  %v6815_v36 = vor.u32 %v9950_v25, %v6814_v23  ;;  %4938 = vmatpush.bf16.msra.mxu0 %v6559_v31 }
  0x21   :  { %v7182_v28 = vld [vmem:[%s15922_s1 + $0x4e0] sm:$0xf]  ;;  %v10042_v29 = vld [vmem:[%s15922_s1 + $0x4ec] sm:$0xf0]  ;;  %v6943_v39 = vor.u32 %v9982_v27, %v6942_v26  ;;  %4951 = vmatpush.bf16.msra.mxu1 %v6687_v35 }
  0x22   :  { %v7310_v30 = vld [vmem:[%s15922_s1 + $0x5e0] sm:$0xf]  ;;  %v10074_v32 = vld [vmem:[%s15922_s1 + $0x5ec] sm:$0xf0]  ;;  %v7183_v40 = vor.u32 %v10042_v29, %v7182_v28  ;;  %4964 = vmatpush.bf16.msra.mxu2 %v6815_v36 }
  0x23   :  { %v7438_v33 = vld [vmem:[%s15922_s1 + $0x6e0] sm:$0xf]  ;;  %v10106_v34 = vld [vmem:[%s15922_s1 + $0x6ec] sm:$0xf0]  ;;  %v7311_v41 = vor.u32 %v10074_v32, %v7310_v30  ;;  %4977 = vmatpush.bf16.msra.mxu3 %v6943_v39 }
  0x24   :  { %v7566_v37 = vld [vmem:[%s15922_s1 + $0x7e0] sm:$0xf]  ;;  %v10138_v38 = vld [vmem:[%s15922_s1 + $0x7ec] sm:$0xf0]  ;;  %v7439_v42 = vor.u32 %v10106_v34, %v7438_v33  ;;  %4983 = vmatpush.bf16.msrb.mxu0 %v7183_v40 }
  0x25   :  { %v7166_v43 = vld [vmem:[%s15922_s1 + $0x4c0] sm:$0xf]  ;;  %v10038_v44 = vld [vmem:[%s15922_s1 + $0x4cc] sm:$0xf0]  ;;  %v7567_v46 = vor.u32 %v10138_v38, %v7566_v37  ;;  %4996 = vmatpush.bf16.msrb.mxu1 %v7311_v41  ;;  %4965 = vmatmul.bf16.vlgmr.msra.gmra.mxu2 %v11044_v18 }
  0x26   :  { %v7294_v45 = vld [vmem:[%s15922_s1 + $0x5c0] sm:$0xf]  ;;  %v10070_v47 = vld [vmem:[%s15922_s1 + $0x5cc] sm:$0xf0]  ;;  %v7167_v52 = vor.u32 %v10038_v44, %v7166_v43  ;;  %5009 = vmatpush.bf16.msrb.mxu2 %v7439_v42  ;;  %4978 = vmatmul.bf16.vlgmr.msra.gmra.mxu3 %v11048_v20 }
  0x27   :  { %v7422_v48 = vld [vmem:[%s15922_s1 + $0x6c0] sm:$0xf]  ;;  %v10102_v49 = vld [vmem:[%s15922_s1 + $0x6cc] sm:$0xf0]  ;;  %v7295_v54 = vor.u32 %v10070_v47, %v7294_v45  ;;  %5022 = vmatpush.bf16.msrb.mxu3 %v7567_v46 }
  0x28   :  { %v7550_v50 = vld [vmem:[%s15922_s1 + $0x7c0] sm:$0xf]  ;;  %v10134_v51 = vld [vmem:[%s15922_s1 + $0x7cc] sm:$0xf0]  ;;  %v7423_v55 = vor.u32 %v10102_v49, %v7422_v48  ;;  %4984 = vmatpush.bf16.msrb.mxu0 %v7167_v52 }
  0x29   :  { %v7150_v53 = vld [vmem:[%s15922_s1 + $0x4a0] sm:$0xf]  ;;  %v10034_v56 = vld [vmem:[%s15922_s1 + $0x4ac] sm:$0xf0]  ;;  %v7551_v59 = vor.u32 %v10134_v51, %v7550_v50  ;;  %4997 = vmatpush.bf16.msrb.mxu1 %v7295_v54 }
  0x2a   :  { %v7278_v57 = vld [vmem:[%s15922_s1 + $0x5a0] sm:$0xf]  ;;  %v10066_v58 = vld [vmem:[%s15922_s1 + $0x5ac] sm:$0xf0]  ;;  %v7151_v0 = vor.u32 %v10034_v56, %v7150_v53  ;;  %5010 = vmatpush.bf16.msrb.mxu2 %v7423_v55 }
  0x2b   :  { %v7406_v60 = vld [vmem:[%s15922_s1 + $0x6a0] sm:$0xf]  ;;  %v10098_v61 = vld [vmem:[%s15922_s1 + $0x6ac] sm:$0xf0]  ;;  %v7279_v1 = vor.u32 %v10066_v58, %v7278_v57  ;;  %5023 = vmatpush.bf16.msrb.mxu3 %v7551_v59 }
  0x2c   :  { %v7534_v62 = vld [vmem:[%s15922_s1 + $0x7a0] sm:$0xf]  ;;  %v10130_v63 = vld [vmem:[%s15922_s1 + $0x7ac] sm:$0xf0]  ;;  %v7407_v4 = vor.u32 %v10098_v61, %v7406_v60  ;;  %4985 = vmatpush.bf16.msrb.mxu0 %v7151_v0 }
  0x2d   :  { %v20_v3 = vld [vmem:[%s15923_s0] sm:$0xff]  ;;  %v10030_v6 = vld [vmem:[%s15922_s1 + $0x48c] sm:$0xf0]  ;;  %v7535_v11 = vor.u32 %v10130_v63, %v7534_v62  ;;  %4998 = vmatpush.bf16.msrb.mxu1 %v7279_v1 }
  0x2e   :  { %v7134_v5 = vld [vmem:[%s15922_s1 + $0x480] sm:$0xf]  ;;  %v856_v9 = vunpack.c.l.b16 %v20_v3  ;;  %v10062_v12 = vld [vmem:[%s15922_s1 + $0x58c] sm:$0xf0]  ;;  %v857_v15 = vunpack.c.h.b16 %v20_v3  ;;  %5011 = vmatpush.bf16.msrb.mxu2 %v7407_v4  ;;  %v23_v3 = vld [vmem:[%s15923_s0 + $0x18] sm:$0xff] }
  0x2f   :  { %v7262_v7 = vld [vmem:[%s15922_s1 + $0x580] sm:$0xf]  ;;  %v10094_v14 = vld [vmem:[%s15922_s1 + $0x68c] sm:$0xf0]  ;;  %v7135_v21 = vor.u32 %v10030_v6, %v7134_v5  ;;  %5024 = vmatpush.bf16.msrb.mxu3 %v7535_v11 }
  0x30   :  { %v7390_v13 = vld [vmem:[%s15922_s1 + $0x680] sm:$0xf]  ;;  %v10126_v17 = vld [vmem:[%s15922_s1 + $0x78c] sm:$0xf0]  ;;  %v11046_v19 = vpack.c.b16 %v856_v9, %v856_v9  ;;  %v11050_v22 = vpack.c.b16 %v857_v15, %v857_v15  ;;  %v7263_v23 = vor.u32 %v10062_v12, %v7262_v7  ;;  %v862_v15 = vunpack.c.l.b16 %v23_v3 }
  0x31   :  { %v7518_v16 = vld [vmem:[%s15922_s1 + $0x780] sm:$0xf]  ;;  %v7391_v24 = vor.u32 %v10094_v14, %v7390_v13  ;;  %v10026_v26 = vld [vmem:[%s15922_s1 + $0x46c] sm:$0xf0]  ;;  %4986 = vmatpush.bf16.msrb.mxu0 %v7135_v21 }
  0x32   :  { %v7118_v25 = vld [vmem:[%s15922_s1 + $0x460] sm:$0xf]  ;;  %v7519_v28 = vor.u32 %v10126_v17, %v7518_v16  ;;  %v10058_v29 = vld [vmem:[%s15922_s1 + $0x56c] sm:$0xf0]  ;;  %4939 = vmatmul.bf16.vlgmr.msra.gmra.mxu0 %v11046_v19  ;;  %4952 = vmatmul.bf16.vlgmr.msra.gmra.mxu1 %v11050_v22 }
  0x33   :  { %v7246_v27 = vld [vmem:[%s15922_s1 + $0x560] sm:$0xf]  ;;  %v10090_v31 = vld [vmem:[%s15922_s1 + $0x66c] sm:$0xf0]  ;;  %v7119_v34 = vor.u32 %v10026_v26, %v7118_v25  ;;  %4999 = vmatpush.bf16.msrb.mxu1 %v7263_v23  ;;  %5012 = vmatpush.bf16.msrb.mxu2 %v7391_v24  ;;  %v863_v25 = vunpack.c.h.b16 %v23_v3 }
  0x34   :  { %v7374_v30 = vld [vmem:[%s15922_s1 + $0x660] sm:$0xf]  ;;  %v10122_v33 = vld [vmem:[%s15922_s1 + $0x76c] sm:$0xf0]  ;;  %v7247_v35 = vor.u32 %v10058_v29, %v7246_v27  ;;  %5025 = vmatpush.bf16.msrb.mxu3 %v7519_v28 }
  0x35   :  { %v7502_v32 = vld [vmem:[%s15922_s1 + $0x760] sm:$0xf]  ;;  %v7375_v36 = vor.u32 %v10090_v31, %v7374_v30  ;;  %v10022_v38 = vld [vmem:[%s15922_s1 + $0x44c] sm:$0xf0]  ;;  %4987 = vmatpush.bf16.msrb.mxu0 %v7119_v34 }
  0x36   :  { %v7102_v37 = vld [vmem:[%s15922_s1 + $0x440] sm:$0xf]  ;;  %v7503_v40 = vor.u32 %v10122_v33, %v7502_v32  ;;  %v10054_v41 = vld [vmem:[%s15922_s1 + $0x54c] sm:$0xf0] }
  0x37   :  { %v7230_v39 = vld [vmem:[%s15922_s1 + $0x540] sm:$0xf]  ;;  %v10086_v43 = vld [vmem:[%s15922_s1 + $0x64c] sm:$0xf0]  ;;  %v7103_v46 = vor.u32 %v10022_v38, %v7102_v37  ;;  %5000 = vmatpush.bf16.msrb.mxu1 %v7247_v35  ;;  %5013 = vmatpush.bf16.msrb.mxu2 %v7375_v36  ;;  %v11200_v38 = vpack.c.b16 %v862_v15, %v862_v15 }
  0x38   :  { %v7358_v42 = vld [vmem:[%s15922_s1 + $0x640] sm:$0xf]  ;;  %v10118_v45 = vld [vmem:[%s15922_s1 + $0x74c] sm:$0xf0]  ;;  %v7231_v47 = vor.u32 %v10054_v41, %v7230_v39  ;;  %5026 = vmatpush.bf16.msrb.mxu3 %v7503_v40 }
  0x39   :  { %v7486_v44 = vld [vmem:[%s15922_s1 + $0x740] sm:$0xf]  ;;  %v7359_v48 = vor.u32 %v10086_v43, %v7358_v42  ;;  %v10018_v50 = vld [vmem:[%s15922_s1 + $0x42c] sm:$0xf0]  ;;  %4988 = vmatpush.bf16.msrb.mxu0 %v7103_v46  ;;  %v11210_v42 = vpack.c.b16 %v863_v25, %v863_v25 }
  0x3a   :  { %v7086_v49 = vld [vmem:[%s15922_s1 + $0x420] sm:$0xf]  ;;  %v7487_v52 = vor.u32 %v10118_v45, %v7486_v44  ;;  %v10050_v53 = vld [vmem:[%s15922_s1 + $0x52c] sm:$0xf0] }
  0x3b   :  { %v7214_v51 = vld [vmem:[%s15922_s1 + $0x520] sm:$0xf]  ;;  %v10082_v55 = vld [vmem:[%s15922_s1 + $0x62c] sm:$0xf0]  ;;  %v7087_v59 = vor.u32 %v10018_v50, %v7086_v49  ;;  %5001 = vmatpush.bf16.msrb.mxu1 %v7231_v47  ;;  %5014 = vmatpush.bf16.msrb.mxu2 %v7359_v48 }
  0x3c   :  { %v7342_v54 = vld [vmem:[%s15922_s1 + $0x620] sm:$0xf]  ;;  %v10114_v57 = vld [vmem:[%s15922_s1 + $0x72c] sm:$0xf0]  ;;  %v7215_v63 = vor.u32 %v10050_v53, %v7214_v51  ;;  %5027 = vmatpush.bf16.msrb.mxu3 %v7487_v52 }
  0x3d   :  { %v7470_v56 = vld [vmem:[%s15922_s1 + $0x720] sm:$0xf]  ;;  %v10014_v60 = vld [vmem:[%s15922_s1 + $0x40c] sm:$0xf0]  ;;  %v7343_v0 = vor.u32 %v10082_v55, %v7342_v54  ;;  %4989 = vmatpush.bf16.msrb.mxu0 %v7087_v59 }
  0x3e   :  { %v7070_v58 = vld [vmem:[%s15922_s1 + $0x400] sm:$0xf]  ;;  %v10046_v62 = vld [vmem:[%s15922_s1 + $0x50c] sm:$0xf0]  ;;  %v7471_v4 = vor.u32 %v10114_v57, %v7470_v56 }
  0x3f   :  { %v7198_v61 = vld [vmem:[%s15922_s1 + $0x500] sm:$0xf]  ;;  %v10078_v2 = vld [vmem:[%s15922_s1 + $0x60c] sm:$0xf0]  ;;  %v7071_v11 = vor.u32 %v10014_v60, %v7070_v58  ;;  %5002 = vmatpush.bf16.msrb.mxu1 %v7215_v63  ;;  %5015 = vmatpush.bf16.msrb.mxu2 %v7343_v0 }
  0x40   :  { %v7326_v1 = vld [vmem:[%s15922_s1 + $0x600] sm:$0xf]  ;;  %v10110_v6 = vld [vmem:[%s15922_s1 + $0x70c] sm:$0xf0]  ;;  %v7199_v16 = vor.u32 %v10046_v62, %v7198_v61  ;;  %5028 = vmatpush.bf16.msrb.mxu3 %v7471_v4 }
  0x41   :  { %v7454_v5 = vld [vmem:[%s15922_s1 + $0x700] sm:$0xf]  ;;  %v22_v7 = vld [vmem:[%s15923_s0 + $0x10] sm:$0xff]  ;;  %v7327_v17 = vor.u32 %v10078_v2, %v7326_v1  ;;  %4990 = vmatpush.bf16.msrb.mxu0 %v7071_v11 }
  0x42   :  { %v7694_v8 = vld [vmem:[%s15922_s1 + $0x8e0] sm:$0xf]  ;;  %v10170_v9 = vld [vmem:[%s15922_s1 + $0x8ec] sm:$0xf0]  ;;  %v860_v24 = vunpack.c.l.b16 %v22_v7  ;;  %v7455_v26 = vor.u32 %v10110_v6, %v7454_v5  ;;  %v861_v28 = vunpack.c.h.b16 %v22_v7 }
  0x43   :  { %v7822_v10 = vld [vmem:[%s15922_s1 + $0x9e0] sm:$0xf]  ;;  %v10202_v12 = vld [vmem:[%s15922_s1 + $0x9ec] sm:$0xf0]  ;;  %v7695_v27 = vor.u32 %v10170_v9, %v7694_v8  ;;  %5003 = vmatpush.bf16.msrb.mxu1 %v7199_v16  ;;  %5016 = vmatpush.bf16.msrb.mxu2 %v7327_v17 }
  0x44   :  { %v7950_v13 = vld [vmem:[%s15922_s1 + $0xae0] sm:$0xf]  ;;  %v10234_v14 = vld [vmem:[%s15922_s1 + $0xaec] sm:$0xf0]  ;;  %v7823_v29 = vor.u32 %v10202_v12, %v7822_v10  ;;  %v11208_v41 = vpack.c.b16 %v860_v24, %v860_v24  ;;  %5029 = vmatpush.bf16.msrb.mxu3 %v7455_v26  ;;  %v11212_v44 = vpack.c.b16 %v861_v28, %v861_v28 }
  0x45   :  { %v8078_v21 = vld [vmem:[%s15922_s1 + $0xbe0] sm:$0xf]  ;;  %v10266_v23 = vld [vmem:[%s15922_s1 + $0xbec] sm:$0xf0]  ;;  %v7951_v30 = vor.u32 %v10234_v14, %v7950_v13  ;;  %5035 = vmatpush.bf16.msra.mxu0 %v7695_v27 }
  0x46   :  { %v7678_v31 = vld [vmem:[%s15922_s1 + $0x8c0] sm:$0xf]  ;;  %v10166_v32 = vld [vmem:[%s15922_s1 + $0x8cc] sm:$0xf0]  ;;  %v8079_v34 = vor.u32 %v10266_v23, %v8078_v21  ;;  %5017 = vmatmul.bf16.vlgmr.msrb.gmra.mxu2 %v11200_v38  ;;  %4991 = vmatmul.bf16.vlgmr.msrb.gmra.mxu0 %v11208_v41 }
  0x47   :  { %v7806_v33 = vld [vmem:[%s15922_s1 + $0x9c0] sm:$0xf]  ;;  %v10198_v35 = vld [vmem:[%s15922_s1 + $0x9cc] sm:$0xf0]  ;;  %v7679_v43 = vor.u32 %v10166_v32, %v7678_v31  ;;  %5048 = vmatpush.bf16.msra.mxu1 %v7823_v29  ;;  %5061 = vmatpush.bf16.msra.mxu2 %v7951_v30 }
  0x48   :  { %v7934_v36 = vld [vmem:[%s15922_s1 + $0xac0] sm:$0xf]  ;;  %v10230_v37 = vld [vmem:[%s15922_s1 + $0xacc] sm:$0xf0]  ;;  %v7807_v45 = vor.u32 %v10198_v35, %v7806_v33  ;;  %5074 = vmatpush.bf16.msra.mxu3 %v8079_v34  ;;  %5004 = vmatmul.bf16.vlgmr.msrb.gmra.mxu1 %v11212_v44 }
  0x49   :  { %v8062_v39 = vld [vmem:[%s15922_s1 + $0xbc0] sm:$0xf]  ;;  %v10262_v40 = vld [vmem:[%s15922_s1 + $0xbcc] sm:$0xf0]  ;;  %v7935_v46 = vor.u32 %v10230_v37, %v7934_v36  ;;  %5030 = vmatmul.bf16.vlgmr.msrb.gmra.mxu3 %v11210_v42  ;;  %5036 = vmatpush.bf16.msra.mxu0 %v7679_v43 }
  0x4a   :  { %v7662_v47 = vld [vmem:[%s15922_s1 + $0x8a0] sm:$0xf]  ;;  %v10162_v48 = vld [vmem:[%s15922_s1 + $0x8ac] sm:$0xf0]  ;;  %v8063_v50 = vor.u32 %v10262_v40, %v8062_v39 }
  0x4b   :  { %v7790_v49 = vld [vmem:[%s15922_s1 + $0x9a0] sm:$0xf]  ;;  %v10194_v51 = vld [vmem:[%s15922_s1 + $0x9ac] sm:$0xf0]  ;;  %v7663_v56 = vor.u32 %v10162_v48, %v7662_v47  ;;  %5049 = vmatpush.bf16.msra.mxu1 %v7807_v45  ;;  %5062 = vmatpush.bf16.msra.mxu2 %v7935_v46 }
  0x4c   :  { %v7918_v52 = vld [vmem:[%s15922_s1 + $0xaa0] sm:$0xf]  ;;  %v10226_v53 = vld [vmem:[%s15922_s1 + $0xaac] sm:$0xf0]  ;;  %v7791_v57 = vor.u32 %v10194_v51, %v7790_v49  ;;  %5075 = vmatpush.bf16.msra.mxu3 %v8063_v50 }
  0x4d   :  { %v8046_v54 = vld [vmem:[%s15922_s1 + $0xba0] sm:$0xf]  ;;  %v10258_v55 = vld [vmem:[%s15922_s1 + $0xbac] sm:$0xf0]  ;;  %v7919_v58 = vor.u32 %v10226_v53, %v7918_v52  ;;  %5037 = vmatpush.bf16.msra.mxu0 %v7663_v56 }
  0x4e   :  { %v7646_v59 = vld [vmem:[%s15922_s1 + $0x880] sm:$0xf]  ;;  %v10158_v60 = vld [vmem:[%s15922_s1 + $0x88c] sm:$0xf0]  ;;  %v8047_v62 = vor.u32 %v10258_v55, %v8046_v54 }
  0x4f   :  { %v7774_v61 = vld [vmem:[%s15922_s1 + $0x980] sm:$0xf]  ;;  %v10190_v63 = vld [vmem:[%s15922_s1 + $0x98c] sm:$0xf0]  ;;  %v7647_v4 = vor.u32 %v10158_v60, %v7646_v59  ;;  %5050 = vmatpush.bf16.msra.mxu1 %v7791_v57  ;;  %5063 = vmatpush.bf16.msra.mxu2 %v7919_v58 }
  0x50   :  { %v7902_v0 = vld [vmem:[%s15922_s1 + $0xa80] sm:$0xf]  ;;  %v10222_v1 = vld [vmem:[%s15922_s1 + $0xa8c] sm:$0xf0]  ;;  %v7775_v5 = vor.u32 %v10190_v63, %v7774_v61  ;;  %5076 = vmatpush.bf16.msra.mxu3 %v8047_v62  ;;  %v25_v61 = vld [vmem:[%s15923_s0 + $0x28] sm:$0xff] }
  0x51   :  { %v8030_v2 = vld [vmem:[%s15922_s1 + $0xb80] sm:$0xf]  ;;  %v10254_v3 = vld [vmem:[%s15922_s1 + $0xb8c] sm:$0xf0]  ;;  %v7903_v6 = vor.u32 %v10222_v1, %v7902_v0  ;;  %5038 = vmatpush.bf16.msra.mxu0 %v7647_v4 }
  0x52   :  { %v7630_v7 = vld [vmem:[%s15922_s1 + $0x860] sm:$0xf]  ;;  %v10154_v8 = vld [vmem:[%s15922_s1 + $0x86c] sm:$0xf0]  ;;  %v8031_v10 = vor.u32 %v10254_v3, %v8030_v2 }
  0x53   :  { %v7758_v9 = vld [vmem:[%s15922_s1 + $0x960] sm:$0xf]  ;;  %v10186_v11 = vld [vmem:[%s15922_s1 + $0x96c] sm:$0xf0]  ;;  %v7631_v16 = vor.u32 %v10154_v8, %v7630_v7  ;;  %5051 = vmatpush.bf16.msra.mxu1 %v7775_v5  ;;  %5064 = vmatpush.bf16.msra.mxu2 %v7903_v6 }
  0x54   :  { %v7886_v12 = vld [vmem:[%s15922_s1 + $0xa60] sm:$0xf]  ;;  %v10218_v13 = vld [vmem:[%s15922_s1 + $0xa6c] sm:$0xf0]  ;;  %v7759_v17 = vor.u32 %v10186_v11, %v7758_v9  ;;  %5077 = vmatpush.bf16.msra.mxu3 %v8031_v10  ;;  %v866_v10 = vunpack.c.l.b16 %v25_v61 }
  0x55   :  { %v8014_v14 = vld [vmem:[%s15922_s1 + $0xb60] sm:$0xf]  ;;  %v10250_v15 = vld [vmem:[%s15922_s1 + $0xb6c] sm:$0xf0]  ;;  %v7887_v21 = vor.u32 %v10218_v13, %v7886_v12  ;;  %5039 = vmatpush.bf16.msra.mxu0 %v7631_v16 }
  0x56   :  { %v7614_v23 = vld [vmem:[%s15922_s1 + $0x840] sm:$0xf]  ;;  %v10150_v24 = vld [vmem:[%s15922_s1 + $0x84c] sm:$0xf0]  ;;  %v8015_v26 = vor.u32 %v10250_v15, %v8014_v14  ;;  %v867_v14 = vunpack.c.h.b16 %v25_v61 }
  0x57   :  { %v7742_v25 = vld [vmem:[%s15922_s1 + $0x940] sm:$0xf]  ;;  %v10182_v27 = vld [vmem:[%s15922_s1 + $0x94c] sm:$0xf0]  ;;  %v7615_v32 = vor.u32 %v10150_v24, %v7614_v23  ;;  %5052 = vmatpush.bf16.msra.mxu1 %v7759_v17  ;;  %5065 = vmatpush.bf16.msra.mxu2 %v7887_v21 }
  0x58   :  { %v7870_v28 = vld [vmem:[%s15922_s1 + $0xa40] sm:$0xf]  ;;  %v10214_v29 = vld [vmem:[%s15922_s1 + $0xa4c] sm:$0xf0]  ;;  %v7743_v33 = vor.u32 %v10182_v27, %v7742_v25  ;;  %5078 = vmatpush.bf16.msra.mxu3 %v8015_v26 }
  0x59   :  { %v7998_v30 = vld [vmem:[%s15922_s1 + $0xb40] sm:$0xf]  ;;  %v10246_v31 = vld [vmem:[%s15922_s1 + $0xb4c] sm:$0xf0]  ;;  %v7871_v34 = vor.u32 %v10214_v29, %v7870_v28  ;;  %5040 = vmatpush.bf16.msra.mxu0 %v7615_v32  ;;  %v11412_v29 = vpack.c.b16 %v866_v10, %v866_v10 }
  0x5a   :  { %v7598_v35 = vld [vmem:[%s15922_s1 + $0x820] sm:$0xf]  ;;  %v10146_v36 = vld [vmem:[%s15922_s1 + $0x82c] sm:$0xf0]  ;;  %v7999_v39 = vor.u32 %v10246_v31, %v7998_v30 }
  0x5b   :  { %v7726_v37 = vld [vmem:[%s15922_s1 + $0x920] sm:$0xf]  ;;  %v10178_v40 = vld [vmem:[%s15922_s1 + $0x92c] sm:$0xf0]  ;;  %v7599_v49 = vor.u32 %v10146_v36, %v7598_v35  ;;  %5053 = vmatpush.bf16.msra.mxu1 %v7743_v33  ;;  %5066 = vmatpush.bf16.msra.mxu2 %v7871_v34  ;;  %v11422_v33 = vpack.c.b16 %v867_v14, %v867_v14 }
  0x5c   :  { %v7854_v43 = vld [vmem:[%s15922_s1 + $0xa20] sm:$0xf]  ;;  %v10210_v45 = vld [vmem:[%s15922_s1 + $0xa2c] sm:$0xf0]  ;;  %v7727_v53 = vor.u32 %v10178_v40, %v7726_v37  ;;  %5079 = vmatpush.bf16.msra.mxu3 %v7999_v39 }
  0x5d   :  { %v7982_v46 = vld [vmem:[%s15922_s1 + $0xb20] sm:$0xf]  ;;  %v10242_v47 = vld [vmem:[%s15922_s1 + $0xb2c] sm:$0xf0]  ;;  %v7855_v54 = vor.u32 %v10210_v45, %v7854_v43  ;;  %5041 = vmatpush.bf16.msra.mxu0 %v7599_v49 }
  0x5e   :  { %v7582_v48 = vld [vmem:[%s15922_s1 + $0x800] sm:$0xf]  ;;  %v10142_v50 = vld [vmem:[%s15922_s1 + $0x80c] sm:$0xf0]  ;;  %v7983_v58 = vor.u32 %v10242_v47, %v7982_v46 }
  0x5f   :  { %v7710_v51 = vld [vmem:[%s15922_s1 + $0x900] sm:$0xf]  ;;  %v10174_v52 = vld [vmem:[%s15922_s1 + $0x90c] sm:$0xf0]  ;;  %v7583_v1 = vor.u32 %v10142_v50, %v7582_v48  ;;  %5054 = vmatpush.bf16.msra.mxu1 %v7727_v53  ;;  %5067 = vmatpush.bf16.msra.mxu2 %v7855_v54 }
  0x60   :  { %v7838_v55 = vld [vmem:[%s15922_s1 + $0xa00] sm:$0xf]  ;;  %v10206_v56 = vld [vmem:[%s15922_s1 + $0xa0c] sm:$0xf0]  ;;  %v7711_v6 = vor.u32 %v10174_v52, %v7710_v51  ;;  %5080 = vmatpush.bf16.msra.mxu3 %v7983_v58 }
  0x61   :  { %v24_v57 = vld [vmem:[%s15923_s0 + $0x20] sm:$0xff]  ;;  %v10238_v60 = vld [vmem:[%s15922_s1 + $0xb0c] sm:$0xf0]  ;;  %v7839_v7 = vor.u32 %v10206_v56, %v7838_v55  ;;  %5042 = vmatpush.bf16.msra.mxu0 %v7583_v1 }
  0x62   :  { %v7966_v59 = vld [vmem:[%s15922_s1 + $0xb00] sm:$0xf]  ;;  %v10298_v63 = vld [vmem:[%s15922_s1 + $0xcec] sm:$0xf0]  ;;  %v864_v5 = vunpack.c.l.b16 %v24_v57  ;;  %v865_v11 = vunpack.c.h.b16 %v24_v57 }
  0x63   :  { %v8206_v62 = vld [vmem:[%s15922_s1 + $0xce0] sm:$0xf]  ;;  %v10330_v2 = vld [vmem:[%s15922_s1 + $0xdec] sm:$0xf0]  ;;  %v7967_v12 = vor.u32 %v10238_v60, %v7966_v59  ;;  %5055 = vmatpush.bf16.msra.mxu1 %v7711_v6  ;;  %5068 = vmatpush.bf16.msra.mxu2 %v7839_v7 }
  0x64   :  { %v8334_v0 = vld [vmem:[%s15922_s1 + $0xde0] sm:$0xf]  ;;  %v10362_v4 = vld [vmem:[%s15922_s1 + $0xeec] sm:$0xf0]  ;;  %v8207_v13 = vor.u32 %v10298_v63, %v8206_v62  ;;  %v11401_v25 = vpack.c.b16 %v864_v5, %v864_v5  ;;  %v11414_v30 = vpack.c.b16 %v865_v11, %v865_v11 }
  0x65   :  { %v8462_v3 = vld [vmem:[%s15922_s1 + $0xee0] sm:$0xf]  ;;  %v10394_v9 = vld [vmem:[%s15922_s1 + $0xfec] sm:$0xf0]  ;;  %v8335_v15 = vor.u32 %v10330_v2, %v8334_v0  ;;  %5081 = vmatpush.bf16.msra.mxu3 %v7967_v12 }
  0x66   :  { %v8590_v8 = vld [vmem:[%s15922_s1 + $0xfe0] sm:$0xf]  ;;  %v8463_v16 = vor.u32 %v10362_v4, %v8462_v3  ;;  %v10294_v21 = vld [vmem:[%s15922_s1 + $0xccc] sm:$0xf0]  ;;  %5087 = vmatpush.bf16.msrb.mxu0 %v8207_v13  ;;  %5069 = vmatmul.bf16.vlgmr.msra.gmra.mxu2 %v11412_v29 }
  0x67   :  { %v8190_v17 = vld [vmem:[%s15922_s1 + $0xcc0] sm:$0xf]  ;;  %v8591_v24 = vor.u32 %v10394_v9, %v8590_v8  ;;  %v10326_v26 = vld [vmem:[%s15922_s1 + $0xdcc] sm:$0xf0]  ;;  %5100 = vmatpush.bf16.msrb.mxu1 %v8335_v15  ;;  %5043 = vmatmul.bf16.vlgmr.msra.gmra.mxu0 %v11401_v25 }
  0x68   :  { %v8318_v23 = vld [vmem:[%s15922_s1 + $0xdc0] sm:$0xf]  ;;  %v10358_v28 = vld [vmem:[%s15922_s1 + $0xecc] sm:$0xf0]  ;;  %v8191_v34 = vor.u32 %v10294_v21, %v8190_v17  ;;  %5113 = vmatpush.bf16.msrb.mxu2 %v8463_v16  ;;  %5056 = vmatmul.bf16.vlgmr.msra.gmra.mxu1 %v11414_v30 }
  0x69   :  { %v8446_v27 = vld [vmem:[%s15922_s1 + $0xec0] sm:$0xf]  ;;  %v10390_v32 = vld [vmem:[%s15922_s1 + $0xfcc] sm:$0xf0]  ;;  %v8319_v35 = vor.u32 %v10326_v26, %v8318_v23  ;;  %5126 = vmatpush.bf16.msrb.mxu3 %v8591_v24 }
  0x6a   :  { %v8574_v31 = vld [vmem:[%s15922_s1 + $0xfc0] sm:$0xf]  ;;  %v8447_v36 = vor.u32 %v10358_v28, %v8446_v27  ;;  %v10290_v39 = vld [vmem:[%s15922_s1 + $0xcac] sm:$0xf0]  ;;  %5082 = vmatmul.bf16.vlgmr.msra.gmra.mxu3 %v11422_v33  ;;  %5088 = vmatpush.bf16.msrb.mxu0 %v8191_v34 }
  0x6b   :  { %v8174_v37 = vld [vmem:[%s15922_s1 + $0xca0] sm:$0xf]  ;;  %v8575_v43 = vor.u32 %v10390_v32, %v8574_v31  ;;  %v10322_v45 = vld [vmem:[%s15922_s1 + $0xdac] sm:$0xf0]  ;;  %5101 = vmatpush.bf16.msrb.mxu1 %v8319_v35 }
  0x6c   :  { %v8302_v40 = vld [vmem:[%s15922_s1 + $0xda0] sm:$0xf]  ;;  %v10354_v47 = vld [vmem:[%s15922_s1 + $0xeac] sm:$0xf0]  ;;  %v8175_v50 = vor.u32 %v10290_v39, %v8174_v37  ;;  %5114 = vmatpush.bf16.msrb.mxu2 %v8447_v36 }
  0x6d   :  { %v8430_v46 = vld [vmem:[%s15922_s1 + $0xea0] sm:$0xf]  ;;  %v10386_v49 = vld [vmem:[%s15922_s1 + $0xfac] sm:$0xf0]  ;;  %v8303_v51 = vor.u32 %v10322_v45, %v8302_v40  ;;  %5127 = vmatpush.bf16.msrb.mxu3 %v8575_v43 }
  0x6e   :  { %v8558_v48 = vld [vmem:[%s15922_s1 + $0xfa0] sm:$0xf]  ;;  %v8431_v52 = vor.u32 %v10354_v47, %v8430_v46  ;;  %v10286_v54 = vld [vmem:[%s15922_s1 + $0xc8c] sm:$0xf0]  ;;  %5089 = vmatpush.bf16.msrb.mxu0 %v8175_v50 }
  0x6f   :  { %v8158_v53 = vld [vmem:[%s15922_s1 + $0xc80] sm:$0xf]  ;;  %v8559_v56 = vor.u32 %v10386_v49, %v8558_v48  ;;  %v10318_v57 = vld [vmem:[%s15922_s1 + $0xd8c] sm:$0xf0]  ;;  %5102 = vmatpush.bf16.msrb.mxu1 %v8303_v51 }
  0x70   :  { %v8286_v55 = vld [vmem:[%s15922_s1 + $0xd80] sm:$0xf]  ;;  %v10350_v59 = vld [vmem:[%s15922_s1 + $0xe8c] sm:$0xf0]  ;;  %v8159_v62 = vor.u32 %v10286_v54, %v8158_v53  ;;  %5115 = vmatpush.bf16.msrb.mxu2 %v8431_v52 }
  0x71   :  { %v8414_v58 = vld [vmem:[%s15922_s1 + $0xe80] sm:$0xf]  ;;  %v10382_v61 = vld [vmem:[%s15922_s1 + $0xf8c] sm:$0xf0]  ;;  %v8287_v63 = vor.u32 %v10318_v57, %v8286_v55  ;;  %5128 = vmatpush.bf16.msrb.mxu3 %v8559_v56 }
  0x72   :  { %v8542_v60 = vld [vmem:[%s15922_s1 + $0xf80] sm:$0xf]  ;;  %v8415_v0 = vor.u32 %v10350_v59, %v8414_v58  ;;  %v10282_v2 = vld [vmem:[%s15922_s1 + $0xc6c] sm:$0xf0]  ;;  %5090 = vmatpush.bf16.msrb.mxu0 %v8159_v62  ;;  %v27_v59 = vld [vmem:[%s15923_s0 + $0x38] sm:$0xff] }
  0x73   :  { %v8142_v1 = vld [vmem:[%s15922_s1 + $0xc60] sm:$0xf]  ;;  %v8543_v4 = vor.u32 %v10382_v61, %v8542_v60  ;;  %v10314_v5 = vld [vmem:[%s15922_s1 + $0xd6c] sm:$0xf0]  ;;  %5103 = vmatpush.bf16.msrb.mxu1 %v8287_v63 }
  0x74   :  { %v8270_v3 = vld [vmem:[%s15922_s1 + $0xd60] sm:$0xf]  ;;  %v10346_v7 = vld [vmem:[%s15922_s1 + $0xe6c] sm:$0xf0]  ;;  %v8143_v10 = vor.u32 %v10282_v2, %v8142_v1  ;;  %5116 = vmatpush.bf16.msrb.mxu2 %v8415_v0 }
  0x75   :  { %v8398_v6 = vld [vmem:[%s15922_s1 + $0xe60] sm:$0xf]  ;;  %v10378_v9 = vld [vmem:[%s15922_s1 + $0xf6c] sm:$0xf0]  ;;  %v8271_v11 = vor.u32 %v10314_v5, %v8270_v3  ;;  %5129 = vmatpush.bf16.msrb.mxu3 %v8543_v4 }
  0x76   :  { %v8526_v8 = vld [vmem:[%s15922_s1 + $0xf60] sm:$0xf]  ;;  %v8399_v12 = vor.u32 %v10346_v7, %v8398_v6  ;;  %v10278_v14 = vld [vmem:[%s15922_s1 + $0xc4c] sm:$0xf0]  ;;  %5091 = vmatpush.bf16.msrb.mxu0 %v8143_v10 }
  0x77   :  { %v8126_v13 = vld [vmem:[%s15922_s1 + $0xc40] sm:$0xf]  ;;  %v8527_v16 = vor.u32 %v10378_v9, %v8526_v8  ;;  %v10310_v17 = vld [vmem:[%s15922_s1 + $0xd4c] sm:$0xf0]  ;;  %5104 = vmatpush.bf16.msrb.mxu1 %v8271_v11  ;;  %v870_v8 = vunpack.c.l.b16 %v27_v59 }
  0x78   :  { %v8254_v15 = vld [vmem:[%s15922_s1 + $0xd40] sm:$0xf]  ;;  %v10342_v23 = vld [vmem:[%s15922_s1 + $0xe4c] sm:$0xf0]  ;;  %v8127_v27 = vor.u32 %v10278_v14, %v8126_v13  ;;  %5117 = vmatpush.bf16.msrb.mxu2 %v8399_v12  ;;  %v871_v12 = vunpack.c.h.b16 %v27_v59 }
  0x79   :  { %v8382_v21 = vld [vmem:[%s15922_s1 + $0xe40] sm:$0xf]  ;;  %v10374_v26 = vld [vmem:[%s15922_s1 + $0xf4c] sm:$0xf0]  ;;  %v8255_v28 = vor.u32 %v10310_v17, %v8254_v15  ;;  %5130 = vmatpush.bf16.msrb.mxu3 %v8527_v16 }
  0x7a   :  { %v8510_v24 = vld [vmem:[%s15922_s1 + $0xf40] sm:$0xf]  ;;  %v8383_v31 = vor.u32 %v10342_v23, %v8382_v21  ;;  %v10274_v34 = vld [vmem:[%s15922_s1 + $0xc2c] sm:$0xf0]  ;;  %5092 = vmatpush.bf16.msrb.mxu0 %v8127_v27 }
  0x7b   :  { %v8110_v32 = vld [vmem:[%s15922_s1 + $0xc20] sm:$0xf]  ;;  %v8511_v36 = vor.u32 %v10374_v26, %v8510_v24  ;;  %v10306_v37 = vld [vmem:[%s15922_s1 + $0xd2c] sm:$0xf0]  ;;  %5105 = vmatpush.bf16.msrb.mxu1 %v8255_v28  ;;  %v11622_v28 = vpack.c.b16 %v870_v8, %v870_v8 }
  0x7c   :  { %v8238_v35 = vld [vmem:[%s15922_s1 + $0xd20] sm:$0xf]  ;;  %v10338_v40 = vld [vmem:[%s15922_s1 + $0xe2c] sm:$0xf0]  ;;  %v8111_v47 = vor.u32 %v10274_v34, %v8110_v32  ;;  %5118 = vmatpush.bf16.msrb.mxu2 %v8383_v31 }
  0x7d   :  { %v8366_v39 = vld [vmem:[%s15922_s1 + $0xe20] sm:$0xf]  ;;  %v10370_v45 = vld [vmem:[%s15922_s1 + $0xf2c] sm:$0xf0]  ;;  %v8239_v51 = vor.u32 %v10306_v37, %v8238_v35  ;;  %5131 = vmatpush.bf16.msrb.mxu3 %v8511_v36  ;;  %v11632_v35 = vpack.c.b16 %v871_v12, %v871_v12 }
  0x7e   :  { %v8494_v43 = vld [vmem:[%s15922_s1 + $0xf20] sm:$0xf]  ;;  %v10270_v48 = vld [vmem:[%s15922_s1 + $0xc0c] sm:$0xf0]  ;;  %v8367_v52 = vor.u32 %v10338_v40, %v8366_v39  ;;  %5093 = vmatpush.bf16.msrb.mxu0 %v8111_v47 }
  0x7f   :  { %v8094_v46 = vld [vmem:[%s15922_s1 + $0xc00] sm:$0xf]  ;;  %v10302_v50 = vld [vmem:[%s15922_s1 + $0xd0c] sm:$0xf0]  ;;  %v8495_v56 = vor.u32 %v10370_v45, %v8494_v43  ;;  %5106 = vmatpush.bf16.msrb.mxu1 %v8239_v51 }
  0x80   :  { %v8222_v49 = vld [vmem:[%s15922_s1 + $0xd00] sm:$0xf]  ;;  %v10334_v54 = vld [vmem:[%s15922_s1 + $0xe0c] sm:$0xf0]  ;;  %v8095_v63 = vor.u32 %v10270_v48, %v8094_v46  ;;  %5119 = vmatpush.bf16.msrb.mxu2 %v8367_v52 }
  0x81   :  { %v8350_v53 = vld [vmem:[%s15922_s1 + $0xe00] sm:$0xf]  ;;  %v26_v55 = vld [vmem:[%s15923_s0 + $0x30] sm:$0xff]  ;;  %v8223_v4 = vor.u32 %v10302_v50, %v8222_v49  ;;  %5132 = vmatpush.bf16.msrb.mxu3 %v8495_v56 }
  0x82   :  { %v8478_v57 = vld [vmem:[%s15922_s1 + $0xf00] sm:$0xf]  ;;  %v10366_v58 = vld [vmem:[%s15922_s1 + $0xf0c] sm:$0xf0]  ;;  %v868_v3 = vunpack.c.l.b16 %v26_v55  ;;  %v8351_v5 = vor.u32 %v10334_v54, %v8350_v53  ;;  %v869_v9 = vunpack.c.h.b16 %v26_v55  ;;  %5094 = vmatpush.bf16.msrb.mxu0 %v8095_v63 }
  0x83   :  { %v8718_v60 = vld [vmem:[%s15922_s1 + $0x10e0] sm:$0xf]  ;;  %v10426_v61 = vld [vmem:[%s15922_s1 + $0x10ec] sm:$0xf0]  ;;  %v8479_v10 = vor.u32 %v10366_v58, %v8478_v57  ;;  %5107 = vmatpush.bf16.msrb.mxu1 %v8223_v4 }
  0x84   :  { %v8846_v62 = vld [vmem:[%s15922_s1 + $0x11e0] sm:$0xf]  ;;  %v10458_v0 = vld [vmem:[%s15922_s1 + $0x11ec] sm:$0xf0]  ;;  %v8719_v11 = vor.u32 %v10426_v61, %v8718_v60  ;;  %v11611_v23 = vpack.c.b16 %v868_v3, %v868_v3  ;;  %5120 = vmatpush.bf16.msrb.mxu2 %v8351_v5  ;;  %v11624_v31 = vpack.c.b16 %v869_v9, %v869_v9 }
  0x85   :  { %v8974_v1 = vld [vmem:[%s15922_s1 + $0x12e0] sm:$0xf]  ;;  %v10490_v2 = vld [vmem:[%s15922_s1 + $0x12ec] sm:$0xf0]  ;;  %v8847_v13 = vor.u32 %v10458_v0, %v8846_v62  ;;  %5133 = vmatpush.bf16.msrb.mxu3 %v8479_v10 }
  0x86   :  { %v9102_v6 = vld [vmem:[%s15922_s1 + $0x13e0] sm:$0xf]  ;;  %v10522_v7 = vld [vmem:[%s15922_s1 + $0x13ec] sm:$0xf0]  ;;  %v8975_v14 = vor.u32 %v10490_v2, %v8974_v1  ;;  %5139 = vmatpush.bf16.msra.mxu0 %v8719_v11  ;;  %5108 = vmatmul.bf16.vlgmr.msrb.gmra.mxu1 %v11624_v31 }
  0x87   :  { %v8702_v15 = vld [vmem:[%s15922_s1 + $0x10c0] sm:$0xf]  ;;  %v10422_v16 = vld [vmem:[%s15922_s1 + $0x10cc] sm:$0xf0]  ;;  %v9103_v21 = vor.u32 %v10522_v7, %v9102_v6  ;;  %5152 = vmatpush.bf16.msra.mxu1 %v8847_v13  ;;  %5095 = vmatmul.bf16.vlgmr.msrb.gmra.mxu0 %v11611_v23 }
  0x88   :  { %v8830_v17 = vld [vmem:[%s15922_s1 + $0x11c0] sm:$0xf]  ;;  %v10454_v24 = vld [vmem:[%s15922_s1 + $0x11cc] sm:$0xf0]  ;;  %v8703_v36 = vor.u32 %v10422_v16, %v8702_v15  ;;  %5165 = vmatpush.bf16.msra.mxu2 %v8975_v14  ;;  %5134 = vmatmul.bf16.vlgmr.msrb.gmra.mxu3 %v11632_v35 }
  0x89   :  { %v8958_v26 = vld [vmem:[%s15922_s1 + $0x12c0] sm:$0xf]  ;;  %v10486_v27 = vld [vmem:[%s15922_s1 + $0x12cc] sm:$0xf0]  ;;  %v8831_v37 = vor.u32 %v10454_v24, %v8830_v17  ;;  %5178 = vmatpush.bf16.msra.mxu3 %v9103_v21  ;;  %5121 = vmatmul.bf16.vlgmr.msrb.gmra.mxu2 %v11622_v28 }
  0x8a   :  { %v9086_v32 = vld [vmem:[%s15922_s1 + $0x13c0] sm:$0xf]  ;;  %v10518_v34 = vld [vmem:[%s15922_s1 + $0x13cc] sm:$0xf0]  ;;  %v8959_v39 = vor.u32 %v10486_v27, %v8958_v26  ;;  %5140 = vmatpush.bf16.msra.mxu0 %v8703_v36 }
  0x8b   :  { %v8686_v40 = vld [vmem:[%s15922_s1 + $0x10a0] sm:$0xf]  ;;  %v10418_v43 = vld [vmem:[%s15922_s1 + $0x10ac] sm:$0xf0]  ;;  %v9087_v46 = vor.u32 %v10518_v34, %v9086_v32  ;;  %5153 = vmatpush.bf16.msra.mxu1 %v8831_v37 }
  0x8c   :  { %v8814_v45 = vld [vmem:[%s15922_s1 + $0x11a0] sm:$0xf]  ;;  %v10450_v47 = vld [vmem:[%s15922_s1 + $0x11ac] sm:$0xf0]  ;;  %v8687_v52 = vor.u32 %v10418_v43, %v8686_v40  ;;  %5166 = vmatpush.bf16.msra.mxu2 %v8959_v39 }
  0x8d   :  { %v8942_v48 = vld [vmem:[%s15922_s1 + $0x12a0] sm:$0xf]  ;;  %v10482_v49 = vld [vmem:[%s15922_s1 + $0x12ac] sm:$0xf0]  ;;  %v8815_v53 = vor.u32 %v10450_v47, %v8814_v45  ;;  %5179 = vmatpush.bf16.msra.mxu3 %v9087_v46 }
  0x8e   :  { %v9070_v50 = vld [vmem:[%s15922_s1 + $0x13a0] sm:$0xf]  ;;  %v10514_v51 = vld [vmem:[%s15922_s1 + $0x13ac] sm:$0xf0]  ;;  %v8943_v54 = vor.u32 %v10482_v49, %v8942_v48  ;;  %5141 = vmatpush.bf16.msra.mxu0 %v8687_v52 }
  0x8f   :  { %v8670_v55 = vld [vmem:[%s15922_s1 + $0x1080] sm:$0xf]  ;;  %v10414_v56 = vld [vmem:[%s15922_s1 + $0x108c] sm:$0xf0]  ;;  %v9071_v58 = vor.u32 %v10514_v51, %v9070_v50  ;;  %5154 = vmatpush.bf16.msra.mxu1 %v8815_v53 }
  0x90   :  { %v8798_v57 = vld [vmem:[%s15922_s1 + $0x1180] sm:$0xf]  ;;  %v10446_v59 = vld [vmem:[%s15922_s1 + $0x118c] sm:$0xf0]  ;;  %v8671_v0 = vor.u32 %v10414_v56, %v8670_v55  ;;  %5167 = vmatpush.bf16.msra.mxu2 %v8943_v54 }
  0x91   :  { %v8926_v60 = vld [vmem:[%s15922_s1 + $0x1280] sm:$0xf]  ;;  %v10478_v61 = vld [vmem:[%s15922_s1 + $0x128c] sm:$0xf0]  ;;  %v8799_v1 = vor.u32 %v10446_v59, %v8798_v57  ;;  %5180 = vmatpush.bf16.msra.mxu3 %v9071_v58 }
  0x92   :  { %v9054_v62 = vld [vmem:[%s15922_s1 + $0x1380] sm:$0xf]  ;;  %v10510_v63 = vld [vmem:[%s15922_s1 + $0x138c] sm:$0xf0]  ;;  %v8927_v2 = vor.u32 %v10478_v61, %v8926_v60  ;;  %5142 = vmatpush.bf16.msra.mxu0 %v8671_v0 }
  0x93   :  { %v8654_v3 = vld [vmem:[%s15922_s1 + $0x1060] sm:$0xf]  ;;  %v10410_v4 = vld [vmem:[%s15922_s1 + $0x106c] sm:$0xf0]  ;;  %v9055_v6 = vor.u32 %v10510_v63, %v9054_v62  ;;  %5155 = vmatpush.bf16.msra.mxu1 %v8799_v1  ;;  %v29_v1 = vld [vmem:[%s15923_s0 + $0x48] sm:$0xff] }
  0x94   :  { %v8782_v5 = vld [vmem:[%s15922_s1 + $0x1160] sm:$0xf]  ;;  %v10442_v7 = vld [vmem:[%s15922_s1 + $0x116c] sm:$0xf0]  ;;  %v8655_v12 = vor.u32 %v10410_v4, %v8654_v3  ;;  %5168 = vmatpush.bf16.msra.mxu2 %v8927_v2 }
  0x95   :  { %v8910_v8 = vld [vmem:[%s15922_s1 + $0x1260] sm:$0xf]  ;;  %v10474_v9 = vld [vmem:[%s15922_s1 + $0x126c] sm:$0xf0]  ;;  %v8783_v13 = vor.u32 %v10442_v7, %v8782_v5  ;;  %5181 = vmatpush.bf16.msra.mxu3 %v9055_v6 }
  0x96   :  { %v9038_v10 = vld [vmem:[%s15922_s1 + $0x1360] sm:$0xf]  ;;  %v10506_v11 = vld [vmem:[%s15922_s1 + $0x136c] sm:$0xf0]  ;;  %v8911_v14 = vor.u32 %v10474_v9, %v8910_v8  ;;  %5143 = vmatpush.bf16.msra.mxu0 %v8655_v12 }
  0x97   :  { %v8638_v15 = vld [vmem:[%s15922_s1 + $0x1040] sm:$0xf]  ;;  %v10406_v16 = vld [vmem:[%s15922_s1 + $0x104c] sm:$0xf0]  ;;  %v9039_v21 = vor.u32 %v10506_v11, %v9038_v10  ;;  %5156 = vmatpush.bf16.msra.mxu1 %v8783_v13 }
  0x98   :  { %v8766_v17 = vld [vmem:[%s15922_s1 + $0x1140] sm:$0xf]  ;;  %v10438_v24 = vld [vmem:[%s15922_s1 + $0x114c] sm:$0xf0]  ;;  %v8639_v36 = vor.u32 %v10406_v16, %v8638_v15  ;;  %5169 = vmatpush.bf16.msra.mxu2 %v8911_v14  ;;  %v874_v14 = vunpack.c.l.b16 %v29_v1 }
  0x99   :  { %v8894_v26 = vld [vmem:[%s15922_s1 + $0x1240] sm:$0xf]  ;;  %v10470_v27 = vld [vmem:[%s15922_s1 + $0x124c] sm:$0xf0]  ;;  %v8767_v37 = vor.u32 %v10438_v24, %v8766_v17  ;;  %5182 = vmatpush.bf16.msra.mxu3 %v9039_v21  ;;  %v875_v21 = vunpack.c.h.b16 %v29_v1 }
  0x9a   :  { %v9022_v32 = vld [vmem:[%s15922_s1 + $0x1340] sm:$0xf]  ;;  %v10502_v34 = vld [vmem:[%s15922_s1 + $0x134c] sm:$0xf0]  ;;  %v8895_v39 = vor.u32 %v10470_v27, %v8894_v26  ;;  %5144 = vmatpush.bf16.msra.mxu0 %v8639_v36 }
  0x9b   :  { %v8622_v40 = vld [vmem:[%s15922_s1 + $0x1020] sm:$0xf]  ;;  %v10402_v43 = vld [vmem:[%s15922_s1 + $0x102c] sm:$0xf0]  ;;  %v9023_v46 = vor.u32 %v10502_v34, %v9022_v32  ;;  %5157 = vmatpush.bf16.msra.mxu1 %v8767_v37 }
  0x9c   :  { %v8750_v45 = vld [vmem:[%s15922_s1 + $0x1120] sm:$0xf]  ;;  %v10434_v47 = vld [vmem:[%s15922_s1 + $0x112c] sm:$0xf0]  ;;  %v8623_v53 = vor.u32 %v10402_v43, %v8622_v40  ;;  %5170 = vmatpush.bf16.msra.mxu2 %v8895_v39 }
  0x9d   :  { %v8878_v48 = vld [vmem:[%s15922_s1 + $0x1220] sm:$0xf]  ;;  %v10466_v49 = vld [vmem:[%s15922_s1 + $0x122c] sm:$0xf0]  ;;  %v8751_v57 = vor.u32 %v10434_v47, %v8750_v45  ;;  %5183 = vmatpush.bf16.msra.mxu3 %v9023_v46  ;;  %v11832_v45 = vpack.c.b16 %v874_v14, %v874_v14 }
  0x9e   :  { %v9006_v50 = vld [vmem:[%s15922_s1 + $0x1320] sm:$0xf]  ;;  %v10498_v51 = vld [vmem:[%s15922_s1 + $0x132c] sm:$0xf0]  ;;  %v8879_v58 = vor.u32 %v10466_v49, %v8878_v48  ;;  %5145 = vmatpush.bf16.msra.mxu0 %v8623_v53  ;;  %v11842_v49 = vpack.c.b16 %v875_v21, %v875_v21 }
  0x9f   :  { %v8606_v52 = vld [vmem:[%s15922_s1 + $0x1000] sm:$0xf]  ;;  %v10398_v54 = vld [vmem:[%s15922_s1 + $0x100c] sm:$0xf0]  ;;  %v9007_v62 = vor.u32 %v10498_v51, %v9006_v50  ;;  %5158 = vmatpush.bf16.msra.mxu1 %v8751_v57 }
  0xa0   :  { %v8734_v55 = vld [vmem:[%s15922_s1 + $0x1100] sm:$0xf]  ;;  %v10430_v56 = vld [vmem:[%s15922_s1 + $0x110c] sm:$0xf0]  ;;  %v8607_v5 = vor.u32 %v10398_v54, %v8606_v52  ;;  %5171 = vmatpush.bf16.msra.mxu2 %v8879_v58 }
  0xa1   :  { %v8862_v59 = vld [vmem:[%s15922_s1 + $0x1200] sm:$0xf]  ;;  %v10462_v60 = vld [vmem:[%s15922_s1 + $0x120c] sm:$0xf0]  ;;  %v8735_v10 = vor.u32 %v10430_v56, %v8734_v55  ;;  %5184 = vmatpush.bf16.msra.mxu3 %v9007_v62 }
  0xa2   :  { %v28_v61 = vld [vmem:[%s15923_s0 + $0x40] sm:$0xff]  ;;  %v10494_v0 = vld [vmem:[%s15922_s1 + $0x130c] sm:$0xf0]  ;;  %v8863_v11 = vor.u32 %v10462_v60, %v8862_v59  ;;  %5146 = vmatpush.bf16.msra.mxu0 %v8607_v5 }
  0xa3   :  { %v8990_v63 = vld [vmem:[%s15922_s1 + $0x1300] sm:$0xf]  ;;  %v10554_v3 = vld [vmem:[%s15922_s1 + $0x14ec] sm:$0xf0]  ;;  %v872_v9 = vunpack.c.l.b16 %v28_v61  ;;  %v873_v15 = vunpack.c.h.b16 %v28_v61  ;;  %5159 = vmatpush.bf16.msra.mxu1 %v8735_v10 }
  0xa4   :  { %v9230_v2 = vld [vmem:[%s15922_s1 + $0x14e0] sm:$0xf]  ;;  %v10586_v6 = vld [vmem:[%s15922_s1 + $0x15ec] sm:$0xf0]  ;;  %v8991_v16 = vor.u32 %v10494_v0, %v8990_v63  ;;  %5172 = vmatpush.bf16.msra.mxu2 %v8863_v11 }
  0xa5   :  { %v9358_v4 = vld [vmem:[%s15922_s1 + $0x15e0] sm:$0xf]  ;;  %v10618_v8 = vld [vmem:[%s15922_s1 + $0x16ec] sm:$0xf0]  ;;  %v9231_v17 = vor.u32 %v10554_v3, %v9230_v2  ;;  %v11821_v37 = vpack.c.b16 %v872_v9, %v872_v9  ;;  %v11834_v46 = vpack.c.b16 %v873_v15, %v873_v15 }
  0xa6   :  { %v9486_v7 = vld [vmem:[%s15922_s1 + $0x16e0] sm:$0xf]  ;;  %v10650_v13 = vld [vmem:[%s15922_s1 + $0x17ec] sm:$0xf0]  ;;  %v9359_v24 = vor.u32 %v10586_v6, %v9358_v4  ;;  %5185 = vmatpush.bf16.msra.mxu3 %v8991_v16 }
  0xa7   :  { %v9614_v12 = vld [vmem:[%s15922_s1 + $0x17e0] sm:$0xf]  ;;  %v9487_v26 = vor.u32 %v10618_v8, %v9486_v7  ;;  %v10550_v32 = vld [vmem:[%s15922_s1 + $0x14cc] sm:$0xf0]  ;;  %5191 = vmatpush.bf16.msrb.mxu0 %v9231_v17  ;;  %5173 = vmatmul.bf16.vlgmr.msra.gmra.mxu2 %v11832_v45 }
  0xa8   :  { %v9214_v27 = vld [vmem:[%s15922_s1 + $0x14c0] sm:$0xf]  ;;  %v9615_v36 = vor.u32 %v10650_v13, %v9614_v12  ;;  %v10582_v39 = vld [vmem:[%s15922_s1 + $0x15cc] sm:$0xf0]  ;;  %5204 = vmatpush.bf16.msrb.mxu1 %v9359_v24  ;;  %5147 = vmatmul.bf16.vlgmr.msra.gmra.mxu0 %v11821_v37 }
  0xa9   :  { %v9342_v34 = vld [vmem:[%s15922_s1 + $0x15c0] sm:$0xf]  ;;  %v10614_v43 = vld [vmem:[%s15922_s1 + $0x16cc] sm:$0xf0]  ;;  %v9215_v50 = vor.u32 %v10550_v32, %v9214_v27  ;;  %5217 = vmatpush.bf16.msrb.mxu2 %v9487_v26  ;;  %5160 = vmatmul.bf16.vlgmr.msra.gmra.mxu1 %v11834_v46 }
  0xaa   :  { %v9470_v40 = vld [vmem:[%s15922_s1 + $0x16c0] sm:$0xf]  ;;  %v10646_v48 = vld [vmem:[%s15922_s1 + $0x17cc] sm:$0xf0]  ;;  %v9343_v51 = vor.u32 %v10582_v39, %v9342_v34  ;;  %5230 = vmatpush.bf16.msrb.mxu3 %v9615_v36 }
  0xab   :  { %v9598_v47 = vld [vmem:[%s15922_s1 + $0x17c0] sm:$0xf]  ;;  %v9471_v52 = vor.u32 %v10614_v43, %v9470_v40  ;;  %v10546_v54 = vld [vmem:[%s15922_s1 + $0x14ac] sm:$0xf0]  ;;  %5186 = vmatmul.bf16.vlgmr.msra.gmra.mxu3 %v11842_v49  ;;  %5192 = vmatpush.bf16.msrb.mxu0 %v9215_v50 }
  0xac   :  { %v9198_v53 = vld [vmem:[%s15922_s1 + $0x14a0] sm:$0xf]  ;;  %v9599_v56 = vor.u32 %v10646_v48, %v9598_v47  ;;  %v10578_v57 = vld [vmem:[%s15922_s1 + $0x15ac] sm:$0xf0]  ;;  %5205 = vmatpush.bf16.msrb.mxu1 %v9343_v51 }
  0xad   :  { %v9326_v55 = vld [vmem:[%s15922_s1 + $0x15a0] sm:$0xf]  ;;  %v10610_v59 = vld [vmem:[%s15922_s1 + $0x16ac] sm:$0xf0]  ;;  %v9199_v62 = vor.u32 %v10546_v54, %v9198_v53  ;;  %5218 = vmatpush.bf16.msrb.mxu2 %v9471_v52 }
  0xae   :  { %v9454_v58 = vld [vmem:[%s15922_s1 + $0x16a0] sm:$0xf]  ;;  %v10642_v61 = vld [vmem:[%s15922_s1 + $0x17ac] sm:$0xf0]  ;;  %v9327_v63 = vor.u32 %v10578_v57, %v9326_v55  ;;  %5231 = vmatpush.bf16.msrb.mxu3 %v9599_v56 }
  0xaf   :  { %v9582_v60 = vld [vmem:[%s15922_s1 + $0x17a0] sm:$0xf]  ;;  %v9455_v0 = vor.u32 %v10610_v59, %v9454_v58  ;;  %v10542_v2 = vld [vmem:[%s15922_s1 + $0x148c] sm:$0xf0]  ;;  %5193 = vmatpush.bf16.msrb.mxu0 %v9199_v62  ;;  %v4940_v57 = vpop.f32.mrf.mxu0 }
  0xb0   :  { %v9182_v1 = vld [vmem:[%s15922_s1 + $0x1480] sm:$0xf]  ;;  %v9583_v4 = vor.u32 %v10642_v61, %v9582_v60  ;;  %v10574_v5 = vld [vmem:[%s15922_s1 + $0x158c] sm:$0xf0]  ;;  %5206 = vmatpush.bf16.msrb.mxu1 %v9327_v63 }
  0xb1   :  { %v9310_v3 = vld [vmem:[%s15922_s1 + $0x1580] sm:$0xf]  ;;  %v10606_v7 = vld [vmem:[%s15922_s1 + $0x168c] sm:$0xf0]  ;;  %v9183_v10 = vor.u32 %v10542_v2, %v9182_v1  ;;  %5219 = vmatpush.bf16.msrb.mxu2 %v9455_v0  ;;  %v4953_v0 = vpop.f32.mrf.mxu1 }
  0xb2   :  { %v9438_v6 = vld [vmem:[%s15922_s1 + $0x1680] sm:$0xf]  ;;  %v10638_v9 = vld [vmem:[%s15922_s1 + $0x178c] sm:$0xf0]  ;;  %v9311_v12 = vor.u32 %v10574_v5, %v9310_v3  ;;  %5232 = vmatpush.bf16.msrb.mxu3 %v9583_v4 }
  0xb3   :  { %v9566_v8 = vld [vmem:[%s15922_s1 + $0x1780] sm:$0xf]  ;;  %v9439_v13 = vor.u32 %v10606_v7, %v9438_v6  ;;  %v10538_v14 = vld [vmem:[%s15922_s1 + $0x146c] sm:$0xf0]  ;;  %5194 = vmatpush.bf16.msrb.mxu0 %v9183_v10 }
  0xb4   :  { %v9166_v11 = vld [vmem:[%s15922_s1 + $0x1460] sm:$0xf]  ;;  %v10570_v16 = vld [vmem:[%s15922_s1 + $0x156c] sm:$0xf0]  ;;  %v9567_v17 = vor.u32 %v10638_v9, %v9566_v8  ;;  %5207 = vmatpush.bf16.msrb.mxu1 %v9311_v12 }
  0xb5   :  { %v9294_v15 = vld [vmem:[%s15922_s1 + $0x1560] sm:$0xf]  ;;  %v10602_v24 = vld [vmem:[%s15922_s1 + $0x166c] sm:$0xf0]  ;;  %v9167_v34 = vor.u32 %v10538_v14, %v9166_v11  ;;  %5220 = vmatpush.bf16.msrb.mxu2 %v9439_v13 }
  0xb6   :  { %v9422_v21 = vld [vmem:[%s15922_s1 + $0x1660] sm:$0xf]  ;;  %v10634_v32 = vld [vmem:[%s15922_s1 + $0x176c] sm:$0xf0]  ;;  %v9295_v39 = vor.u32 %v10570_v16, %v9294_v15  ;;  %5233 = vmatpush.bf16.msrb.mxu3 %v9567_v17 }
  0xb7   :  { %v833_v26 = vld [vmem:[%s15924_s2] sm:$0xf]  ;;  %v9423_v40 = vor.u32 %v10602_v24, %v9422_v21  ;;  %v10534_v43 = vld [vmem:[%s15922_s1 + $0x144c] sm:$0xf0]  ;;  %5195 = vmatpush.bf16.msrb.mxu0 %v9167_v34  ;;  %v4966_v21 = vpop.f32.mrf.mxu2 }
  0xb8   :  { %v9550_v27 = vld [vmem:[%s15922_s1 + $0x1760] sm:$0xf]  ;;  %v835_v48 = vperm.slane %v833_v26, 0  ;;  %v10566_v51 = vld [vmem:[%s15922_s1 + $0x154c] sm:$0xf0]  ;;  %5208 = vmatpush.bf16.msrb.mxu1 %v9295_v39 }
  0xb9   :  { %v9150_v36 = vld [vmem:[%s15922_s1 + $0x1440] sm:$0xf]  ;;  %v9551_v50 = vor.u32 %v10634_v32, %v9550_v27  ;;  %v10598_v53 = vld [vmem:[%s15922_s1 + $0x164c] sm:$0xf0]  ;;  %5221 = vmatpush.bf16.msrb.mxu2 %v9423_v40  ;;  %v31_v32 = vld [vmem:[%s15923_s0 + $0x58] sm:$0xff] }
  0xba   :  { %v9278_v47 = vld [vmem:[%s15922_s1 + $0x1540] sm:$0xf]  ;;  %v10630_v55 = vld [vmem:[%s15922_s1 + $0x174c] sm:$0xf0]  ;;  %v9151_v56 = vor.u32 %v10534_v43, %v9150_v36  ;;  %v4941_v63 = vadd.f32 %v4940_v57, %v835_v48  ;;  %v4979_v36 = vpop.f32.mrf.mxu3  ;;  %v9912_v43 = vld [vmem:[%s15922_s1 + $0xe4] sm:$0xf] }
  0xbb   :  { %v9406_v52 = vld [vmem:[%s15922_s1 + $0x1640] sm:$0xf]  ;;  %v9279_v58 = vor.u32 %v10566_v51, %v9278_v47  ;;  %v10530_v61 = vld [vmem:[%s15922_s1 + $0x142c] sm:$0xf0]  ;;  %5234 = vmatpush.bf16.msrb.mxu3 %v9551_v50  ;;  %v6672_v48 = vld [vmem:[%s15922_s1 + $0xf0] sm:$0xf0] }
  0xbc   :  { %v9534_v54 = vld [vmem:[%s15922_s1 + $0x1740] sm:$0xf]  ;;  %v9407_v59 = vor.u32 %v10598_v53, %v9406_v52  ;;  %v10562_v2 = vld [vmem:[%s15922_s1 + $0x152c] sm:$0xf0]  ;;  %v4954_v8 = vadd.f32 %v4953_v0, %v4941_v63  ;;  %5196 = vmatpush.bf16.msrb.mxu0 %v9151_v56  ;;  %v9944_v50 = vld [vmem:[%s15922_s1 + $0x1e4] sm:$0xf]  ;;  %v879_v0 = vunpack.c.h.b16 %v31_v32 }
  0xbd   :  { %v9134_v60 = vld [vmem:[%s15922_s1 + $0x1420] sm:$0xf]  ;;  %v9535_v1 = vor.u32 %v10630_v55, %v9534_v54  ;;  %v10594_v4 = vld [vmem:[%s15922_s1 + $0x162c] sm:$0xf0]  ;;  %5209 = vmatpush.bf16.msrb.mxu1 %v9279_v58  ;;  %v6800_v51 = vld [vmem:[%s15922_s1 + $0x1f0] sm:$0xf0]  ;;  %v4942_v54 = vpop.f32.mrf.mxu0 }
  0xbe   :  { %v9262_v62 = vld [vmem:[%s15922_s1 + $0x1520] sm:$0xf]  ;;  %v10626_v6 = vld [vmem:[%s15922_s1 + $0x172c] sm:$0xf0]  ;;  %v9135_v9 = vor.u32 %v10530_v61, %v9134_v60  ;;  %5222 = vmatpush.bf16.msrb.mxu2 %v9407_v59  ;;  %v4967_v34 = vadd.f32 %v4966_v21, %v4954_v8  ;;  %v9976_v57 = vld [vmem:[%s15922_s1 + $0x2e4] sm:$0xf]  ;;  %v878_v59 = vunpack.c.l.b16 %v31_v32  ;;  %v4955_v61 = vpop.f32.mrf.mxu1 }
  0xbf   :  { %v9390_v3 = vld [vmem:[%s15922_s1 + $0x1620] sm:$0xf]  ;;  %v10526_v10 = vld [vmem:[%s15922_s1 + $0x140c] sm:$0xf0]  ;;  %v9263_v13 = vor.u32 %v10562_v2, %v9262_v62  ;;  %5235 = vmatpush.bf16.msrb.mxu3 %v9535_v1  ;;  %v6928_v58 = vld [vmem:[%s15922_s1 + $0x2f0] sm:$0xf0]  ;;  %v6675_v1 = vor.u32 %v9912_v43, %v6672_v48  ;;  %v6803_v2 = vor.u32 %v9944_v50, %v6800_v51 }
  0xc0   :  { %v9518_v5 = vld [vmem:[%s15922_s1 + $0x1720] sm:$0xf]  ;;  %v10558_v12 = vld [vmem:[%s15922_s1 + $0x150c] sm:$0xf0]  ;;  %v9391_v14 = vor.u32 %v10594_v4, %v9390_v3  ;;  %5197 = vmatpush.bf16.msrb.mxu0 %v9135_v9  ;;  %v12019_v53 = vadd.f32 %v4979_v36, %v4967_v34  ;;  %v6656_v8 = vld [vmem:[%s15922_s1 + $0xd0] sm:$0xf0] }
  0xc1   :  { %v9118_v7 = vld [vmem:[%s15922_s1 + $0x1400] sm:$0xf]  ;;  %v10590_v16 = vld [vmem:[%s15922_s1 + $0x160c] sm:$0xf0]  ;;  %v9519_v24 = vor.u32 %v10626_v6, %v9518_v5  ;;  %5210 = vmatpush.bf16.msrb.mxu1 %v9263_v13  ;;  %v9908_v5 = vld [vmem:[%s15922_s1 + $0xc4] sm:$0xf]  ;;  %v6931_v6 = vor.u32 %v9976_v57, %v6928_v58 }
  0xc2   :  { %v9246_v11 = vld [vmem:[%s15922_s1 + $0x1500] sm:$0xf]  ;;  %v30_v17 = vld [vmem:[%s15923_s0 + $0x50] sm:$0xff]  ;;  %v9119_v47 = vor.u32 %v10526_v10, %v9118_v7  ;;  %5223 = vmatpush.bf16.msrb.mxu2 %v9391_v14  ;;  %v9940_v9 = vld [vmem:[%s15922_s1 + $0x1c4] sm:$0xf]  ;;  %v4981_v21 = vpop.f32.mrf.mxu3 }
  0xc3   :  { %v9374_v15 = vld [vmem:[%s15922_s1 + $0x1600] sm:$0xf]  ;;  %v10622_v27 = vld [vmem:[%s15922_s1 + $0x170c] sm:$0xf0]  ;;  %v876_v52 = vunpack.c.l.b16 %v30_v17  ;;  %v9247_v55 = vor.u32 %v10558_v12, %v9246_v11  ;;  %v877_v60 = vunpack.c.h.b16 %v30_v17  ;;  %5236 = vmatpush.bf16.msrb.mxu3 %v9519_v24  ;;  %v6784_v10 = vld [vmem:[%s15922_s1 + $0x1d0] sm:$0xf0]  ;;  %v12047_v11 = vpack.c.b16 %v878_v59, %v878_v59 }
  0xc4   :  { %v9502_v26 = vld [vmem:[%s15922_s1 + $0x1700] sm:$0xf]  ;;  %v10682_v40 = vld [vmem:[%s15922_s1 + $0x18ec] sm:$0xf0]  ;;  %v9375_v56 = vor.u32 %v10590_v16, %v9374_v15  ;;  %5198 = vmatpush.bf16.msrb.mxu0 %v9119_v47  ;;  %v9972_v13 = vld [vmem:[%s15922_s1 + $0x2c4] sm:$0xf]  ;;  %v4968_v15 = vpop.f32.mrf.mxu2  ;;  %v12057_v16 = vpack.c.b16 %v879_v0, %v879_v0  ;;  %v6659_v24 = vor.u32 %v9908_v5, %v6656_v8 }
  0xc5   :  { %v9742_v39 = vld [vmem:[%s15922_s1 + $0x18e0] sm:$0xf]  ;;  %v9503_v62 = vor.u32 %v10622_v27, %v9502_v26  ;;  %v10678_v4 = vld [vmem:[%s15922_s1 + $0x18cc] sm:$0xf0]  ;;  %v12036_v7 = vpack.c.b16 %v876_v52, %v876_v52  ;;  %5211 = vmatpush.bf16.msrb.mxu1 %v9247_v55  ;;  %v12049_v12 = vpack.c.b16 %v877_v60, %v877_v60  ;;  %v6912_v14 = vld [vmem:[%s15922_s1 + $0x2d0] sm:$0xf0]  ;;  %v6787_v26 = vor.u32 %v9940_v9, %v6784_v10  ;;  %v4992_v0 = vpop.f32.mrf.mxu0 }
  0xc6   :  { %v9743_v63 = vor.u32 %v10682_v40, %v9742_v39  ;;  %v9726_v3 = vld [vmem:[%s15922_s1 + $0x18c0] sm:$0xf]  ;;  %5224 = vmatpush.bf16.msrb.mxu2 %v9375_v56  ;;  %v10674_v32 = vld [vmem:[%s15922_s1 + $0x18ac] sm:$0xf0]  ;;  %v9904_v34 = vld [vmem:[%s15922_s1 + $0xa4] sm:$0xf]  ;;  %v6915_v36 = vor.u32 %v9972_v13, %v6912_v14  ;;  %v5005_v8 = vpop.f32.mrf.mxu1 }
  0xc7   :  { %5237 = vmatpush.bf16.msrb.mxu3 %v9503_v62  ;;  %v9727_v17 = vor.u32 %v10678_v4, %v9726_v3  ;;  %v9710_v27 = vld [vmem:[%s15922_s1 + $0x18a0] sm:$0xf]  ;;  %5199 = vmatmul.bf16.vlgmr.msrb.gmra.mxu0 %v12036_v7  ;;  %v6640_v39 = vld [vmem:[%s15922_s1 + $0xb0] sm:$0xf0]  ;;  %v9936_v40 = vld [vmem:[%s15922_s1 + $0x1a4] sm:$0xf] }
  0xc8   :  { %5243 = vmatpush.bf16.msra.mxu0 %v9743_v63  ;;  %v6768_v43 = vld [vmem:[%s15922_s1 + $0x1b0] sm:$0xf0]  ;;  %5212 = vmatmul.bf16.vlgmr.msrb.gmra.mxu1 %v12049_v12  ;;  %v9968_v47 = vld [vmem:[%s15922_s1 + $0x2a4] sm:$0xf]  ;;  %v9711_v50 = vor.u32 %v10674_v32, %v9710_v27  ;;  %v6643_v51 = vor.u32 %v9904_v34, %v6640_v39  ;;  %v9694_v54 = vld [vmem:[%s15922_s1 + $0x1880] sm:$0xf] }
  0xc9   :  { %5256 = vmatpush.bf16.msra.mxu1 %v6675_v1  ;;  %5225 = vmatmul.bf16.vlgmr.msrb.gmra.mxu2 %v12047_v11  ;;  %v6896_v48 = vld [vmem:[%s15922_s1 + $0x2b0] sm:$0xf0]  ;;  %v6771_v52 = vor.u32 %v9936_v40, %v6768_v43  ;;  %v10670_v55 = vld [vmem:[%s15922_s1 + $0x188c] sm:$0xf0]  ;;  %v9900_v56 = vld [vmem:[%s15922_s1 + $0x84] sm:$0xf] }
  0xca   :  { %5269 = vmatpush.bf16.msra.mxu2 %v6803_v2  ;;  %5238 = vmatmul.bf16.vlgmr.msrb.gmra.mxu3 %v12057_v16  ;;  %v6899_v57 = vor.u32 %v9968_v47, %v6896_v48  ;;  %v6624_v58 = vld [vmem:[%s15922_s1 + $0x90] sm:$0xf0]  ;;  %v9932_v59 = vld [vmem:[%s15922_s1 + $0x184] sm:$0xf]  ;;  %v9695_v63 = vor.u32 %v10670_v55, %v9694_v54  ;;  %v9678_v3 = vld [vmem:[%s15922_s1 + $0x1860] sm:$0xf] }
  0xcb   :  { %5282 = vmatpush.bf16.msra.mxu3 %v6931_v6  ;;  %v6752_v60 = vld [vmem:[%s15922_s1 + $0x190] sm:$0xf0]  ;;  %v9964_v61 = vld [vmem:[%s15922_s1 + $0x284] sm:$0xf]  ;;  %v6627_v1 = vor.u32 %v9900_v56, %v6624_v58  ;;  %v10666_v4 = vld [vmem:[%s15922_s1 + $0x186c] sm:$0xf0]  ;;  %v4993_v6 = vadd.f32 %v4992_v0, %v12019_v53 }
  0xcc   :  { %5244 = vmatpush.bf16.msra.mxu0 %v9727_v17  ;;  %v6880_v62 = vld [vmem:[%s15922_s1 + $0x290] sm:$0xf0]  ;;  %v6755_v2 = vor.u32 %v9932_v59, %v6752_v60  ;;  %v9896_v5 = vld [vmem:[%s15922_s1 + $0x64] sm:$0xf]  ;;  %v9679_v21 = vor.u32 %v10666_v4, %v9678_v3  ;;  %v9662_v27 = vld [vmem:[%s15922_s1 + $0x1840] sm:$0xf] }
  0xcd   :  { %5257 = vmatpush.bf16.msra.mxu1 %v6659_v24  ;;  %v6883_v9 = vor.u32 %v9964_v61, %v6880_v62  ;;  %v6608_v10 = vld [vmem:[%s15922_s1 + $0x70] sm:$0xf0]  ;;  %v9928_v13 = vld [vmem:[%s15922_s1 + $0x164] sm:$0xf]  ;;  %v5006_v17 = vadd.f32 %v5005_v8, %v4993_v6  ;;  %v10662_v32 = vld [vmem:[%s15922_s1 + $0x184c] sm:$0xf0]  ;;  %v4994_v56 = vpop.f32.mrf.mxu0 }
  0xce   :  { %5270 = vmatpush.bf16.msra.mxu2 %v6787_v26  ;;  %v6736_v14 = vld [vmem:[%s15922_s1 + $0x170] sm:$0xf0]  ;;  %v9960_v15 = vld [vmem:[%s15922_s1 + $0x264] sm:$0xf]  ;;  %v6611_v24 = vor.u32 %v9896_v5, %v6608_v10  ;;  %v9663_v54 = vor.u32 %v10662_v32, %v9662_v27  ;;  %v9646_v59 = vld [vmem:[%s15922_s1 + $0x1820] sm:$0xf]  ;;  %v5007_v62 = vpop.f32.mrf.mxu1 }
  0xcf   :  { %5283 = vmatpush.bf16.msra.mxu3 %v6915_v36  ;;  %v6864_v53 = vld [vmem:[%s15922_s1 + $0x270] sm:$0xf0]  ;;  %v6739_v26 = vor.u32 %v9928_v13, %v6736_v14  ;;  %v9892_v34 = vld [vmem:[%s15922_s1 + $0x44] sm:$0xf]  ;;  %v5018_v36 = vpop.f32.mrf.mxu2  ;;  %v10658_v60 = vld [vmem:[%s15922_s1 + $0x182c] sm:$0xf0] }
  0xd0   :  { %5245 = vmatpush.bf16.msra.mxu0 %v9711_v50  ;;  %v6867_v39 = vor.u32 %v9960_v15, %v6864_v53  ;;  %v6592_v40 = vld [vmem:[%s15922_s1 + $0x50] sm:$0xf0]  ;;  %v9924_v43 = vld [vmem:[%s15922_s1 + $0x144] sm:$0xf]  ;;  %v5019_v48 = vadd.f32 %v5018_v36, %v5006_v17  ;;  %v5031_v50 = vpop.f32.mrf.mxu3  ;;  %v9647_v5 = vor.u32 %v10658_v60, %v9646_v59  ;;  %v9630_v6 = vld [vmem:[%s15922_s1 + $0x1800] sm:$0xf] }
  0xd1   :  { %5258 = vmatpush.bf16.msra.mxu1 %v6643_v51  ;;  %v6720_v47 = vld [vmem:[%s15922_s1 + $0x150] sm:$0xf0]  ;;  %v9956_v51 = vld [vmem:[%s15922_s1 + $0x244] sm:$0xf]  ;;  %v10654_v8 = vld [vmem:[%s15922_s1 + $0x180c] sm:$0xf0] }
  0xd2   :  { %5271 = vmatpush.bf16.msra.mxu2 %v6771_v52  ;;  %v6848_v52 = vld [vmem:[%s15922_s1 + $0x250] sm:$0xf0]  ;;  %v12160_v55 = vadd.f32 %v5031_v50, %v5019_v48  ;;  %v6723_v58 = vor.u32 %v9924_v43, %v6720_v47  ;;  %v9888_v61 = vld [vmem:[%s15922_s1 + $0x24] sm:$0xf]  ;;  %v32_v53 = vld [vmem:[%s15923_s0 + $0x60] sm:$0xf] }
  0xd3   :  { %5284 = vmatpush.bf16.msra.mxu3 %v6899_v57  ;;  %v6595_v57 = vor.u32 %v9892_v34, %v6592_v40  ;;  %v6576_v0 = vld [vmem:[%s15922_s1 + $0x30] sm:$0xf0]  ;;  %v9952_v3 = vld [vmem:[%s15922_s1 + $0x224] sm:$0xf]  ;;  %v9631_v40 = vor.u32 %v10654_v8, %v9630_v6  ;;  %v880_v50 = vunpack.c.l.b16 %v32_v53 }
  0xd4   :  { %5246 = vmatpush.bf16.msra.mxu0 %v9695_v63  ;;  %v6851_v63 = vor.u32 %v9956_v51, %v6848_v52  ;;  %v6832_v4 = vld [vmem:[%s15922_s1 + $0x230] sm:$0xf0]  ;;  %v6579_v10 = vor.u32 %v9888_v61, %v6576_v0  ;;  %v9916_v15 = vld [vmem:[%s15922_s1 + $0x104] sm:$0xf] }
  0xd5   :  { %5259 = vmatpush.bf16.msra.mxu1 %v6627_v1  ;;  %v9920_v1 = vld [vmem:[%s15922_s1 + $0x124] sm:$0xf]  ;;  %v6560_v14 = vld [vmem:[%s15922_s1 + $0x10] sm:$0xf0] }
  0xd6   :  { %5272 = vmatpush.bf16.msra.mxu2 %v6755_v2  ;;  %v6704_v2 = vld [vmem:[%s15922_s1 + $0x130] sm:$0xf0]  ;;  %v10008_v34 = vld [vmem:[%s15922_s1 + $0x3e4] sm:$0xf] }
  0xd7   :  { %5285 = vmatpush.bf16.msra.mxu3 %v6883_v9  ;;  %v9884_v9 = vld [vmem:[%s15922_s1 + $0x4] sm:$0xf]  ;;  %v6707_v13 = vor.u32 %v9920_v1, %v6704_v2  ;;  %v5020_v17 = vpop.f32.mrf.mxu2  ;;  %v6816_v27 = vld [vmem:[%s15922_s1 + $0x210] sm:$0xf0]  ;;  %v12246_v1 = vpack.c.b16 %v880_v50, %v880_v50 }
  0xd8   :  { %5247 = vmatpush.bf16.msra.mxu0 %v9679_v21  ;;  %v6835_v21 = vor.u32 %v9952_v3, %v6832_v4  ;;  %v5033_v32 = vpop.f32.mrf.mxu3  ;;  %v7056_v36 = vld [vmem:[%s15922_s1 + $0x3f0] sm:$0xf0]  ;;  %v10072_v47 = vld [vmem:[%s15922_s1 + $0x5e4] sm:$0xf]  ;;  %v6563_v51 = vor.u32 %v9884_v9, %v6560_v14 }
  0xd9   :  { %5260 = vmatpush.bf16.msra.mxu1 %v6611_v24  ;;  %v6688_v24 = vld [vmem:[%s15922_s1 + $0x110] sm:$0xf0]  ;;  %v10004_v61 = vld [vmem:[%s15922_s1 + $0x3c4] sm:$0xf] }
  0xda   :  { %5273 = vmatpush.bf16.msra.mxu2 %v6739_v26  ;;  %v9948_v26 = vld [vmem:[%s15922_s1 + $0x204] sm:$0xf]  ;;  %v7184_v43 = vld [vmem:[%s15922_s1 + $0x4f0] sm:$0xf0]  ;;  %v6691_v52 = vor.u32 %v9916_v15, %v6688_v24 }
  0xdb   :  { %5286 = vmatpush.bf16.msra.mxu3 %v6867_v39  ;;  %v10040_v39 = vld [vmem:[%s15922_s1 + $0x4e4] sm:$0xf]  ;;  %v7312_v48 = vld [vmem:[%s15922_s1 + $0x5f0] sm:$0xf0] }
  0xdc   :  { %5248 = vmatpush.bf16.msra.mxu0 %v9663_v54  ;;  %v10104_v54 = vld [vmem:[%s15922_s1 + $0x6e4] sm:$0xf]  ;;  %v7440_v56 = vld [vmem:[%s15922_s1 + $0x6f0] sm:$0xf0]  ;;  %v7187_v59 = vor.u32 %v10040_v39, %v7184_v43  ;;  %v7315_v60 = vor.u32 %v10072_v47, %v7312_v48 }
  0xdd   :  { %5261 = vmatpush.bf16.msra.mxu1 %v6595_v57  ;;  %v6819_v57 = vor.u32 %v9948_v26, %v6816_v27  ;;  %v7040_v62 = vld [vmem:[%s15922_s1 + $0x3d0] sm:$0xf0]  ;;  %v7443_v0 = vor.u32 %v10104_v54, %v7440_v56  ;;  %v10068_v3 = vld [vmem:[%s15922_s1 + $0x5c4] sm:$0xf] }
  0xde   :  { %5274 = vmatpush.bf16.msra.mxu2 %v6723_v58  ;;  %v7059_v58 = vor.u32 %v10008_v34, %v7056_v36  ;;  %v7168_v2 = vld [vmem:[%s15922_s1 + $0x4d0] sm:$0xf0]  ;;  %v7043_v8 = vor.u32 %v10004_v61, %v7040_v62  ;;  %v10032_v15 = vld [vmem:[%s15922_s1 + $0x4a4] sm:$0xf] }
  0xdf   :  { %5287 = vmatpush.bf16.msra.mxu3 %v6851_v63  ;;  %v10036_v63 = vld [vmem:[%s15922_s1 + $0x4c4] sm:$0xf]  ;;  %v7296_v4 = vld [vmem:[%s15922_s1 + $0x5d0] sm:$0xf0] }
  0xe0   :  { %5249 = vmatpush.bf16.msra.mxu0 %v9647_v5  ;;  %v10100_v5 = vld [vmem:[%s15922_s1 + $0x6c4] sm:$0xf]  ;;  %v7424_v6 = vld [vmem:[%s15922_s1 + $0x6d0] sm:$0xf0]  ;;  %v7171_v9 = vor.u32 %v10036_v63, %v7168_v2 }
  0xe1   :  { %5262 = vmatpush.bf16.msra.mxu1 %v6579_v10  ;;  %v7299_v10 = vor.u32 %v10068_v3, %v7296_v4  ;;  %v7024_v14 = vld [vmem:[%s15922_s1 + $0x3b0] sm:$0xf0]  ;;  %v7427_v53 = vor.u32 %v10100_v5, %v7424_v6  ;;  %v10096_v26 = vld [vmem:[%s15922_s1 + $0x6a4] sm:$0xf] }
  0xe2   :  { %5275 = vmatpush.bf16.msra.mxu2 %v6707_v13  ;;  %v10000_v13 = vld [vmem:[%s15922_s1 + $0x3a4] sm:$0xf]  ;;  %v7152_v17 = vld [vmem:[%s15922_s1 + $0x4b0] sm:$0xf0] }
  0xe3   :  { %5288 = vmatpush.bf16.msra.mxu3 %v6835_v21  ;;  %v10064_v21 = vld [vmem:[%s15922_s1 + $0x5a4] sm:$0xf]  ;;  %v7280_v24 = vld [vmem:[%s15922_s1 + $0x5b0] sm:$0xf0]  ;;  %v7027_v32 = vor.u32 %v10000_v13, %v7024_v14  ;;  %v7155_v34 = vor.u32 %v10032_v15, %v7152_v17 }
  0xe4   :  { %5250 = vmatpush.bf16.msra.mxu0 %v9631_v40  ;;  %v7408_v27 = vld [vmem:[%s15922_s1 + $0x6b0] sm:$0xf0]  ;;  %v7283_v36 = vor.u32 %v10064_v21, %v7280_v24  ;;  %v9996_v39 = vld [vmem:[%s15922_s1 + $0x384] sm:$0xf] }
  0xe5   :  { %5263 = vmatpush.bf16.msra.mxu1 %v6563_v51  ;;  %v7008_v40 = vld [vmem:[%s15922_s1 + $0x390] sm:$0xf0]  ;;  %v10028_v43 = vld [vmem:[%s15922_s1 + $0x484] sm:$0xf]  ;;  %v7411_v47 = vor.u32 %v10096_v26, %v7408_v27 }
  0xe6   :  { %5276 = vmatpush.bf16.msra.mxu2 %v6691_v52  ;;  %v7136_v48 = vld [vmem:[%s15922_s1 + $0x490] sm:$0xf0]  ;;  %v10060_v50 = vld [vmem:[%s15922_s1 + $0x584] sm:$0xf]  ;;  %v5044_v52 = vpop.f32.mrf.mxu0 }
  0xe7   :  { %5289 = vmatpush.bf16.msra.mxu3 %v6819_v57  ;;  %5251 = vmatmul.bf16.vlgmr.msra.gmra.mxu0 %v12246_v1  ;;  %v7264_v51 = vld [vmem:[%s15922_s1 + $0x590] sm:$0xf0]  ;;  %v10092_v54 = vld [vmem:[%s15922_s1 + $0x684] sm:$0xf]  ;;  %v5045_v57 = vadd.f32 %v5044_v52, %v12160_v55 }
  0xe8   :  { %5295 = vmatpush.bf16.msrb.mxu0 %v7059_v58  ;;  %5264 = vmatmul.bf16.vlgmr.msra.gmra.mxu1 %v11046_v19  ;;  %v7392_v56 = vld [vmem:[%s15922_s1 + $0x690] sm:$0xf0]  ;;  %v7011_v58 = vor.u32 %v9996_v39, %v7008_v40  ;;  %v7267_v61 = vor.u32 %v10060_v50, %v7264_v51  ;;  %v9992_v62 = vld [vmem:[%s15922_s1 + $0x364] sm:$0xf] }
  0xe9   :  { %5308 = vmatpush.bf16.msrb.mxu1 %v7187_v59  ;;  %5277 = vmatmul.bf16.vlgmr.msra.gmra.mxu2 %v11050_v22  ;;  %v5057_v59 = vpop.f32.mrf.mxu1  ;;  %v6992_v63 = vld [vmem:[%s15922_s1 + $0x370] sm:$0xf0]  ;;  %v7395_v55 = vor.u32 %v10092_v54, %v7392_v56  ;;  %v10056_v4 = vld [vmem:[%s15922_s1 + $0x564] sm:$0xf]  ;;  %v5070_v21 = vpop.f32.mrf.mxu2 }
  0xea   :  { %5321 = vmatpush.bf16.msrb.mxu2 %v7315_v60  ;;  %5290 = vmatmul.bf16.vlgmr.msra.gmra.mxu3 %v11044_v18  ;;  %v7139_v60 = vor.u32 %v10028_v43, %v7136_v48  ;;  %v5058_v2 = vadd.f32 %v5057_v59, %v5045_v57  ;;  %v7120_v3 = vld [vmem:[%s15922_s1 + $0x470] sm:$0xf0]  ;;  %v10088_v6 = vld [vmem:[%s15922_s1 + $0x664] sm:$0xf] }
  0xeb   :  { %5334 = vmatpush.bf16.msrb.mxu3 %v7443_v0  ;;  %v10024_v0 = vld [vmem:[%s15922_s1 + $0x464] sm:$0xf]  ;;  %v7248_v5 = vld [vmem:[%s15922_s1 + $0x570] sm:$0xf0] }
  0xec   :  { %5296 = vmatpush.bf16.msrb.mxu0 %v7043_v8  ;;  %v7376_v8 = vld [vmem:[%s15922_s1 + $0x670] sm:$0xf0]  ;;  %v7251_v13 = vor.u32 %v10056_v4, %v7248_v5  ;;  %v9988_v14 = vld [vmem:[%s15922_s1 + $0x344] sm:$0xf] }
  0xed   :  { %5309 = vmatpush.bf16.msrb.mxu1 %v7171_v9  ;;  %v6995_v9 = vor.u32 %v9992_v62, %v6992_v63  ;;  %v6976_v15 = vld [vmem:[%s15922_s1 + $0x350] sm:$0xf0]  ;;  %v7379_v17 = vor.u32 %v10088_v6, %v7376_v8  ;;  %v10052_v26 = vld [vmem:[%s15922_s1 + $0x544] sm:$0xf] }
  0xee   :  { %5322 = vmatpush.bf16.msrb.mxu2 %v7299_v10  ;;  %v7123_v10 = vor.u32 %v10024_v0, %v7120_v3  ;;  %v7104_v24 = vld [vmem:[%s15922_s1 + $0x450] sm:$0xf0]  ;;  %v5046_v40 = vpop.f32.mrf.mxu0  ;;  %v6979_v43 = vor.u32 %v9988_v14, %v6976_v15  ;;  %v9984_v52 = vld [vmem:[%s15922_s1 + $0x324] sm:$0xf] }
  0xef   :  { %5335 = vmatpush.bf16.msrb.mxu3 %v7427_v53  ;;  %v10020_v53 = vld [vmem:[%s15922_s1 + $0x444] sm:$0xf]  ;;  %v7232_v27 = vld [vmem:[%s15922_s1 + $0x550] sm:$0xf0] }
  0xf0   :  { %5297 = vmatpush.bf16.msrb.mxu0 %v7027_v32  ;;  %v5071_v32 = vadd.f32 %v5070_v21, %v5058_v2  ;;  %v7360_v39 = vld [vmem:[%s15922_s1 + $0x650] sm:$0xf0]  ;;  %v7107_v50 = vor.u32 %v10020_v53, %v7104_v24  ;;  %v7235_v51 = vor.u32 %v10052_v26, %v7232_v27  ;;  %v10016_v56 = vld [vmem:[%s15922_s1 + $0x424] sm:$0xf] }
  0xf1   :  { %5310 = vmatpush.bf16.msrb.mxu1 %v7155_v34  ;;  %v5083_v34 = vpop.f32.mrf.mxu3  ;;  %v6960_v54 = vld [vmem:[%s15922_s1 + $0x330] sm:$0xf0]  ;;  %v10048_v59 = vld [vmem:[%s15922_s1 + $0x524] sm:$0xf]  ;;  %v5072_v14 = vpop.f32.mrf.mxu2 }
  0xf2   :  { %5323 = vmatpush.bf16.msrb.mxu2 %v7283_v36  ;;  %v10084_v36 = vld [vmem:[%s15922_s1 + $0x644] sm:$0xf]  ;;  %v12364_v48 = vadd.f32 %v5083_v34, %v5071_v32  ;;  %v7344_v62 = vld [vmem:[%s15922_s1 + $0x630] sm:$0xf0]  ;;  %v6963_v63 = vor.u32 %v9984_v52, %v6960_v54 }
  0xf3   :  { %5336 = vmatpush.bf16.msrb.mxu3 %v7411_v47  ;;  %v5059_v47 = vpop.f32.mrf.mxu1  ;;  %v7363_v57 = vor.u32 %v10084_v36, %v7360_v39  ;;  %v9980_v0 = vld [vmem:[%s15922_s1 + $0x304] sm:$0xf]  ;;  %v7072_v5 = vld [vmem:[%s15922_s1 + $0x410] sm:$0xf0] }
  0xf4   :  { %5298 = vmatpush.bf16.msrb.mxu0 %v7011_v58  ;;  %v7088_v58 = vld [vmem:[%s15922_s1 + $0x430] sm:$0xf0]  ;;  %v10012_v4 = vld [vmem:[%s15922_s1 + $0x404] sm:$0xf] }
  0xf5   :  { %5311 = vmatpush.bf16.msrb.mxu1 %v7139_v60  ;;  %v7216_v60 = vld [vmem:[%s15922_s1 + $0x530] sm:$0xf0]  ;;  %v7091_v2 = vor.u32 %v10016_v56, %v7088_v58  ;;  %v10044_v6 = vld [vmem:[%s15922_s1 + $0x504] sm:$0xf]  ;;  %v7075_v34 = vor.u32 %v10012_v4, %v7072_v5 }
  0xf6   :  { %5324 = vmatpush.bf16.msrb.mxu2 %v7267_v61  ;;  %v10080_v61 = vld [vmem:[%s15922_s1 + $0x624] sm:$0xf]  ;;  %v7219_v3 = vor.u32 %v10048_v59, %v7216_v60  ;;  %v7568_v53 = vld [vmem:[%s15922_s1 + $0x7f0] sm:$0xf0] }
  0xf7   :  { %5337 = vmatpush.bf16.msrb.mxu3 %v7395_v55  ;;  %v6944_v55 = vld [vmem:[%s15922_s1 + $0x310] sm:$0xf0]  ;;  %v7347_v8 = vor.u32 %v10080_v61, %v7344_v62  ;;  %v10136_v15 = vld [vmem:[%s15922_s1 + $0x7e4] sm:$0xf] }
  0xf8   :  { %5299 = vmatpush.bf16.msrb.mxu0 %v6995_v9  ;;  %v7200_v9 = vld [vmem:[%s15922_s1 + $0x510] sm:$0xf0]  ;;  %v6947_v24 = vor.u32 %v9980_v0, %v6944_v55  ;;  %v10200_v27 = vld [vmem:[%s15922_s1 + $0x9e4] sm:$0xf]  ;;  %v7571_v47 = vor.u32 %v10136_v15, %v7568_v53 }
  0xf9   :  { %5312 = vmatpush.bf16.msrb.mxu1 %v7123_v10  ;;  %v10076_v10 = vld [vmem:[%s15922_s1 + $0x604] sm:$0xf]  ;;  %v5085_v21 = vpop.f32.mrf.mxu3  ;;  %v7696_v26 = vld [vmem:[%s15922_s1 + $0x8f0] sm:$0xf0]  ;;  %v7203_v36 = vor.u32 %v10044_v6, %v7200_v9 }
  0xfa   :  { %5325 = vmatpush.bf16.msrb.mxu2 %v7251_v13  ;;  %v7328_v13 = vld [vmem:[%s15922_s1 + $0x610] sm:$0xf0]  ;;  %v10232_v39 = vld [vmem:[%s15922_s1 + $0xae4] sm:$0xf] }
  0xfb   :  { %5338 = vmatpush.bf16.msrb.mxu3 %v7379_v17  ;;  %v10168_v17 = vld [vmem:[%s15922_s1 + $0x8e4] sm:$0xf]  ;;  %v7824_v32 = vld [vmem:[%s15922_s1 + $0x9f0] sm:$0xf0] }
  0xfc   :  { %5300 = vmatpush.bf16.msrb.mxu0 %v6979_v43  ;;  %v7952_v40 = vld [vmem:[%s15922_s1 + $0xaf0] sm:$0xf0]  ;;  %v7331_v43 = vor.u32 %v10076_v10, %v7328_v13  ;;  %v10132_v52 = vld [vmem:[%s15922_s1 + $0x7c4] sm:$0xf] }
  0xfd   :  { %5313 = vmatpush.bf16.msrb.mxu1 %v7107_v50  ;;  %v7699_v50 = vor.u32 %v10168_v17, %v7696_v26  ;;  %v7552_v54 = vld [vmem:[%s15922_s1 + $0x7d0] sm:$0xf0]  ;;  %v10164_v56 = vld [vmem:[%s15922_s1 + $0x8c4] sm:$0xf] }
  0xfe   :  { %5326 = vmatpush.bf16.msrb.mxu2 %v7235_v51  ;;  %v7827_v51 = vor.u32 %v10200_v27, %v7824_v32  ;;  %v7680_v58 = vld [vmem:[%s15922_s1 + $0x8d0] sm:$0xf0]  ;;  %v10196_v59 = vld [vmem:[%s15922_s1 + $0x9c4] sm:$0xf] }
  0xff   :  { %5339 = vmatpush.bf16.msrb.mxu3 %v7363_v57  ;;  %v7955_v57 = vor.u32 %v10232_v39, %v7952_v40  ;;  %v7808_v60 = vld [vmem:[%s15922_s1 + $0x9d0] sm:$0xf0]  ;;  %v10228_v61 = vld [vmem:[%s15922_s1 + $0xac4] sm:$0xf]  ;;  %v7683_v0 = vor.u32 %v10164_v56, %v7680_v58 }
 0x100   :  { %5301 = vmatpush.bf16.msrb.mxu0 %v6963_v63  ;;  %v7936_v62 = vld [vmem:[%s15922_s1 + $0xad0] sm:$0xf0]  ;;  %v7555_v63 = vor.u32 %v10132_v52, %v7552_v54  ;;  %v7811_v55 = vor.u32 %v10196_v59, %v7808_v60  ;;  %v10160_v4 = vld [vmem:[%s15922_s1 + $0x8a4] sm:$0xf] }
 0x101   :  { %5314 = vmatpush.bf16.msrb.mxu1 %v7091_v2  ;;  %v10128_v2 = vld [vmem:[%s15922_s1 + $0x7a4] sm:$0xf]  ;;  %v7939_v5 = vor.u32 %v10228_v61, %v7936_v62  ;;  %v7664_v6 = vld [vmem:[%s15922_s1 + $0x8b0] sm:$0xf0] }
 0x102   :  { %5327 = vmatpush.bf16.msrb.mxu2 %v7219_v3  ;;  %v7536_v3 = vld [vmem:[%s15922_s1 + $0x7b0] sm:$0xf0]  ;;  %v10224_v10 = vld [vmem:[%s15922_s1 + $0xaa4] sm:$0xf]  ;;  %v7667_v15 = vor.u32 %v10160_v4, %v7664_v6 }
 0x103   :  { %5340 = vmatpush.bf16.msrb.mxu3 %v7347_v8  ;;  %v10192_v8 = vld [vmem:[%s15922_s1 + $0x9a4] sm:$0xf]  ;;  %v7792_v9 = vld [vmem:[%s15922_s1 + $0x9b0] sm:$0xf0]  ;;  %v7539_v14 = vor.u32 %v10128_v2, %v7536_v3 }
 0x104   :  { %5302 = vmatpush.bf16.msrb.mxu0 %v6947_v24  ;;  %v7920_v13 = vld [vmem:[%s15922_s1 + $0xab0] sm:$0xf0]  ;;  %v7795_v53 = vor.u32 %v10192_v8, %v7792_v9  ;;  %v10124_v17 = vld [vmem:[%s15922_s1 + $0x784] sm:$0xf] }
 0x105   :  { %5315 = vmatpush.bf16.msrb.mxu1 %v7075_v34  ;;  %v7520_v21 = vld [vmem:[%s15922_s1 + $0x790] sm:$0xf0]  ;;  %v10156_v24 = vld [vmem:[%s15922_s1 + $0x884] sm:$0xf]  ;;  %v7923_v26 = vor.u32 %v10224_v10, %v7920_v13 }
 0x106   :  { %5328 = vmatpush.bf16.msrb.mxu2 %v7203_v36  ;;  %v7648_v27 = vld [vmem:[%s15922_s1 + $0x890] sm:$0xf0]  ;;  %v10188_v32 = vld [vmem:[%s15922_s1 + $0x984] sm:$0xf]  ;;  %v5096_v36 = vpop.f32.mrf.mxu0 }
 0x107   :  { %5341 = vmatpush.bf16.msrb.mxu3 %v7331_v43  ;;  %5303 = vmatmul.bf16.vlgmr.msrb.gmra.mxu0 %v11048_v20  ;;  %v7776_v34 = vld [vmem:[%s15922_s1 + $0x990] sm:$0xf0]  ;;  %v10220_v39 = vld [vmem:[%s15922_s1 + $0xa84] sm:$0xf]  ;;  %v5097_v43 = vadd.f32 %v5096_v36, %v12364_v48 }
 0x108   :  { %5347 = vmatpush.bf16.msra.mxu0 %v7571_v47  ;;  %5316 = vmatmul.bf16.vlgmr.msrb.gmra.mxu1 %v11208_v41  ;;  %v7904_v40 = vld [vmem:[%s15922_s1 + $0xa90] sm:$0xf0]  ;;  %v7523_v47 = vor.u32 %v10124_v17, %v7520_v21  ;;  %v7779_v52 = vor.u32 %v10188_v32, %v7776_v34  ;;  %v10120_v54 = vld [vmem:[%s15922_s1 + $0x764] sm:$0xf] }
 0x109   :  { %5360 = vmatpush.bf16.msra.mxu1 %v7699_v50  ;;  %5329 = vmatmul.bf16.vlgmr.msrb.gmra.mxu2 %v11212_v44  ;;  %v5109_v50 = vpop.f32.mrf.mxu1  ;;  %v7504_v56 = vld [vmem:[%s15922_s1 + $0x770] sm:$0xf0]  ;;  %v7907_v48 = vor.u32 %v10220_v39, %v7904_v40  ;;  %v10184_v60 = vld [vmem:[%s15922_s1 + $0x964] sm:$0xf] }
 0x10a   :  { %5373 = vmatpush.bf16.msra.mxu2 %v7827_v51  ;;  %5342 = vmatmul.bf16.vlgmr.msrb.gmra.mxu3 %v11200_v38  ;;  %v7651_v51 = vor.u32 %v10156_v24, %v7648_v27  ;;  %v5110_v58 = vadd.f32 %v5109_v50, %v5097_v43  ;;  %v7632_v59 = vld [vmem:[%s15922_s1 + $0x870] sm:$0xf0]  ;;  %v10216_v62 = vld [vmem:[%s15922_s1 + $0xa64] sm:$0xf] }
 0x10b   :  { %5386 = vmatpush.bf16.msra.mxu3 %v7955_v57  ;;  %v10152_v57 = vld [vmem:[%s15922_s1 + $0x864] sm:$0xf]  ;;  %v7760_v61 = vld [vmem:[%s15922_s1 + $0x970] sm:$0xf0] }
 0x10c   :  { %5348 = vmatpush.bf16.msra.mxu0 %v7555_v63  ;;  %v7888_v63 = vld [vmem:[%s15922_s1 + $0xa70] sm:$0xf0]  ;;  %v7763_v2 = vor.u32 %v10184_v60, %v7760_v61  ;;  %v10116_v3 = vld [vmem:[%s15922_s1 + $0x744] sm:$0xf]  ;;  %v5122_v8 = vpop.f32.mrf.mxu2 }
 0x10d   :  { %5361 = vmatpush.bf16.msra.mxu1 %v7683_v0  ;;  %v7507_v0 = vor.u32 %v10120_v54, %v7504_v56  ;;  %v7488_v4 = vld [vmem:[%s15922_s1 + $0x750] sm:$0xf0]  ;;  %v7891_v6 = vor.u32 %v10216_v62, %v7888_v63  ;;  %v10180_v10 = vld [vmem:[%s15922_s1 + $0x944] sm:$0xf] }
 0x10e   :  { %5374 = vmatpush.bf16.msra.mxu2 %v7811_v55  ;;  %v7635_v55 = vor.u32 %v10152_v57, %v7632_v59  ;;  %v7616_v9 = vld [vmem:[%s15922_s1 + $0x850] sm:$0xf0]  ;;  %v5098_v21 = vpop.f32.mrf.mxu0  ;;  %v7491_v24 = vor.u32 %v10116_v3, %v7488_v4  ;;  %v10112_v36 = vld [vmem:[%s15922_s1 + $0x724] sm:$0xf] }
 0x10f   :  { %5387 = vmatpush.bf16.msra.mxu3 %v7939_v5  ;;  %v10148_v5 = vld [vmem:[%s15922_s1 + $0x844] sm:$0xf]  ;;  %v7744_v13 = vld [vmem:[%s15922_s1 + $0x950] sm:$0xf0] }
 0x110   :  { %5349 = vmatpush.bf16.msra.mxu0 %v7539_v14  ;;  %v5123_v14 = vadd.f32 %v5122_v8, %v5110_v58  ;;  %v7872_v17 = vld [vmem:[%s15922_s1 + $0xa50] sm:$0xf0]  ;;  %v7619_v32 = vor.u32 %v10148_v5, %v7616_v9  ;;  %v7747_v34 = vor.u32 %v10180_v10, %v7744_v13  ;;  %v10144_v40 = vld [vmem:[%s15922_s1 + $0x824] sm:$0xf] }
 0x111   :  { %5362 = vmatpush.bf16.msra.mxu1 %v7667_v15  ;;  %v5135_v15 = vpop.f32.mrf.mxu3  ;;  %v7472_v39 = vld [vmem:[%s15922_s1 + $0x730] sm:$0xf0]  ;;  %v10176_v50 = vld [vmem:[%s15922_s1 + $0x924] sm:$0xf] }
 0x112   :  { %5375 = vmatpush.bf16.msra.mxu2 %v7795_v53  ;;  %v10212_v53 = vld [vmem:[%s15922_s1 + $0xa44] sm:$0xf]  ;;  %v12563_v27 = vadd.f32 %v5135_v15, %v5123_v14  ;;  %v7856_v54 = vld [vmem:[%s15922_s1 + $0xa30] sm:$0xf0]  ;;  %v7475_v56 = vor.u32 %v10112_v36, %v7472_v39 }
 0x113   :  { %5388 = vmatpush.bf16.msra.mxu3 %v7923_v26  ;;  %v5111_v26 = vpop.f32.mrf.mxu1  ;;  %v7875_v43 = vor.u32 %v10212_v53, %v7872_v17  ;;  %v10108_v57 = vld [vmem:[%s15922_s1 + $0x704] sm:$0xf]  ;;  %v7584_v61 = vld [vmem:[%s15922_s1 + $0x810] sm:$0xf0] }
 0x114   :  { %5350 = vmatpush.bf16.msra.mxu0 %v7523_v47  ;;  %v7600_v47 = vld [vmem:[%s15922_s1 + $0x830] sm:$0xf0]  ;;  %v10140_v60 = vld [vmem:[%s15922_s1 + $0x804] sm:$0xf]  ;;  %v5124_v3 = vpop.f32.mrf.mxu2 }
 0x115   :  { %5363 = vmatpush.bf16.msra.mxu1 %v7651_v51  ;;  %v7728_v51 = vld [vmem:[%s15922_s1 + $0x930] sm:$0xf0]  ;;  %v7603_v58 = vor.u32 %v10144_v40, %v7600_v47  ;;  %v10172_v62 = vld [vmem:[%s15922_s1 + $0x904] sm:$0xf]  ;;  %v7587_v15 = vor.u32 %v10140_v60, %v7584_v61 }
 0x116   :  { %5376 = vmatpush.bf16.msra.mxu2 %v7779_v52  ;;  %v10208_v52 = vld [vmem:[%s15922_s1 + $0xa24] sm:$0xf]  ;;  %v7731_v59 = vor.u32 %v10176_v50, %v7728_v51  ;;  %v8080_v5 = vld [vmem:[%s15922_s1 + $0xbf0] sm:$0xf0] }
 0x117   :  { %5389 = vmatpush.bf16.msra.mxu3 %v7907_v48  ;;  %v7456_v48 = vld [vmem:[%s15922_s1 + $0x710] sm:$0xf0]  ;;  %v7859_v63 = vor.u32 %v10208_v52, %v7856_v54  ;;  %v10264_v4 = vld [vmem:[%s15922_s1 + $0xbe4] sm:$0xf] }
 0x118   :  { %5351 = vmatpush.bf16.msra.mxu0 %v7507_v0  ;;  %v7712_v0 = vld [vmem:[%s15922_s1 + $0x910] sm:$0xf0]  ;;  %v7459_v9 = vor.u32 %v10108_v57, %v7456_v48  ;;  %v10328_v13 = vld [vmem:[%s15922_s1 + $0xde4] sm:$0xf]  ;;  %v8083_v26 = vor.u32 %v10264_v4, %v8080_v5 }
 0x119   :  { %5364 = vmatpush.bf16.msra.mxu1 %v7635_v55  ;;  %v10204_v55 = vld [vmem:[%s15922_s1 + $0xa04] sm:$0xf]  ;;  %v5137_v8 = vpop.f32.mrf.mxu3  ;;  %v8208_v10 = vld [vmem:[%s15922_s1 + $0xcf0] sm:$0xf0]  ;;  %v7715_v53 = vor.u32 %v10172_v62, %v7712_v0 }
 0x11a   :  { %5377 = vmatpush.bf16.msra.mxu2 %v7763_v2  ;;  %v7840_v2 = vld [vmem:[%s15922_s1 + $0xa10] sm:$0xf0]  ;;  %v10360_v17 = vld [vmem:[%s15922_s1 + $0xee4] sm:$0xf] }
 0x11b   :  { %5390 = vmatpush.bf16.msra.mxu3 %v7891_v6  ;;  %v10296_v6 = vld [vmem:[%s15922_s1 + $0xce4] sm:$0xf]  ;;  %v8336_v14 = vld [vmem:[%s15922_s1 + $0xdf0] sm:$0xf0] }
 0x11c   :  { %5352 = vmatpush.bf16.msra.mxu0 %v7491_v24  ;;  %v8464_v21 = vld [vmem:[%s15922_s1 + $0xef0] sm:$0xf0]  ;;  %v7843_v24 = vor.u32 %v10204_v55, %v7840_v2  ;;  %v10260_v36 = vld [vmem:[%s15922_s1 + $0xbc4] sm:$0xf] }
 0x11d   :  { %5365 = vmatpush.bf16.msra.mxu1 %v7619_v32  ;;  %v8211_v32 = vor.u32 %v10296_v6, %v8208_v10  ;;  %v8064_v39 = vld [vmem:[%s15922_s1 + $0xbd0] sm:$0xf0]  ;;  %v10292_v40 = vld [vmem:[%s15922_s1 + $0xcc4] sm:$0xf] }
 0x11e   :  { %5378 = vmatpush.bf16.msra.mxu2 %v7747_v34  ;;  %v8339_v34 = vor.u32 %v10328_v13, %v8336_v14  ;;  %v8192_v47 = vld [vmem:[%s15922_s1 + $0xcd0] sm:$0xf0]  ;;  %v10324_v50 = vld [vmem:[%s15922_s1 + $0xdc4] sm:$0xf] }
 0x11f   :  { %5391 = vmatpush.bf16.msra.mxu3 %v7875_v43  ;;  %v8467_v43 = vor.u32 %v10360_v17, %v8464_v21  ;;  %v8320_v51 = vld [vmem:[%s15922_s1 + $0xdd0] sm:$0xf0]  ;;  %v10356_v52 = vld [vmem:[%s15922_s1 + $0xec4] sm:$0xf]  ;;  %v8195_v57 = vor.u32 %v10292_v40, %v8192_v47 }
 0x120   :  { %5353 = vmatpush.bf16.msra.mxu0 %v7475_v56  ;;  %v8448_v54 = vld [vmem:[%s15922_s1 + $0xed0] sm:$0xf0]  ;;  %v8067_v56 = vor.u32 %v10260_v36, %v8064_v39  ;;  %v8323_v48 = vor.u32 %v10324_v50, %v8320_v51  ;;  %v10288_v60 = vld [vmem:[%s15922_s1 + $0xca4] sm:$0xf] }
 0x121   :  { %5366 = vmatpush.bf16.msra.mxu1 %v7603_v58  ;;  %v10256_v58 = vld [vmem:[%s15922_s1 + $0xba4] sm:$0xf]  ;;  %v8451_v61 = vor.u32 %v10356_v52, %v8448_v54  ;;  %v8176_v62 = vld [vmem:[%s15922_s1 + $0xcb0] sm:$0xf0] }
 0x122   :  { %5379 = vmatpush.bf16.msra.mxu2 %v7731_v59  ;;  %v8048_v59 = vld [vmem:[%s15922_s1 + $0xbb0] sm:$0xf0]  ;;  %v10352_v55 = vld [vmem:[%s15922_s1 + $0xea4] sm:$0xf]  ;;  %v8179_v4 = vor.u32 %v10288_v60, %v8176_v62 }
 0x123   :  { %5392 = vmatpush.bf16.msra.mxu3 %v7859_v63  ;;  %v10320_v63 = vld [vmem:[%s15922_s1 + $0xda4] sm:$0xf]  ;;  %v8304_v0 = vld [vmem:[%s15922_s1 + $0xdb0] sm:$0xf0]  ;;  %v8051_v3 = vor.u32 %v10256_v58, %v8048_v59 }
 0x124   :  { %5354 = vmatpush.bf16.msra.mxu0 %v7459_v9  ;;  %v8432_v2 = vld [vmem:[%s15922_s1 + $0xeb0] sm:$0xf0]  ;;  %v8307_v5 = vor.u32 %v10320_v63, %v8304_v0  ;;  %v10252_v6 = vld [vmem:[%s15922_s1 + $0xb84] sm:$0xf] }
 0x125   :  { %5367 = vmatpush.bf16.msra.mxu1 %v7587_v15  ;;  %v8032_v8 = vld [vmem:[%s15922_s1 + $0xb90] sm:$0xf0]  ;;  %v10284_v9 = vld [vmem:[%s15922_s1 + $0xc84] sm:$0xf]  ;;  %v8435_v10 = vor.u32 %v10352_v55, %v8432_v2 }
 0x126   :  { %5380 = vmatpush.bf16.msra.mxu2 %v7715_v53  ;;  %v8160_v13 = vld [vmem:[%s15922_s1 + $0xc90] sm:$0xf0]  ;;  %v10316_v14 = vld [vmem:[%s15922_s1 + $0xd84] sm:$0xf]  ;;  %v5148_v53 = vpop.f32.mrf.mxu0 }
 0x127   :  { %5393 = vmatpush.bf16.msra.mxu3 %v7843_v24  ;;  %5355 = vmatmul.bf16.vlgmr.msra.gmra.mxu0 %v11210_v42  ;;  %v8288_v15 = vld [vmem:[%s15922_s1 + $0xd90] sm:$0xf0]  ;;  %v10348_v17 = vld [vmem:[%s15922_s1 + $0xe84] sm:$0xf]  ;;  %v5149_v24 = vadd.f32 %v5148_v53, %v12563_v27 }
 0x128   :  { %5399 = vmatpush.bf16.msrb.mxu0 %v8083_v26  ;;  %5368 = vmatmul.bf16.vlgmr.msra.gmra.mxu1 %v11401_v25  ;;  %v8416_v21 = vld [vmem:[%s15922_s1 + $0xe90] sm:$0xf0]  ;;  %v8035_v26 = vor.u32 %v10252_v6, %v8032_v8  ;;  %v8291_v36 = vor.u32 %v10316_v14, %v8288_v15  ;;  %v10248_v39 = vld [vmem:[%s15922_s1 + $0xb64] sm:$0xf] }
 0x129   :  { %5412 = vmatpush.bf16.msrb.mxu1 %v8211_v32  ;;  %5381 = vmatmul.bf16.vlgmr.msra.gmra.mxu2 %v11414_v30  ;;  %v5161_v32 = vpop.f32.mrf.mxu1  ;;  %v8016_v40 = vld [vmem:[%s15922_s1 + $0xb70] sm:$0xf0]  ;;  %v8419_v27 = vor.u32 %v10348_v17, %v8416_v21  ;;  %v10312_v51 = vld [vmem:[%s15922_s1 + $0xd64] sm:$0xf] }
 0x12a   :  { %5425 = vmatpush.bf16.msrb.mxu2 %v8339_v34  ;;  %5394 = vmatmul.bf16.vlgmr.msra.gmra.mxu3 %v11412_v29  ;;  %v8163_v34 = vor.u32 %v10284_v9, %v8160_v13  ;;  %v5162_v47 = vadd.f32 %v5161_v32, %v5149_v24  ;;  %v8144_v50 = vld [vmem:[%s15922_s1 + $0xc70] sm:$0xf0]  ;;  %v10344_v54 = vld [vmem:[%s15922_s1 + $0xe64] sm:$0xf]  ;;  %v5174_v63 = vpop.f32.mrf.mxu2 }
 0x12b   :  { %5438 = vmatpush.bf16.msrb.mxu3 %v8467_v43  ;;  %v10280_v43 = vld [vmem:[%s15922_s1 + $0xc64] sm:$0xf]  ;;  %v8272_v52 = vld [vmem:[%s15922_s1 + $0xd70] sm:$0xf0] }
 0x12c   :  { %5400 = vmatpush.bf16.msrb.mxu0 %v8067_v56  ;;  %v8400_v56 = vld [vmem:[%s15922_s1 + $0xe70] sm:$0xf0]  ;;  %v8275_v58 = vor.u32 %v10312_v51, %v8272_v52  ;;  %v10244_v59 = vld [vmem:[%s15922_s1 + $0xb44] sm:$0xf] }
 0x12d   :  { %5413 = vmatpush.bf16.msrb.mxu1 %v8195_v57  ;;  %v8019_v57 = vor.u32 %v10248_v39, %v8016_v40  ;;  %v8000_v60 = vld [vmem:[%s15922_s1 + $0xb50] sm:$0xf0]  ;;  %v8403_v62 = vor.u32 %v10344_v54, %v8400_v56  ;;  %v10308_v55 = vld [vmem:[%s15922_s1 + $0xd44] sm:$0xf] }
 0x12e   :  { %5426 = vmatpush.bf16.msrb.mxu2 %v8323_v48  ;;  %v8147_v48 = vor.u32 %v10280_v43, %v8144_v50  ;;  %v8128_v0 = vld [vmem:[%s15922_s1 + $0xc50] sm:$0xf0]  ;;  %v5150_v8 = vpop.f32.mrf.mxu0  ;;  %v8003_v9 = vor.u32 %v10244_v59, %v8000_v60  ;;  %v10240_v53 = vld [vmem:[%s15922_s1 + $0xb24] sm:$0xf] }
 0x12f   :  { %5439 = vmatpush.bf16.msrb.mxu3 %v8451_v61  ;;  %v10276_v61 = vld [vmem:[%s15922_s1 + $0xc44] sm:$0xf]  ;;  %v8256_v2 = vld [vmem:[%s15922_s1 + $0xd50] sm:$0xf0] }
 0x130   :  { %5401 = vmatpush.bf16.msrb.mxu0 %v8051_v3  ;;  %v5175_v3 = vadd.f32 %v5174_v63, %v5162_v47  ;;  %v8384_v6 = vld [vmem:[%s15922_s1 + $0xe50] sm:$0xf0]  ;;  %v8131_v14 = vor.u32 %v10276_v61, %v8128_v0  ;;  %v8259_v15 = vor.u32 %v10308_v55, %v8256_v2  ;;  %v10272_v21 = vld [vmem:[%s15922_s1 + $0xc24] sm:$0xf] }
 0x131   :  { %5414 = vmatpush.bf16.msrb.mxu1 %v8179_v4  ;;  %v5187_v4 = vpop.f32.mrf.mxu3  ;;  %v7984_v17 = vld [vmem:[%s15922_s1 + $0xb30] sm:$0xf0]  ;;  %v10304_v32 = vld [vmem:[%s15922_s1 + $0xd24] sm:$0xf] }
 0x132   :  { %5427 = vmatpush.bf16.msrb.mxu2 %v8307_v5  ;;  %v10340_v5 = vld [vmem:[%s15922_s1 + $0xe44] sm:$0xf]  ;;  %v12762_v13 = vadd.f32 %v5187_v4, %v5175_v3  ;;  %v8368_v39 = vld [vmem:[%s15922_s1 + $0xe30] sm:$0xf0]  ;;  %v7987_v40 = vor.u32 %v10240_v53, %v7984_v17  ;;  %v5176_v59 = vpop.f32.mrf.mxu2 }
 0x133   :  { %5440 = vmatpush.bf16.msrb.mxu3 %v8435_v10  ;;  %v5163_v10 = vpop.f32.mrf.mxu1  ;;  %v8387_v24 = vor.u32 %v10340_v5, %v8384_v6  ;;  %v10236_v43 = vld [vmem:[%s15922_s1 + $0xb04] sm:$0xf]  ;;  %v8096_v52 = vld [vmem:[%s15922_s1 + $0xc10] sm:$0xf0] }
 0x134   :  { %5402 = vmatpush.bf16.msrb.mxu0 %v8035_v26  ;;  %v8112_v26 = vld [vmem:[%s15922_s1 + $0xc30] sm:$0xf0]  ;;  %v10268_v51 = vld [vmem:[%s15922_s1 + $0xc04] sm:$0xf] }
 0x135   :  { %5415 = vmatpush.bf16.msrb.mxu1 %v8163_v34  ;;  %v8240_v34 = vld [vmem:[%s15922_s1 + $0xd30] sm:$0xf0]  ;;  %v8115_v47 = vor.u32 %v10272_v21, %v8112_v26  ;;  %v10300_v54 = vld [vmem:[%s15922_s1 + $0xd04] sm:$0xf]  ;;  %v8099_v4 = vor.u32 %v10268_v51, %v8096_v52 }
 0x136   :  { %5428 = vmatpush.bf16.msrb.mxu2 %v8291_v36  ;;  %v10336_v36 = vld [vmem:[%s15922_s1 + $0xe24] sm:$0xf]  ;;  %v8243_v50 = vor.u32 %v10304_v32, %v8240_v34  ;;  %v8592_v61 = vld [vmem:[%s15922_s1 + $0xff0] sm:$0xf0] }
 0x137   :  { %5441 = vmatpush.bf16.msrb.mxu3 %v8419_v27  ;;  %v7968_v27 = vld [vmem:[%s15922_s1 + $0xb10] sm:$0xf0]  ;;  %v8371_v56 = vor.u32 %v10336_v36, %v8368_v39  ;;  %v10392_v60 = vld [vmem:[%s15922_s1 + $0xfe4] sm:$0xf] }
 0x138   :  { %5403 = vmatpush.bf16.msrb.mxu0 %v8019_v57  ;;  %v8224_v57 = vld [vmem:[%s15922_s1 + $0xd10] sm:$0xf0]  ;;  %v7971_v0 = vor.u32 %v10236_v43, %v7968_v27  ;;  %v10456_v2 = vld [vmem:[%s15922_s1 + $0x11e4] sm:$0xf]  ;;  %v8595_v10 = vor.u32 %v10392_v60, %v8592_v61 }
 0x139   :  { %5416 = vmatpush.bf16.msrb.mxu1 %v8147_v48  ;;  %v10332_v48 = vld [vmem:[%s15922_s1 + $0xe04] sm:$0xf]  ;;  %v5189_v63 = vpop.f32.mrf.mxu3  ;;  %v8720_v55 = vld [vmem:[%s15922_s1 + $0x10f0] sm:$0xf0]  ;;  %v8227_v5 = vor.u32 %v10300_v54, %v8224_v57 }
 0x13a   :  { %5429 = vmatpush.bf16.msrb.mxu2 %v8275_v58  ;;  %v8352_v58 = vld [vmem:[%s15922_s1 + $0xe10] sm:$0xf0]  ;;  %v10488_v6 = vld [vmem:[%s15922_s1 + $0x12e4] sm:$0xf] }
 0x13b   :  { %5442 = vmatpush.bf16.msrb.mxu3 %v8403_v62  ;;  %v10424_v62 = vld [vmem:[%s15922_s1 + $0x10e4] sm:$0xf]  ;;  %v8848_v3 = vld [vmem:[%s15922_s1 + $0x11f0] sm:$0xf0] }
 0x13c   :  { %5404 = vmatpush.bf16.msrb.mxu0 %v8003_v9  ;;  %v8976_v8 = vld [vmem:[%s15922_s1 + $0x12f0] sm:$0xf0]  ;;  %v8355_v9 = vor.u32 %v10332_v48, %v8352_v58  ;;  %v10388_v53 = vld [vmem:[%s15922_s1 + $0xfc4] sm:$0xf] }
 0x13d   :  { %5417 = vmatpush.bf16.msrb.mxu1 %v8131_v14  ;;  %v8723_v14 = vor.u32 %v10424_v62, %v8720_v55  ;;  %v8576_v17 = vld [vmem:[%s15922_s1 + $0xfd0] sm:$0xf0]  ;;  %v10420_v21 = vld [vmem:[%s15922_s1 + $0x10c4] sm:$0xf] }
 0x13e   :  { %5430 = vmatpush.bf16.msrb.mxu2 %v8259_v15  ;;  %v8851_v15 = vor.u32 %v10456_v2, %v8848_v3  ;;  %v8704_v26 = vld [vmem:[%s15922_s1 + $0x10d0] sm:$0xf0]  ;;  %v10452_v32 = vld [vmem:[%s15922_s1 + $0x11c4] sm:$0xf] }
 0x13f   :  { %5443 = vmatpush.bf16.msrb.mxu3 %v8387_v24  ;;  %v8979_v24 = vor.u32 %v10488_v6, %v8976_v8  ;;  %v8832_v34 = vld [vmem:[%s15922_s1 + $0x11d0] sm:$0xf0]  ;;  %v10484_v36 = vld [vmem:[%s15922_s1 + $0x12c4] sm:$0xf]  ;;  %v8707_v43 = vor.u32 %v10420_v21, %v8704_v26 }
 0x140   :  { %5405 = vmatpush.bf16.msrb.mxu0 %v7987_v40  ;;  %v8960_v39 = vld [vmem:[%s15922_s1 + $0x12d0] sm:$0xf0]  ;;  %v8579_v40 = vor.u32 %v10388_v53, %v8576_v17  ;;  %v8835_v27 = vor.u32 %v10452_v32, %v8832_v34  ;;  %v10416_v51 = vld [vmem:[%s15922_s1 + $0x10a4] sm:$0xf] }
 0x141   :  { %5418 = vmatpush.bf16.msrb.mxu1 %v8115_v47  ;;  %v10384_v47 = vld [vmem:[%s15922_s1 + $0xfa4] sm:$0xf]  ;;  %v8963_v52 = vor.u32 %v10484_v36, %v8960_v39  ;;  %v8688_v54 = vld [vmem:[%s15922_s1 + $0x10b0] sm:$0xf0] }
 0x142   :  { %5431 = vmatpush.bf16.msrb.mxu2 %v8243_v50  ;;  %v8560_v50 = vld [vmem:[%s15922_s1 + $0xfb0] sm:$0xf0]  ;;  %v10480_v48 = vld [vmem:[%s15922_s1 + $0x12a4] sm:$0xf]  ;;  %v8691_v60 = vor.u32 %v10416_v51, %v8688_v54 }
 0x143   :  { %5444 = vmatpush.bf16.msrb.mxu3 %v8371_v56  ;;  %v10448_v56 = vld [vmem:[%s15922_s1 + $0x11a4] sm:$0xf]  ;;  %v8816_v57 = vld [vmem:[%s15922_s1 + $0x11b0] sm:$0xf0]  ;;  %v8563_v59 = vor.u32 %v10384_v47, %v8560_v50 }
 0x144   :  { %5406 = vmatpush.bf16.msrb.mxu0 %v7971_v0  ;;  %v8944_v58 = vld [vmem:[%s15922_s1 + $0x12b0] sm:$0xf0]  ;;  %v8819_v61 = vor.u32 %v10448_v56, %v8816_v57  ;;  %v10380_v62 = vld [vmem:[%s15922_s1 + $0xf84] sm:$0xf] }
 0x145   :  { %5419 = vmatpush.bf16.msrb.mxu1 %v8099_v4  ;;  %v8544_v63 = vld [vmem:[%s15922_s1 + $0xf90] sm:$0xf0]  ;;  %v10412_v0 = vld [vmem:[%s15922_s1 + $0x1084] sm:$0xf]  ;;  %v8947_v55 = vor.u32 %v10480_v48, %v8944_v58 }
 0x146   :  { %5432 = vmatpush.bf16.msrb.mxu2 %v8227_v5  ;;  %v8672_v2 = vld [vmem:[%s15922_s1 + $0x1090] sm:$0xf0]  ;;  %v10444_v3 = vld [vmem:[%s15922_s1 + $0x1184] sm:$0xf]  ;;  %v5200_v5 = vpop.f32.mrf.mxu0 }
 0x147   :  { %5445 = vmatpush.bf16.msrb.mxu3 %v8355_v9  ;;  %5407 = vmatmul.bf16.vlgmr.msrb.gmra.mxu0 %v11422_v33  ;;  %v8800_v4 = vld [vmem:[%s15922_s1 + $0x1190] sm:$0xf0]  ;;  %v10476_v6 = vld [vmem:[%s15922_s1 + $0x1284] sm:$0xf]  ;;  %v5201_v9 = vadd.f32 %v5200_v5, %v12762_v13 }
 0x148   :  { %5451 = vmatpush.bf16.msra.mxu0 %v8595_v10  ;;  %5420 = vmatmul.bf16.vlgmr.msrb.gmra.mxu1 %v11611_v23  ;;  %v8928_v8 = vld [vmem:[%s15922_s1 + $0x1290] sm:$0xf0]  ;;  %v8547_v10 = vor.u32 %v10380_v62, %v8544_v63  ;;  %v8803_v53 = vor.u32 %v10444_v3, %v8800_v4  ;;  %v10376_v17 = vld [vmem:[%s15922_s1 + $0xf64] sm:$0xf] }
 0x149   :  { %5464 = vmatpush.bf16.msra.mxu1 %v8723_v14  ;;  %5433 = vmatmul.bf16.vlgmr.msrb.gmra.mxu2 %v11624_v31  ;;  %v5213_v14 = vpop.f32.mrf.mxu1  ;;  %v8528_v21 = vld [vmem:[%s15922_s1 + $0xf70] sm:$0xf0]  ;;  %v8931_v13 = vor.u32 %v10476_v6, %v8928_v8  ;;  %v10440_v34 = vld [vmem:[%s15922_s1 + $0x1164] sm:$0xf] }
 0x14a   :  { %5477 = vmatpush.bf16.msra.mxu2 %v8851_v15  ;;  %5446 = vmatmul.bf16.vlgmr.msrb.gmra.mxu3 %v11622_v28  ;;  %v8675_v15 = vor.u32 %v10412_v0, %v8672_v2  ;;  %v5214_v26 = vadd.f32 %v5213_v14, %v5201_v9  ;;  %v8656_v32 = vld [vmem:[%s15922_s1 + $0x1070] sm:$0xf0]  ;;  %v10472_v39 = vld [vmem:[%s15922_s1 + $0x1264] sm:$0xf] }
 0x14b   :  { %5490 = vmatpush.bf16.msra.mxu3 %v8979_v24  ;;  %v10408_v24 = vld [vmem:[%s15922_s1 + $0x1064] sm:$0xf]  ;;  %v8784_v36 = vld [vmem:[%s15922_s1 + $0x1170] sm:$0xf0] }
 0x14c   :  { %5452 = vmatpush.bf16.msra.mxu0 %v8579_v40  ;;  %v8912_v40 = vld [vmem:[%s15922_s1 + $0x1270] sm:$0xf0]  ;;  %v8787_v47 = vor.u32 %v10440_v34, %v8784_v36  ;;  %v10372_v50 = vld [vmem:[%s15922_s1 + $0xf44] sm:$0xf]  ;;  %v5226_v56 = vpop.f32.mrf.mxu2 }
 0x14d   :  { %5465 = vmatpush.bf16.msra.mxu1 %v8707_v43  ;;  %v8531_v43 = vor.u32 %v10376_v17, %v8528_v21  ;;  %v8512_v51 = vld [vmem:[%s15922_s1 + $0xf50] sm:$0xf0]  ;;  %v8915_v54 = vor.u32 %v10472_v39, %v8912_v40  ;;  %v10436_v48 = vld [vmem:[%s15922_s1 + $0x1144] sm:$0xf] }
 0x14e   :  { %5478 = vmatpush.bf16.msra.mxu2 %v8835_v27  ;;  %v8659_v27 = vor.u32 %v10408_v24, %v8656_v32  ;;  %v8640_v57 = vld [vmem:[%s15922_s1 + $0x1050] sm:$0xf0]  ;;  %v5202_v63 = vpop.f32.mrf.mxu0  ;;  %v8515_v0 = vor.u32 %v10372_v50, %v8512_v51  ;;  %v10368_v5 = vld [vmem:[%s15922_s1 + $0xf24] sm:$0xf] }
 0x14f   :  { %5491 = vmatpush.bf16.msra.mxu3 %v8963_v52  ;;  %v10404_v52 = vld [vmem:[%s15922_s1 + $0x1044] sm:$0xf]  ;;  %v8768_v58 = vld [vmem:[%s15922_s1 + $0x1150] sm:$0xf0] }
 0x150   :  { %5453 = vmatpush.bf16.msra.mxu0 %v8563_v59  ;;  %v5227_v59 = vadd.f32 %v5226_v56, %v5214_v26  ;;  %v8896_v62 = vld [vmem:[%s15922_s1 + $0x1250] sm:$0xf0]  ;;  %v8643_v3 = vor.u32 %v10404_v52, %v8640_v57  ;;  %v8771_v4 = vor.u32 %v10436_v48, %v8768_v58  ;;  %v10400_v8 = vld [vmem:[%s15922_s1 + $0x1024] sm:$0xf] }
 0x151   :  { %5466 = vmatpush.bf16.msra.mxu1 %v8691_v60  ;;  %v5239_v60 = vpop.f32.mrf.mxu3  ;;  %v8496_v6 = vld [vmem:[%s15922_s1 + $0xf30] sm:$0xf0]  ;;  %v10432_v14 = vld [vmem:[%s15922_s1 + $0x1124] sm:$0xf] }
 0x152   :  { %5479 = vmatpush.bf16.msra.mxu2 %v8819_v61  ;;  %v10468_v61 = vld [vmem:[%s15922_s1 + $0x1244] sm:$0xf]  ;;  %v12961_v2 = vadd.f32 %v5239_v60, %v5227_v59  ;;  %v8880_v17 = vld [vmem:[%s15922_s1 + $0x1230] sm:$0xf0]  ;;  %v8499_v21 = vor.u32 %v10368_v5, %v8496_v6 }
 0x153   :  { %5492 = vmatpush.bf16.msra.mxu3 %v8947_v55  ;;  %v5215_v55 = vpop.f32.mrf.mxu1  ;;  %v8899_v9 = vor.u32 %v10468_v61, %v8896_v62  ;;  %v10364_v24 = vld [vmem:[%s15922_s1 + $0xf04] sm:$0xf]  ;;  %v8608_v36 = vld [vmem:[%s15922_s1 + $0x1010] sm:$0xf0] }
 0x154   :  { %5454 = vmatpush.bf16.msra.mxu0 %v8547_v10  ;;  %v8624_v10 = vld [vmem:[%s15922_s1 + $0x1030] sm:$0xf0]  ;;  %v10396_v34 = vld [vmem:[%s15922_s1 + $0x1004] sm:$0xf]  ;;  %v5228_v50 = vpop.f32.mrf.mxu2 }
 0x155   :  { %5467 = vmatpush.bf16.msra.mxu1 %v8675_v15  ;;  %v8752_v15 = vld [vmem:[%s15922_s1 + $0x1130] sm:$0xf0]  ;;  %v8627_v26 = vor.u32 %v10400_v8, %v8624_v10  ;;  %v10428_v39 = vld [vmem:[%s15922_s1 + $0x1104] sm:$0xf]  ;;  %v8611_v60 = vor.u32 %v10396_v34, %v8608_v36 }
 0x156   :  { %5480 = vmatpush.bf16.msra.mxu2 %v8803_v53  ;;  %v10464_v53 = vld [vmem:[%s15922_s1 + $0x1224] sm:$0xf]  ;;  %v8755_v32 = vor.u32 %v10432_v14, %v8752_v15  ;;  %v9104_v52 = vld [vmem:[%s15922_s1 + $0x13f0] sm:$0xf0] }
 0x157   :  { %5493 = vmatpush.bf16.msra.mxu3 %v8931_v13  ;;  %v8480_v13 = vld [vmem:[%s15922_s1 + $0xf10] sm:$0xf0]  ;;  %v8883_v40 = vor.u32 %v10464_v53, %v8880_v17  ;;  %v10520_v51 = vld [vmem:[%s15922_s1 + $0x13e4] sm:$0xf] }
 0x158   :  { %5455 = vmatpush.bf16.msra.mxu0 %v8531_v43  ;;  %v8736_v43 = vld [vmem:[%s15922_s1 + $0x1110] sm:$0xf0]  ;;  %v8483_v57 = vor.u32 %v10364_v24, %v8480_v13  ;;  %v10584_v58 = vld [vmem:[%s15922_s1 + $0x15e4] sm:$0xf]  ;;  %v9107_v55 = vor.u32 %v10520_v51, %v9104_v52 }
 0x159   :  { %5468 = vmatpush.bf16.msra.mxu1 %v8659_v27  ;;  %v10460_v27 = vld [vmem:[%s15922_s1 + $0x1204] sm:$0xf]  ;;  %v5241_v56 = vpop.f32.mrf.mxu3  ;;  %v9232_v48 = vld [vmem:[%s15922_s1 + $0x14f0] sm:$0xf0]  ;;  %v8739_v61 = vor.u32 %v10428_v39, %v8736_v43 }
 0x15a   :  { %5481 = vmatpush.bf16.msra.mxu2 %v8787_v47  ;;  %v8864_v47 = vld [vmem:[%s15922_s1 + $0x1210] sm:$0xf0]  ;;  %v10616_v62 = vld [vmem:[%s15922_s1 + $0x16e4] sm:$0xf] }
 0x15b   :  { %5494 = vmatpush.bf16.msra.mxu3 %v8915_v54  ;;  %v10552_v54 = vld [vmem:[%s15922_s1 + $0x14e4] sm:$0xf]  ;;  %v9360_v59 = vld [vmem:[%s15922_s1 + $0x15f0] sm:$0xf0] }
 0x15c   :  { %5456 = vmatpush.bf16.msra.mxu0 %v8515_v0  ;;  %v9488_v63 = vld [vmem:[%s15922_s1 + $0x16f0] sm:$0xf0]  ;;  %v8867_v0 = vor.u32 %v10460_v27, %v8864_v47  ;;  %v10516_v5 = vld [vmem:[%s15922_s1 + $0x13c4] sm:$0xf] }
 0x15d   :  { %5469 = vmatpush.bf16.msra.mxu1 %v8643_v3  ;;  %v9235_v3 = vor.u32 %v10552_v54, %v9232_v48  ;;  %v9088_v6 = vld [vmem:[%s15922_s1 + $0x13d0] sm:$0xf0]  ;;  %v10548_v8 = vld [vmem:[%s15922_s1 + $0x14c4] sm:$0xf] }
 0x15e   :  { %5482 = vmatpush.bf16.msra.mxu2 %v8771_v4  ;;  %v9363_v4 = vor.u32 %v10584_v58, %v9360_v59  ;;  %v9216_v10 = vld [vmem:[%s15922_s1 + $0x14d0] sm:$0xf0]  ;;  %v10580_v14 = vld [vmem:[%s15922_s1 + $0x15c4] sm:$0xf] }
 0x15f   :  { %5495 = vmatpush.bf16.msra.mxu3 %v8899_v9  ;;  %v9491_v9 = vor.u32 %v10616_v62, %v9488_v63  ;;  %v9344_v15 = vld [vmem:[%s15922_s1 + $0x15d0] sm:$0xf0]  ;;  %v10612_v53 = vld [vmem:[%s15922_s1 + $0x16c4] sm:$0xf]  ;;  %v9219_v24 = vor.u32 %v10548_v8, %v9216_v10 }
 0x160   :  { %5457 = vmatpush.bf16.msra.mxu0 %v8499_v21  ;;  %v9472_v17 = vld [vmem:[%s15922_s1 + $0x16d0] sm:$0xf0]  ;;  %v9091_v21 = vor.u32 %v10516_v5, %v9088_v6  ;;  %v9347_v13 = vor.u32 %v10580_v14, %v9344_v15  ;;  %v10544_v34 = vld [vmem:[%s15922_s1 + $0x14a4] sm:$0xf] }
 0x161   :  { %5470 = vmatpush.bf16.msra.mxu1 %v8627_v26  ;;  %v10512_v26 = vld [vmem:[%s15922_s1 + $0x13a4] sm:$0xf]  ;;  %v9475_v36 = vor.u32 %v10612_v53, %v9472_v17  ;;  %v9200_v39 = vld [vmem:[%s15922_s1 + $0x14b0] sm:$0xf0] }
 0x162   :  { %5483 = vmatpush.bf16.msra.mxu2 %v8755_v32  ;;  %v9072_v32 = vld [vmem:[%s15922_s1 + $0x13b0] sm:$0xf0]  ;;  %v10608_v27 = vld [vmem:[%s15922_s1 + $0x16a4] sm:$0xf]  ;;  %v9203_v51 = vor.u32 %v10544_v34, %v9200_v39 }
 0x163   :  { %5496 = vmatpush.bf16.msra.mxu3 %v8883_v40  ;;  %v10576_v40 = vld [vmem:[%s15922_s1 + $0x15a4] sm:$0xf]  ;;  %v9328_v43 = vld [vmem:[%s15922_s1 + $0x15b0] sm:$0xf0]  ;;  %v9075_v50 = vor.u32 %v10512_v26, %v9072_v32 }
 0x164   :  { %5458 = vmatpush.bf16.msra.mxu0 %v8483_v57  ;;  %v9456_v47 = vld [vmem:[%s15922_s1 + $0x16b0] sm:$0xf0]  ;;  %v9331_v52 = vor.u32 %v10576_v40, %v9328_v43  ;;  %v10508_v54 = vld [vmem:[%s15922_s1 + $0x1384] sm:$0xf] }
 0x165   :  { %5471 = vmatpush.bf16.msra.mxu1 %v8611_v60  ;;  %v9056_v56 = vld [vmem:[%s15922_s1 + $0x1390] sm:$0xf0]  ;;  %v10540_v57 = vld [vmem:[%s15922_s1 + $0x1484] sm:$0xf]  ;;  %v9459_v48 = vor.u32 %v10608_v27, %v9456_v47  ;;  %v5265_v14 = vpop.f32.mrf.mxu1 }
 0x166   :  { %5484 = vmatpush.bf16.msra.mxu2 %v8739_v61  ;;  %v9184_v58 = vld [vmem:[%s15922_s1 + $0x1490] sm:$0xf0]  ;;  %v10572_v59 = vld [vmem:[%s15922_s1 + $0x1584] sm:$0xf]  ;;  %v5252_v61 = vpop.f32.mrf.mxu0 }
 0x167   :  { %5497 = vmatpush.bf16.msra.mxu3 %v8867_v0  ;;  %5459 = vmatmul.bf16.vlgmr.msra.gmra.mxu0 %v11632_v35  ;;  %v9312_v60 = vld [vmem:[%s15922_s1 + $0x1590] sm:$0xf0]  ;;  %v10604_v62 = vld [vmem:[%s15922_s1 + $0x1684] sm:$0xf]  ;;  %v10717_v0 = vld [vmem:[%s15924_s2] sm:$0xf]  ;;  %v9187_v5 = vor.u32 %v10540_v57, %v9184_v58 }
 0x168   :  { %5503 = vmatpush.bf16.msrb.mxu0 %v9107_v55  ;;  %5472 = vmatmul.bf16.vlgmr.msra.gmra.mxu1 %v11821_v37  ;;  %v9440_v63 = vld [vmem:[%s15922_s1 + $0x1690] sm:$0xf0]  ;;  %v836_v55 = vperm.slane %v10717_v0, 1  ;;  %v9315_v6 = vor.u32 %v10572_v59, %v9312_v60  ;;  %v10504_v8 = vld [vmem:[%s15922_s1 + $0x1364] sm:$0xf] }
 0x169   :  { %5516 = vmatpush.bf16.msrb.mxu1 %v9235_v3  ;;  %5485 = vmatmul.bf16.vlgmr.msra.gmra.mxu2 %v11834_v46  ;;  %v13115_v3 = vadd.f32 %v5252_v61, %v12961_v2  ;;  %v10536_v10 = vld [vmem:[%s15922_s1 + $0x1464] sm:$0xf]  ;;  %v9443_v2 = vor.u32 %v10604_v62, %v9440_v63  ;;  %v9168_v15 = vld [vmem:[%s15922_s1 + $0x1470] sm:$0xf0] }
 0x16a   :  { %5529 = vmatpush.bf16.msrb.mxu2 %v9363_v4  ;;  %5498 = vmatmul.bf16.vlgmr.msra.gmra.mxu3 %v11832_v45  ;;  %v9059_v4 = vor.u32 %v10508_v54, %v9056_v56  ;;  %v10568_v53 = vld [vmem:[%s15922_s1 + $0x1564] sm:$0xf]  ;;  %v9296_v17 = vld [vmem:[%s15922_s1 + $0x1570] sm:$0xf0]  ;;  %v9171_v32 = vor.u32 %v10536_v10, %v9168_v15 }
 0x16b   :  { %5542 = vmatpush.bf16.msrb.mxu3 %v9491_v9  ;;  %v9040_v9 = vld [vmem:[%s15922_s1 + $0x1370] sm:$0xf0]  ;;  %v9299_v34 = vor.u32 %v10568_v53, %v9296_v17  ;;  %v10532_v40 = vld [vmem:[%s15922_s1 + $0x1444] sm:$0xf] }
 0x16c   :  { %5504 = vmatpush.bf16.msrb.mxu0 %v9091_v21  ;;  %v10600_v21 = vld [vmem:[%s15922_s1 + $0x1664] sm:$0xf]  ;;  %v9043_v26 = vor.u32 %v10504_v8, %v9040_v9  ;;  %v9024_v39 = vld [vmem:[%s15922_s1 + $0x1350] sm:$0xf0] }
 0x16d   :  { %5517 = vmatpush.bf16.msrb.mxu1 %v9219_v24  ;;  %v9424_v24 = vld [vmem:[%s15922_s1 + $0x1670] sm:$0xf0]  ;;  %v10564_v47 = vld [vmem:[%s15922_s1 + $0x1544] sm:$0xf] }
 0x16e   :  { %5530 = vmatpush.bf16.msrb.mxu2 %v9347_v13  ;;  %v5266_v13 = vadd.f32 %v5265_v14, %v836_v55  ;;  %v9427_v43 = vor.u32 %v10600_v21, %v9424_v24  ;;  %v9152_v27 = vld [vmem:[%s15922_s1 + $0x1450] sm:$0xf0]  ;;  %v10596_v54 = vld [vmem:[%s15922_s1 + $0x1644] sm:$0xf]  ;;  %v5267_v55 = vpop.f32.mrf.mxu1 }
 0x16f   :  { %5543 = vmatpush.bf16.msrb.mxu3 %v9475_v36  ;;  %v10500_v36 = vld [vmem:[%s15922_s1 + $0x1344] sm:$0xf]  ;;  %v9408_v56 = vld [vmem:[%s15922_s1 + $0x1650] sm:$0xf0]  ;;  %v9155_v59 = vor.u32 %v10532_v40, %v9152_v27 }
 0x170   :  { %5505 = vmatpush.bf16.msrb.mxu0 %v9075_v50  ;;  %v9280_v50 = vld [vmem:[%s15922_s1 + $0x1550] sm:$0xf0]  ;;  %v9027_v58 = vor.u32 %v10500_v36, %v9024_v39  ;;  %v10496_v61 = vld [vmem:[%s15922_s1 + $0x1324] sm:$0xf] }
 0x171   :  { %5518 = vmatpush.bf16.msrb.mxu1 %v9203_v51  ;;  %v5278_v51 = vpop.f32.mrf.mxu2  ;;  %v9283_v60 = vor.u32 %v10564_v47, %v9280_v50  ;;  %v9008_v62 = vld [vmem:[%s15922_s1 + $0x1330] sm:$0xf0]  ;;  %v10528_v63 = vld [vmem:[%s15922_s1 + $0x1424] sm:$0xf] }
 0x172   :  { %5531 = vmatpush.bf16.msrb.mxu2 %v9331_v52  ;;  %v5291_v52 = vpop.f32.mrf.mxu3  ;;  %v5279_v57 = vadd.f32 %v5278_v51, %v5266_v13  ;;  %v9264_v8 = vld [vmem:[%s15922_s1 + $0x1530] sm:$0xf0]  ;;  %v10592_v9 = vld [vmem:[%s15922_s1 + $0x1624] sm:$0xf]  ;;  %v9011_v14 = vor.u32 %v10496_v61, %v9008_v62 }
 0x173   :  { %5544 = vmatpush.bf16.msrb.mxu3 %v9459_v48  ;;  %v5254_v48 = vpop.f32.mrf.mxu0  ;;  %v9392_v10 = vld [vmem:[%s15922_s1 + $0x1630] sm:$0xf0]  ;;  %v10524_v21 = vld [vmem:[%s15922_s1 + $0x1404] sm:$0xf] }
 0x174   :  { %5506 = vmatpush.bf16.msrb.mxu0 %v9059_v4  ;;  %v13174_v0 = vadd.f32 %v5291_v52, %v5279_v57  ;;  %v9411_v4 = vor.u32 %v10596_v54, %v9408_v56  ;;  %v8992_v15 = vld [vmem:[%s15922_s1 + $0x1310] sm:$0xf0]  ;;  %v10556_v13 = vld [vmem:[%s15922_s1 + $0x1504] sm:$0xf]  ;;  %v6678_v52 = vld [vmem:[%s15922_s1 + $0xe8] sm:$0xf] }
 0x175   :  { %5519 = vmatpush.bf16.msrb.mxu1 %v9187_v5  ;;  %v9136_v5 = vld [vmem:[%s15922_s1 + $0x1430] sm:$0xf0]  ;;  %v10680_v47 = vld [vmem:[%s15922_s1 + $0x18e4] sm:$0xf]  ;;  %v9915_v54 = vld [vmem:[%s15922_s1 + $0xf4] sm:$0xf0] }
 0x176   :  { %5532 = vmatpush.bf16.msrb.mxu2 %v9315_v6  ;;  %v10560_v6 = vld [vmem:[%s15922_s1 + $0x1524] sm:$0xf]  ;;  %v9139_v53 = vor.u32 %v10528_v63, %v9136_v5  ;;  %v9120_v24 = vld [vmem:[%s15922_s1 + $0x1410] sm:$0xf0]  ;;  %v6806_v48 = vld [vmem:[%s15922_s1 + $0x1e8] sm:$0xf]  ;;  %v6679_v62 = vor.u32 %v9915_v54, %v6678_v52 }
 0x177   :  { %5545 = vmatpush.bf16.msrb.mxu3 %v9443_v2  ;;  %v10492_v2 = vld [vmem:[%s15922_s1 + $0x1304] sm:$0xf]  ;;  %v9267_v17 = vor.u32 %v10560_v6, %v9264_v8  ;;  %v9376_v36 = vld [vmem:[%s15922_s1 + $0x1610] sm:$0xf0]  ;;  %v9123_v56 = vor.u32 %v10524_v21, %v9120_v24  ;;  %v6662_v8 = vld [vmem:[%s15922_s1 + $0xc8] sm:$0xf] }
 0x178   :  { %5507 = vmatpush.bf16.msrb.mxu0 %v9043_v26  ;;  %v9395_v26 = vor.u32 %v10592_v9, %v9392_v10  ;;  %v9616_v27 = vld [vmem:[%s15922_s1 + $0x17f0] sm:$0xf0]  ;;  %v8995_v50 = vor.u32 %v10492_v2, %v8992_v15  ;;  %v10644_v63 = vld [vmem:[%s15922_s1 + $0x17c4] sm:$0xf]  ;;  %v9911_v9 = vld [vmem:[%s15922_s1 + $0xd4] sm:$0xf0] }
 0x179   :  { %5520 = vmatpush.bf16.msrb.mxu1 %v9171_v32  ;;  %v9248_v32 = vld [vmem:[%s15922_s1 + $0x1510] sm:$0xf0]  ;;  %v5280_v39 = vpop.f32.mrf.mxu2  ;;  %v6790_v10 = vld [vmem:[%s15922_s1 + $0x1c8] sm:$0xf]  ;;  %v10672_v24 = vld [vmem:[%s15922_s1 + $0x18a4] sm:$0xf] }
 0x17a   :  { %5533 = vmatpush.bf16.msrb.mxu2 %v9299_v34  ;;  %v10588_v34 = vld [vmem:[%s15922_s1 + $0x1604] sm:$0xf]  ;;  %v5293_v40 = vpop.f32.mrf.mxu3  ;;  %v9744_v51 = vld [vmem:[%s15922_s1 + $0x18f0] sm:$0xf0]  ;;  %v9251_v57 = vor.u32 %v10556_v13, %v9248_v32  ;;  %v6646_v32 = vld [vmem:[%s15922_s1 + $0xa8] sm:$0xf] }
 0x17b   :  { %5546 = vmatpush.bf16.msrb.mxu3 %v9427_v43  ;;  %v10648_v43 = vld [vmem:[%s15922_s1 + $0x17e4] sm:$0xf]  ;;  %v9747_v61 = vor.u32 %v10680_v47, %v9744_v51  ;;  %v9600_v55 = vld [vmem:[%s15922_s1 + $0x17d0] sm:$0xf0]  ;;  %v9939_v39 = vld [vmem:[%s15922_s1 + $0x1b4] sm:$0xf0] }
 0x17c   :  { %5508 = vmatpush.bf16.msrb.mxu0 %v9027_v58  ;;  %v9947_v58 = vld [vmem:[%s15922_s1 + $0x1f4] sm:$0xf0]  ;;  %v9728_v6 = vld [vmem:[%s15922_s1 + $0x18d0] sm:$0xf0]  ;;  %v9603_v2 = vor.u32 %v10644_v63, %v9600_v55  ;;  %v10636_v47 = vld [vmem:[%s15922_s1 + $0x1784] sm:$0xf] }
 0x17d   :  { %5521 = vmatpush.bf16.msrb.mxu1 %v9155_v59  ;;  %v9379_v59 = vor.u32 %v10588_v34, %v9376_v36  ;;  %v6807_v5 = vor.u32 %v9947_v58, %v6806_v48  ;;  %v9584_v21 = vld [vmem:[%s15922_s1 + $0x17b0] sm:$0xf0]  ;;  %v9907_v34 = vld [vmem:[%s15922_s1 + $0xb4] sm:$0xf0]  ;;  %v6774_v36 = vld [vmem:[%s15922_s1 + $0x1a8] sm:$0xf] }
 0x17e   :  { %5534 = vmatpush.bf16.msrb.mxu2 %v9283_v60  ;;  %v9619_v60 = vor.u32 %v10648_v43, %v9616_v27  ;;  %v6647_v27 = vor.u32 %v9907_v34, %v6646_v32  ;;  %v10668_v51 = vld [vmem:[%s15922_s1 + $0x1884] sm:$0xf]  ;;  %v6775_v52 = vor.u32 %v9939_v39, %v6774_v36  ;;  %v9696_v54 = vld [vmem:[%s15922_s1 + $0x1890] sm:$0xf0]  ;;  %v6758_v48 = vld [vmem:[%s15922_s1 + $0x188] sm:$0xf] }
 0x17f   :  { %5547 = vmatpush.bf16.msrb.mxu3 %v9411_v4  ;;  %v10676_v4 = vld [vmem:[%s15922_s1 + $0x18c4] sm:$0xf]  ;;  %v9935_v58 = vld [vmem:[%s15922_s1 + $0x194] sm:$0xf0]  ;;  %v9552_v55 = vld [vmem:[%s15922_s1 + $0x1770] sm:$0xf0] }
 0x180   :  { %5509 = vmatpush.bf16.msrb.mxu0 %v9011_v14  ;;  %v9943_v14 = vld [vmem:[%s15922_s1 + $0x1d4] sm:$0xf0]  ;;  %v9731_v15 = vor.u32 %v10676_v4, %v9728_v6  ;;  %v10632_v63 = vld [vmem:[%s15922_s1 + $0x1764] sm:$0xf]  ;;  %v9664_v36 = vld [vmem:[%s15922_s1 + $0x1850] sm:$0xf0] }
 0x181   :  { %5522 = vmatpush.bf16.msrb.mxu1 %v9139_v53  ;;  %v6663_v53 = vor.u32 %v9911_v9, %v6662_v8  ;;  %v6791_v13 = vor.u32 %v9943_v14, %v6790_v10  ;;  %v10664_v4 = vld [vmem:[%s15922_s1 + $0x1864] sm:$0xf]  ;;  %v6759_v8 = vor.u32 %v9935_v58, %v6758_v48  ;;  %v9680_v9 = vld [vmem:[%s15922_s1 + $0x1870] sm:$0xf0]  ;;  %v6614_v10 = vld [vmem:[%s15922_s1 + $0x68] sm:$0xf] }
 0x182   :  { %5535 = vmatpush.bf16.msrb.mxu2 %v9267_v17  ;;  %v10640_v17 = vld [vmem:[%s15922_s1 + $0x17a4] sm:$0xf]  ;;  %v9899_v14 = vld [vmem:[%s15922_s1 + $0x74] sm:$0xf0]  ;;  %v6598_v39 = vld [vmem:[%s15922_s1 + $0x48] sm:$0xf] }
 0x183   :  { %5548 = vmatpush.bf16.msrb.mxu3 %v9395_v26  ;;  %v9712_v26 = vld [vmem:[%s15922_s1 + $0x18b0] sm:$0xf0]  ;;  %v9587_v40 = vor.u32 %v10640_v17, %v9584_v21  ;;  %v9683_v17 = vor.u32 %v10664_v4, %v9680_v9  ;;  %v6615_v21 = vor.u32 %v9899_v14, %v6614_v10  ;;  %v10624_v48 = vld [vmem:[%s15922_s1 + $0x1724] sm:$0xf]  ;;  %v6710_v4 = vld [vmem:[%s15922_s1 + $0x128] sm:$0xf] }
 0x184   :  { %5510 = vmatpush.bf16.msrb.mxu0 %v8995_v50  ;;  %v9715_v43 = vor.u32 %v10672_v24, %v9712_v26  ;;  %v9568_v50 = vld [vmem:[%s15922_s1 + $0x1790] sm:$0xf0]  ;;  %v10628_v24 = vld [vmem:[%s15922_s1 + $0x1744] sm:$0xf] }
 0x185   :  { %5523 = vmatpush.bf16.msrb.mxu1 %v9123_v56  ;;  %v6630_v56 = vld [vmem:[%s15922_s1 + $0x88] sm:$0xf]  ;;  %v5317_v6 = vpop.f32.mrf.mxu1  ;;  %v10660_v26 = vld [vmem:[%s15922_s1 + $0x1844] sm:$0xf]  ;;  %v9520_v58 = vld [vmem:[%s15922_s1 + $0x1730] sm:$0xf0] }
 0x186   :  { %5536 = vmatpush.bf16.msrb.mxu2 %v9251_v57  ;;  %v9903_v57 = vld [vmem:[%s15922_s1 + $0x94] sm:$0xf0]  ;;  %v9504_v9 = vld [vmem:[%s15922_s1 + $0x1710] sm:$0xf0] }
 0x187   :  { %5549 = vmatpush.bf16.msrb.mxu3 %v9379_v59  ;;  %5511 = vmatmul.bf16.vlgmr.msrb.gmra.mxu0 %v11842_v49  ;;  %v9571_v59 = vor.u32 %v10636_v47, %v9568_v50  ;;  %v6726_v47 = vld [vmem:[%s15922_s1 + $0x148] sm:$0xf]  ;;  %v9927_v50 = vld [vmem:[%s15922_s1 + $0x154] sm:$0xf0] }
 0x188   :  { %5555 = vmatpush.bf16.msra.mxu0 %v9619_v60  ;;  %5524 = vmatmul.bf16.vlgmr.msrb.gmra.mxu1 %v12036_v7  ;;  %v5304_v60 = vpop.f32.mrf.mxu0 }
 0x189   :  { %5568 = vmatpush.bf16.msra.mxu1 %v9747_v61  ;;  %5537 = vmatmul.bf16.vlgmr.msrb.gmra.mxu2 %v12049_v12  ;;  %v9699_v61 = vor.u32 %v10668_v51, %v9696_v54 }
 0x18a   :  { %5581 = vmatpush.bf16.msra.mxu2 %v6679_v62  ;;  %5550 = vmatmul.bf16.vlgmr.msrb.gmra.mxu3 %v12047_v11  ;;  %v6631_v62 = vor.u32 %v9903_v57, %v6630_v56  ;;  %v9667_v56 = vor.u32 %v10660_v26, %v9664_v36  ;;  %v7062_v36 = vld [vmem:[%s15922_s1 + $0x3e8] sm:$0xf] }
 0x18b   :  { %5594 = vmatpush.bf16.msra.mxu3 %v6807_v5  ;;  %v5305_v5 = vadd.f32 %v5304_v60, %v13174_v0  ;;  %v9931_v0 = vld [vmem:[%s15922_s1 + $0x174] sm:$0xf0] }
 0x18c   :  { %5556 = vmatpush.bf16.msra.mxu0 %v9603_v2  ;;  %v6742_v2 = vld [vmem:[%s15922_s1 + $0x168] sm:$0xf]  ;;  %v5330_v32 = vpop.f32.mrf.mxu2 }
 0x18d   :  { %5569 = vmatpush.bf16.msra.mxu1 %v9731_v15  ;;  %v5318_v15 = vadd.f32 %v5317_v6, %v5305_v5  ;;  %v6743_v34 = vor.u32 %v9931_v0, %v6742_v2  ;;  %v5319_v60 = vpop.f32.mrf.mxu1  ;;  %v9923_v5 = vld [vmem:[%s15922_s1 + $0x134] sm:$0xf0]  ;;  %v9523_v6 = vor.u32 %v10624_v48, %v9520_v58  ;;  %v10652_v2 = vld [vmem:[%s15922_s1 + $0x1804] sm:$0xf]  ;;  %v9632_v0 = vld [vmem:[%s15922_s1 + $0x1810] sm:$0xf0] }
 0x18e   :  { %5582 = vmatpush.bf16.msra.mxu2 %v6663_v53  ;;  %v9555_v53 = vor.u32 %v10632_v63, %v9552_v55  ;;  %v6582_v63 = vld [vmem:[%s15922_s1 + $0x28] sm:$0xf]  ;;  %v9891_v55 = vld [vmem:[%s15922_s1 + $0x34] sm:$0xf0] }
 0x18f   :  { %5595 = vmatpush.bf16.msra.mxu3 %v6791_v13  ;;  %v9536_v13 = vld [vmem:[%s15922_s1 + $0x1750] sm:$0xf0]  ;;  %v6583_v14 = vor.u32 %v9891_v55, %v6582_v63  ;;  %v9975_v60 = vld [vmem:[%s15922_s1 + $0x2d4] sm:$0xf0]  ;;  %v7174_v55 = vld [vmem:[%s15922_s1 + $0x4c8] sm:$0xf] }
 0x190   :  { %5557 = vmatpush.bf16.msra.mxu0 %v9587_v40  ;;  %v9895_v40 = vld [vmem:[%s15922_s1 + $0x54] sm:$0xf0]  ;;  %v9539_v51 = vor.u32 %v10628_v24, %v9536_v13  ;;  %v5306_v54 = vpop.f32.mrf.mxu0  ;;  %v6694_v24 = vld [vmem:[%s15922_s1 + $0x108] sm:$0xf] }
 0x191   :  { %5570 = vmatpush.bf16.msra.mxu1 %v9715_v43  ;;  %v5331_v43 = vadd.f32 %v5330_v32, %v5318_v15  ;;  %v6599_v57 = vor.u32 %v9895_v40, %v6598_v39  ;;  %v6566_v15 = vld [vmem:[%s15922_s1 + $0x8] sm:$0xf]  ;;  %v9919_v13 = vld [vmem:[%s15922_s1 + $0x114] sm:$0xf0] }
 0x192   :  { %5583 = vmatpush.bf16.msra.mxu2 %v6647_v27  ;;  %v5343_v27 = vpop.f32.mrf.mxu3  ;;  %v6934_v32 = vld [vmem:[%s15922_s1 + $0x2e8] sm:$0xf]  ;;  %v10011_v40 = vld [vmem:[%s15922_s1 + $0x3f4] sm:$0xf0] }
 0x193   :  { %5596 = vmatpush.bf16.msra.mxu3 %v6775_v52  ;;  %v13364_v52 = vadd.f32 %v5343_v27, %v5331_v43  ;;  %v7190_v43 = vld [vmem:[%s15922_s1 + $0x4e8] sm:$0xf]  ;;  %v10043_v27 = vld [vmem:[%s15922_s1 + $0x4f4] sm:$0xf0]  ;;  %v7063_v48 = vor.u32 %v10011_v40, %v7062_v36 }
 0x194   :  { %5558 = vmatpush.bf16.msra.mxu0 %v9571_v59  ;;  %v10656_v59 = vld [vmem:[%s15922_s1 + $0x1824] sm:$0xf]  ;;  %v10075_v54 = vld [vmem:[%s15922_s1 + $0x5f4] sm:$0xf0]  ;;  %v7191_v58 = vor.u32 %v10043_v27, %v7190_v43  ;;  %v6886_v36 = vld [vmem:[%s15922_s1 + $0x288] sm:$0xf] }
 0x195   :  { %5571 = vmatpush.bf16.msra.mxu1 %v9699_v61  ;;  %v6727_v61 = vor.u32 %v9927_v50, %v6726_v47  ;;  %v9635_v47 = vor.u32 %v10652_v2, %v9632_v0  ;;  %v10007_v63 = vld [vmem:[%s15922_s1 + $0x3d4] sm:$0xf0]  ;;  %v7030_v0 = vld [vmem:[%s15922_s1 + $0x3a8] sm:$0xf] }
 0x196   :  { %5584 = vmatpush.bf16.msra.mxu2 %v6631_v62  ;;  %v9648_v62 = vld [vmem:[%s15922_s1 + $0x1830] sm:$0xf0]  ;;  %v9971_v2 = vld [vmem:[%s15922_s1 + $0x2b4] sm:$0xf0]  ;;  %v7014_v40 = vld [vmem:[%s15922_s1 + $0x388] sm:$0xf] }
 0x197   :  { %5597 = vmatpush.bf16.msra.mxu3 %v6759_v8  ;;  %v10620_v8 = vld [vmem:[%s15922_s1 + $0x1704] sm:$0xf]  ;;  %v9651_v10 = vor.u32 %v10656_v59, %v9648_v62  ;;  %v6918_v59 = vld [vmem:[%s15922_s1 + $0x2c8] sm:$0xf]  ;;  %v9999_v27 = vld [vmem:[%s15922_s1 + $0x394] sm:$0xf0] }
 0x198   :  { %5559 = vmatpush.bf16.msra.mxu0 %v9555_v53  ;;  %v5332_v53 = vpop.f32.mrf.mxu2  ;;  %v9507_v39 = vor.u32 %v10620_v8, %v9504_v9  ;;  %v6919_v8 = vor.u32 %v9975_v60, %v6918_v59  ;;  %v7015_v59 = vor.u32 %v9999_v27, %v7014_v40 }
 0x199   :  { %5572 = vmatpush.bf16.msra.mxu1 %v9683_v17  ;;  %v6711_v17 = vor.u32 %v9923_v5, %v6710_v4  ;;  %v10039_v4 = vld [vmem:[%s15922_s1 + $0x4d4] sm:$0xf0]  ;;  %v7302_v5 = vld [vmem:[%s15922_s1 + $0x5c8] sm:$0xf] }
 0x19a   :  { %5585 = vmatpush.bf16.msra.mxu2 %v6615_v21  ;;  %v9887_v21 = vld [vmem:[%s15922_s1 + $0x14] sm:$0xf0]  ;;  %v5345_v26 = vpop.f32.mrf.mxu3 }
 0x19b   :  { %5598 = vmatpush.bf16.msra.mxu3 %v6743_v34  ;;  %v9979_v34 = vld [vmem:[%s15922_s1 + $0x2f4] sm:$0xf0]  ;;  %v6567_v50 = vor.u32 %v9887_v21, %v6566_v15 }
 0x19c   :  { %5560 = vmatpush.bf16.msra.mxu0 %v9539_v51  ;;  %v7318_v51 = vld [vmem:[%s15922_s1 + $0x5e8] sm:$0xf]  ;;  %v10003_v53 = vld [vmem:[%s15922_s1 + $0x3b4] sm:$0xf0] }
 0x19d   :  { %5573 = vmatpush.bf16.msra.mxu1 %v9667_v56  ;;  %v6695_v56 = vor.u32 %v9919_v13, %v6694_v24  ;;  %v7319_v62 = vor.u32 %v10075_v54, %v7318_v51  ;;  %v10035_v21 = vld [vmem:[%s15922_s1 + $0x4b4] sm:$0xf0]  ;;  %v7286_v24 = vld [vmem:[%s15922_s1 + $0x5a8] sm:$0xf] }
 0x19e   :  { %5586 = vmatpush.bf16.msra.mxu2 %v6599_v57  ;;  %v6935_v57 = vor.u32 %v9979_v34, %v6934_v32  ;;  %v10067_v13 = vld [vmem:[%s15922_s1 + $0x5b4] sm:$0xf0]  ;;  %v7031_v32 = vor.u32 %v10003_v53, %v7030_v0  ;;  %v7270_v54 = vld [vmem:[%s15922_s1 + $0x588] sm:$0xf] }
 0x19f   :  { %5599 = vmatpush.bf16.msra.mxu3 %v6727_v61  ;;  %v7046_v61 = vld [vmem:[%s15922_s1 + $0x3c8] sm:$0xf]  ;;  %v7287_v43 = vor.u32 %v10067_v13, %v7286_v24  ;;  %v9991_v24 = vld [vmem:[%s15922_s1 + $0x354] sm:$0xf0] }
 0x1a0   :  { %5561 = vmatpush.bf16.msra.mxu0 %v9523_v6  ;;  %v10071_v6 = vld [vmem:[%s15922_s1 + $0x5d4] sm:$0xf0]  ;;  %v7047_v9 = vor.u32 %v10007_v63, %v7046_v61  ;;  %v6870_v61 = vld [vmem:[%s15922_s1 + $0x268] sm:$0xf] }
 0x1a1   :  { %5574 = vmatpush.bf16.msra.mxu1 %v9651_v10  ;;  %v7175_v10 = vor.u32 %v10039_v4, %v7174_v55  ;;  %v7303_v15 = vor.u32 %v10071_v6, %v7302_v5  ;;  %v6998_v63 = vld [vmem:[%s15922_s1 + $0x368] sm:$0xf]  ;;  %v9995_v4 = vld [vmem:[%s15922_s1 + $0x374] sm:$0xf0] }
 0x1a2   :  { %5587 = vmatpush.bf16.msra.mxu2 %v6583_v14  ;;  %v6902_v14 = vld [vmem:[%s15922_s1 + $0x2a8] sm:$0xf]  ;;  %v10027_v6 = vld [vmem:[%s15922_s1 + $0x474] sm:$0xf0] }
 0x1a3   :  { %5600 = vmatpush.bf16.msra.mxu3 %v6711_v17  ;;  %v7158_v17 = vld [vmem:[%s15922_s1 + $0x4a8] sm:$0xf]  ;;  %v6903_v26 = vor.u32 %v9971_v2, %v6902_v14  ;;  %v6999_v14 = vor.u32 %v9995_v4, %v6998_v63 }
 0x1a4   :  { %5562 = vmatpush.bf16.msra.mxu0 %v9507_v39  ;;  %v7159_v34 = vor.u32 %v10035_v21, %v7158_v17  ;;  %v9967_v39 = vld [vmem:[%s15922_s1 + $0x294] sm:$0xf0]  ;;  %v5356_v51 = vpop.f32.mrf.mxu0  ;;  %v7126_v5 = vld [vmem:[%s15922_s1 + $0x468] sm:$0xf] }
 0x1a5   :  { %5575 = vmatpush.bf16.msra.mxu1 %v9635_v47  ;;  %v7142_v47 = vld [vmem:[%s15922_s1 + $0x488] sm:$0xf]  ;;  %v7127_v2 = vor.u32 %v10027_v6, %v7126_v5 }
 0x1a6   :  { %5588 = vmatpush.bf16.msra.mxu2 %v6567_v50  ;;  %v10031_v50 = vld [vmem:[%s15922_s1 + $0x494] sm:$0xf0]  ;;  %v6854_v0 = vld [vmem:[%s15922_s1 + $0x248] sm:$0xf] }
 0x1a7   :  { %5601 = vmatpush.bf16.msra.mxu3 %v6695_v56  ;;  %5563 = vmatmul.bf16.vlgmr.msra.gmra.mxu0 %v12057_v16  ;;  %v10063_v56 = vld [vmem:[%s15922_s1 + $0x594] sm:$0xf0]  ;;  %v7143_v60 = vor.u32 %v10031_v50, %v7142_v47  ;;  %v6982_v53 = vld [vmem:[%s15922_s1 + $0x348] sm:$0xf] }
 0x1a8   :  { %5607 = vmatpush.bf16.msrb.mxu0 %v6935_v57  ;;  %5576 = vmatmul.bf16.vlgmr.msra.gmra.mxu1 %v12246_v1  ;;  %v5357_v57 = vadd.f32 %v5356_v51, %v13364_v52  ;;  %v7271_v52 = vor.u32 %v10063_v56, %v7270_v54  ;;  %v7110_v13 = vld [vmem:[%s15922_s1 + $0x448] sm:$0xf]  ;;  %v6983_v50 = vor.u32 %v9991_v24, %v6982_v53  ;;  %v9955_v56 = vld [vmem:[%s15922_s1 + $0x234] sm:$0xf0] }
 0x1a9   :  { %5620 = vmatpush.bf16.msrb.mxu1 %v7063_v48  ;;  %5589 = vmatmul.bf16.vlgmr.msra.gmra.mxu2 %v11046_v19  ;;  %v6887_v48 = vor.u32 %v9967_v39, %v6886_v36  ;;  %v7238_v36 = vld [vmem:[%s15922_s1 + $0x548] sm:$0xf]  ;;  %v10055_v39 = vld [vmem:[%s15922_s1 + $0x554] sm:$0xf0] }
 0x1aa   :  { %5633 = vmatpush.bf16.msrb.mxu2 %v7191_v58  ;;  %5602 = vmatmul.bf16.vlgmr.msra.gmra.mxu3 %v11050_v22  ;;  %v5369_v58 = vpop.f32.mrf.mxu1  ;;  %v6838_v54 = vld [vmem:[%s15922_s1 + $0x228] sm:$0xf] }
 0x1ab   :  { %5646 = vmatpush.bf16.msrb.mxu3 %v7319_v62  ;;  %v9963_v62 = vld [vmem:[%s15922_s1 + $0x274] sm:$0xf0]  ;;  %v5370_v55 = vadd.f32 %v5369_v58, %v5357_v57  ;;  %v6966_v57 = vld [vmem:[%s15922_s1 + $0x328] sm:$0xf]  ;;  %v6839_v63 = vor.u32 %v9955_v56, %v6838_v54 }
 0x1ac   :  { %5608 = vmatpush.bf16.msrb.mxu0 %v6919_v8  ;;  %v7254_v8 = vld [vmem:[%s15922_s1 + $0x568] sm:$0xf]  ;;  %v5382_v21 = vpop.f32.mrf.mxu2  ;;  %v5358_v40 = vpop.f32.mrf.mxu0  ;;  %v9987_v58 = vld [vmem:[%s15922_s1 + $0x334] sm:$0xf0] }
 0x1ad   :  { %5621 = vmatpush.bf16.msrb.mxu1 %v7047_v9  ;;  %v10059_v9 = vld [vmem:[%s15922_s1 + $0x574] sm:$0xf0]  ;;  %v6967_v4 = vor.u32 %v9987_v58, %v6966_v57  ;;  %v6950_v6 = vld [vmem:[%s15922_s1 + $0x308] sm:$0xf] }
 0x1ae   :  { %5634 = vmatpush.bf16.msrb.mxu2 %v7175_v10  ;;  %v6871_v10 = vor.u32 %v9963_v62, %v6870_v61  ;;  %v7255_v17 = vor.u32 %v10059_v9, %v7254_v8  ;;  %v7222_v61 = vld [vmem:[%s15922_s1 + $0x528] sm:$0xf]  ;;  %v10051_v62 = vld [vmem:[%s15922_s1 + $0x534] sm:$0xf0] }
 0x1af   :  { %5647 = vmatpush.bf16.msrb.mxu3 %v7303_v15  ;;  %v9959_v15 = vld [vmem:[%s15922_s1 + $0x254] sm:$0xf0]  ;;  %v7078_v9 = vld [vmem:[%s15922_s1 + $0x408] sm:$0xf] }
 0x1b0   :  { %5609 = vmatpush.bf16.msrb.mxu0 %v6903_v26  ;;  %v10023_v26 = vld [vmem:[%s15922_s1 + $0x454] sm:$0xf0]  ;;  %v7446_v53 = vld [vmem:[%s15922_s1 + $0x6e8] sm:$0xf] }
 0x1b1   :  { %5622 = vmatpush.bf16.msrb.mxu1 %v7031_v32  ;;  %v5383_v32 = vadd.f32 %v5382_v21, %v5370_v55  ;;  %v7111_v51 = vor.u32 %v10023_v26, %v7110_v13  ;;  %v9951_v55 = vld [vmem:[%s15922_s1 + $0x214] sm:$0xf0]  ;;  %v7574_v21 = vld [vmem:[%s15922_s1 + $0x7e8] sm:$0xf] }
 0x1b2   :  { %5635 = vmatpush.bf16.msrb.mxu2 %v7159_v34  ;;  %v5395_v34 = vpop.f32.mrf.mxu3  ;;  %v5371_v27 = vpop.f32.mrf.mxu1  ;;  %v9983_v8 = vld [vmem:[%s15922_s1 + $0x314] sm:$0xf0]  ;;  %v7830_v40 = vld [vmem:[%s15922_s1 + $0x9e8] sm:$0xf] }
 0x1b3   :  { %5648 = vmatpush.bf16.msrb.mxu3 %v7287_v43  ;;  %v6855_v43 = vor.u32 %v9959_v15, %v6854_v0  ;;  %v13563_v47 = vadd.f32 %v5395_v34, %v5383_v32  ;;  %v10047_v0 = vld [vmem:[%s15922_s1 + $0x514] sm:$0xf0]  ;;  %v7702_v32 = vld [vmem:[%s15922_s1 + $0x8e8] sm:$0xf] }
 0x1b4   :  { %5610 = vmatpush.bf16.msrb.mxu0 %v6887_v48  ;;  %v7239_v48 = vor.u32 %v10055_v39, %v7238_v36  ;;  %v5384_v15 = vpop.f32.mrf.mxu2  ;;  %v10139_v26 = vld [vmem:[%s15922_s1 + $0x7f4] sm:$0xf0]  ;;  %v6951_v36 = vor.u32 %v9983_v8, %v6950_v6  ;;  %v7430_v56 = vld [vmem:[%s15922_s1 + $0x6c8] sm:$0xf] }
 0x1b5   :  { %5623 = vmatpush.bf16.msrb.mxu1 %v7015_v59  ;;  %v7094_v59 = vld [vmem:[%s15922_s1 + $0x428] sm:$0xf]  ;;  %v10171_v34 = vld [vmem:[%s15922_s1 + $0x8f4] sm:$0xf0] }
 0x1b6   :  { %5636 = vmatpush.bf16.msrb.mxu2 %v7143_v60  ;;  %v10019_v60 = vld [vmem:[%s15922_s1 + $0x434] sm:$0xf0]  ;;  %v7703_v54 = vor.u32 %v10171_v34, %v7702_v32  ;;  %v7542_v8 = vld [vmem:[%s15922_s1 + $0x7a8] sm:$0xf] }
 0x1b7   :  { %5649 = vmatpush.bf16.msrb.mxu3 %v7271_v52  ;;  %v6822_v52 = vld [vmem:[%s15922_s1 + $0x208] sm:$0xf]  ;;  %v7095_v5 = vor.u32 %v10019_v60, %v7094_v59  ;;  %v10103_v57 = vld [vmem:[%s15922_s1 + $0x6d4] sm:$0xf0] }
 0x1b8   :  { %5611 = vmatpush.bf16.msrb.mxu0 %v6871_v10  ;;  %v7223_v10 = vor.u32 %v10051_v62, %v7222_v61  ;;  %v6823_v13 = vor.u32 %v9951_v55, %v6822_v52  ;;  %v10135_v59 = vld [vmem:[%s15922_s1 + $0x7d4] sm:$0xf0]  ;;  %v7686_v60 = vld [vmem:[%s15922_s1 + $0x8c8] sm:$0xf]  ;;  %v7431_v52 = vor.u32 %v10103_v57, %v7430_v56 }
 0x1b9   :  { %5624 = vmatpush.bf16.msrb.mxu1 %v6999_v14  ;;  %v10015_v14 = vld [vmem:[%s15922_s1 + $0x414] sm:$0xf0]  ;;  %v7814_v62 = vld [vmem:[%s15922_s1 + $0x9c8] sm:$0xf] }
 0x1ba   :  { %5637 = vmatpush.bf16.msrb.mxu2 %v7127_v2  ;;  %v7206_v2 = vld [vmem:[%s15922_s1 + $0x508] sm:$0xf]  ;;  %v5397_v24 = vpop.f32.mrf.mxu3  ;;  %v7079_v39 = vor.u32 %v10015_v14, %v7078_v9  ;;  %v10167_v61 = vld [vmem:[%s15922_s1 + $0x8d4] sm:$0xf0] }
 0x1bb   :  { %5650 = vmatpush.bf16.msrb.mxu3 %v7255_v17  ;;  %v10107_v17 = vld [vmem:[%s15922_s1 + $0x6f4] sm:$0xf0]  ;;  %v7207_v27 = vor.u32 %v10047_v0, %v7206_v2  ;;  %v7670_v14 = vld [vmem:[%s15922_s1 + $0x8a8] sm:$0xf] }
 0x1bc   :  { %5612 = vmatpush.bf16.msrb.mxu0 %v6855_v43  ;;  %v10203_v43 = vld [vmem:[%s15922_s1 + $0x9f4] sm:$0xf0]  ;;  %v7798_v0 = vld [vmem:[%s15922_s1 + $0x9a8] sm:$0xf] }
 0x1bd   :  { %5625 = vmatpush.bf16.msrb.mxu1 %v6983_v50  ;;  %v7447_v50 = vor.u32 %v10107_v17, %v7446_v53  ;;  %v7831_v58 = vor.u32 %v10203_v43, %v7830_v40  ;;  %v10099_v6 = vld [vmem:[%s15922_s1 + $0x6b4] sm:$0xf0]  ;;  %v7398_v24 = vld [vmem:[%s15922_s1 + $0x688] sm:$0xf] }
 0x1be   :  { %5638 = vmatpush.bf16.msrb.mxu2 %v7111_v51  ;;  %v7575_v51 = vor.u32 %v10139_v26, %v7574_v21  ;;  %v10163_v2 = vld [vmem:[%s15922_s1 + $0x8b4] sm:$0xf0]  ;;  %v7526_v26 = vld [vmem:[%s15922_s1 + $0x788] sm:$0xf] }
 0x1bf   :  { %5651 = vmatpush.bf16.msrb.mxu3 %v7239_v48  ;;  %v7558_v48 = vld [vmem:[%s15922_s1 + $0x7c8] sm:$0xf]  ;;  %v10195_v15 = vld [vmem:[%s15922_s1 + $0x9b4] sm:$0xf0]  ;;  %v7671_v21 = vor.u32 %v10163_v2, %v7670_v14 }
 0x1c0   :  { %5613 = vmatpush.bf16.msrb.mxu0 %v6839_v63  ;;  %v10199_v63 = vld [vmem:[%s15922_s1 + $0x9d4] sm:$0xf0]  ;;  %v7559_v55 = vor.u32 %v10135_v59, %v7558_v48  ;;  %v7799_v32 = vor.u32 %v10195_v15, %v7798_v0  ;;  %v7782_v43 = vld [vmem:[%s15922_s1 + $0x988] sm:$0xf] }
 0x1c1   :  { %5626 = vmatpush.bf16.msrb.mxu1 %v6967_v4  ;;  %v7687_v4 = vor.u32 %v10167_v61, %v7686_v60  ;;  %v7815_v9 = vor.u32 %v10199_v63, %v7814_v62  ;;  %v10127_v34 = vld [vmem:[%s15922_s1 + $0x794] sm:$0xf0]  ;;  %v7382_v48 = vld [vmem:[%s15922_s1 + $0x668] sm:$0xf] }
 0x1c2   :  { %5639 = vmatpush.bf16.msrb.mxu2 %v7095_v5  ;;  %v7414_v5 = vld [vmem:[%s15922_s1 + $0x6a8] sm:$0xf]  ;;  %v7527_v56 = vor.u32 %v10127_v34, %v7526_v26  ;;  %v10123_v61 = vld [vmem:[%s15922_s1 + $0x774] sm:$0xf0] }
 0x1c3   :  { %5652 = vmatpush.bf16.msrb.mxu3 %v7223_v10  ;;  %v10131_v10 = vld [vmem:[%s15922_s1 + $0x7b4] sm:$0xf0]  ;;  %v7415_v53 = vor.u32 %v10099_v6, %v7414_v5  ;;  %v7510_v59 = vld [vmem:[%s15922_s1 + $0x768] sm:$0xf] }
 0x1c4   :  { %5614 = vmatpush.bf16.msrb.mxu0 %v6823_v13  ;;  %v7543_v17 = vor.u32 %v10131_v10, %v7542_v8  ;;  %v10095_v13 = vld [vmem:[%s15922_s1 + $0x694] sm:$0xf0]  ;;  %v5408_v40 = vpop.f32.mrf.mxu0  ;;  %v7638_v62 = vld [vmem:[%s15922_s1 + $0x868] sm:$0xf]  ;;  %v7511_v5 = vor.u32 %v10123_v61, %v7510_v59 }
 0x1c5   :  { %5627 = vmatpush.bf16.msrb.mxu1 %v6951_v36  ;;  %v7654_v36 = vld [vmem:[%s15922_s1 + $0x888] sm:$0xf]  ;;  %v10155_v63 = vld [vmem:[%s15922_s1 + $0x874] sm:$0xf0] }
 0x1c6   :  { %5640 = vmatpush.bf16.msrb.mxu2 %v7079_v39  ;;  %v10159_v39 = vld [vmem:[%s15922_s1 + $0x894] sm:$0xf0]  ;;  %v7639_v6 = vor.u32 %v10155_v63, %v7638_v62  ;;  %v7366_v8 = vld [vmem:[%s15922_s1 + $0x648] sm:$0xf] }
 0x1c7   :  { %5653 = vmatpush.bf16.msrb.mxu3 %v7207_v27  ;;  %5615 = vmatmul.bf16.vlgmr.msrb.gmra.mxu0 %v11044_v18  ;;  %v10191_v27 = vld [vmem:[%s15922_s1 + $0x994] sm:$0xf0]  ;;  %v7655_v57 = vor.u32 %v10159_v39, %v7654_v36  ;;  %v7494_v10 = vld [vmem:[%s15922_s1 + $0x748] sm:$0xf] }
 0x1c8   :  { %5659 = vmatpush.bf16.msra.mxu0 %v7447_v50  ;;  %5628 = vmatmul.bf16.vlgmr.msrb.gmra.mxu1 %v11048_v20  ;;  %v5409_v50 = vadd.f32 %v5408_v40, %v13563_v47  ;;  %v7783_v47 = vor.u32 %v10191_v27, %v7782_v43  ;;  %v10119_v0 = vld [vmem:[%s15922_s1 + $0x754] sm:$0xf0]  ;;  %v7622_v15 = vld [vmem:[%s15922_s1 + $0x848] sm:$0xf] }
 0x1c9   :  { %5672 = vmatpush.bf16.msra.mxu1 %v7575_v51  ;;  %5641 = vmatmul.bf16.vlgmr.msrb.gmra.mxu2 %v11208_v41  ;;  %v7399_v51 = vor.u32 %v10095_v13, %v7398_v24  ;;  %v7750_v24 = vld [vmem:[%s15922_s1 + $0x948] sm:$0xf]  ;;  %v10183_v13 = vld [vmem:[%s15922_s1 + $0x954] sm:$0xf0]  ;;  %v7495_v39 = vor.u32 %v10119_v0, %v7494_v10 }
 0x1ca   :  { %5685 = vmatpush.bf16.msra.mxu2 %v7703_v54  ;;  %5654 = vmatmul.bf16.vlgmr.msrb.gmra.mxu3 %v11212_v44  ;;  %v5421_v54 = vpop.f32.mrf.mxu1  ;;  %v7350_v43 = vld [vmem:[%s15922_s1 + $0x628] sm:$0xf]  ;;  %v10083_v27 = vld [vmem:[%s15922_s1 + $0x634] sm:$0xf0] }
 0x1cb   :  { %5698 = vmatpush.bf16.msra.mxu3 %v7831_v58  ;;  %v10091_v58 = vld [vmem:[%s15922_s1 + $0x674] sm:$0xf0]  ;;  %v5422_v60 = vadd.f32 %v5421_v54, %v5409_v50  ;;  %v7478_v50 = vld [vmem:[%s15922_s1 + $0x728] sm:$0xf]  ;;  %v7351_v59 = vor.u32 %v10083_v27, %v7350_v43 }
 0x1cc   :  { %5660 = vmatpush.bf16.msra.mxu0 %v7431_v52  ;;  %v7766_v52 = vld [vmem:[%s15922_s1 + $0x968] sm:$0xf]  ;;  %v5434_v2 = vpop.f32.mrf.mxu2  ;;  %v5410_v26 = vpop.f32.mrf.mxu0  ;;  %v10115_v54 = vld [vmem:[%s15922_s1 + $0x734] sm:$0xf0] }
 0x1cd   :  { %5673 = vmatpush.bf16.msra.mxu1 %v7559_v55  ;;  %v10187_v55 = vld [vmem:[%s15922_s1 + $0x974] sm:$0xf0]  ;;  %v7479_v61 = vor.u32 %v10115_v54, %v7478_v50  ;;  %v7462_v63 = vld [vmem:[%s15922_s1 + $0x708] sm:$0xf] }
 0x1ce   :  { %5686 = vmatpush.bf16.msra.mxu2 %v7687_v4  ;;  %v7383_v4 = vor.u32 %v10091_v58, %v7382_v48  ;;  %v7767_v14 = vor.u32 %v10187_v55, %v7766_v52  ;;  %v7734_v48 = vld [vmem:[%s15922_s1 + $0x928] sm:$0xf]  ;;  %v10179_v58 = vld [vmem:[%s15922_s1 + $0x934] sm:$0xf0] }
 0x1cf   :  { %5699 = vmatpush.bf16.msra.mxu3 %v7815_v9  ;;  %v10087_v9 = vld [vmem:[%s15922_s1 + $0x654] sm:$0xf0]  ;;  %v7590_v55 = vld [vmem:[%s15922_s1 + $0x808] sm:$0xf] }
 0x1d0   :  { %5661 = vmatpush.bf16.msra.mxu0 %v7415_v53  ;;  %v10151_v53 = vld [vmem:[%s15922_s1 + $0x854] sm:$0xf0]  ;;  %v7958_v10 = vld [vmem:[%s15922_s1 + $0xae8] sm:$0xf] }
 0x1d1   :  { %5674 = vmatpush.bf16.msra.mxu1 %v7543_v17  ;;  %v5435_v17 = vadd.f32 %v5434_v2, %v5422_v60  ;;  %v7623_v40 = vor.u32 %v10151_v53, %v7622_v15  ;;  %v10079_v60 = vld [vmem:[%s15922_s1 + $0x614] sm:$0xf0]  ;;  %v8086_v2 = vld [vmem:[%s15922_s1 + $0xbe8] sm:$0xf] }
 0x1d2   :  { %5687 = vmatpush.bf16.msra.mxu2 %v7671_v21  ;;  %v5447_v21 = vpop.f32.mrf.mxu3  ;;  %v5423_v34 = vpop.f32.mrf.mxu1  ;;  %v10111_v52 = vld [vmem:[%s15922_s1 + $0x714] sm:$0xf0]  ;;  %v8342_v26 = vld [vmem:[%s15922_s1 + $0xde8] sm:$0xf] }
 0x1d3   :  { %5700 = vmatpush.bf16.msra.mxu3 %v7799_v32  ;;  %v7367_v32 = vor.u32 %v10087_v9, %v7366_v8  ;;  %v13762_v36 = vadd.f32 %v5447_v21, %v5435_v17  ;;  %v10175_v8 = vld [vmem:[%s15922_s1 + $0x914] sm:$0xf0]  ;;  %v8214_v17 = vld [vmem:[%s15922_s1 + $0xce8] sm:$0xf] }
 0x1d4   :  { %5662 = vmatpush.bf16.msra.mxu0 %v7399_v51  ;;  %v7751_v51 = vor.u32 %v10183_v13, %v7750_v24  ;;  %v5436_v9 = vpop.f32.mrf.mxu2  ;;  %v10267_v53 = vld [vmem:[%s15922_s1 + $0xbf4] sm:$0xf0]  ;;  %v7463_v24 = vor.u32 %v10111_v52, %v7462_v63  ;;  %v7942_v27 = vld [vmem:[%s15922_s1 + $0xac8] sm:$0xf] }
 0x1d5   :  { %5675 = vmatpush.bf16.msra.mxu1 %v7527_v56  ;;  %v7606_v56 = vld [vmem:[%s15922_s1 + $0x828] sm:$0xf]  ;;  %v10299_v21 = vld [vmem:[%s15922_s1 + $0xcf4] sm:$0xf0] }
 0x1d6   :  { %5688 = vmatpush.bf16.msra.mxu2 %v7655_v57  ;;  %v10147_v57 = vld [vmem:[%s15922_s1 + $0x834] sm:$0xf0]  ;;  %v8215_v43 = vor.u32 %v10299_v21, %v8214_v17  ;;  %v8054_v52 = vld [vmem:[%s15922_s1 + $0xba8] sm:$0xf] }
 0x1d7   :  { %5701 = vmatpush.bf16.msra.mxu3 %v7783_v47  ;;  %v7334_v47 = vld [vmem:[%s15922_s1 + $0x608] sm:$0xf]  ;;  %v7607_v62 = vor.u32 %v10147_v57, %v7606_v56  ;;  %v10231_v50 = vld [vmem:[%s15922_s1 + $0xad4] sm:$0xf0] }
 0x1d8   :  { %5663 = vmatpush.bf16.msra.mxu0 %v7383_v4  ;;  %v7735_v4 = vor.u32 %v10179_v58, %v7734_v48  ;;  %v7335_v15 = vor.u32 %v10079_v60, %v7334_v47  ;;  %v10263_v56 = vld [vmem:[%s15922_s1 + $0xbd4] sm:$0xf0]  ;;  %v8198_v57 = vld [vmem:[%s15922_s1 + $0xcc8] sm:$0xf]  ;;  %v7943_v47 = vor.u32 %v10231_v50, %v7942_v27 }
 0x1d9   :  { %5676 = vmatpush.bf16.msra.mxu1 %v7511_v5  ;;  %v10143_v5 = vld [vmem:[%s15922_s1 + $0x814] sm:$0xf0]  ;;  %v8326_v58 = vld [vmem:[%s15922_s1 + $0xdc8] sm:$0xf] }
 0x1da   :  { %5689 = vmatpush.bf16.msra.mxu2 %v7639_v6  ;;  %v7718_v6 = vld [vmem:[%s15922_s1 + $0x908] sm:$0xf]  ;;  %v5449_v0 = vpop.f32.mrf.mxu3  ;;  %v7591_v13 = vor.u32 %v10143_v5, %v7590_v55  ;;  %v10295_v48 = vld [vmem:[%s15922_s1 + $0xcd4] sm:$0xf0] }
 0x1db   :  { %5702 = vmatpush.bf16.msra.mxu3 %v7767_v14  ;;  %v10235_v14 = vld [vmem:[%s15922_s1 + $0xaf4] sm:$0xf0]  ;;  %v7719_v34 = vor.u32 %v10175_v8, %v7718_v6  ;;  %v8182_v5 = vld [vmem:[%s15922_s1 + $0xca8] sm:$0xf] }
 0x1dc   :  { %5664 = vmatpush.bf16.msra.mxu0 %v7367_v32  ;;  %v10331_v32 = vld [vmem:[%s15922_s1 + $0xdf4] sm:$0xf0]  ;;  %v8310_v8 = vld [vmem:[%s15922_s1 + $0xda8] sm:$0xf] }
 0x1dd   :  { %5677 = vmatpush.bf16.msra.mxu1 %v7495_v39  ;;  %v7959_v39 = vor.u32 %v10235_v14, %v7958_v10  ;;  %v8343_v54 = vor.u32 %v10331_v32, %v8342_v26  ;;  %v10227_v63 = vld [vmem:[%s15922_s1 + $0xab4] sm:$0xf0]  ;;  %v7910_v0 = vld [vmem:[%s15922_s1 + $0xa88] sm:$0xf] }
 0x1de   :  { %5690 = vmatpush.bf16.msra.mxu2 %v7623_v40  ;;  %v8087_v40 = vor.u32 %v10267_v53, %v8086_v2  ;;  %v10291_v6 = vld [vmem:[%s15922_s1 + $0xcb4] sm:$0xf0]  ;;  %v8038_v53 = vld [vmem:[%s15922_s1 + $0xb88] sm:$0xf] }
 0x1df   :  { %5703 = vmatpush.bf16.msra.mxu3 %v7751_v51  ;;  %v8070_v51 = vld [vmem:[%s15922_s1 + $0xbc8] sm:$0xf]  ;;  %v10323_v9 = vld [vmem:[%s15922_s1 + $0xdb4] sm:$0xf0]  ;;  %v8183_v2 = vor.u32 %v10291_v6, %v8182_v5 }
 0x1e0   :  { %5665 = vmatpush.bf16.msra.mxu0 %v7351_v59  ;;  %v10327_v59 = vld [vmem:[%s15922_s1 + $0xdd4] sm:$0xf0]  ;;  %v8071_v60 = vor.u32 %v10263_v56, %v8070_v51  ;;  %v8311_v17 = vor.u32 %v10323_v9, %v8310_v8  ;;  %v8294_v32 = vld [vmem:[%s15922_s1 + $0xd88] sm:$0xf] }
 0x1e1   :  { %5678 = vmatpush.bf16.msra.mxu1 %v7479_v61  ;;  %v8199_v61 = vor.u32 %v10295_v48, %v8198_v57  ;;  %v8327_v55 = vor.u32 %v10327_v59, %v8326_v58  ;;  %v10255_v21 = vld [vmem:[%s15922_s1 + $0xb94] sm:$0xf0]  ;;  %v7894_v51 = vld [vmem:[%s15922_s1 + $0xa68] sm:$0xf] }
 0x1e2   :  { %5691 = vmatpush.bf16.msra.mxu2 %v7607_v62  ;;  %v7926_v62 = vld [vmem:[%s15922_s1 + $0xaa8] sm:$0xf]  ;;  %v8039_v27 = vor.u32 %v10255_v21, %v8038_v53  ;;  %v10251_v48 = vld [vmem:[%s15922_s1 + $0xb74] sm:$0xf0] }
 0x1e3   :  { %5704 = vmatpush.bf16.msra.mxu3 %v7735_v4  ;;  %v10259_v4 = vld [vmem:[%s15922_s1 + $0xbb4] sm:$0xf0]  ;;  %v7927_v10 = vor.u32 %v10227_v63, %v7926_v62  ;;  %v8022_v56 = vld [vmem:[%s15922_s1 + $0xb68] sm:$0xf] }
 0x1e4   :  { %5666 = vmatpush.bf16.msra.mxu0 %v7335_v15  ;;  %v8055_v14 = vor.u32 %v10259_v4, %v8054_v52  ;;  %v10223_v15 = vld [vmem:[%s15922_s1 + $0xa94] sm:$0xf0]  ;;  %v5460_v26 = vpop.f32.mrf.mxu0  ;;  %v8150_v58 = vld [vmem:[%s15922_s1 + $0xc68] sm:$0xf]  ;;  %v8023_v62 = vor.u32 %v10251_v48, %v8022_v56 }
 0x1e5   :  { %5679 = vmatpush.bf16.msra.mxu1 %v7463_v24  ;;  %v8166_v24 = vld [vmem:[%s15922_s1 + $0xc88] sm:$0xf]  ;;  %v10283_v59 = vld [vmem:[%s15922_s1 + $0xc74] sm:$0xf0] }
 0x1e6   :  { %5692 = vmatpush.bf16.msra.mxu2 %v7591_v13  ;;  %v10287_v13 = vld [vmem:[%s15922_s1 + $0xc94] sm:$0xf0]  ;;  %v8151_v63 = vor.u32 %v10283_v59, %v8150_v58  ;;  %v7878_v52 = vld [vmem:[%s15922_s1 + $0xa48] sm:$0xf] }
 0x1e7   :  { %5705 = vmatpush.bf16.msra.mxu3 %v7719_v34  ;;  %5667 = vmatmul.bf16.vlgmr.msra.gmra.mxu0 %v11200_v38  ;;  %v10319_v34 = vld [vmem:[%s15922_s1 + $0xd94] sm:$0xf0]  ;;  %v8167_v50 = vor.u32 %v10287_v13, %v8166_v24  ;;  %v8006_v4 = vld [vmem:[%s15922_s1 + $0xb48] sm:$0xf] }
 0x1e8   :  { %5711 = vmatpush.bf16.msrb.mxu0 %v7959_v39  ;;  %5680 = vmatmul.bf16.vlgmr.msra.gmra.mxu1 %v11210_v42  ;;  %v5461_v39 = vadd.f32 %v5460_v26, %v13762_v36  ;;  %v8295_v36 = vor.u32 %v10319_v34, %v8294_v32  ;;  %v10247_v8 = vld [vmem:[%s15922_s1 + $0xb54] sm:$0xf0]  ;;  %v8134_v9 = vld [vmem:[%s15922_s1 + $0xc48] sm:$0xf] }
 0x1e9   :  { %5724 = vmatpush.bf16.msrb.mxu1 %v8087_v40  ;;  %5693 = vmatmul.bf16.vlgmr.msra.gmra.mxu2 %v11401_v25  ;;  %v7911_v40 = vor.u32 %v10223_v15, %v7910_v0  ;;  %v8262_v0 = vld [vmem:[%s15922_s1 + $0xd48] sm:$0xf]  ;;  %v10311_v15 = vld [vmem:[%s15922_s1 + $0xd54] sm:$0xf0]  ;;  %v8007_v13 = vor.u32 %v10247_v8, %v8006_v4 }
 0x1ea   :  { %5737 = vmatpush.bf16.msrb.mxu2 %v8215_v43  ;;  %5706 = vmatmul.bf16.vlgmr.msra.gmra.mxu3 %v11414_v30  ;;  %v5473_v43 = vpop.f32.mrf.mxu1  ;;  %v7862_v32 = vld [vmem:[%s15922_s1 + $0xa28] sm:$0xf]  ;;  %v10211_v34 = vld [vmem:[%s15922_s1 + $0xa34] sm:$0xf0] }
 0x1eb   :  { %5750 = vmatpush.bf16.msrb.mxu3 %v8343_v54  ;;  %v10219_v54 = vld [vmem:[%s15922_s1 + $0xa74] sm:$0xf0]  ;;  %v5474_v57 = vadd.f32 %v5473_v43, %v5461_v39  ;;  %v7990_v39 = vld [vmem:[%s15922_s1 + $0xb28] sm:$0xf]  ;;  %v7863_v56 = vor.u32 %v10211_v34, %v7862_v32 }
 0x1ec   :  { %5712 = vmatpush.bf16.msrb.mxu0 %v7943_v47  ;;  %v8278_v47 = vld [vmem:[%s15922_s1 + $0xd68] sm:$0xf]  ;;  %v5486_v6 = vpop.f32.mrf.mxu2  ;;  %v5462_v53 = vpop.f32.mrf.mxu0  ;;  %v10243_v43 = vld [vmem:[%s15922_s1 + $0xb34] sm:$0xf0] }
 0x1ed   :  { %5725 = vmatpush.bf16.msrb.mxu1 %v8071_v60  ;;  %v10315_v60 = vld [vmem:[%s15922_s1 + $0xd74] sm:$0xf0]  ;;  %v7991_v48 = vor.u32 %v10243_v43, %v7990_v39  ;;  %v7974_v59 = vld [vmem:[%s15922_s1 + $0xb08] sm:$0xf] }
 0x1ee   :  { %5738 = vmatpush.bf16.msrb.mxu2 %v8199_v61  ;;  %v7895_v61 = vor.u32 %v10219_v54, %v7894_v51  ;;  %v8279_v5 = vor.u32 %v10315_v60, %v8278_v47  ;;  %v8246_v51 = vld [vmem:[%s15922_s1 + $0xd28] sm:$0xf]  ;;  %v10307_v54 = vld [vmem:[%s15922_s1 + $0xd34] sm:$0xf0] }
 0x1ef   :  { %5751 = vmatpush.bf16.msrb.mxu3 %v8327_v55  ;;  %v10215_v55 = vld [vmem:[%s15922_s1 + $0xa54] sm:$0xf0]  ;;  %v8102_v60 = vld [vmem:[%s15922_s1 + $0xc08] sm:$0xf] }
 0x1f0   :  { %5713 = vmatpush.bf16.msrb.mxu0 %v7927_v10  ;;  %v10279_v10 = vld [vmem:[%s15922_s1 + $0xc54] sm:$0xf0]  ;;  %v8470_v4 = vld [vmem:[%s15922_s1 + $0xee8] sm:$0xf] }
 0x1f1   :  { %5726 = vmatpush.bf16.msrb.mxu1 %v8055_v14  ;;  %v5487_v14 = vadd.f32 %v5486_v6, %v5474_v57  ;;  %v8135_v26 = vor.u32 %v10279_v10, %v8134_v9  ;;  %v10207_v57 = vld [vmem:[%s15922_s1 + $0xa14] sm:$0xf0]  ;;  %v8598_v6 = vld [vmem:[%s15922_s1 + $0xfe8] sm:$0xf] }
 0x1f2   :  { %5739 = vmatpush.bf16.msrb.mxu2 %v8183_v2  ;;  %v5499_v2 = vpop.f32.mrf.mxu3  ;;  %v5475_v21 = vpop.f32.mrf.mxu1  ;;  %v10239_v47 = vld [vmem:[%s15922_s1 + $0xb14] sm:$0xf0]  ;;  %v8854_v53 = vld [vmem:[%s15922_s1 + $0x11e8] sm:$0xf] }
 0x1f3   :  { %5752 = vmatpush.bf16.msrb.mxu3 %v8311_v17  ;;  %v7879_v17 = vor.u32 %v10215_v55, %v7878_v52  ;;  %v13961_v24 = vadd.f32 %v5499_v2, %v5487_v14  ;;  %v10303_v52 = vld [vmem:[%s15922_s1 + $0xd14] sm:$0xf0]  ;;  %v8726_v14 = vld [vmem:[%s15922_s1 + $0x10e8] sm:$0xf] }
 0x1f4   :  { %5714 = vmatpush.bf16.msrb.mxu0 %v7911_v40  ;;  %v8263_v40 = vor.u32 %v10311_v15, %v8262_v0  ;;  %v5488_v55 = vpop.f32.mrf.mxu2  ;;  %v10395_v10 = vld [vmem:[%s15922_s1 + $0xff4] sm:$0xf0]  ;;  %v7975_v0 = vor.u32 %v10239_v47, %v7974_v59  ;;  %v8454_v34 = vld [vmem:[%s15922_s1 + $0xec8] sm:$0xf] }
 0x1f5   :  { %5727 = vmatpush.bf16.msrb.mxu1 %v8039_v27  ;;  %v8118_v27 = vld [vmem:[%s15922_s1 + $0xc28] sm:$0xf]  ;;  %v10427_v2 = vld [vmem:[%s15922_s1 + $0x10f4] sm:$0xf0] }
 0x1f6   :  { %5740 = vmatpush.bf16.msrb.mxu2 %v8167_v50  ;;  %v10275_v50 = vld [vmem:[%s15922_s1 + $0xc34] sm:$0xf0]  ;;  %v8727_v32 = vor.u32 %v10427_v2, %v8726_v14  ;;  %v8566_v47 = vld [vmem:[%s15922_s1 + $0xfa8] sm:$0xf] }
 0x1f7   :  { %5753 = vmatpush.bf16.msrb.mxu3 %v8295_v36  ;;  %v7846_v36 = vld [vmem:[%s15922_s1 + $0xa08] sm:$0xf]  ;;  %v8119_v58 = vor.u32 %v10275_v50, %v8118_v27  ;;  %v10359_v39 = vld [vmem:[%s15922_s1 + $0xed4] sm:$0xf0] }
 0x1f8   :  { %5715 = vmatpush.bf16.msrb.mxu0 %v7895_v61  ;;  %v8247_v61 = vor.u32 %v10307_v54, %v8246_v51  ;;  %v7847_v9 = vor.u32 %v10207_v57, %v7846_v36  ;;  %v10391_v27 = vld [vmem:[%s15922_s1 + $0xfd4] sm:$0xf0]  ;;  %v8710_v50 = vld [vmem:[%s15922_s1 + $0x10c8] sm:$0xf]  ;;  %v8455_v36 = vor.u32 %v10359_v39, %v8454_v34 }
 0x1f9   :  { %5728 = vmatpush.bf16.msrb.mxu1 %v8023_v62  ;;  %v10271_v62 = vld [vmem:[%s15922_s1 + $0xc14] sm:$0xf0]  ;;  %v8838_v54 = vld [vmem:[%s15922_s1 + $0x11c8] sm:$0xf] }
 0x1fa   :  { %5741 = vmatpush.bf16.msrb.mxu2 %v8151_v63  ;;  %v8230_v63 = vld [vmem:[%s15922_s1 + $0xd08] sm:$0xf]  ;;  %v5501_v8 = vpop.f32.mrf.mxu3  ;;  %v8103_v15 = vor.u32 %v10271_v62, %v8102_v60  ;;  %v10423_v51 = vld [vmem:[%s15922_s1 + $0x10d4] sm:$0xf0] }
 0x1fb   :  { %5754 = vmatpush.bf16.msrb.mxu3 %v8279_v5  ;;  %v10363_v5 = vld [vmem:[%s15922_s1 + $0xef4] sm:$0xf0]  ;;  %v8231_v21 = vor.u32 %v10303_v52, %v8230_v63  ;;  %v8694_v62 = vld [vmem:[%s15922_s1 + $0x10a8] sm:$0xf] }
 0x1fc   :  { %5716 = vmatpush.bf16.msrb.mxu0 %v7879_v17  ;;  %v10459_v17 = vld [vmem:[%s15922_s1 + $0x11f4] sm:$0xf0]  ;;  %v8822_v52 = vld [vmem:[%s15922_s1 + $0x11a8] sm:$0xf] }
 0x1fd   :  { %5729 = vmatpush.bf16.msrb.mxu1 %v8007_v13  ;;  %v8471_v13 = vor.u32 %v10363_v5, %v8470_v4  ;;  %v8855_v43 = vor.u32 %v10459_v17, %v8854_v53  ;;  %v10355_v59 = vld [vmem:[%s15922_s1 + $0xeb4] sm:$0xf0]  ;;  %v8422_v8 = vld [vmem:[%s15922_s1 + $0xe88] sm:$0xf] }
 0x1fe   :  { %5742 = vmatpush.bf16.msrb.mxu2 %v8135_v26  ;;  %v8599_v26 = vor.u32 %v10395_v10, %v8598_v6  ;;  %v10419_v63 = vld [vmem:[%s15922_s1 + $0x10b4] sm:$0xf0]  ;;  %v8550_v10 = vld [vmem:[%s15922_s1 + $0xf88] sm:$0xf] }
 0x1ff   :  { %5755 = vmatpush.bf16.msrb.mxu3 %v8263_v40  ;;  %v8582_v40 = vld [vmem:[%s15922_s1 + $0xfc8] sm:$0xf]  ;;  %v10451_v55 = vld [vmem:[%s15922_s1 + $0x11b4] sm:$0xf0]  ;;  %v8695_v6 = vor.u32 %v10419_v63, %v8694_v62 }
 0x200   :  { %5717 = vmatpush.bf16.msrb.mxu0 %v7863_v56  ;;  %v10455_v56 = vld [vmem:[%s15922_s1 + $0x11d4] sm:$0xf0]  ;;  %v8583_v57 = vor.u32 %v10391_v27, %v8582_v40  ;;  %v8823_v14 = vor.u32 %v10451_v55, %v8822_v52  ;;  %v8806_v17 = vld [vmem:[%s15922_s1 + $0x1188] sm:$0xf] }
 0x201   :  { %5730 = vmatpush.bf16.msrb.mxu1 %v7991_v48  ;;  %v8711_v48 = vor.u32 %v10423_v51, %v8710_v50  ;;  %v8839_v60 = vor.u32 %v10455_v56, %v8838_v54  ;;  %v10383_v2 = vld [vmem:[%s15922_s1 + $0xf94] sm:$0xf0]  ;;  %v8406_v40 = vld [vmem:[%s15922_s1 + $0xe68] sm:$0xf] }
 0x202   :  { %5743 = vmatpush.bf16.msrb.mxu2 %v8119_v58  ;;  %v8438_v58 = vld [vmem:[%s15922_s1 + $0xea8] sm:$0xf]  ;;  %v8551_v34 = vor.u32 %v10383_v2, %v8550_v10  ;;  %v10379_v51 = vld [vmem:[%s15922_s1 + $0xf74] sm:$0xf0] }
 0x203   :  { %5756 = vmatpush.bf16.msrb.mxu3 %v8247_v61  ;;  %v10387_v61 = vld [vmem:[%s15922_s1 + $0xfb4] sm:$0xf0]  ;;  %v8439_v4 = vor.u32 %v10355_v59, %v8438_v58  ;;  %v8534_v27 = vld [vmem:[%s15922_s1 + $0xf68] sm:$0xf] }
 0x204   :  { %5718 = vmatpush.bf16.msrb.mxu0 %v7847_v9  ;;  %v8567_v5 = vor.u32 %v10387_v61, %v8566_v47  ;;  %v10351_v9 = vld [vmem:[%s15922_s1 + $0xe94] sm:$0xf0]  ;;  %v5512_v53 = vpop.f32.mrf.mxu0  ;;  %v8662_v54 = vld [vmem:[%s15922_s1 + $0x1068] sm:$0xf]  ;;  %v8535_v58 = vor.u32 %v10379_v51, %v8534_v27 }
 0x205   :  { %5731 = vmatpush.bf16.msrb.mxu1 %v7975_v0  ;;  %v8678_v0 = vld [vmem:[%s15922_s1 + $0x1088] sm:$0xf]  ;;  %v10411_v56 = vld [vmem:[%s15922_s1 + $0x1074] sm:$0xf0] }
 0x206   :  { %5744 = vmatpush.bf16.msrb.mxu2 %v8103_v15  ;;  %v10415_v15 = vld [vmem:[%s15922_s1 + $0x1094] sm:$0xf0]  ;;  %v8663_v59 = vor.u32 %v10411_v56, %v8662_v54  ;;  %v8390_v47 = vld [vmem:[%s15922_s1 + $0xe48] sm:$0xf] }
 0x207   :  { %5757 = vmatpush.bf16.msrb.mxu3 %v8231_v21  ;;  %5719 = vmatmul.bf16.vlgmr.msrb.gmra.mxu0 %v11412_v29  ;;  %v10447_v21 = vld [vmem:[%s15922_s1 + $0x1194] sm:$0xf0]  ;;  %v8679_v39 = vor.u32 %v10415_v15, %v8678_v0  ;;  %v8518_v61 = vld [vmem:[%s15922_s1 + $0xf48] sm:$0xf] }
 0x208   :  { %5763 = vmatpush.bf16.msra.mxu0 %v8471_v13  ;;  %5732 = vmatmul.bf16.vlgmr.msrb.gmra.mxu1 %v11422_v33  ;;  %v5513_v13 = vadd.f32 %v5512_v53, %v13961_v24  ;;  %v8807_v24 = vor.u32 %v10447_v21, %v8806_v17  ;;  %v10375_v52 = vld [vmem:[%s15922_s1 + $0xf54] sm:$0xf0]  ;;  %v8646_v55 = vld [vmem:[%s15922_s1 + $0x1048] sm:$0xf] }
 0x209   :  { %5776 = vmatpush.bf16.msra.mxu1 %v8599_v26  ;;  %5745 = vmatmul.bf16.vlgmr.msrb.gmra.mxu2 %v11611_v23  ;;  %v8423_v26 = vor.u32 %v10351_v9, %v8422_v8  ;;  %v8774_v8 = vld [vmem:[%s15922_s1 + $0x1148] sm:$0xf]  ;;  %v10439_v9 = vld [vmem:[%s15922_s1 + $0x1154] sm:$0xf0]  ;;  %v8519_v15 = vor.u32 %v10375_v52, %v8518_v61 }
 0x20a   :  { %5789 = vmatpush.bf16.msra.mxu2 %v8727_v32  ;;  %5758 = vmatmul.bf16.vlgmr.msrb.gmra.mxu3 %v11624_v31  ;;  %v5525_v32 = vpop.f32.mrf.mxu1  ;;  %v8374_v17 = vld [vmem:[%s15922_s1 + $0xe28] sm:$0xf]  ;;  %v10339_v21 = vld [vmem:[%s15922_s1 + $0xe34] sm:$0xf0] }
 0x20b   :  { %5802 = vmatpush.bf16.msra.mxu3 %v8855_v43  ;;  %v10347_v43 = vld [vmem:[%s15922_s1 + $0xe74] sm:$0xf0]  ;;  %v5526_v50 = vadd.f32 %v5525_v32, %v5513_v13  ;;  %v8502_v13 = vld [vmem:[%s15922_s1 + $0xf28] sm:$0xf]  ;;  %v8375_v27 = vor.u32 %v10339_v21, %v8374_v17 }
 0x20c   :  { %5764 = vmatpush.bf16.msra.mxu0 %v8455_v36  ;;  %v8790_v36 = vld [vmem:[%s15922_s1 + $0x1168] sm:$0xf]  ;;  %v5538_v63 = vpop.f32.mrf.mxu2  ;;  %v5514_v10 = vpop.f32.mrf.mxu0  ;;  %v10371_v32 = vld [vmem:[%s15922_s1 + $0xf34] sm:$0xf0] }
 0x20d   :  { %5777 = vmatpush.bf16.msra.mxu1 %v8583_v57  ;;  %v10443_v57 = vld [vmem:[%s15922_s1 + $0x1174] sm:$0xf0]  ;;  %v8503_v51 = vor.u32 %v10371_v32, %v8502_v13  ;;  %v8486_v56 = vld [vmem:[%s15922_s1 + $0xf08] sm:$0xf] }
 0x20e   :  { %5790 = vmatpush.bf16.msra.mxu2 %v8711_v48  ;;  %v8407_v48 = vor.u32 %v10347_v43, %v8406_v40  ;;  %v8791_v62 = vor.u32 %v10443_v57, %v8790_v36  ;;  %v8758_v40 = vld [vmem:[%s15922_s1 + $0x1128] sm:$0xf]  ;;  %v10435_v43 = vld [vmem:[%s15922_s1 + $0x1134] sm:$0xf0] }
 0x20f   :  { %5803 = vmatpush.bf16.msra.mxu3 %v8839_v60  ;;  %v10343_v60 = vld [vmem:[%s15922_s1 + $0xe54] sm:$0xf0]  ;;  %v8614_v57 = vld [vmem:[%s15922_s1 + $0x1008] sm:$0xf] }
 0x210   :  { %5765 = vmatpush.bf16.msra.mxu0 %v8439_v4  ;;  %v10407_v4 = vld [vmem:[%s15922_s1 + $0x1054] sm:$0xf0]  ;;  %v8982_v61 = vld [vmem:[%s15922_s1 + $0x12e8] sm:$0xf] }
 0x211   :  { %5778 = vmatpush.bf16.msra.mxu1 %v8567_v5  ;;  %v5539_v5 = vadd.f32 %v5538_v63, %v5526_v50  ;;  %v8647_v53 = vor.u32 %v10407_v4, %v8646_v55  ;;  %v10335_v50 = vld [vmem:[%s15922_s1 + $0xe14] sm:$0xf0]  ;;  %v9110_v63 = vld [vmem:[%s15922_s1 + $0x13e8] sm:$0xf] }
 0x212   :  { %5791 = vmatpush.bf16.msra.mxu2 %v8695_v6  ;;  %v5551_v6 = vpop.f32.mrf.mxu3  ;;  %v5527_v2 = vpop.f32.mrf.mxu1  ;;  %v10367_v36 = vld [vmem:[%s15922_s1 + $0xf14] sm:$0xf0]  ;;  %v9366_v10 = vld [vmem:[%s15922_s1 + $0x15e8] sm:$0xf] }
 0x213   :  { %5804 = vmatpush.bf16.msra.mxu3 %v8823_v14  ;;  %v8391_v14 = vor.u32 %v10343_v60, %v8390_v47  ;;  %v14160_v0 = vadd.f32 %v5551_v6, %v5539_v5  ;;  %v10431_v47 = vld [vmem:[%s15922_s1 + $0x1114] sm:$0xf0]  ;;  %v9238_v5 = vld [vmem:[%s15922_s1 + $0x14e8] sm:$0xf] }
 0x214   :  { %5766 = vmatpush.bf16.msra.mxu0 %v8423_v26  ;;  %v8775_v26 = vor.u32 %v10439_v9, %v8774_v8  ;;  %v5540_v60 = vpop.f32.mrf.mxu2  ;;  %v10523_v4 = vld [vmem:[%s15922_s1 + $0x13f4] sm:$0xf0]  ;;  %v8487_v8 = vor.u32 %v10367_v36, %v8486_v56  ;;  %v8966_v21 = vld [vmem:[%s15922_s1 + $0x12c8] sm:$0xf] }
 0x215   :  { %5779 = vmatpush.bf16.msra.mxu1 %v8551_v34  ;;  %v8630_v34 = vld [vmem:[%s15922_s1 + $0x1028] sm:$0xf]  ;;  %v10555_v6 = vld [vmem:[%s15922_s1 + $0x14f4] sm:$0xf0] }
 0x216   :  { %5792 = vmatpush.bf16.msra.mxu2 %v8679_v39  ;;  %v10403_v39 = vld [vmem:[%s15922_s1 + $0x1034] sm:$0xf0]  ;;  %v9239_v17 = vor.u32 %v10555_v6, %v9238_v5  ;;  %v9078_v36 = vld [vmem:[%s15922_s1 + $0x13a8] sm:$0xf] }
 0x217   :  { %5805 = vmatpush.bf16.msra.mxu3 %v8807_v24  ;;  %v8358_v24 = vld [vmem:[%s15922_s1 + $0xe08] sm:$0xf]  ;;  %v8631_v54 = vor.u32 %v10403_v39, %v8630_v34  ;;  %v10487_v13 = vld [vmem:[%s15922_s1 + $0x12d4] sm:$0xf0] }
 0x218   :  { %5767 = vmatpush.bf16.msra.mxu0 %v8407_v48  ;;  %v8759_v48 = vor.u32 %v10435_v43, %v8758_v40  ;;  %v8359_v55 = vor.u32 %v10335_v50, %v8358_v24  ;;  %v10519_v34 = vld [vmem:[%s15922_s1 + $0x13d4] sm:$0xf0]  ;;  %v9222_v39 = vld [vmem:[%s15922_s1 + $0x14c8] sm:$0xf]  ;;  %v8967_v24 = vor.u32 %v10487_v13, %v8966_v21 }
 0x219   :  { %5780 = vmatpush.bf16.msra.mxu1 %v8535_v58  ;;  %v10399_v58 = vld [vmem:[%s15922_s1 + $0x1014] sm:$0xf0]  ;;  %v9350_v43 = vld [vmem:[%s15922_s1 + $0x15c8] sm:$0xf] }
 0x21a   :  { %5793 = vmatpush.bf16.msra.mxu2 %v8663_v59  ;;  %v8742_v59 = vld [vmem:[%s15922_s1 + $0x1108] sm:$0xf]  ;;  %v5553_v52 = vpop.f32.mrf.mxu3  ;;  %v8615_v9 = vor.u32 %v10399_v58, %v8614_v57  ;;  %v10551_v40 = vld [vmem:[%s15922_s1 + $0x14d4] sm:$0xf0] }
 0x21b   :  { %5806 = vmatpush.bf16.msra.mxu3 %v8791_v62  ;;  %v10491_v62 = vld [vmem:[%s15922_s1 + $0x12f4] sm:$0xf0]  ;;  %v8743_v2 = vor.u32 %v10431_v47, %v8742_v59  ;;  %v9206_v58 = vld [vmem:[%s15922_s1 + $0x14a8] sm:$0xf] }
 0x21c   :  { %5768 = vmatpush.bf16.msra.mxu0 %v8391_v14  ;;  %v10587_v14 = vld [vmem:[%s15922_s1 + $0x15f4] sm:$0xf0]  ;;  %v9334_v47 = vld [vmem:[%s15922_s1 + $0x15a8] sm:$0xf] }
 0x21d   :  { %5781 = vmatpush.bf16.msra.mxu1 %v8519_v15  ;;  %v8983_v15 = vor.u32 %v10491_v62, %v8982_v61  ;;  %v9367_v32 = vor.u32 %v10587_v14, %v9366_v10  ;;  %v10483_v56 = vld [vmem:[%s15922_s1 + $0x12b4] sm:$0xf0]  ;;  %v8934_v52 = vld [vmem:[%s15922_s1 + $0x1288] sm:$0xf] }
 0x21e   :  { %5794 = vmatpush.bf16.msra.mxu2 %v8647_v53  ;;  %v9111_v53 = vor.u32 %v10523_v4, %v9110_v63  ;;  %v10547_v59 = vld [vmem:[%s15922_s1 + $0x14b4] sm:$0xf0]  ;;  %v9062_v4 = vld [vmem:[%s15922_s1 + $0x1388] sm:$0xf] }
 0x21f   :  { %5807 = vmatpush.bf16.msra.mxu3 %v8775_v26  ;;  %v9094_v26 = vld [vmem:[%s15922_s1 + $0x13c8] sm:$0xf]  ;;  %v10579_v60 = vld [vmem:[%s15922_s1 + $0x15b4] sm:$0xf0]  ;;  %v9207_v63 = vor.u32 %v10547_v59, %v9206_v58 }
 0x220   :  { %5769 = vmatpush.bf16.msra.mxu0 %v8375_v27  ;;  %v10583_v27 = vld [vmem:[%s15922_s1 + $0x15d4] sm:$0xf0]  ;;  %v9095_v50 = vor.u32 %v10519_v34, %v9094_v26  ;;  %v9335_v5 = vor.u32 %v10579_v60, %v9334_v47  ;;  %v9318_v14 = vld [vmem:[%s15922_s1 + $0x1588] sm:$0xf] }
 0x221   :  { %5782 = vmatpush.bf16.msra.mxu1 %v8503_v51  ;;  %v9223_v51 = vor.u32 %v10551_v40, %v9222_v39  ;;  %v9351_v57 = vor.u32 %v10583_v27, %v9350_v43  ;;  %v10511_v6 = vld [vmem:[%s15922_s1 + $0x1394] sm:$0xf0]  ;;  %v8918_v26 = vld [vmem:[%s15922_s1 + $0x1268] sm:$0xf] }
 0x222   :  { %5795 = vmatpush.bf16.msra.mxu2 %v8631_v54  ;;  %v8950_v54 = vld [vmem:[%s15922_s1 + $0x12a8] sm:$0xf]  ;;  %v9063_v21 = vor.u32 %v10511_v6, %v9062_v4  ;;  %v10507_v40 = vld [vmem:[%s15922_s1 + $0x1374] sm:$0xf0] }
 0x223   :  { %5808 = vmatpush.bf16.msra.mxu3 %v8759_v48  ;;  %v10515_v48 = vld [vmem:[%s15922_s1 + $0x13b4] sm:$0xf0]  ;;  %v8951_v61 = vor.u32 %v10483_v56, %v8950_v54  ;;  %v9046_v34 = vld [vmem:[%s15922_s1 + $0x1368] sm:$0xf] }
 0x224   :  { %5770 = vmatpush.bf16.msra.mxu0 %v8359_v55  ;;  %v9079_v62 = vor.u32 %v10515_v48, %v9078_v36  ;;  %v10479_v55 = vld [vmem:[%s15922_s1 + $0x1294] sm:$0xf0]  ;;  %v5564_v10 = vpop.f32.mrf.mxu0  ;;  %v9174_v43 = vld [vmem:[%s15922_s1 + $0x1468] sm:$0xf]  ;;  %v9047_v36 = vor.u32 %v10507_v40, %v9046_v34 }
 0x225   :  { %5783 = vmatpush.bf16.msra.mxu1 %v8487_v8  ;;  %v9190_v8 = vld [vmem:[%s15922_s1 + $0x1488] sm:$0xf]  ;;  %v10539_v27 = vld [vmem:[%s15922_s1 + $0x1474] sm:$0xf0] }
 0x226   :  { %5796 = vmatpush.bf16.msra.mxu2 %v8615_v9  ;;  %v10543_v9 = vld [vmem:[%s15922_s1 + $0x1494] sm:$0xf0]  ;;  %v8902_v48 = vld [vmem:[%s15922_s1 + $0x1248] sm:$0xf] }
 0x227   :  { %5809 = vmatpush.bf16.msra.mxu3 %v8743_v2  ;;  %5771 = vmatmul.bf16.vlgmr.msra.gmra.mxu0 %v11622_v28  ;;  %v10575_v2 = vld [vmem:[%s15922_s1 + $0x1594] sm:$0xf0]  ;;  %v9191_v13 = vor.u32 %v10543_v9, %v9190_v8  ;;  %v9030_v59 = vld [vmem:[%s15922_s1 + $0x1348] sm:$0xf] }
 0x228   :  { %5815 = vmatpush.bf16.msrb.mxu0 %v8983_v15  ;;  %5784 = vmatmul.bf16.vlgmr.msra.gmra.mxu1 %v11632_v35  ;;  %v5565_v15 = vadd.f32 %v5564_v10, %v14160_v0  ;;  %v9319_v0 = vor.u32 %v10575_v2, %v9318_v14  ;;  %v10471_v58 = vld [vmem:[%s15922_s1 + $0x1254] sm:$0xf0]  ;;  %v8886_v2 = vld [vmem:[%s15922_s1 + $0x1228] sm:$0xf] }
 0x229   :  { %5828 = vmatpush.bf16.msrb.mxu1 %v9111_v53  ;;  %5797 = vmatmul.bf16.vlgmr.msra.gmra.mxu2 %v11821_v37  ;;  %v8935_v53 = vor.u32 %v10479_v55, %v8934_v52  ;;  %v10503_v60 = vld [vmem:[%s15922_s1 + $0x1354] sm:$0xf0]  ;;  %v9286_v52 = vld [vmem:[%s15922_s1 + $0x1548] sm:$0xf]  ;;  %v8903_v8 = vor.u32 %v10471_v58, %v8902_v48 }
 0x22a   :  { %5841 = vmatpush.bf16.msrb.mxu2 %v9239_v17  ;;  %5810 = vmatmul.bf16.vlgmr.msra.gmra.mxu3 %v11834_v46  ;;  %v5577_v17 = vpop.f32.mrf.mxu1  ;;  %v10567_v55 = vld [vmem:[%s15922_s1 + $0x1554] sm:$0xf0]  ;;  %v9031_v10 = vor.u32 %v10503_v60, %v9030_v59  ;;  %v9270_v34 = vld [vmem:[%s15922_s1 + $0x1528] sm:$0xf] }
 0x22b   :  { %5854 = vmatpush.bf16.msrb.mxu3 %v9367_v32  ;;  %v10475_v32 = vld [vmem:[%s15922_s1 + $0x1274] sm:$0xf0]  ;;  %v14320_v39 = vadd.f32 %v5577_v17, %v5565_v15  ;;  %v9254_v48 = vld [vmem:[%s15922_s1 + $0x1508] sm:$0xf] }
 0x22c   :  { %5816 = vmatpush.bf16.msrb.mxu0 %v8967_v24  ;;  %v9302_v24 = vld [vmem:[%s15922_s1 + $0x1568] sm:$0xf]  ;;  %v8919_v56 = vor.u32 %v10475_v32, %v8918_v26  ;;  %v5566_v6 = vpop.f32.mrf.mxu0  ;;  %v10467_v15 = vld [vmem:[%s15922_s1 + $0x1234] sm:$0xf0] }
 0x22d   :  { %5829 = vmatpush.bf16.msrb.mxu1 %v9095_v50  ;;  %v10571_v50 = vld [vmem:[%s15922_s1 + $0x1574] sm:$0xf0]  ;;  %v9142_v26 = vld [vmem:[%s15922_s1 + $0x1428] sm:$0xf]  ;;  %v8887_v40 = vor.u32 %v10467_v15, %v8886_v2 }
 0x22e   :  { %5842 = vmatpush.bf16.msrb.mxu2 %v9223_v51  ;;  %v10718_v51 = vld [vmem:[%s15924_s2] sm:$0xf]  ;;  %v9303_v47 = vor.u32 %v10571_v50, %v9302_v24  ;;  %v10531_v32 = vld [vmem:[%s15922_s1 + $0x1434] sm:$0xf0] }
 0x22f   :  { %5855 = vmatpush.bf16.msrb.mxu3 %v9351_v57  ;;  %v837_v54 = vperm.slane %v10718_v51, 2  ;;  %v9175_v57 = vor.u32 %v10539_v27, %v9174_v43  ;;  %v8870_v43 = vld [vmem:[%s15922_s1 + $0x1208] sm:$0xf]  ;;  %v10463_v27 = vld [vmem:[%s15922_s1 + $0x1214] sm:$0xf0]  ;;  %v9143_v50 = vor.u32 %v10531_v32, %v9142_v26 }
 0x230   :  { %5817 = vmatpush.bf16.msrb.mxu0 %v8951_v61  ;;  %v9158_v61 = vld [vmem:[%s15922_s1 + $0x1448] sm:$0xf]  ;;  %v10559_v58 = vld [vmem:[%s15922_s1 + $0x1514] sm:$0xf0] }
 0x231   :  { %5830 = vmatpush.bf16.msrb.mxu1 %v9079_v62  ;;  %v10535_v62 = vld [vmem:[%s15922_s1 + $0x1454] sm:$0xf0]  ;;  %v8998_v51 = vld [vmem:[%s15922_s1 + $0x1308] sm:$0xf] }
 0x232   :  { %5843 = vmatpush.bf16.msrb.mxu2 %v9207_v63  ;;  %v5590_v63 = vpop.f32.mrf.mxu2  ;;  %v5579_v9 = vpop.f32.mrf.mxu1  ;;  %v9159_v14 = vor.u32 %v10535_v62, %v9158_v61  ;;  %v10619_v60 = vld [vmem:[%s15922_s1 + $0x16f4] sm:$0xf0]  ;;  %v9622_v61 = vld [vmem:[%s15922_s1 + $0x17e8] sm:$0xf] }
 0x233   :  { %5856 = vmatpush.bf16.msrb.mxu3 %v9335_v5  ;;  %v5591_v4 = vadd.f32 %v5590_v63, %v837_v54  ;;  %v5603_v5 = vpop.f32.mrf.mxu3  ;;  %v10495_v54 = vld [vmem:[%s15922_s1 + $0x1314] sm:$0xf0]  ;;  %v8871_v63 = vor.u32 %v10463_v27, %v8870_v43  ;;  %v6680_v9 = vld [vmem:[%s15922_s1 + $0xf8] sm:$0xf0] }
 0x234   :  { %5818 = vmatpush.bf16.msrb.mxu0 %v8935_v53  ;;  %v9014_v53 = vld [vmem:[%s15922_s1 + $0x1328] sm:$0xf]  ;;  %v10647_v32 = vld [vmem:[%s15922_s1 + $0x17d4] sm:$0xf0]  ;;  %v6664_v43 = vld [vmem:[%s15922_s1 + $0xd8] sm:$0xf0] }
 0x235   :  { %5831 = vmatpush.bf16.msrb.mxu1 %v9063_v21  ;;  %v14373_v17 = vadd.f32 %v5603_v5, %v5591_v4  ;;  %v9287_v21 = vor.u32 %v10567_v55, %v9286_v52  ;;  %v10651_v52 = vld [vmem:[%s15922_s1 + $0x17f4] sm:$0xf0]  ;;  %v9750_v55 = vld [vmem:[%s15922_s1 + $0x18e8] sm:$0xf]  ;;  %v8999_v5 = vor.u32 %v10495_v54, %v8998_v51 }
 0x236   :  { %5844 = vmatpush.bf16.msrb.mxu2 %v9191_v13  ;;  %v10499_v13 = vld [vmem:[%s15922_s1 + $0x1334] sm:$0xf0]  ;;  %v9623_v2 = vor.u32 %v10651_v52, %v9622_v61  ;;  %v9462_v51 = vld [vmem:[%s15922_s1 + $0x16a8] sm:$0xf] }
 0x237   :  { %5857 = vmatpush.bf16.msrb.mxu3 %v9319_v0  ;;  %v10563_v0 = vld [vmem:[%s15922_s1 + $0x1534] sm:$0xf0]  ;;  %v9015_v24 = vor.u32 %v10499_v13, %v9014_v53  ;;  %v9478_v53 = vld [vmem:[%s15922_s1 + $0x16c8] sm:$0xf] }
 0x238   :  { %5819 = vmatpush.bf16.msrb.mxu0 %v8919_v56  ;;  %v9126_v56 = vld [vmem:[%s15922_s1 + $0x1408] sm:$0xf]  ;;  %v10683_v4 = vld [vmem:[%s15922_s1 + $0x18f4] sm:$0xf0] }
 0x239   :  { %5832 = vmatpush.bf16.msrb.mxu1 %v9047_v36  ;;  %v9271_v36 = vor.u32 %v10563_v0, %v9270_v34  ;;  %v9751_v15 = vor.u32 %v10683_v4, %v9750_v55  ;;  %v9606_v13 = vld [vmem:[%s15922_s1 + $0x17c8] sm:$0xf]  ;;  %v10679_v0 = vld [vmem:[%s15922_s1 + $0x18d4] sm:$0xf0] }
 0x23a   :  { %5845 = vmatpush.bf16.msrb.mxu2 %v9175_v57  ;;  %v10527_v57 = vld [vmem:[%s15922_s1 + $0x1414] sm:$0xf0]  ;;  %v5592_v59 = vpop.f32.mrf.mxu2  ;;  %v9734_v34 = vld [vmem:[%s15922_s1 + $0x18c8] sm:$0xf] }
 0x23b   :  { %5858 = vmatpush.bf16.msrb.mxu3 %v9303_v47  ;;  %v9494_v47 = vld [vmem:[%s15922_s1 + $0x16e8] sm:$0xf]  ;;  %v5605_v62 = vpop.f32.mrf.mxu3  ;;  %v9127_v6 = vor.u32 %v10527_v57, %v9126_v56  ;;  %v10611_v54 = vld [vmem:[%s15922_s1 + $0x16b4] sm:$0xf0]  ;;  %v9905_v59 = vld [vmem:[%s15922_s1 + $0xac] sm:$0xf] }
 0x23c   :  { %5820 = vmatpush.bf16.msrb.mxu0 %v8903_v8  ;;  %v9913_v8 = vld [vmem:[%s15922_s1 + $0xec] sm:$0xf]  ;;  %v9590_v56 = vld [vmem:[%s15922_s1 + $0x17a8] sm:$0xf]  ;;  %v10643_v57 = vld [vmem:[%s15922_s1 + $0x17b4] sm:$0xf0] }
 0x23d   :  { %5833 = vmatpush.bf16.msrb.mxu1 %v9031_v10  ;;  %v9255_v10 = vor.u32 %v10559_v58, %v9254_v48  ;;  %v6683_v26 = vor.u32 %v9913_v8, %v6680_v9  ;;  %v9718_v48 = vld [vmem:[%s15922_s1 + $0x18a8] sm:$0xf]  ;;  %v10675_v58 = vld [vmem:[%s15922_s1 + $0x18b4] sm:$0xf0]  ;;  %v9591_v61 = vor.u32 %v10643_v57, %v9590_v56  ;;  %v9901_v9 = vld [vmem:[%s15922_s1 + $0x8c] sm:$0xf] }
 0x23e   :  { %5846 = vmatpush.bf16.msrb.mxu2 %v9159_v14  ;;  %v9495_v14 = vor.u32 %v10619_v60, %v9494_v47  ;;  %v6648_v47 = vld [vmem:[%s15922_s1 + $0xb8] sm:$0xf0]  ;;  %v9463_v60 = vor.u32 %v10611_v54, %v9462_v51  ;;  %v9719_v62 = vor.u32 %v10675_v58, %v9718_v48  ;;  %v10607_v52 = vld [vmem:[%s15922_s1 + $0x1694] sm:$0xf0]  ;;  %v9574_v55 = vld [vmem:[%s15922_s1 + $0x1788] sm:$0xf] }
 0x23f   :  { %5859 = vmatpush.bf16.msrb.mxu3 %v9287_v21  ;;  %v10615_v21 = vld [vmem:[%s15922_s1 + $0x16d4] sm:$0xf0]  ;;  %v6651_v4 = vor.u32 %v9905_v59, %v6648_v47  ;;  %v9542_v48 = vld [vmem:[%s15922_s1 + $0x1748] sm:$0xf] }
 0x240   :  { %5821 = vmatpush.bf16.msrb.mxu0 %v8887_v40  ;;  %v9909_v40 = vld [vmem:[%s15922_s1 + $0xcc] sm:$0xf]  ;;  %v9479_v27 = vor.u32 %v10615_v21, %v9478_v53  ;;  %v10671_v8 = vld [vmem:[%s15922_s1 + $0x1894] sm:$0xf0]  ;;  %v9430_v21 = vld [vmem:[%s15922_s1 + $0x1668] sm:$0xf] }
 0x241   :  { %5834 = vmatpush.bf16.msrb.mxu1 %v9015_v24  ;;  %v9607_v24 = vor.u32 %v10647_v32, %v9606_v13  ;;  %v10603_v13 = vld [vmem:[%s15922_s1 + $0x1674] sm:$0xf0] }
 0x242   :  { %5847 = vmatpush.bf16.msrb.mxu2 %v9143_v50  ;;  %v9735_v50 = vor.u32 %v10679_v0, %v9734_v34  ;;  %v9431_v51 = vor.u32 %v10603_v13, %v9430_v21  ;;  %v10599_v57 = vld [vmem:[%s15922_s1 + $0x1654] sm:$0xf0]  ;;  %v9654_v13 = vld [vmem:[%s15922_s1 + $0x1828] sm:$0xf] }
 0x243   :  { %5860 = vmatpush.bf16.msrb.mxu3 %v9271_v36  ;;  %v6667_v36 = vor.u32 %v9909_v40, %v6664_v43  ;;  %v10635_v40 = vld [vmem:[%s15922_s1 + $0x1774] sm:$0xf0]  ;;  %v9686_v43 = vld [vmem:[%s15922_s1 + $0x1868] sm:$0xf] }
 0x244   :  { %5822 = vmatpush.bf16.msrb.mxu0 %v8871_v63  ;;  %v9446_v63 = vld [vmem:[%s15922_s1 + $0x1688] sm:$0xf]  ;;  %v10631_v47 = vld [vmem:[%s15922_s1 + $0x1754] sm:$0xf0] }
 0x245   :  { %5835 = vmatpush.bf16.msrb.mxu1 %v8999_v5  ;;  %v10639_v5 = vld [vmem:[%s15922_s1 + $0x1794] sm:$0xf0]  ;;  %v5629_v34 = vpop.f32.mrf.mxu1 }
 0x246   :  { %5848 = vmatpush.bf16.msrb.mxu2 %v9127_v6  ;;  %v9702_v6 = vld [vmem:[%s15922_s1 + $0x1888] sm:$0xf]  ;;  %v10627_v21 = vld [vmem:[%s15922_s1 + $0x1734] sm:$0xf0] }
 0x247   :  { %5861 = vmatpush.bf16.msrb.mxu3 %v9255_v10  ;;  %5823 = vmatmul.bf16.vlgmr.msrb.gmra.mxu0 %v11832_v45  ;;  %v6632_v10 = vld [vmem:[%s15922_s1 + $0x98] sm:$0xf0]  ;;  %v9703_v53 = vor.u32 %v10671_v8, %v9702_v6  ;;  %v9543_v8 = vor.u32 %v10631_v47, %v9542_v48 }
 0x248   :  { %5867 = vmatpush.bf16.msra.mxu0 %v9495_v14  ;;  %5836 = vmatmul.bf16.vlgmr.msrb.gmra.mxu1 %v11842_v49  ;;  %v9447_v14 = vor.u32 %v10607_v52, %v9446_v63  ;;  %v6635_v0 = vor.u32 %v9901_v9, %v6632_v10  ;;  %v9893_v52 = vld [vmem:[%s15922_s1 + $0x4c] sm:$0xf]  ;;  %v9398_v10 = vld [vmem:[%s15922_s1 + $0x1628] sm:$0xf]  ;;  %v6568_v48 = vld [vmem:[%s15922_s1 + $0x18] sm:$0xf0] }
 0x249   :  { %5880 = vmatpush.bf16.msra.mxu1 %v9623_v2  ;;  %5849 = vmatmul.bf16.vlgmr.msrb.gmra.mxu2 %v12036_v7  ;;  %v5616_v2 = vpop.f32.mrf.mxu0  ;;  %v6808_v47 = vld [vmem:[%s15922_s1 + $0x1f8] sm:$0xf0] }
 0x24a   :  { %5893 = vmatpush.bf16.msra.mxu2 %v9751_v15  ;;  %5862 = vmatmul.bf16.vlgmr.msrb.gmra.mxu3 %v12049_v12  ;;  %v9575_v15 = vor.u32 %v10639_v5, %v9574_v55  ;;  %v5617_v32 = vadd.f32 %v5616_v2, %v14373_v17  ;;  %v6616_v17 = vld [vmem:[%s15922_s1 + $0x78] sm:$0xf0]  ;;  %v9526_v2 = vld [vmem:[%s15922_s1 + $0x1728] sm:$0xf] }
 0x24b   :  { %5906 = vmatpush.bf16.msra.mxu3 %v6683_v26  ;;  %v9558_v26 = vld [vmem:[%s15922_s1 + $0x1768] sm:$0xf]  ;;  %v6600_v55 = vld [vmem:[%s15922_s1 + $0x58] sm:$0xf0] }
 0x24c   :  { %5868 = vmatpush.bf16.msra.mxu0 %v9479_v27  ;;  %v10667_v27 = vld [vmem:[%s15922_s1 + $0x1874] sm:$0xf0]  ;;  %v9559_v54 = vor.u32 %v10635_v40, %v9558_v26  ;;  %v5642_v58 = vpop.f32.mrf.mxu2  ;;  %v9382_v40 = vld [vmem:[%s15922_s1 + $0x1608] sm:$0xf] }
 0x24d   :  { %5881 = vmatpush.bf16.msra.mxu1 %v9607_v24  ;;  %v9897_v24 = vld [vmem:[%s15922_s1 + $0x6c] sm:$0xf]  ;;  %v9687_v56 = vor.u32 %v10667_v27, %v9686_v43  ;;  %v5655_v63 = vpop.f32.mrf.mxu3  ;;  %v10659_v26 = vld [vmem:[%s15922_s1 + $0x1834] sm:$0xf0]  ;;  %v9527_v27 = vor.u32 %v10627_v21, %v9526_v2 }
 0x24e   :  { %5894 = vmatpush.bf16.msra.mxu2 %v9735_v50  ;;  %v5630_v50 = vadd.f32 %v5629_v34, %v5617_v32  ;;  %v6619_v59 = vor.u32 %v9897_v24, %v6616_v17  ;;  %v9889_v32 = vld [vmem:[%s15922_s1 + $0x2c] sm:$0xf]  ;;  %v6584_v34 = vld [vmem:[%s15922_s1 + $0x38] sm:$0xf0]  ;;  %v10591_v43 = vld [vmem:[%s15922_s1 + $0x1614] sm:$0xf0]  ;;  %v9655_v24 = vor.u32 %v10659_v26, %v9654_v13 }
 0x24f   :  { %5907 = vmatpush.bf16.msra.mxu3 %v6667_v36  ;;  %v9414_v36 = vld [vmem:[%s15922_s1 + $0x1648] sm:$0xf]  ;;  %v9973_v21 = vld [vmem:[%s15922_s1 + $0x2cc] sm:$0xf]  ;;  %v6920_v26 = vld [vmem:[%s15922_s1 + $0x2d8] sm:$0xf0] }
 0x250   :  { %5869 = vmatpush.bf16.msra.mxu0 %v9463_v60  ;;  %v9670_v60 = vld [vmem:[%s15922_s1 + $0x1848] sm:$0xf] }
 0x251   :  { %5882 = vmatpush.bf16.msra.mxu1 %v9591_v61  ;;  %v10663_v61 = vld [vmem:[%s15922_s1 + $0x1854] sm:$0xf0]  ;;  %v5618_v6 = vpop.f32.mrf.mxu0  ;;  %v9510_v17 = vld [vmem:[%s15922_s1 + $0x1708] sm:$0xf] }
 0x252   :  { %5895 = vmatpush.bf16.msra.mxu2 %v9719_v62  ;;  %v5643_v62 = vadd.f32 %v5642_v58, %v5630_v50  ;;  %v9671_v9 = vor.u32 %v10663_v61, %v9670_v60  ;;  %v10623_v50 = vld [vmem:[%s15922_s1 + $0x1714] sm:$0xf0]  ;;  %v9977_v60 = vld [vmem:[%s15922_s1 + $0x2ec] sm:$0xf]  ;;  %v9383_v61 = vor.u32 %v10591_v43, %v9382_v40  ;;  %v7176_v40 = vld [vmem:[%s15922_s1 + $0x4d8] sm:$0xf0] }
 0x253   :  { %5908 = vmatpush.bf16.msra.mxu3 %v6651_v4  ;;  %v9415_v4 = vor.u32 %v10599_v57, %v9414_v36  ;;  %v10655_v36 = vld [vmem:[%s15922_s1 + $0x1814] sm:$0xf0]  ;;  %v9885_v57 = vld [vmem:[%s15922_s1 + $0xc] sm:$0xf] }
 0x254   :  { %5870 = vmatpush.bf16.msra.mxu0 %v9447_v14  ;;  %v14563_v5 = vadd.f32 %v5655_v63, %v5643_v62  ;;  %v10595_v14 = vld [vmem:[%s15922_s1 + $0x1634] sm:$0xf0]  ;;  %v6936_v62 = vld [vmem:[%s15922_s1 + $0x2f8] sm:$0xf0]  ;;  %v10009_v63 = vld [vmem:[%s15922_s1 + $0x3ec] sm:$0xf] }
 0x255   :  { %5883 = vmatpush.bf16.msra.mxu1 %v9575_v15  ;;  %v5631_v15 = vpop.f32.mrf.mxu1  ;;  %v5657_v58 = vpop.f32.mrf.mxu3  ;;  %v10041_v6 = vld [vmem:[%s15922_s1 + $0x4ec] sm:$0xf] }
 0x256   :  { %5896 = vmatpush.bf16.msra.mxu2 %v9703_v53  ;;  %v6603_v53 = vor.u32 %v9893_v52, %v6600_v55  ;;  %v7064_v52 = vld [vmem:[%s15922_s1 + $0x3f8] sm:$0xf0]  ;;  %v9511_v55 = vor.u32 %v10623_v50, %v9510_v17  ;;  %v9941_v15 = vld [vmem:[%s15922_s1 + $0x1cc] sm:$0xf] }
 0x257   :  { %5909 = vmatpush.bf16.msra.mxu3 %v6635_v0  ;;  %v9399_v0 = vor.u32 %v10595_v14, %v9398_v10  ;;  %v6939_v14 = vor.u32 %v9977_v60, %v6936_v62  ;;  %v7067_v2 = vor.u32 %v10009_v63, %v7064_v52  ;;  %v9937_v17 = vld [vmem:[%s15922_s1 + $0x1ac] sm:$0xf]  ;;  %v6776_v50 = vld [vmem:[%s15922_s1 + $0x1b8] sm:$0xf0] }
 0x258   :  { %5871 = vmatpush.bf16.msra.mxu0 %v9431_v51  ;;  %v9638_v51 = vld [vmem:[%s15922_s1 + $0x1808] sm:$0xf]  ;;  %v7160_v58 = vld [vmem:[%s15922_s1 + $0x4b8] sm:$0xf0]  ;;  %v9965_v63 = vld [vmem:[%s15922_s1 + $0x28c] sm:$0xf] }
 0x259   :  { %5884 = vmatpush.bf16.msra.mxu1 %v9559_v54  ;;  %v5644_v54 = vpop.f32.mrf.mxu2  ;;  %v6760_v62 = vld [vmem:[%s15922_s1 + $0x198] sm:$0xf0] }
 0x25a   :  { %5897 = vmatpush.bf16.msra.mxu2 %v9687_v56  ;;  %v6587_v56 = vor.u32 %v9889_v32, %v6584_v34  ;;  %v10005_v32 = vld [vmem:[%s15922_s1 + $0x3cc] sm:$0xf]  ;;  %v7048_v34 = vld [vmem:[%s15922_s1 + $0x3d8] sm:$0xf0] }
 0x25b   :  { %5910 = vmatpush.bf16.msra.mxu3 %v6619_v59  ;;  %v9945_v59 = vld [vmem:[%s15922_s1 + $0x1ec] sm:$0xf] }
 0x25c   :  { %5872 = vmatpush.bf16.msra.mxu0 %v9415_v4  ;;  %v9639_v4 = vor.u32 %v10655_v36, %v9638_v51  ;;  %v6811_v10 = vor.u32 %v9945_v59, %v6808_v47  ;;  %v9969_v51 = vld [vmem:[%s15922_s1 + $0x2ac] sm:$0xf]  ;;  %v6779_v59 = vor.u32 %v9937_v17, %v6776_v50 }
 0x25d   :  { %5885 = vmatpush.bf16.msra.mxu1 %v9543_v8  ;;  %v7192_v8 = vld [vmem:[%s15922_s1 + $0x4f8] sm:$0xf0]  ;;  %v10001_v36 = vld [vmem:[%s15922_s1 + $0x3ac] sm:$0xf] }
 0x25e   :  { %5898 = vmatpush.bf16.msra.mxu2 %v9671_v9  ;;  %v6571_v9 = vor.u32 %v9885_v57, %v6568_v48  ;;  %v7195_v13 = vor.u32 %v10041_v6, %v7192_v8  ;;  %v7032_v57 = vld [vmem:[%s15922_s1 + $0x3b8] sm:$0xf0]  ;;  %v10033_v48 = vld [vmem:[%s15922_s1 + $0x4ac] sm:$0xf] }
 0x25f   :  { %5911 = vmatpush.bf16.msra.mxu3 %v6603_v53  ;;  %v6792_v53 = vld [vmem:[%s15922_s1 + $0x1d8] sm:$0xf0]  ;;  %v7035_v60 = vor.u32 %v10001_v36, %v7032_v57  ;;  %v7163_v52 = vor.u32 %v10033_v48, %v7160_v58  ;;  %v10029_v8 = vld [vmem:[%s15922_s1 + $0x48c] sm:$0xf] }
 0x260   :  { %5873 = vmatpush.bf16.msra.mxu0 %v9399_v0  ;;  %v10037_v0 = vld [vmem:[%s15922_s1 + $0x4cc] sm:$0xf]  ;;  %v6795_v43 = vor.u32 %v9941_v15, %v6792_v53  ;;  %v6856_v48 = vld [vmem:[%s15922_s1 + $0x258] sm:$0xf0] }
 0x261   :  { %5886 = vmatpush.bf16.msra.mxu1 %v9527_v27  ;;  %v6923_v27 = vor.u32 %v9973_v21, %v6920_v26  ;;  %v7179_v54 = vor.u32 %v10037_v0, %v7176_v40  ;;  %v9929_v21 = vld [vmem:[%s15922_s1 + $0x16c] sm:$0xf]  ;;  %v7000_v40 = vld [vmem:[%s15922_s1 + $0x378] sm:$0xf0] }
 0x262   :  { %5899 = vmatpush.bf16.msra.mxu2 %v9655_v24  ;;  %v7051_v24 = vor.u32 %v10005_v32, %v7048_v34  ;;  %v9961_v26 = vld [vmem:[%s15922_s1 + $0x26c] sm:$0xf]  ;;  %v6872_v34 = vld [vmem:[%s15922_s1 + $0x278] sm:$0xf0] }
 0x263   :  { %5912 = vmatpush.bf16.msra.mxu3 %v6587_v56  ;;  %v6904_v56 = vld [vmem:[%s15922_s1 + $0x2b8] sm:$0xf0]  ;;  %v9993_v0 = vld [vmem:[%s15922_s1 + $0x36c] sm:$0xf]  ;;  %v6875_v17 = vor.u32 %v9961_v26, %v6872_v34 }
 0x264   :  { %5874 = vmatpush.bf16.msra.mxu0 %v9383_v61  ;;  %v6907_v47 = vor.u32 %v9969_v51, %v6904_v56  ;;  %v9933_v61 = vld [vmem:[%s15922_s1 + $0x18c] sm:$0xf]  ;;  %v5668_v6 = vpop.f32.mrf.mxu0  ;;  %v7003_v50 = vor.u32 %v9993_v0, %v7000_v40 }
 0x265   :  { %5887 = vmatpush.bf16.msra.mxu1 %v9511_v55  ;;  %v9997_v55 = vld [vmem:[%s15922_s1 + $0x38c] sm:$0xf] }
 0x266   :  { %5900 = vmatpush.bf16.msra.mxu2 %v9639_v4  ;;  %v7016_v4 = vld [vmem:[%s15922_s1 + $0x398] sm:$0xf0]  ;;  %v9925_v51 = vld [vmem:[%s15922_s1 + $0x14c] sm:$0xf] }
 0x267   :  { %5913 = vmatpush.bf16.msra.mxu3 %v6571_v9  ;;  %5875 = vmatmul.bf16.vlgmr.msra.gmra.mxu0 %v12047_v11  ;;  %v7144_v9 = vld [vmem:[%s15922_s1 + $0x498] sm:$0xf0]  ;;  %v7019_v53 = vor.u32 %v9997_v55, %v7016_v4  ;;  %v9957_v56 = vld [vmem:[%s15922_s1 + $0x24c] sm:$0xf] }
 0x268   :  { %5919 = vmatpush.bf16.msrb.mxu0 %v6811_v10  ;;  %5888 = vmatmul.bf16.vlgmr.msra.gmra.mxu1 %v12057_v16  ;;  %v5669_v10 = vadd.f32 %v5668_v6, %v14563_v5  ;;  %v7147_v5 = vor.u32 %v10029_v8, %v7144_v9  ;;  %v9989_v58 = vld [vmem:[%s15922_s1 + $0x34c] sm:$0xf]  ;;  %v6859_v4 = vor.u32 %v9957_v56, %v6856_v48  ;;  %v6712_v9 = vld [vmem:[%s15922_s1 + $0x138] sm:$0xf0] }
 0x269   :  { %5932 = vmatpush.bf16.msrb.mxu1 %v6939_v14  ;;  %5901 = vmatmul.bf16.vlgmr.msra.gmra.mxu2 %v12246_v1  ;;  %v6763_v14 = vor.u32 %v9933_v61, %v6760_v62  ;;  %v10021_v61 = vld [vmem:[%s15922_s1 + $0x44c] sm:$0xf]  ;;  %v7112_v62 = vld [vmem:[%s15922_s1 + $0x458] sm:$0xf0] }
 0x26a   :  { %5945 = vmatpush.bf16.msrb.mxu2 %v7067_v2  ;;  %5914 = vmatmul.bf16.vlgmr.msra.gmra.mxu3 %v11046_v19  ;;  %v6888_v19 = vld [vmem:[%s15922_s1 + $0x298] sm:$0xf0]  ;;  %v5681_v2 = vpop.f32.mrf.mxu1  ;;  %v9921_v8 = vld [vmem:[%s15922_s1 + $0x12c] sm:$0xf] }
 0x26b   :  { %5958 = vmatpush.bf16.msrb.mxu3 %v7195_v13  ;;  %v6891_v15 = vor.u32 %v9965_v63, %v6888_v19  ;;  %v6744_v13 = vld [vmem:[%s15922_s1 + $0x178] sm:$0xf0]  ;;  %v5682_v32 = vadd.f32 %v5681_v2, %v5669_v10  ;;  %v9953_v10 = vld [vmem:[%s15922_s1 + $0x22c] sm:$0xf]  ;;  %v6715_v26 = vor.u32 %v9921_v8, %v6712_v9 }
 0x26c   :  { %5920 = vmatpush.bf16.msrb.mxu0 %v6795_v43  ;;  %v10025_v43 = vld [vmem:[%s15922_s1 + $0x46c] sm:$0xf]  ;;  %v5694_v57 = vpop.f32.mrf.mxu2  ;;  %v5670_v63 = vpop.f32.mrf.mxu0  ;;  %v6840_v2 = vld [vmem:[%s15922_s1 + $0x238] sm:$0xf0] }
 0x26d   :  { %5933 = vmatpush.bf16.msrb.mxu1 %v6923_v27  ;;  %v7128_v27 = vld [vmem:[%s15922_s1 + $0x478] sm:$0xf0]  ;;  %v6843_v34 = vor.u32 %v9953_v10, %v6840_v2  ;;  %v9949_v40 = vld [vmem:[%s15922_s1 + $0x20c] sm:$0xf] }
 0x26e   :  { %5946 = vmatpush.bf16.msrb.mxu2 %v7051_v24  ;;  %v6747_v24 = vor.u32 %v9929_v21, %v6744_v13  ;;  %v7131_v36 = vor.u32 %v10025_v43, %v7128_v27  ;;  %v10017_v21 = vld [vmem:[%s15922_s1 + $0x42c] sm:$0xf]  ;;  %v7096_v13 = vld [vmem:[%s15922_s1 + $0x438] sm:$0xf0] }
 0x26f   :  { %5959 = vmatpush.bf16.msrb.mxu3 %v7179_v54  ;;  %v6728_v54 = vld [vmem:[%s15922_s1 + $0x158] sm:$0xf0]  ;;  %v9981_v27 = vld [vmem:[%s15922_s1 + $0x30c] sm:$0xf] }
 0x270   :  { %5921 = vmatpush.bf16.msrb.mxu0 %v6779_v59  ;;  %v6984_v59 = vld [vmem:[%s15922_s1 + $0x358] sm:$0xf0]  ;;  %v10073_v56 = vld [vmem:[%s15922_s1 + $0x5ec] sm:$0xf] }
 0x271   :  { %5934 = vmatpush.bf16.msrb.mxu1 %v6907_v47  ;;  %v5695_v47 = vadd.f32 %v5694_v57, %v5682_v32  ;;  %v6987_v6 = vor.u32 %v9989_v58, %v6984_v59  ;;  %v6696_v32 = vld [vmem:[%s15922_s1 + $0x118] sm:$0xf0]  ;;  %v10105_v57 = vld [vmem:[%s15922_s1 + $0x6ec] sm:$0xf] }
 0x272   :  { %5947 = vmatpush.bf16.msrb.mxu2 %v7035_v60  ;;  %v5707_v60 = vpop.f32.mrf.mxu3  ;;  %v5683_v19 = vpop.f32.mrf.mxu1  ;;  %v6824_v43 = vld [vmem:[%s15922_s1 + $0x218] sm:$0xf0]  ;;  %v10169_v63 = vld [vmem:[%s15922_s1 + $0x8ec] sm:$0xf] }
 0x273   :  { %5960 = vmatpush.bf16.msrb.mxu3 %v7163_v52  ;;  %v6731_v52 = vor.u32 %v9925_v51, %v6728_v54  ;;  %v14762_v55 = vadd.f32 %v5707_v60, %v5695_v47  ;;  %v7080_v51 = vld [vmem:[%s15922_s1 + $0x418] sm:$0xf0]  ;;  %v10137_v47 = vld [vmem:[%s15922_s1 + $0x7ec] sm:$0xf] }
 0x274   :  { %5922 = vmatpush.bf16.msrb.mxu0 %v6763_v14  ;;  %v7115_v14 = vor.u32 %v10021_v61, %v7112_v62  ;;  %v5696_v54 = vpop.f32.mrf.mxu2  ;;  %v7448_v59 = vld [vmem:[%s15922_s1 + $0x6f8] sm:$0xf0]  ;;  %v6827_v61 = vor.u32 %v9949_v40, %v6824_v43  ;;  %v10069_v9 = vld [vmem:[%s15922_s1 + $0x5cc] sm:$0xf] }
 0x275   :  { %5935 = vmatpush.bf16.msrb.mxu1 %v6891_v15  ;;  %v9985_v15 = vld [vmem:[%s15922_s1 + $0x32c] sm:$0xf]  ;;  %v7576_v60 = vld [vmem:[%s15922_s1 + $0x7f8] sm:$0xf0] }
 0x276   :  { %5948 = vmatpush.bf16.msrb.mxu2 %v7019_v53  ;;  %v6968_v53 = vld [vmem:[%s15922_s1 + $0x338] sm:$0xf0]  ;;  %v7579_v8 = vor.u32 %v10137_v47, %v7576_v60  ;;  %v10097_v43 = vld [vmem:[%s15922_s1 + $0x6ac] sm:$0xf] }
 0x277   :  { %5961 = vmatpush.bf16.msrb.mxu3 %v7147_v5  ;;  %v9917_v5 = vld [vmem:[%s15922_s1 + $0x10c] sm:$0xf]  ;;  %v6971_v0 = vor.u32 %v9985_v15, %v6968_v53  ;;  %v7304_v10 = vld [vmem:[%s15922_s1 + $0x5d8] sm:$0xf0] }
 0x278   :  { %5923 = vmatpush.bf16.msrb.mxu0 %v6747_v24  ;;  %v7099_v24 = vor.u32 %v10017_v21, %v7096_v13  ;;  %v6699_v58 = vor.u32 %v9917_v5, %v6696_v32  ;;  %v7432_v15 = vld [vmem:[%s15922_s1 + $0x6d8] sm:$0xf0]  ;;  %v10133_v53 = vld [vmem:[%s15922_s1 + $0x7cc] sm:$0xf]  ;;  %v7307_v5 = vor.u32 %v10069_v9, %v7304_v10 }
 0x279   :  { %5936 = vmatpush.bf16.msrb.mxu1 %v6875_v17  ;;  %v6952_v17 = vld [vmem:[%s15922_s1 + $0x318] sm:$0xf0]  ;;  %v10165_v13 = vld [vmem:[%s15922_s1 + $0x8cc] sm:$0xf] }
 0x27a   :  { %5949 = vmatpush.bf16.msrb.mxu2 %v7003_v50  ;;  %v10013_v50 = vld [vmem:[%s15922_s1 + $0x40c] sm:$0xf]  ;;  %v5709_v48 = vpop.f32.mrf.mxu3  ;;  %v6955_v62 = vor.u32 %v9981_v27, %v6952_v17  ;;  %v7560_v21 = vld [vmem:[%s15922_s1 + $0x7d8] sm:$0xf0] }
 0x27b   :  { %5962 = vmatpush.bf16.msrb.mxu3 %v7131_v36  ;;  %v7320_v36 = vld [vmem:[%s15922_s1 + $0x5f8] sm:$0xf0]  ;;  %v7083_v19 = vor.u32 %v10013_v50, %v7080_v51  ;;  %v10129_v17 = vld [vmem:[%s15922_s1 + $0x7ac] sm:$0xf] }
 0x27c   :  { %5924 = vmatpush.bf16.msrb.mxu0 %v6731_v52  ;;  %v7704_v52 = vld [vmem:[%s15922_s1 + $0x8f8] sm:$0xf0]  ;;  %v10161_v51 = vld [vmem:[%s15922_s1 + $0x8ac] sm:$0xf] }
 0x27d   :  { %5937 = vmatpush.bf16.msrb.mxu1 %v6859_v4  ;;  %v7323_v4 = vor.u32 %v10073_v56, %v7320_v36  ;;  %v7707_v2 = vor.u32 %v10169_v63, %v7704_v52  ;;  %v7288_v40 = vld [vmem:[%s15922_s1 + $0x5b8] sm:$0xf0]  ;;  %v10157_v60 = vld [vmem:[%s15922_s1 + $0x88c] sm:$0xf] }
 0x27e   :  { %5950 = vmatpush.bf16.msrb.mxu2 %v6987_v6  ;;  %v7451_v6 = vor.u32 %v10105_v57, %v7448_v59  ;;  %v7544_v50 = vld [vmem:[%s15922_s1 + $0x7b8] sm:$0xf0]  ;;  %v10061_v57 = vld [vmem:[%s15922_s1 + $0x58c] sm:$0xf] }
 0x27f   :  { %5963 = vmatpush.bf16.msrb.mxu3 %v7115_v14  ;;  %v10101_v14 = vld [vmem:[%s15922_s1 + $0x6cc] sm:$0xf]  ;;  %v7547_v36 = vor.u32 %v10129_v17, %v7544_v50  ;;  %v7272_v48 = vld [vmem:[%s15922_s1 + $0x598] sm:$0xf0] }
 0x280   :  { %5925 = vmatpush.bf16.msrb.mxu0 %v6715_v26  ;;  %v7688_v26 = vld [vmem:[%s15922_s1 + $0x8d8] sm:$0xf0]  ;;  %v7435_v32 = vor.u32 %v10101_v14, %v7432_v15  ;;  %v7275_v63 = vor.u32 %v10061_v57, %v7272_v48  ;;  %v10089_v9 = vld [vmem:[%s15922_s1 + $0x66c] sm:$0xf] }
 0x281   :  { %5938 = vmatpush.bf16.msrb.mxu1 %v6843_v34  ;;  %v7563_v34 = vor.u32 %v10133_v53, %v7560_v21  ;;  %v7691_v27 = vor.u32 %v10165_v13, %v7688_v26  ;;  %v7528_v59 = vld [vmem:[%s15922_s1 + $0x798] sm:$0xf0]  ;;  %v10153_v53 = vld [vmem:[%s15922_s1 + $0x86c] sm:$0xf] }
 0x282   :  { %5951 = vmatpush.bf16.msrb.mxu2 %v6971_v0  ;;  %v10065_v0 = vld [vmem:[%s15922_s1 + $0x5ac] sm:$0xf]  ;;  %v7384_v14 = vld [vmem:[%s15922_s1 + $0x678] sm:$0xf0] }
 0x283   :  { %5964 = vmatpush.bf16.msrb.mxu3 %v7099_v24  ;;  %v7416_v24 = vld [vmem:[%s15922_s1 + $0x6b8] sm:$0xf0]  ;;  %v7291_v54 = vor.u32 %v10065_v0, %v7288_v40  ;;  %v7387_v26 = vor.u32 %v10089_v9, %v7384_v14  ;;  %v10085_v0 = vld [vmem:[%s15922_s1 + $0x64c] sm:$0xf] }
 0x284   :  { %5926 = vmatpush.bf16.msrb.mxu0 %v6699_v58  ;;  %v7419_v56 = vor.u32 %v10097_v43, %v7416_v24  ;;  %v10125_v58 = vld [vmem:[%s15922_s1 + $0x78c] sm:$0xf]  ;;  %v5720_v47 = vpop.f32.mrf.mxu0  ;;  %v7512_v15 = vld [vmem:[%s15922_s1 + $0x778] sm:$0xf0] }
 0x285   :  { %5939 = vmatpush.bf16.msrb.mxu1 %v6827_v61  ;;  %v7656_v61 = vld [vmem:[%s15922_s1 + $0x898] sm:$0xf0]  ;;  %v5733_v52 = vpop.f32.mrf.mxu1  ;;  %v10117_v24 = vld [vmem:[%s15922_s1 + $0x74c] sm:$0xf] }
 0x286   :  { %5952 = vmatpush.bf16.msrb.mxu2 %v6955_v62  ;;  %v5721_v62 = vadd.f32 %v5720_v47, %v14762_v55  ;;  %v7659_v55 = vor.u32 %v10157_v60, %v7656_v61  ;;  %v7640_v21 = vld [vmem:[%s15922_s1 + $0x878] sm:$0xf0]  ;;  %v10113_v61 = vld [vmem:[%s15922_s1 + $0x72c] sm:$0xf] }
 0x287   :  { %5965 = vmatpush.bf16.msrb.mxu3 %v7083_v19  ;;  %5927 = vmatmul.bf16.vlgmr.msrb.gmra.mxu0 %v11050_v22  ;;  %v10093_v22 = vld [vmem:[%s15922_s1 + $0x68c] sm:$0xf]  ;;  %v7643_v40 = vor.u32 %v10153_v53, %v7640_v21  ;;  %v7496_v17 = vld [vmem:[%s15922_s1 + $0x758] sm:$0xf0] }
 0x288   :  { %5971 = vmatpush.bf16.msra.mxu0 %v7323_v4  ;;  %5940 = vmatmul.bf16.vlgmr.msrb.gmra.mxu1 %v11044_v18  ;;  %v7400_v18 = vld [vmem:[%s15922_s1 + $0x698] sm:$0xf0]  ;;  %v7531_v4 = vor.u32 %v10125_v58, %v7528_v59  ;;  %v5734_v10 = vadd.f32 %v5733_v52, %v5721_v62  ;;  %v10081_v59 = vld [vmem:[%s15922_s1 + $0x62c] sm:$0xf] }
 0x289   :  { %5984 = vmatpush.bf16.msra.mxu1 %v7451_v6  ;;  %5953 = vmatmul.bf16.vlgmr.msrb.gmra.mxu2 %v11048_v20  ;;  %v7672_v20 = vld [vmem:[%s15922_s1 + $0x8b8] sm:$0xf0]  ;;  %v7403_v19 = vor.u32 %v10093_v22, %v7400_v18  ;;  %v10057_v6 = vld [vmem:[%s15922_s1 + $0x56c] sm:$0xf] }
 0x28a   :  { %5997 = vmatpush.bf16.msra.mxu2 %v7579_v8  ;;  %5966 = vmatmul.bf16.vlgmr.msrb.gmra.mxu3 %v11208_v41  ;;  %v7675_v41 = vor.u32 %v10161_v51, %v7672_v20  ;;  %v7256_v8 = vld [vmem:[%s15922_s1 + $0x578] sm:$0xf0]  ;;  %v10149_v20 = vld [vmem:[%s15922_s1 + $0x84c] sm:$0xf] }
 0x28b   :  { %6010 = vmatpush.bf16.msra.mxu3 %v7707_v2  ;;  %v10121_v2 = vld [vmem:[%s15922_s1 + $0x76c] sm:$0xf]  ;;  %v7259_v13 = vor.u32 %v10057_v6, %v7256_v8  ;;  %v7224_v58 = vld [vmem:[%s15922_s1 + $0x538] sm:$0xf0] }
 0x28c   :  { %5972 = vmatpush.bf16.msra.mxu0 %v7307_v5  ;;  %v7515_v5 = vor.u32 %v10121_v2, %v7512_v15  ;;  %v5746_v43 = vpop.f32.mrf.mxu2  ;;  %v10049_v18 = vld [vmem:[%s15922_s1 + $0x52c] sm:$0xf]  ;;  %v7352_v60 = vld [vmem:[%s15922_s1 + $0x638] sm:$0xf0] }
 0x28d   :  { %5985 = vmatpush.bf16.msra.mxu1 %v7435_v32  ;;  %v10053_v32 = vld [vmem:[%s15922_s1 + $0x54c] sm:$0xf]  ;;  %v5747_v50 = vadd.f32 %v5746_v43, %v5734_v10  ;;  %v5759_v51 = vpop.f32.mrf.mxu3  ;;  %v5735_v57 = vpop.f32.mrf.mxu1  ;;  %v7480_v62 = vld [vmem:[%s15922_s1 + $0x738] sm:$0xf0]  ;;  %v7355_v8 = vor.u32 %v10081_v59, %v7352_v60 }
 0x28e   :  { %5998 = vmatpush.bf16.msra.mxu2 %v7563_v34  ;;  %v7240_v34 = vld [vmem:[%s15922_s1 + $0x558] sm:$0xf0]  ;;  %v7483_v9 = vor.u32 %v10113_v61, %v7480_v62  ;;  %v10109_v14 = vld [vmem:[%s15922_s1 + $0x70c] sm:$0xf] }
 0x28f   :  { %6011 = vmatpush.bf16.msra.mxu3 %v7691_v27  ;;  %v7368_v27 = vld [vmem:[%s15922_s1 + $0x658] sm:$0xf0]  ;;  %v14961_v48 = vadd.f32 %v5759_v51, %v5747_v50  ;;  %v10141_v53 = vld [vmem:[%s15922_s1 + $0x80c] sm:$0xf] }
 0x290   :  { %5973 = vmatpush.bf16.msra.mxu0 %v7291_v54  ;;  %v7624_v54 = vld [vmem:[%s15922_s1 + $0x858] sm:$0xf0]  ;;  %v7371_v22 = vor.u32 %v10085_v0, %v7368_v27  ;;  %v10265_v43 = vld [vmem:[%s15922_s1 + $0xbec] sm:$0xf] }
 0x291   :  { %5986 = vmatpush.bf16.msra.mxu1 %v7419_v56  ;;  %v5722_v56 = vpop.f32.mrf.mxu0  ;;  %v7627_v47 = vor.u32 %v10149_v20, %v7624_v54  ;;  %v7608_v52 = vld [vmem:[%s15922_s1 + $0x838] sm:$0xf0]  ;;  %v10297_v50 = vld [vmem:[%s15922_s1 + $0xcec] sm:$0xf] }
 0x292   :  { %5999 = vmatpush.bf16.msra.mxu2 %v7547_v36  ;;  %v7243_v36 = vor.u32 %v10053_v32, %v7240_v34  ;;  %v7208_v6 = vld [vmem:[%s15922_s1 + $0x518] sm:$0xf0]  ;;  %v10233_v32 = vld [vmem:[%s15922_s1 + $0xaec] sm:$0xf] }
 0x293   :  { %6012 = vmatpush.bf16.msra.mxu3 %v7675_v41  ;;  %v7499_v41 = vor.u32 %v10117_v24, %v7496_v17  ;;  %v7336_v10 = vld [vmem:[%s15922_s1 + $0x618] sm:$0xf0]  ;;  %v10197_v57 = vld [vmem:[%s15922_s1 + $0x9cc] sm:$0xf] }
 0x294   :  { %5974 = vmatpush.bf16.msra.mxu0 %v7275_v63  ;;  %v10145_v63 = vld [vmem:[%s15922_s1 + $0x82c] sm:$0xf]  ;;  %v7464_v15 = vld [vmem:[%s15922_s1 + $0x718] sm:$0xf0] }
 0x295   :  { %5987 = vmatpush.bf16.msra.mxu1 %v7403_v19  ;;  %v7227_v19 = vor.u32 %v10049_v18, %v7224_v58  ;;  %v7611_v2 = vor.u32 %v10145_v63, %v7608_v52  ;;  %v7592_v21 = vld [vmem:[%s15922_s1 + $0x818] sm:$0xf0]  ;;  %v5761_v34 = vpop.f32.mrf.mxu3  ;;  %v7467_v17 = vor.u32 %v10109_v14, %v7464_v15  ;;  %v10261_v59 = vld [vmem:[%s15922_s1 + $0xbcc] sm:$0xf] }
 0x296   :  { %6000 = vmatpush.bf16.msra.mxu2 %v7531_v4  ;;  %v10045_v4 = vld [vmem:[%s15922_s1 + $0x50c] sm:$0xf]  ;;  %v8088_v27 = vld [vmem:[%s15922_s1 + $0xbf8] sm:$0xf0]  ;;  %v7595_v20 = vor.u32 %v10141_v53, %v7592_v21 }
 0x297   :  { %6013 = vmatpush.bf16.msra.mxu3 %v7659_v55  ;;  %v10077_v55 = vld [vmem:[%s15922_s1 + $0x60c] sm:$0xf]  ;;  %v7211_v0 = vor.u32 %v10045_v4, %v7208_v6  ;;  %v8216_v51 = vld [vmem:[%s15922_s1 + $0xcf8] sm:$0xf0] }
 0x298   :  { %5975 = vmatpush.bf16.msra.mxu0 %v7259_v13  ;;  %v5748_v13 = vpop.f32.mrf.mxu2  ;;  %v7339_v24 = vor.u32 %v10077_v55, %v7336_v10  ;;  %v8219_v18 = vor.u32 %v10297_v50, %v8216_v51  ;;  %v7944_v58 = vld [vmem:[%s15922_s1 + $0xad8] sm:$0xf0]  ;;  %v10293_v60 = vld [vmem:[%s15922_s1 + $0xccc] sm:$0xf] }
 0x299   :  { %5988 = vmatpush.bf16.msra.mxu1 %v7387_v26  ;;  %v10201_v26 = vld [vmem:[%s15922_s1 + $0x9ec] sm:$0xf]  ;;  %v8200_v61 = vld [vmem:[%s15922_s1 + $0xcd8] sm:$0xf0] }
 0x29a   :  { %6001 = vmatpush.bf16.msra.mxu2 %v7515_v5  ;;  %v7832_v5 = vld [vmem:[%s15922_s1 + $0x9f8] sm:$0xf0]  ;;  %v10225_v6 = vld [vmem:[%s15922_s1 + $0xaac] sm:$0xf] }
 0x29b   :  { %6014 = vmatpush.bf16.msra.mxu3 %v7643_v40  ;;  %v7960_v40 = vld [vmem:[%s15922_s1 + $0xaf8] sm:$0xf0]  ;;  %v7835_v54 = vor.u32 %v10201_v26, %v7832_v5  ;;  %v10257_v55 = vld [vmem:[%s15922_s1 + $0xbac] sm:$0xf] }
 0x29c   :  { %5976 = vmatpush.bf16.msra.mxu0 %v7243_v36  ;;  %v7963_v56 = vor.u32 %v10233_v32, %v7960_v40  ;;  %v8091_v36 = vor.u32 %v10265_v43, %v8088_v27  ;;  %v7800_v4 = vld [vmem:[%s15922_s1 + $0x9b8] sm:$0xf0]  ;;  %v10221_v21 = vld [vmem:[%s15922_s1 + $0xa8c] sm:$0xf] }
 0x29d   :  { %5989 = vmatpush.bf16.msra.mxu1 %v7371_v22  ;;  %v7816_v22 = vld [vmem:[%s15922_s1 + $0x9d8] sm:$0xf0]  ;;  %v10253_v26 = vld [vmem:[%s15922_s1 + $0xb8c] sm:$0xf] }
 0x29e   :  { %6002 = vmatpush.bf16.msra.mxu2 %v7499_v41  ;;  %v10229_v41 = vld [vmem:[%s15922_s1 + $0xacc] sm:$0xf]  ;;  %v7819_v62 = vor.u32 %v10197_v57, %v7816_v22  ;;  %v8056_v10 = vld [vmem:[%s15922_s1 + $0xbb8] sm:$0xf0] }
 0x29f   :  { %6015 = vmatpush.bf16.msra.mxu3 %v7627_v47  ;;  %v8072_v47 = vld [vmem:[%s15922_s1 + $0xbd8] sm:$0xf0]  ;;  %v7947_v63 = vor.u32 %v10229_v41, %v7944_v58  ;;  %v8059_v53 = vor.u32 %v10257_v55, %v8056_v10  ;;  %v10285_v34 = vld [vmem:[%s15922_s1 + $0xc8c] sm:$0xf] }
 0x2a0   :  { %5977 = vmatpush.bf16.msra.mxu0 %v7227_v19  ;;  %v8075_v52 = vor.u32 %v10261_v59, %v8072_v47  ;;  %v10193_v19 = vld [vmem:[%s15922_s1 + $0x9ac] sm:$0xf]  ;;  %v8184_v14 = vld [vmem:[%s15922_s1 + $0xcb8] sm:$0xf0] }
 0x2a1   :  { %5990 = vmatpush.bf16.msra.mxu1 %v7355_v8  ;;  %v8203_v8 = vor.u32 %v10293_v60, %v8200_v61  ;;  %v7912_v13 = vld [vmem:[%s15922_s1 + $0xa98] sm:$0xf0]  ;;  %v10185_v50 = vld [vmem:[%s15922_s1 + $0x96c] sm:$0xf] }
 0x2a2   :  { %6003 = vmatpush.bf16.msra.mxu2 %v7483_v9  ;;  %v7928_v9 = vld [vmem:[%s15922_s1 + $0xab8] sm:$0xf0]  ;;  %v10281_v22 = vld [vmem:[%s15922_s1 + $0xc6c] sm:$0xf] }
 0x2a3   :  { %6016 = vmatpush.bf16.msra.mxu3 %v7611_v2  ;;  %v7803_v2 = vor.u32 %v10193_v19, %v7800_v4  ;;  %v7931_v15 = vor.u32 %v10225_v6, %v7928_v9  ;;  %v8040_v5 = vld [vmem:[%s15922_s1 + $0xb98] sm:$0xf0]  ;;  %v10181_v47 = vld [vmem:[%s15922_s1 + $0x94c] sm:$0xf] }
 0x2a4   :  { %5978 = vmatpush.bf16.msra.mxu0 %v7211_v0  ;;  %v5772_v32 = vpop.f32.mrf.mxu0  ;;  %v8168_v0 = vld [vmem:[%s15922_s1 + $0xc98] sm:$0xf0]  ;;  %v10213_v61 = vld [vmem:[%s15922_s1 + $0xa4c] sm:$0xf] }
 0x2a5   :  { %5991 = vmatpush.bf16.msra.mxu1 %v7339_v24  ;;  %v5773_v40 = vadd.f32 %v5772_v32, %v14961_v48  ;;  %v5785_v27 = vpop.f32.mrf.mxu1  ;;  %v7915_v24 = vor.u32 %v10221_v21, %v7912_v13  ;;  %v7768_v51 = vld [vmem:[%s15922_s1 + $0x978] sm:$0xf0]  ;;  %v8171_v48 = vor.u32 %v10285_v34, %v8168_v0  ;;  %v10245_v19 = vld [vmem:[%s15922_s1 + $0xb4c] sm:$0xf] }
 0x2a6   :  { %6004 = vmatpush.bf16.msra.mxu2 %v7467_v17  ;;  %v8043_v17 = vor.u32 %v10253_v26, %v8040_v5  ;;  %v8024_v57 = vld [vmem:[%s15922_s1 + $0xb78] sm:$0xf0]  ;;  %v10277_v9 = vld [vmem:[%s15922_s1 + $0xc4c] sm:$0xf] }
 0x2a7   :  { %6017 = vmatpush.bf16.msra.mxu3 %v7595_v20  ;;  %5979 = vmatmul.bf16.vlgmr.msra.gmra.mxu0 %v11212_v44  ;;  %v10289_v44 = vld [vmem:[%s15922_s1 + $0xcac] sm:$0xf]  ;;  %v8152_v41 = vld [vmem:[%s15922_s1 + $0xc78] sm:$0xf0] }
 0x2a8   :  { %6023 = vmatpush.bf16.msrb.mxu0 %v7835_v54  ;;  %5992 = vmatmul.bf16.vlgmr.msra.gmra.mxu1 %v11200_v38  ;;  %v10189_v38 = vld [vmem:[%s15922_s1 + $0x98c] sm:$0xf]  ;;  %v5786_v54 = vadd.f32 %v5785_v27, %v5773_v40  ;;  %v7752_v60 = vld [vmem:[%s15922_s1 + $0x958] sm:$0xf0] }
 0x2a9   :  { %6036 = vmatpush.bf16.msrb.mxu1 %v7963_v56  ;;  %6005 = vmatmul.bf16.vlgmr.msra.gmra.mxu2 %v11210_v42  ;;  %v7784_v42 = vld [vmem:[%s15922_s1 + $0x998] sm:$0xf0]  ;;  %v10217_v20 = vld [vmem:[%s15922_s1 + $0xa6c] sm:$0xf] }
 0x2aa   :  { %6049 = vmatpush.bf16.msrb.mxu2 %v8091_v36  ;;  %6018 = vmatmul.bf16.vlgmr.msra.gmra.mxu3 %v11401_v25  ;;  %v8187_v25 = vor.u32 %v10289_v44, %v8184_v14  ;;  %v7787_v43 = vor.u32 %v10189_v38, %v7784_v42  ;;  %v7896_v56 = vld [vmem:[%s15922_s1 + $0xa78] sm:$0xf0]  ;;  %v10249_v36 = vld [vmem:[%s15922_s1 + $0xb6c] sm:$0xf]  ;;  %v7755_v44 = vor.u32 %v10181_v47, %v7752_v60 }
 0x2ab   :  { %6062 = vmatpush.bf16.msrb.mxu3 %v8219_v18  ;;  %v7771_v18 = vor.u32 %v10185_v50, %v7768_v51  ;;  %v7899_v58 = vor.u32 %v10217_v20, %v7896_v56  ;;  %v8027_v59 = vor.u32 %v10249_v36, %v8024_v57  ;;  %v8008_v4 = vld [vmem:[%s15922_s1 + $0xb58] sm:$0xf0]  ;;  %v10177_v38 = vld [vmem:[%s15922_s1 + $0x92c] sm:$0xf] }
 0x2ac   :  { %6024 = vmatpush.bf16.msrb.mxu0 %v7819_v62  ;;  %v8155_v62 = vor.u32 %v10281_v22, %v8152_v41  ;;  %v8136_v55 = vld [vmem:[%s15922_s1 + $0xc58] sm:$0xf0]  ;;  %v5774_v10 = vpop.f32.mrf.mxu0  ;;  %v10209_v21 = vld [vmem:[%s15922_s1 + $0xa2c] sm:$0xf] }
 0x2ad   :  { %6037 = vmatpush.bf16.msrb.mxu1 %v7947_v63  ;;  %v5798_v63 = vpop.f32.mrf.mxu2  ;;  %v5787_v14 = vpop.f32.mrf.mxu1  ;;  %v7736_v42 = vld [vmem:[%s15922_s1 + $0x938] sm:$0xf0]  ;;  %v10241_v26 = vld [vmem:[%s15922_s1 + $0xb2c] sm:$0xf] }
 0x2ae   :  { %6050 = vmatpush.bf16.msrb.mxu2 %v8075_v52  ;;  %v7880_v52 = vld [vmem:[%s15922_s1 + $0xa58] sm:$0xf0]  ;;  %v5799_v6 = vadd.f32 %v5798_v63, %v5786_v54  ;;  %v10273_v32 = vld [vmem:[%s15922_s1 + $0xc2c] sm:$0xf]  ;;  %v7739_v0 = vor.u32 %v10177_v38, %v7736_v42 }
 0x2af   :  { %6063 = vmatpush.bf16.msrb.mxu3 %v8203_v8  ;;  %v5811_v8 = vpop.f32.mrf.mxu3  ;;  %v7864_v13 = vld [vmem:[%s15922_s1 + $0xa38] sm:$0xf0]  ;;  %v10173_v40 = vld [vmem:[%s15922_s1 + $0x90c] sm:$0xf] }
 0x2b0   :  { %6025 = vmatpush.bf16.msrb.mxu0 %v7803_v2  ;;  %v15160_v2 = vadd.f32 %v5811_v8, %v5799_v6  ;;  %v7992_v5 = vld [vmem:[%s15922_s1 + $0xb38] sm:$0xf0]  ;;  %v7867_v27 = vor.u32 %v10209_v21, %v7864_v13  ;;  %v10237_v51 = vld [vmem:[%s15922_s1 + $0xb0c] sm:$0xf] }
 0x2b1   :  { %6038 = vmatpush.bf16.msrb.mxu1 %v7931_v15  ;;  %v7883_v15 = vor.u32 %v10213_v61, %v7880_v52  ;;  %v8120_v34 = vld [vmem:[%s15922_s1 + $0xc38] sm:$0xf0]  ;;  %v10269_v54 = vld [vmem:[%s15922_s1 + $0xc0c] sm:$0xf] }
 0x2b2   :  { %6051 = vmatpush.bf16.msrb.mxu2 %v8059_v53  ;;  %v8011_v53 = vor.u32 %v10245_v19, %v8008_v4  ;;  %v7848_v50 = vld [vmem:[%s15922_s1 + $0xa18] sm:$0xf0]  ;;  %v8123_v20 = vor.u32 %v10273_v32, %v8120_v34  ;;  %v10329_v57 = vld [vmem:[%s15922_s1 + $0xdec] sm:$0xf] }
 0x2b3   :  { %6064 = vmatpush.bf16.msrb.mxu3 %v8187_v25  ;;  %v8139_v25 = vor.u32 %v10277_v9, %v8136_v55  ;;  %v8104_v56 = vld [vmem:[%s15922_s1 + $0xc18] sm:$0xf0]  ;;  %v10361_v41 = vld [vmem:[%s15922_s1 + $0xeec] sm:$0xf] }
 0x2b4   :  { %6026 = vmatpush.bf16.msrb.mxu0 %v7787_v43  ;;  %v7720_v43 = vld [vmem:[%s15922_s1 + $0x918] sm:$0xf0]  ;;  %v10393_v47 = vld [vmem:[%s15922_s1 + $0xfec] sm:$0xf]  ;;  %v8107_v19 = vor.u32 %v10269_v54, %v8104_v56 }
 0x2b5   :  { %6039 = vmatpush.bf16.msrb.mxu1 %v7915_v24  ;;  %v7995_v24 = vor.u32 %v10241_v26, %v7992_v5  ;;  %v5800_v36 = vpop.f32.mrf.mxu2  ;;  %v8344_v22 = vld [vmem:[%s15922_s1 + $0xdf8] sm:$0xf0]  ;;  %v10425_v63 = vld [vmem:[%s15922_s1 + $0x10ec] sm:$0xf] }
 0x2b6   :  { %6052 = vmatpush.bf16.msrb.mxu2 %v8043_v17  ;;  %v10205_v17 = vld [vmem:[%s15922_s1 + $0xa0c] sm:$0xf]  ;;  %v8600_v60 = vld [vmem:[%s15922_s1 + $0xff8] sm:$0xf0]  ;;  %v8347_v4 = vor.u32 %v10329_v57, %v8344_v22 }
 0x2b7   :  { %6065 = vmatpush.bf16.msrb.mxu3 %v8171_v48  ;;  %v7976_v48 = vld [vmem:[%s15922_s1 + $0xb18] sm:$0xf0]  ;;  %v7851_v61 = vor.u32 %v10205_v17, %v7848_v50  ;;  %v8603_v8 = vor.u32 %v10393_v47, %v8600_v60  ;;  %v10325_v9 = vld [vmem:[%s15922_s1 + $0xdcc] sm:$0xf] }
 0x2b8   :  { %6027 = vmatpush.bf16.msrb.mxu0 %v7771_v18  ;;  %v5813_v18 = vpop.f32.mrf.mxu3  ;;  %v8728_v52 = vld [vmem:[%s15922_s1 + $0x10f8] sm:$0xf0]  ;;  %v10357_v10 = vld [vmem:[%s15922_s1 + $0xecc] sm:$0xf] }
 0x2b9   :  { %6040 = vmatpush.bf16.msrb.mxu1 %v7899_v58  ;;  %v7723_v58 = vor.u32 %v10173_v40, %v7720_v43  ;;  %v8328_v55 = vld [vmem:[%s15922_s1 + $0xdd8] sm:$0xf0]  ;;  %v10421_v38 = vld [vmem:[%s15922_s1 + $0x10cc] sm:$0xf] }
 0x2ba   :  { %6053 = vmatpush.bf16.msrb.mxu2 %v8027_v59  ;;  %v8472_v59 = vld [vmem:[%s15922_s1 + $0xef8] sm:$0xf0]  ;;  %v8331_v21 = vor.u32 %v10325_v9, %v8328_v55  ;;  %v10321_v26 = vld [vmem:[%s15922_s1 + $0xdac] sm:$0xf] }
 0x2bb   :  { %6066 = vmatpush.bf16.msrb.mxu3 %v8155_v62  ;;  %v7979_v62 = vor.u32 %v10237_v51, %v7976_v48  ;;  %v8475_v6 = vor.u32 %v10361_v41, %v8472_v59  ;;  %v8456_v14 = vld [vmem:[%s15922_s1 + $0xed8] sm:$0xf0]  ;;  %v10353_v32 = vld [vmem:[%s15922_s1 + $0xeac] sm:$0xf] }
 0x2bc   :  { %6028 = vmatpush.bf16.msrb.mxu0 %v7755_v44  ;;  %v8731_v44 = vor.u32 %v10425_v63, %v8728_v52  ;;  %v8712_v42 = vld [vmem:[%s15922_s1 + $0x10d8] sm:$0xf0]  ;;  %v10385_v40 = vld [vmem:[%s15922_s1 + $0xfac] sm:$0xf] }
 0x2bd   :  { %6041 = vmatpush.bf16.msrb.mxu1 %v7883_v15  ;;  %v10389_v15 = vld [vmem:[%s15922_s1 + $0xfcc] sm:$0xf]  ;;  %v8312_v5 = vld [vmem:[%s15922_s1 + $0xdb8] sm:$0xf0]  ;;  %v8715_v34 = vor.u32 %v10421_v38, %v8712_v42 }
 0x2be   :  { %6054 = vmatpush.bf16.msrb.mxu2 %v8011_v53  ;;  %v8584_v53 = vld [vmem:[%s15922_s1 + $0xfd8] sm:$0xf0]  ;;  %v10349_v51 = vld [vmem:[%s15922_s1 + $0xe8c] sm:$0xf] }
 0x2bf   :  { %6067 = vmatpush.bf16.msrb.mxu3 %v8139_v25  ;;  %v8459_v25 = vor.u32 %v10357_v10, %v8456_v14  ;;  %v8587_v13 = vor.u32 %v10389_v15, %v8584_v53  ;;  %v8568_v43 = vld [vmem:[%s15922_s1 + $0xfb8] sm:$0xf0]  ;;  %v10381_v48 = vld [vmem:[%s15922_s1 + $0xf8c] sm:$0xf] }
 0x2c0   :  { %6029 = vmatpush.bf16.msrb.mxu0 %v7739_v0  ;;  %v8440_v0 = vld [vmem:[%s15922_s1 + $0xeb8] sm:$0xf0]  ;;  %v8571_v50 = vor.u32 %v10385_v40, %v8568_v43  ;;  %v10413_v36 = vld [vmem:[%s15922_s1 + $0x108c] sm:$0xf] }
 0x2c1   :  { %6042 = vmatpush.bf16.msrb.mxu1 %v7867_v27  ;;  %v8696_v27 = vld [vmem:[%s15922_s1 + $0x10b8] sm:$0xf0]  ;;  %v8443_v17 = vor.u32 %v10353_v32, %v8440_v0  ;;  %v10313_v47 = vld [vmem:[%s15922_s1 + $0xd6c] sm:$0xf] }
 0x2c2   :  { %6055 = vmatpush.bf16.msrb.mxu2 %v7995_v24  ;;  %v8315_v24 = vor.u32 %v10321_v26, %v8312_v5  ;;  %v8552_v54 = vld [vmem:[%s15922_s1 + $0xf98] sm:$0xf0]  ;;  %v10377_v52 = vld [vmem:[%s15922_s1 + $0xf6c] sm:$0xf] }
 0x2c3   :  { %6068 = vmatpush.bf16.msrb.mxu3 %v8123_v20  ;;  %v8424_v20 = vld [vmem:[%s15922_s1 + $0xe98] sm:$0xf0]  ;;  %v8555_v59 = vor.u32 %v10381_v48, %v8552_v54  ;;  %v10309_v10 = vld [vmem:[%s15922_s1 + $0xd4c] sm:$0xf] }
 0x2c4   :  { %6030 = vmatpush.bf16.msrb.mxu0 %v7723_v58  ;;  %v5824_v56 = vpop.f32.mrf.mxu0  ;;  %v8680_v57 = vld [vmem:[%s15922_s1 + $0x1098] sm:$0xf0]  ;;  %v8427_v58 = vor.u32 %v10349_v51, %v8424_v20  ;;  %v10341_v14 = vld [vmem:[%s15922_s1 + $0xe4c] sm:$0xf] }
 0x2c5   :  { %6043 = vmatpush.bf16.msrb.mxu1 %v7851_v61  ;;  %v5825_v22 = vadd.f32 %v5824_v56, %v15160_v2  ;;  %v5837_v18 = vpop.f32.mrf.mxu1  ;;  %v8280_v60 = vld [vmem:[%s15922_s1 + $0xd78] sm:$0xf0]  ;;  %v10345_v61 = vld [vmem:[%s15922_s1 + $0xe6c] sm:$0xf]  ;;  %v8683_v2 = vor.u32 %v10413_v36, %v8680_v57 }
 0x2c6   :  { %6056 = vmatpush.bf16.msrb.mxu2 %v7979_v62  ;;  %v8408_v63 = vld [vmem:[%s15922_s1 + $0xe78] sm:$0xf0]  ;;  %v10373_v42 = vld [vmem:[%s15922_s1 + $0xf4c] sm:$0xf] }
 0x2c7   :  { %6069 = vmatpush.bf16.msrb.mxu3 %v8107_v19  ;;  %6031 = vmatmul.bf16.vlgmr.msrb.gmra.mxu0 %v11414_v30  ;;  %v10417_v30 = vld [vmem:[%s15922_s1 + $0x10ac] sm:$0xf]  ;;  %v5838_v62 = vadd.f32 %v5837_v18, %v5825_v22  ;;  %v8536_v19 = vld [vmem:[%s15922_s1 + $0xf78] sm:$0xf0]  ;;  %v8411_v9 = vor.u32 %v10345_v61, %v8408_v63 }
 0x2c8   :  { %6075 = vmatpush.bf16.msra.mxu0 %v8347_v4  ;;  %6044 = vmatmul.bf16.vlgmr.msrb.gmra.mxu1 %v11412_v29  ;;  %v10317_v29 = vld [vmem:[%s15922_s1 + $0xd8c] sm:$0xf]  ;;  %v8539_v55 = vor.u32 %v10377_v52, %v8536_v19  ;;  %v8392_v38 = vld [vmem:[%s15922_s1 + $0xe58] sm:$0xf0] }
 0x2c9   :  { %6088 = vmatpush.bf16.msra.mxu1 %v8475_v6  ;;  %6057 = vmatmul.bf16.vlgmr.msrb.gmra.mxu2 %v11422_v33  ;;  %v8296_v33 = vld [vmem:[%s15922_s1 + $0xd98] sm:$0xf0]  ;;  %v10409_v4 = vld [vmem:[%s15922_s1 + $0x106c] sm:$0xf]  ;;  %v8395_v43 = vor.u32 %v10341_v14, %v8392_v38 }
 0x2ca   :  { %6101 = vmatpush.bf16.msra.mxu2 %v8603_v8  ;;  %6070 = vmatmul.bf16.vlgmr.msrb.gmra.mxu3 %v11611_v23  ;;  %v8699_v23 = vor.u32 %v10417_v30, %v8696_v27  ;;  %v8299_v41 = vor.u32 %v10317_v29, %v8296_v33  ;;  %v8664_v6 = vld [vmem:[%s15922_s1 + $0x1078] sm:$0xf0]  ;;  %v8283_v8 = vor.u32 %v10313_v47, %v8280_v60  ;;  %v10405_v26 = vld [vmem:[%s15922_s1 + $0x104c] sm:$0xf] }
 0x2cb   :  { %6114 = vmatpush.bf16.msra.mxu3 %v8731_v44  ;;  %v8264_v44 = vld [vmem:[%s15922_s1 + $0xd58] sm:$0xf0]  ;;  %v8667_v15 = vor.u32 %v10409_v4, %v8664_v6  ;;  %v10305_v27 = vld [vmem:[%s15922_s1 + $0xd2c] sm:$0xf] }
 0x2cc   :  { %6076 = vmatpush.bf16.msra.mxu0 %v8331_v21  ;;  %v5850_v53 = vpop.f32.mrf.mxu2  ;;  %v8520_v21 = vld [vmem:[%s15922_s1 + $0xf58] sm:$0xf0]  ;;  %v5826_v32 = vpop.f32.mrf.mxu0  ;;  %v10369_v33 = vld [vmem:[%s15922_s1 + $0xf2c] sm:$0xf] }
 0x2cd   :  { %6089 = vmatpush.bf16.msra.mxu1 %v8459_v25  ;;  %v5851_v25 = vadd.f32 %v5850_v53, %v5838_v62  ;;  %v8648_v5 = vld [vmem:[%s15922_s1 + $0x1058] sm:$0xf0]  ;;  %v5839_v0 = vpop.f32.mrf.mxu1  ;;  %v8523_v30 = vor.u32 %v10373_v42, %v8520_v21  ;;  %v10301_v54 = vld [vmem:[%s15922_s1 + $0xd0c] sm:$0xf] }
 0x2ce   :  { %6102 = vmatpush.bf16.msra.mxu2 %v8587_v13  ;;  %v5863_v13 = vpop.f32.mrf.mxu3  ;;  %v8376_v29 = vld [vmem:[%s15922_s1 + $0xe38] sm:$0xf0]  ;;  %v10333_v22 = vld [vmem:[%s15922_s1 + $0xe0c] sm:$0xf] }
 0x2cf   :  { %6115 = vmatpush.bf16.msra.mxu3 %v8715_v34  ;;  %v8267_v34 = vor.u32 %v10309_v10, %v8264_v44  ;;  %v15359_v40 = vadd.f32 %v5863_v13, %v5851_v25  ;;  %v8504_v51 = vld [vmem:[%s15922_s1 + $0xf38] sm:$0xf0]  ;;  %v10365_v18 = vld [vmem:[%s15922_s1 + $0xf0c] sm:$0xf] }
 0x2d0   :  { %6077 = vmatpush.bf16.msra.mxu0 %v8315_v24  ;;  %v8248_v24 = vld [vmem:[%s15922_s1 + $0xd38] sm:$0xf0]  ;;  %v8507_v57 = vor.u32 %v10369_v33, %v8504_v51  ;;  %v10397_v47 = vld [vmem:[%s15922_s1 + $0x100c] sm:$0xf] }
 0x2d1   :  { %6090 = vmatpush.bf16.msra.mxu1 %v8443_v17  ;;  %v10337_v17 = vld [vmem:[%s15922_s1 + $0xe2c] sm:$0xf]  ;;  %v8632_v20 = vld [vmem:[%s15922_s1 + $0x1038] sm:$0xf0]  ;;  %v8251_v48 = vor.u32 %v10305_v27, %v8248_v24 }
 0x2d2   :  { %6103 = vmatpush.bf16.msra.mxu2 %v8571_v50  ;;  %v8651_v50 = vor.u32 %v10405_v26, %v8648_v5  ;;  %v8232_v56 = vld [vmem:[%s15922_s1 + $0xd18] sm:$0xf0]  ;;  %v8379_v36 = vor.u32 %v10337_v17, %v8376_v29  ;;  %v10489_v63 = vld [vmem:[%s15922_s1 + $0x12ec] sm:$0xf] }
 0x2d3   :  { %6116 = vmatpush.bf16.msra.mxu3 %v8699_v23  ;;  %v10401_v23 = vld [vmem:[%s15922_s1 + $0x102c] sm:$0xf]  ;;  %v8616_v60 = vld [vmem:[%s15922_s1 + $0x1018] sm:$0xf0]  ;;  %v8235_v19 = vor.u32 %v10301_v54, %v8232_v56 }
 0x2d4   :  { %6078 = vmatpush.bf16.msra.mxu0 %v8299_v41  ;;  %v8360_v41 = vld [vmem:[%s15922_s1 + $0xe18] sm:$0xf0]  ;;  %v5852_v61 = vpop.f32.mrf.mxu2  ;;  %v10521_v6 = vld [vmem:[%s15922_s1 + $0x13ec] sm:$0xf]  ;;  %v8619_v14 = vor.u32 %v10397_v47, %v8616_v60 }
 0x2d5   :  { %6091 = vmatpush.bf16.msra.mxu1 %v8427_v58  ;;  %v8635_v58 = vor.u32 %v10401_v23, %v8632_v20  ;;  %v8856_v62 = vld [vmem:[%s15922_s1 + $0x11f8] sm:$0xf0]  ;;  %v10553_v10 = vld [vmem:[%s15922_s1 + $0x14ec] sm:$0xf] }
 0x2d6   :  { %6104 = vmatpush.bf16.msra.mxu2 %v8555_v59  ;;  %v8488_v59 = vld [vmem:[%s15922_s1 + $0xf18] sm:$0xf0]  ;;  %v5865_v52 = vpop.f32.mrf.mxu3  ;;  %v10453_v42 = vld [vmem:[%s15922_s1 + $0x11cc] sm:$0xf] }
 0x2d7   :  { %6117 = vmatpush.bf16.msra.mxu3 %v8683_v2  ;;  %v10457_v2 = vld [vmem:[%s15922_s1 + $0x11ec] sm:$0xf]  ;;  %v8984_v4 = vld [vmem:[%s15922_s1 + $0x12f8] sm:$0xf0] }
 0x2d8   :  { %6079 = vmatpush.bf16.msra.mxu0 %v8283_v8  ;;  %v9112_v8 = vld [vmem:[%s15922_s1 + $0x13f8] sm:$0xf0]  ;;  %v8987_v53 = vor.u32 %v10489_v63, %v8984_v4  ;;  %v10485_v25 = vld [vmem:[%s15922_s1 + $0x12cc] sm:$0xf] }
 0x2d9   :  { %6092 = vmatpush.bf16.msra.mxu1 %v8411_v9  ;;  %v8363_v9 = vor.u32 %v10333_v22, %v8360_v41  ;;  %v9240_v44 = vld [vmem:[%s15922_s1 + $0x14f8] sm:$0xf0]  ;;  %v9115_v38 = vor.u32 %v10521_v6, %v9112_v8  ;;  %v10517_v5 = vld [vmem:[%s15922_s1 + $0x13cc] sm:$0xf] }
 0x2da   :  { %6105 = vmatpush.bf16.msra.mxu2 %v8539_v55  ;;  %v8491_v55 = vor.u32 %v10365_v18, %v8488_v59  ;;  %v8840_v21 = vld [vmem:[%s15922_s1 + $0x11d8] sm:$0xf0]  ;;  %v9243_v13 = vor.u32 %v10553_v10, %v9240_v44  ;;  %v10449_v24 = vld [vmem:[%s15922_s1 + $0x11ac] sm:$0xf] }
 0x2db   :  { %6118 = vmatpush.bf16.msra.mxu3 %v8667_v15  ;;  %v8859_v15 = vor.u32 %v10457_v2, %v8856_v62  ;;  %v8968_v26 = vld [vmem:[%s15922_s1 + $0x12d8] sm:$0xf0]  ;;  %v10513_v51 = vld [vmem:[%s15922_s1 + $0x13ac] sm:$0xf] }
 0x2dc   :  { %6080 = vmatpush.bf16.msra.mxu0 %v8267_v34  ;;  %v9096_v32 = vld [vmem:[%s15922_s1 + $0x13d8] sm:$0xf0]  ;;  %v10549_v34 = vld [vmem:[%s15922_s1 + $0x14cc] sm:$0xf] }
 0x2dd   :  { %6093 = vmatpush.bf16.msra.mxu1 %v8395_v43  ;;  %v9224_v0 = vld [vmem:[%s15922_s1 + $0x14d8] sm:$0xf0]  ;;  %v8843_v43 = vor.u32 %v10453_v42, %v8840_v21  ;;  %v9099_v27 = vor.u32 %v10517_v5, %v9096_v32  ;;  %v10509_v22 = vld [vmem:[%s15922_s1 + $0x138c] sm:$0xf] }
 0x2de   :  { %6106 = vmatpush.bf16.msra.mxu2 %v8523_v30  ;;  %v8971_v30 = vor.u32 %v10485_v25, %v8968_v26  ;;  %v8824_v17 = vld [vmem:[%s15922_s1 + $0x11b8] sm:$0xf0]  ;;  %v9227_v29 = vor.u32 %v10549_v34, %v9224_v0  ;;  %v10441_v63 = vld [vmem:[%s15922_s1 + $0x116c] sm:$0xf] }
 0x2df   :  { %6119 = vmatpush.bf16.msra.mxu3 %v8651_v50  ;;  %v10481_v50 = vld [vmem:[%s15922_s1 + $0x12ac] sm:$0xf]  ;;  %v8952_v33 = vld [vmem:[%s15922_s1 + $0x12b8] sm:$0xf0] }
 0x2e0   :  { %6081 = vmatpush.bf16.msra.mxu0 %v8251_v48  ;;  %v9080_v23 = vld [vmem:[%s15922_s1 + $0x13b8] sm:$0xf0]  ;;  %v8827_v48 = vor.u32 %v10449_v24, %v8824_v17  ;;  %v8955_v54 = vor.u32 %v10481_v50, %v8952_v33  ;;  %v10505_v8 = vld [vmem:[%s15922_s1 + $0x136c] sm:$0xf] }
 0x2e1   :  { %6094 = vmatpush.bf16.msra.mxu1 %v8379_v36  ;;  %v9208_v20 = vld [vmem:[%s15922_s1 + $0x14b8] sm:$0xf0]  ;;  %v9083_v56 = vor.u32 %v10513_v51, %v9080_v23  ;;  %v10477_v36 = vld [vmem:[%s15922_s1 + $0x128c] sm:$0xf] }
 0x2e2   :  { %6107 = vmatpush.bf16.msra.mxu2 %v8507_v57  ;;  %v8936_v57 = vld [vmem:[%s15922_s1 + $0x1298] sm:$0xf0]  ;;  %v10469_v42 = vld [vmem:[%s15922_s1 + $0x124c] sm:$0xf] }
 0x2e3   :  { %6120 = vmatpush.bf16.msra.mxu3 %v8635_v58  ;;  %v9064_v41 = vld [vmem:[%s15922_s1 + $0x1398] sm:$0xf0]  ;;  %v10541_v58 = vld [vmem:[%s15922_s1 + $0x148c] sm:$0xf]  ;;  %v8939_v2 = vor.u32 %v10477_v36, %v8936_v57 }
 0x2e4   :  { %6082 = vmatpush.bf16.msra.mxu0 %v8235_v19  ;;  %v5876_v18 = vpop.f32.mrf.mxu0  ;;  %v9192_v59 = vld [vmem:[%s15922_s1 + $0x1498] sm:$0xf0]  ;;  %v9067_v62 = vor.u32 %v10509_v22, %v9064_v41  ;;  %v10473_v19 = vld [vmem:[%s15922_s1 + $0x126c] sm:$0xf] }
 0x2e5   :  { %6095 = vmatpush.bf16.msra.mxu1 %v8363_v9  ;;  %v5877_v47 = vadd.f32 %v5876_v18, %v15359_v40  ;;  %v5889_v61 = vpop.f32.mrf.mxu1  ;;  %v8792_v52 = vld [vmem:[%s15922_s1 + $0x1178] sm:$0xf0]  ;;  %v9195_v40 = vor.u32 %v10541_v58, %v9192_v59  ;;  %v10501_v26 = vld [vmem:[%s15922_s1 + $0x134c] sm:$0xf] }
 0x2e6   :  { %6108 = vmatpush.bf16.msra.mxu2 %v8491_v55  ;;  %v8920_v6 = vld [vmem:[%s15922_s1 + $0x1278] sm:$0xf0]  ;;  %v10537_v55 = vld [vmem:[%s15922_s1 + $0x146c] sm:$0xf]  ;;  %v8795_v44 = vor.u32 %v10441_v63, %v8792_v52 }
 0x2e7   :  { %6121 = vmatpush.bf16.msra.mxu3 %v8619_v14  ;;  %6083 = vmatmul.bf16.vlgmr.msra.gmra.mxu0 %v11624_v31  ;;  %v10545_v31 = vld [vmem:[%s15922_s1 + $0x14ac] sm:$0xf]  ;;  %v5890_v4 = vadd.f32 %v5889_v61, %v5877_v47  ;;  %v9048_v9 = vld [vmem:[%s15922_s1 + $0x1378] sm:$0xf0]  ;;  %v8923_v14 = vor.u32 %v10473_v19, %v8920_v6 }
 0x2e8   :  { %6127 = vmatpush.bf16.msrb.mxu0 %v8859_v15  ;;  %6096 = vmatmul.bf16.vlgmr.msra.gmra.mxu1 %v11622_v28  ;;  %v10445_v28 = vld [vmem:[%s15922_s1 + $0x118c] sm:$0xf]  ;;  %v9176_v10 = vld [vmem:[%s15922_s1 + $0x1478] sm:$0xf0]  ;;  %v9051_v15 = vor.u32 %v10505_v8, %v9048_v9 }
 0x2e9   :  { %6140 = vmatpush.bf16.msrb.mxu1 %v8987_v53  ;;  %6109 = vmatmul.bf16.vlgmr.msra.gmra.mxu2 %v11632_v35  ;;  %v8808_v35 = vld [vmem:[%s15922_s1 + $0x1198] sm:$0xf0]  ;;  %v10437_v53 = vld [vmem:[%s15922_s1 + $0x114c] sm:$0xf]  ;;  %v9179_v21 = vor.u32 %v10537_v55, %v9176_v10 }
 0x2ea   :  { %6153 = vmatpush.bf16.msrb.mxu2 %v9115_v38  ;;  %6122 = vmatmul.bf16.vlgmr.msra.gmra.mxu3 %v11821_v37  ;;  %v9211_v37 = vor.u32 %v10545_v31, %v9208_v20  ;;  %v8811_v60 = vor.u32 %v10445_v28, %v8808_v35  ;;  %v8776_v38 = vld [vmem:[%s15922_s1 + $0x1158] sm:$0xf0]  ;;  %v10533_v34 = vld [vmem:[%s15922_s1 + $0x144c] sm:$0xf] }
 0x2eb   :  { %6166 = vmatpush.bf16.msrb.mxu3 %v9243_v13  ;;  %v8904_v13 = vld [vmem:[%s15922_s1 + $0x1258] sm:$0xf0]  ;;  %v10465_v51 = vld [vmem:[%s15922_s1 + $0x122c] sm:$0xf] }
 0x2ec   :  { %6128 = vmatpush.bf16.msrb.mxu0 %v8843_v43  ;;  %v5902_v25 = vpop.f32.mrf.mxu2  ;;  %v9032_v5 = vld [vmem:[%s15922_s1 + $0x1358] sm:$0xf0]  ;;  %v8907_v17 = vor.u32 %v10469_v42, %v8904_v13  ;;  %v10497_v20 = vld [vmem:[%s15922_s1 + $0x132c] sm:$0xf] }
 0x2ed   :  { %6141 = vmatpush.bf16.msrb.mxu1 %v8971_v30  ;;  %v15552_v32 = vadd.f32 %v5902_v25, %v5890_v4  ;;  %v9160_v0 = vld [vmem:[%s15922_s1 + $0x1458] sm:$0xf0]  ;;  %v15560_v43 = vpop.f32.mrf.mxu3  ;;  %v5878_v30 = vpop.f32.mrf.mxu0  ;;  %v9035_v50 = vor.u32 %v10501_v26, %v9032_v5  ;;  %v10429_v35 = vld [vmem:[%s15922_s1 + $0x110c] sm:$0xf] }
 0x2ee   :  { %6154 = vmatpush.bf16.msrb.mxu2 %v9099_v27  ;;  %v8779_v27 = vor.u32 %v10437_v53, %v8776_v38  ;;  %v5891_v24 = vpop.f32.mrf.mxu1  ;;  %v8760_v33 = vld [vmem:[%s15922_s1 + $0x1138] sm:$0xf0]  ;;  %v9163_v23 = vor.u32 %v10533_v34, %v9160_v0  ;;  %v10461_v22 = vld [vmem:[%s15922_s1 + $0x120c] sm:$0xf] }
 0x2ef   :  { %6167 = vmatpush.bf16.msrb.mxu3 %v9227_v29  ;;  %v10433_v29 = vld [vmem:[%s15922_s1 + $0x112c] sm:$0xf]  ;;  %v8888_v31 = vld [vmem:[%s15922_s1 + $0x1238] sm:$0xf0] }
 0x2f0   :  { %6129 = vmatpush.bf16.msrb.mxu0 %v8827_v48  ;;  %v9016_v48 = vld [vmem:[%s15922_s1 + $0x1338] sm:$0xf0]  ;;  %v8763_v28 = vor.u32 %v10433_v29, %v8760_v33  ;;  %v10493_v18 = vld [vmem:[%s15922_s1 + $0x130c] sm:$0xf]  ;;  %v10719_v33 = vld [vmem:[%s15924_s2] sm:$0xf] }
 0x2f1   :  { %6142 = vmatpush.bf16.msrb.mxu1 %v8955_v54  ;;  %v10529_v54 = vld [vmem:[%s15922_s1 + $0x142c] sm:$0xf]  ;;  %v8744_v36 = vld [vmem:[%s15922_s1 + $0x1118] sm:$0xf0]  ;;  %v9019_v57 = vor.u32 %v10497_v20, %v9016_v48 }
 0x2f2   :  { %6155 = vmatpush.bf16.msrb.mxu2 %v9083_v56  ;;  %v9144_v56 = vld [vmem:[%s15922_s1 + $0x1438] sm:$0xf0]  ;;  %v10525_v47 = vld [vmem:[%s15922_s1 + $0x140c] sm:$0xf]  ;;  %v8747_v19 = vor.u32 %v10429_v35, %v8744_v36 }
 0x2f3   :  { %6168 = vmatpush.bf16.msrb.mxu3 %v9211_v37  ;;  %v8891_v37 = vor.u32 %v10465_v51, %v8888_v31  ;;  %v8872_v41 = vld [vmem:[%s15922_s1 + $0x1218] sm:$0xf0]  ;;  %v9147_v58 = vor.u32 %v10529_v54, %v9144_v56  ;;  %v10617_v63 = vld [vmem:[%s15922_s1 + $0x16ec] sm:$0xf]  ;;  %v838_v51 = vperm.slane %v10719_v33, 3 }
 0x2f4   :  { %6130 = vmatpush.bf16.msrb.mxu0 %v8811_v60  ;;  %v9000_v59 = vld [vmem:[%s15922_s1 + $0x1318] sm:$0xf0]  ;;  %v5904_v61 = vpop.f32.mrf.mxu2  ;;  %v10649_v4 = vld [vmem:[%s15922_s1 + $0x17ec] sm:$0xf]  ;;  %v8875_v8 = vor.u32 %v10461_v22, %v8872_v41 }
 0x2f5   :  { %6143 = vmatpush.bf16.msrb.mxu1 %v8939_v2  ;;  %v9128_v60 = vld [vmem:[%s15922_s1 + $0x1418] sm:$0xf0]  ;;  %v10585_v2 = vld [vmem:[%s15922_s1 + $0x15ec] sm:$0xf]  ;;  %v5917_v52 = vpop.f32.mrf.mxu3  ;;  %v9003_v9 = vor.u32 %v10493_v18, %v9000_v59 }
 0x2f6   :  { %6156 = vmatpush.bf16.msrb.mxu2 %v9067_v62  ;;  %v9368_v62 = vld [vmem:[%s15922_s1 + $0x15f8] sm:$0xf0]  ;;  %v10681_v55 = vld [vmem:[%s15922_s1 + $0x18ec] sm:$0xf] }
 0x2f7   :  { %6169 = vmatpush.bf16.msrb.mxu3 %v9195_v40  ;;  %v9496_v40 = vld [vmem:[%s15922_s1 + $0x16f8] sm:$0xf0]  ;;  %v10581_v38 = vld [vmem:[%s15922_s1 + $0x15cc] sm:$0xf] }
 0x2f8   :  { %6131 = vmatpush.bf16.msrb.mxu0 %v8795_v44  ;;  %v9624_v6 = vld [vmem:[%s15922_s1 + $0x17f8] sm:$0xf0]  ;;  %v9131_v44 = vor.u32 %v10525_v47, %v9128_v60  ;;  %v10645_v26 = vld [vmem:[%s15922_s1 + $0x17cc] sm:$0xf] }
 0x2f9   :  { %6144 = vmatpush.bf16.msrb.mxu1 %v8923_v14  ;;  %v9752_v10 = vld [vmem:[%s15922_s1 + $0x18f8] sm:$0xf0]  ;;  %v9371_v14 = vor.u32 %v10585_v2, %v9368_v62  ;;  %v9627_v53 = vor.u32 %v10649_v4, %v9624_v6  ;;  %v10677_v34 = vld [vmem:[%s15922_s1 + $0x18cc] sm:$0xf] }
 0x2fa   :  { %6157 = vmatpush.bf16.msrb.mxu2 %v9051_v15  ;;  %v9499_v15 = vor.u32 %v10617_v63, %v9496_v40  ;;  %v9352_v42 = vld [vmem:[%s15922_s1 + $0x15d8] sm:$0xf0]  ;;  %v9755_v25 = vor.u32 %v10681_v55, %v9752_v10  ;;  %v10609_v29 = vld [vmem:[%s15922_s1 + $0x16ac] sm:$0xf] }
 0x2fb   :  { %6170 = vmatpush.bf16.msrb.mxu3 %v9179_v21  ;;  %v10613_v21 = vld [vmem:[%s15922_s1 + $0x16cc] sm:$0xf]  ;;  %v9480_v13 = vld [vmem:[%s15922_s1 + $0x16d8] sm:$0xf0]  ;;  %v9355_v30 = vor.u32 %v10581_v38, %v9352_v42 }
 0x2fc   :  { %6132 = vmatpush.bf16.msrb.mxu0 %v8779_v27  ;;  %v9608_v5 = vld [vmem:[%s15922_s1 + $0x17d8] sm:$0xf0]  ;;  %v10577_v27 = vld [vmem:[%s15922_s1 + $0x15ac] sm:$0xf]  ;;  %v9483_v24 = vor.u32 %v10613_v21, %v9480_v13 }
 0x2fd   :  { %6145 = vmatpush.bf16.msrb.mxu1 %v8907_v17  ;;  %v9736_v0 = vld [vmem:[%s15922_s1 + $0x18d8] sm:$0xf0]  ;;  %v9611_v17 = vor.u32 %v10645_v26, %v9608_v5  ;;  %v10641_v20 = vld [vmem:[%s15922_s1 + $0x17ac] sm:$0xf] }
 0x2fe   :  { %6158 = vmatpush.bf16.msrb.mxu2 %v9035_v50  ;;  %v9336_v50 = vld [vmem:[%s15922_s1 + $0x15b8] sm:$0xf0]  ;;  %v10669_v41 = vld [vmem:[%s15922_s1 + $0x188c] sm:$0xf] }
 0x2ff   :  { %6171 = vmatpush.bf16.msrb.mxu3 %v9163_v23  ;;  %v9739_v23 = vor.u32 %v10677_v34, %v9736_v0  ;;  %v9464_v31 = vld [vmem:[%s15922_s1 + $0x16b8] sm:$0xf0]  ;;  %v9339_v56 = vor.u32 %v10577_v27, %v9336_v50  ;;  %v10569_v61 = vld [vmem:[%s15922_s1 + $0x156c] sm:$0xf] }
 0x300   :  { %6133 = vmatpush.bf16.msrb.mxu0 %v8763_v28  ;;  %v9592_v48 = vld [vmem:[%s15922_s1 + $0x17b8] sm:$0xf0]  ;;  %v9467_v28 = vor.u32 %v10609_v29, %v9464_v31  ;;  %v10601_v62 = vld [vmem:[%s15922_s1 + $0x166c] sm:$0xf] }
 0x301   :  { %6146 = vmatpush.bf16.msrb.mxu1 %v8891_v37  ;;  %v9720_v54 = vld [vmem:[%s15922_s1 + $0x18b8] sm:$0xf0]  ;;  %v9595_v35 = vor.u32 %v10641_v20, %v9592_v48  ;;  %v10633_v4 = vld [vmem:[%s15922_s1 + $0x176c] sm:$0xf] }
 0x302   :  { %6159 = vmatpush.bf16.msrb.mxu2 %v9019_v57  ;;  %v9320_v36 = vld [vmem:[%s15922_s1 + $0x1598] sm:$0xf0]  ;;  %v10597_v38 = vld [vmem:[%s15922_s1 + $0x164c] sm:$0xf] }
 0x303   :  { %6172 = vmatpush.bf16.msrb.mxu3 %v9147_v58  ;;  %v9448_v57 = vld [vmem:[%s15922_s1 + $0x1698] sm:$0xf0]  ;;  %v10629_v13 = vld [vmem:[%s15922_s1 + $0x174c] sm:$0xf] }
 0x304   :  { %6134 = vmatpush.bf16.msrb.mxu0 %v8747_v19  ;;  %v9576_v22 = vld [vmem:[%s15922_s1 + $0x1798] sm:$0xf0]  ;;  %v5928_v59 = vpop.f32.mrf.mxu0  ;;  %v10661_v0 = vld [vmem:[%s15922_s1 + $0x184c] sm:$0xf] }
 0x305   :  { %6147 = vmatpush.bf16.msrb.mxu1 %v8875_v8  ;;  %v9704_v18 = vld [vmem:[%s15922_s1 + $0x1898] sm:$0xf0]  ;;  %v5941_v52 = vpop.f32.mrf.mxu1  ;;  %v10665_v8 = vld [vmem:[%s15922_s1 + $0x186c] sm:$0xf] }
 0x306   :  { %6160 = vmatpush.bf16.msrb.mxu2 %v9003_v9  ;;  %v9304_v2 = vld [vmem:[%s15922_s1 + $0x1578] sm:$0xf0]  ;;  %v9707_v19 = vor.u32 %v10669_v41, %v9704_v18  ;;  %v10561_v33 = vld [vmem:[%s15922_s1 + $0x152c] sm:$0xf] }
 0x307   :  { %6173 = vmatpush.bf16.msrb.mxu3 %v9131_v44  ;;  %6135 = vmatmul.bf16.vlgmr.msrb.gmra.mxu0 %v11834_v46  ;;  %v10673_v46 = vld [vmem:[%s15922_s1 + $0x18ac] sm:$0xf]  ;;  %v9432_v40 = vld [vmem:[%s15922_s1 + $0x1678] sm:$0xf0]  ;;  %v9307_v10 = vor.u32 %v10569_v61, %v9304_v2 }
 0x308   :  { %6179 = vmatpush.bf16.msra.mxu0 %v9371_v14  ;;  %6148 = vmatmul.bf16.vlgmr.msrb.gmra.mxu1 %v11832_v45  ;;  %v10573_v45 = vld [vmem:[%s15922_s1 + $0x158c] sm:$0xf]  ;;  %v9723_v37 = vor.u32 %v10673_v46, %v9720_v54  ;;  %v9560_v6 = vld [vmem:[%s15922_s1 + $0x1778] sm:$0xf0]  ;;  %v9435_v44 = vor.u32 %v10601_v62, %v9432_v40  ;;  %v10690_v40 = vld [vmem:[%s15925_s3 + $0x30] sm:$0xff] }
 0x309   :  { %6192 = vmatpush.bf16.msra.mxu1 %v9499_v15  ;;  %6161 = vmatmul.bf16.vlgmr.msrb.gmra.mxu2 %v11842_v49  ;;  %v5916_v49 = vadd.f32 %v15560_v43, %v838_v51  ;;  %v10637_v43 = vld [vmem:[%s15922_s1 + $0x178c] sm:$0xf]  ;;  %v9323_v58 = vor.u32 %v10573_v45, %v9320_v36  ;;  %v9688_v9 = vld [vmem:[%s15922_s1 + $0x1878] sm:$0xf0]  ;;  %v9563_v14 = vor.u32 %v10633_v4, %v9560_v6  ;;  %v10698_v4 = vld [vmem:[%s15925_s3 + $0x70] sm:$0xff] }
 0x30a   :  { %6205 = vmatpush.bf16.msra.mxu2 %v9627_v53  ;;  %6174 = vmatmul.bf16.vlgmr.msrb.gmra.mxu3 %v12036_v7  ;;  %v10605_v7 = vld [vmem:[%s15922_s1 + $0x168c] sm:$0xf]  ;;  %v9579_v60 = vor.u32 %v10637_v43, %v9576_v22  ;;  %v9288_v53 = vld [vmem:[%s15922_s1 + $0x1558] sm:$0xf0]  ;;  %v9691_v21 = vor.u32 %v10665_v8, %v9688_v9  ;;  %v10706_v6 = vld [vmem:[%s15925_s3 + $0xb0] sm:$0xff] }
 0x30b   :  { %6218 = vmatpush.bf16.msra.mxu3 %v9755_v25  ;;  %v9451_v47 = vor.u32 %v10605_v7, %v9448_v57  ;;  %v5929_v63 = vadd.f32 %v5928_v59, %v5916_v49  ;;  %v10565_v15 = vld [vmem:[%s15922_s1 + $0x154c] sm:$0xf]  ;;  %v9416_v25 = vld [vmem:[%s15922_s1 + $0x1658] sm:$0xf0] }
 0x30c   :  { %6180 = vmatpush.bf16.msra.mxu0 %v9355_v30  ;;  %v5954_v42 = vpop.f32.mrf.mxu2  ;;  %v9544_v26 = vld [vmem:[%s15922_s1 + $0x1758] sm:$0xf0]  ;;  %v9291_v27 = vor.u32 %v10565_v15, %v9288_v53  ;;  %v9419_v50 = vor.u32 %v10597_v38, %v9416_v25  ;;  %v10625_v46 = vld [vmem:[%s15922_s1 + $0x172c] sm:$0xf] }
 0x30d   :  { %6193 = vmatpush.bf16.msra.mxu1 %v9483_v24  ;;  %v5942_v55 = vadd.f32 %v5941_v52, %v5929_v63  ;;  %v5967_v34 = vpop.f32.mrf.mxu3  ;;  %v9672_v30 = vld [vmem:[%s15922_s1 + $0x1858] sm:$0xf0]  ;;  %v9547_v29 = vor.u32 %v10629_v13, %v9544_v26  ;;  %v5943_v31 = vpop.f32.mrf.mxu1  ;;  %v10557_v36 = vld [vmem:[%s15922_s1 + $0x150c] sm:$0xf]  ;;  %v10686_v26 = vld [vmem:[%s15925_s3 + $0x10] sm:$0xff] }
 0x30e   :  { %6206 = vmatpush.bf16.msra.mxu2 %v9611_v17  ;;  %v5930_v17 = vpop.f32.mrf.mxu0  ;;  %v9272_v51 = vld [vmem:[%s15922_s1 + $0x1538] sm:$0xf0]  ;;  %v9675_v20 = vor.u32 %v10661_v0, %v9672_v30  ;;  %v10621_v41 = vld [vmem:[%s15922_s1 + $0x170c] sm:$0xf]  ;;  %v10694_v0 = vld [vmem:[%s15925_s3 + $0x50] sm:$0xff] }
 0x30f   :  { %6219 = vmatpush.bf16.msra.mxu3 %v9739_v23  ;;  %v5955_v5 = vadd.f32 %v5954_v42, %v5942_v55  ;;  %v10593_v23 = vld [vmem:[%s15922_s1 + $0x162c] sm:$0xf]  ;;  %v9400_v48 = vld [vmem:[%s15922_s1 + $0x1638] sm:$0xf0]  ;;  %v10702_v30 = vld [vmem:[%s15925_s3 + $0x90] sm:$0xff] }
 0x310   :  { %6181 = vmatpush.bf16.msra.mxu0 %v9339_v56  ;;  %v9528_v54 = vld [vmem:[%s15922_s1 + $0x1738] sm:$0xf0]  ;;  %v10657_v56 = vld [vmem:[%s15922_s1 + $0x182c] sm:$0xf]  ;;  %v9403_v49 = vor.u32 %v10593_v23, %v9400_v48  ;;  %v10692_v23 = vld [vmem:[%s15925_s3 + $0x40] sm:$0xff]  ;;  %v6233_v48 = vmax.f32 %v15552_v32, 0.0 }
 0x311   :  { %6194 = vmatpush.bf16.msra.mxu1 %v9467_v28  ;;  %v15762_v24 = vadd.f32 %v5967_v34, %v5955_v5  ;;  %v9656_v28 = vld [vmem:[%s15922_s1 + $0x1838] sm:$0xf0]  ;;  %v9531_v45 = vor.u32 %v10625_v46, %v9528_v54  ;;  %v10653_v59 = vld [vmem:[%s15922_s1 + $0x180c] sm:$0xf]  ;;  %v10700_v31 = vld [vmem:[%s15925_s3 + $0x80] sm:$0xff] }
 0x312   :  { %6207 = vmatpush.bf16.msra.mxu2 %v9595_v35  ;;  %v9275_v35 = vor.u32 %v10561_v33, %v9272_v51  ;;  %v9256_v7 = vld [vmem:[%s15922_s1 + $0x1518] sm:$0xf0]  ;;  %v9659_v43 = vor.u32 %v10657_v56, %v9656_v28  ;;  %v10689_v8 = vld [vmem:[%s15925_s3 + $0x28] sm:$0xff]  ;;  %v10684_v33 = vld [vmem:[%s15925_s3] sm:$0xff]  ;;  %v6231_v51 = vmax.f32 %v13115_v3, 0.0  ;;  %v6237_v3 = vpack.c.bf16 %v6233_v48, %v6233_v48 }
 0x313   :  { %6220 = vmatpush.bf16.msra.mxu3 %v9723_v37  ;;  %v10589_v37 = vld [vmem:[%s15922_s1 + $0x160c] sm:$0xf]  ;;  %v9384_v22 = vld [vmem:[%s15922_s1 + $0x1618] sm:$0xf0] }
 0x314   :  { %6182 = vmatpush.bf16.msra.mxu0 %v9323_v58  ;;  %v5956_v57 = vpop.f32.mrf.mxu2  ;;  %v9512_v18 = vld [vmem:[%s15922_s1 + $0x1718] sm:$0xf0]  ;;  %v9387_v61 = vor.u32 %v10589_v37, %v9384_v22  ;;  %v10697_v9 = vld [vmem:[%s15925_s3 + $0x68] sm:$0xff]  ;;  %v6235_v46 = vpack.c.bf16 %v6231_v51, %v6231_v51 }
 0x315   :  { %6195 = vmatpush.bf16.msra.mxu1 %v9451_v47  ;;  %v5969_v58 = vpop.f32.mrf.mxu3  ;;  %v9640_v47 = vld [vmem:[%s15922_s1 + $0x1818] sm:$0xf0]  ;;  %v9515_v2 = vor.u32 %v10621_v41, %v9512_v18  ;;  %v10701_v17 = vld [vmem:[%s15925_s3 + $0x88] sm:$0xff] }
 0x316   :  { %6208 = vmatpush.bf16.msra.mxu2 %v9579_v60  ;;  %v9259_v60 = vor.u32 %v10557_v36, %v9256_v7  ;;  %v9643_v62 = vor.u32 %v10653_v59, %v9640_v47  ;;  %v10691_v63 = vld [vmem:[%s15925_s3 + $0x38] sm:$0xff] }
 0x317   :  { %6221 = vmatpush.bf16.msra.mxu3 %v9707_v19  ;;  %v10699_v52 = vld [vmem:[%s15925_s3 + $0x78] sm:$0xff] }
 0x318   :  { %6183 = vmatpush.bf16.msra.mxu0 %v9307_v10  ;;  %v10707_v19 = vld [vmem:[%s15925_s3 + $0xb8] sm:$0xff]  ;;  %v10696_v10 = vld [vmem:[%s15925_s3 + $0x60] sm:$0xff] }
 0x319   :  { %6196 = vmatpush.bf16.msra.mxu1 %v9435_v44  ;;  %v10704_v44 = vld [vmem:[%s15925_s3 + $0xa0] sm:$0xff]  ;;  %v10687_v15 = vld [vmem:[%s15925_s3 + $0x18] sm:$0xff] }
 0x31a   :  { %6209 = vmatpush.bf16.msra.mxu2 %v9563_v14  ;;  %v10695_v53 = vld [vmem:[%s15925_s3 + $0x58] sm:$0xff] }
 0x31b   :  { %6222 = vmatpush.bf16.msra.mxu3 %v9691_v21  ;;  %v10703_v38 = vld [vmem:[%s15925_s3 + $0x98] sm:$0xff] }
 0x31c   :  { %6184 = vmatpush.bf16.msra.mxu0 %v9291_v27  ;;  %v10685_v27 = vld [vmem:[%s15925_s3 + $0x8] sm:$0xff]  ;;  %v10715_v47 = vld [vmem:[%s15925_s3 + $0xf8] sm:$0xff] }
 0x31d   :  { %6197 = vmatpush.bf16.msra.mxu1 %v9419_v50 }
 0x31e   :  { %6210 = vmatpush.bf16.msra.mxu2 %v9547_v29 }
 0x31f   :  { %6223 = vmatpush.bf16.msra.mxu3 %v9675_v20  ;;  %v6232_v20 = vmax.f32 %v14320_v39, 0.0 }
 0x320   :  { %6185 = vmatpush.bf16.msra.mxu0 %v9275_v35 }
 0x321   :  { %6198 = vmatpush.bf16.msra.mxu1 %v9403_v49  ;;  %v6236_v54 = vpack.c.bf16 %v6232_v20, %v6232_v20 }
 0x322   :  { %6211 = vmatpush.bf16.msra.mxu2 %v9531_v45 }
 0x323   :  { %6224 = vmatpush.bf16.msra.mxu3 %v9659_v43 }
 0x324   :  { %6186 = vmatpush.bf16.msra.mxu0 %v9259_v60 }
 0x325   :  { %6199 = vmatpush.bf16.msra.mxu1 %v9387_v61  ;;  %v5993_v55 = vpop.f32.mrf.mxu1  ;;  %v10714_v61 = vld [vmem:[%s15925_s3 + $0xf0] sm:$0xff] }
 0x326   :  { %6212 = vmatpush.bf16.msra.mxu2 %v9515_v2  ;;  %v10713_v2 = vld [vmem:[%s15925_s3 + $0xe8] sm:$0xff] }
 0x327   :  { %6225 = vmatpush.bf16.msra.mxu3 %v9643_v62  ;;  %6187 = vmatmul.bf16.vlgmr.msra.gmra.mxu0 %v12049_v12  ;;  %v10705_v12 = vld [vmem:[%s15925_s3 + $0xa8] sm:$0xff] }
 0x328   :  { %6499 = vmatpush.bf16.msrb.mxu0 %v10691_v63  ;;  %6200 = vmatmul.bf16.vlgmr.msra.gmra.mxu1 %v12047_v11  ;;  %v5980_v11 = vpop.f32.mrf.mxu0 }
 0x329   :  { %6512 = vmatpush.bf16.msrb.mxu1 %v10699_v52  ;;  %6213 = vmatmul.bf16.vlgmr.msra.gmra.mxu2 %v12057_v16  ;;  %v5981_v16 = vadd.f32 %v5980_v11, %v15762_v24  ;;  %v10693_v24 = vld [vmem:[%s15925_s3 + $0x48] sm:$0xff]  ;;  %v10712_v52 = vld [vmem:[%s15925_s3 + $0xe0] sm:$0xff] }
 0x32a   :  { %6525 = vmatpush.bf16.msrb.mxu2 %v10707_v19  ;;  %6226 = vmatmul.bf16.vlgmr.msra.gmra.mxu3 %v12246_v1  ;;  %v10688_v1 = vld [vmem:[%s15925_s3 + $0x20] sm:$0xff]  ;;  %v10711_v19 = vld [vmem:[%s15925_s3 + $0xd8] sm:$0xff] }
 0x32b   :  { %v5994_v14 = vadd.f32 %v5993_v55, %v5981_v16  ;;  %6538 = vmatpush.bf16.msrb.mxu3 %v10715_v47  ;;  %v10708_v55 = vld [vmem:[%s15925_s3 + $0xc0] sm:$0xff] }
 0x32c   :  { %6500 = vmatpush.bf16.msrb.mxu0 %v10690_v40  ;;  %v6006_v42 = vpop.f32.mrf.mxu2 }
 0x32d   :  { %6513 = vmatpush.bf16.msrb.mxu1 %v10698_v4  ;;  %v6007_v21 = vadd.f32 %v6006_v42, %v5994_v14  ;;  %v6019_v25 = vpop.f32.mrf.mxu3  ;;  %v5995_v5 = vpop.f32.mrf.mxu1 }
 0x32e   :  { %6526 = vmatpush.bf16.msrb.mxu2 %v10706_v6  ;;  %v10710_v6 = vld [vmem:[%s15925_s3 + $0xd0] sm:$0xff] }
 0x32f   :  { %v6020_v34 = vadd.f32 %v6019_v25, %v6007_v21  ;;  %6539 = vmatpush.bf16.msrb.mxu3 %v10714_v61 }
 0x330   :  { %6501 = vmatpush.bf16.msrb.mxu0 %v10689_v8  ;;  %v5982_v13 = vpop.f32.mrf.mxu0  ;;  %v10709_v8 = vld [vmem:[%s15925_s3 + $0xc8] sm:$0xff] }
 0x331   :  { %6514 = vmatpush.bf16.msrb.mxu1 %v10697_v9 }
 0x332   :  { %6527 = vmatpush.bf16.msrb.mxu2 %v10705_v12 }
 0x333   :  { %6540 = vmatpush.bf16.msrb.mxu3 %v10713_v2 }
 0x334   :  { %6502 = vmatpush.bf16.msrb.mxu0 %v10688_v1  ;;  %v6008_v50 = vpop.f32.mrf.mxu2 }
 0x335   :  { %6515 = vmatpush.bf16.msrb.mxu1 %v10696_v10  ;;  %v6021_v29 = vpop.f32.mrf.mxu3 }
 0x336   :  { %6528 = vmatpush.bf16.msrb.mxu2 %v10704_v44 }
 0x337   :  { %6541 = vmatpush.bf16.msrb.mxu3 %v10712_v52 }
 0x338   :  { %6503 = vmatpush.bf16.msrb.mxu0 %v10687_v15 }
 0x339   :  { %6516 = vmatpush.bf16.msrb.mxu1 %v10695_v53 }
 0x33a   :  { %6529 = vmatpush.bf16.msrb.mxu2 %v10703_v38 }
 0x33b   :  { %6542 = vmatpush.bf16.msrb.mxu3 %v10711_v19 }
 0x33c   :  { %6504 = vmatpush.bf16.msrb.mxu0 %v10686_v26 }
 0x33d   :  { %6517 = vmatpush.bf16.msrb.mxu1 %v10694_v0 }
 0x33e   :  { %6530 = vmatpush.bf16.msrb.mxu2 %v10702_v30 }
 0x33f   :  { %6543 = vmatpush.bf16.msrb.mxu3 %v10710_v6 }
 0x340   :  { %6505 = vmatpush.bf16.msrb.mxu0 %v10685_v27 }
 0x341   :  { %6518 = vmatpush.bf16.msrb.mxu1 %v10693_v24 }
 0x342   :  { %6531 = vmatpush.bf16.msrb.mxu2 %v10701_v17 }
 0x343   :  { %6544 = vmatpush.bf16.msrb.mxu3 %v10709_v8 }
 0x344   :  { %6506 = vmatpush.bf16.msrb.mxu0 %v10684_v33  ;;  %v6032_v56 = vpop.f32.mrf.mxu0 }
 0x345   :  { %6519 = vmatpush.bf16.msrb.mxu1 %v10692_v23  ;;  %v6033_v28 = vadd.f32 %v6032_v56, %v6020_v34  ;;  %v6045_v35 = vpop.f32.mrf.mxu1 }
 0x346   :  { %6532 = vmatpush.bf16.msrb.mxu2 %v10700_v31  ;;  %v10716_v31 = vld [vmem:[%s15926_s4] ss:$0 sm:$0xff] }
 0x347   :  { %6507 = vmatmul.bf16.vlgmr.msrb.gmra.mxu0 %v6235_v46  ;;  %v6046_v49 = vadd.f32 %v6045_v35, %v6033_v28  ;;  %6545 = vmatpush.bf16.msrb.mxu3 %v10708_v55 }
 0x348   :  { %6520 = vmatmul.bf16.vlgmr.msrb.gmra.mxu1 %v6236_v54 }
 0x349   :  { %6533 = vmatmul.bf16.vlgmr.msrb.gmra.mxu2 %v6237_v3 }
 0x34c   :  { %v6058_v45 = vpop.f32.mrf.mxu2  ;;  %v6034_v37 = vpop.f32.mrf.mxu0 }
 0x34d   :  { %v6059_v36 = vadd.f32 %v6058_v45, %v6046_v49  ;;  %v6071_v7 = vpop.f32.mrf.mxu3  ;;  %v6047_v39 = vpop.f32.mrf.mxu1 }
 0x34f   :  { %v6072_v57 = vadd.f32 %v6071_v7, %v6059_v36 }
 0x354   :  { %v6060_v32 = vpop.f32.mrf.mxu2 }
 0x355   :  { %v6073_v43 = vpop.f32.mrf.mxu3 }
 0x364   :  { %v6084_v22 = vpop.f32.mrf.mxu0 }
 0x365   :  { %v6097_v41 = vpop.f32.mrf.mxu1  ;;  %v6085_v12 = vadd.f32 %v6084_v22, %v6072_v57 }
 0x367   :  { %v6098_v10 = vadd.f32 %v6097_v41, %v6085_v12 }
 0x36c   :  { %v6110_v18 = vpop.f32.mrf.mxu2  ;;  %v6086_v59 = vpop.f32.mrf.mxu0 }
 0x36d   :  { %v6123_v58 = vpop.f32.mrf.mxu3  ;;  %v6099_v60 = vpop.f32.mrf.mxu1  ;;  %v6111_v44 = vadd.f32 %v6110_v18, %v6098_v10 }
 0x36f   :  { %v6124_v53 = vadd.f32 %v6123_v58, %v6111_v44 }
 0x374   :  { %v6112_v62 = vpop.f32.mrf.mxu2 }
 0x375   :  { %v6125_v63 = vpop.f32.mrf.mxu3 }
 0x384   :  { %v6136_v40 = vpop.f32.mrf.mxu0 }
 0x385   :  { %v6149_v4 = vpop.f32.mrf.mxu1  ;;  %v6137_v38 = vadd.f32 %v6136_v40, %v6124_v53 }
 0x387   :  { %v6150_v42 = vadd.f32 %v6149_v4, %v6137_v38 }
 0x38c   :  { %v6162_v9 = vpop.f32.mrf.mxu2  ;;  %v6138_v16 = vpop.f32.mrf.mxu0 }
 0x38d   :  { %v6175_v11 = vpop.f32.mrf.mxu3  ;;  %v6151_v1 = vpop.f32.mrf.mxu1  ;;  %v6163_v21 = vadd.f32 %v6162_v9, %v6150_v42 }
 0x38f   :  { %v6176_v25 = vadd.f32 %v6175_v11, %v6163_v21 }
 0x394   :  { %v6164_v14 = vpop.f32.mrf.mxu2 }
 0x395   :  { %v6177_v15 = vpop.f32.mrf.mxu3 }
 0x3a4   :  { %v6188_v13 = vpop.f32.mrf.mxu0 }
 0x3a5   :  { %v6201_v26 = vpop.f32.mrf.mxu1  ;;  %v6189_v5 = vadd.f32 %v6188_v13, %v6176_v25 }
 0x3a7   :  { %v6202_v34 = vadd.f32 %v6201_v26, %v6189_v5 }
 0x3ac   :  { %v6214_v0 = vpop.f32.mrf.mxu2  ;;  %v6190_v24 = vpop.f32.mrf.mxu0 }
 0x3ad   :  { %v6227_v30 = vpop.f32.mrf.mxu3  ;;  %v6215_v27 = vadd.f32 %v6214_v0, %v6202_v34  ;;  %v6203_v17 = vpop.f32.mrf.mxu1 }
 0x3af   :  { %v6228_v50 = vadd.f32 %v6227_v30, %v6215_v27 }
 0x3b1   :  { %v6234_v29 = vmax.f32 %v6228_v50, 0.0 }
 0x3b3   :  { %v6238_v33 = vpack.c.bf16 %v6234_v29, %v6234_v29 }
 0x3b4   :  { %v6216_v51 = vpop.f32.mrf.mxu2 }
 0x3b5   :  { %v6229_v23 = vpop.f32.mrf.mxu3  ;;  %6546 = vmatmul.bf16.vlgmr.msrb.gmra.mxu3 %v6238_v33 }
 0x3c4   :  { %v6508_v20 = vpop.f32.mrf.mxu0 }
 0x3c5   :  { %v6509_v48 = vadd.f32 %v10716_v31, %v6508_v20  ;;  %v6521_v46 = vpop.f32.mrf.mxu1 }
 0x3c7   :  { %v6522_v54 = vadd.f32 %v6521_v46, %v6509_v48 }
 0x3cc   :  { %v6534_v3 = vpop.f32.mrf.mxu2  ;;  %v6510_v28 = vpop.f32.mrf.mxu0 }
 0x3cd   :  { %v6535_v56 = vadd.f32 %v6534_v3, %v6522_v54  ;;  %v6523_v35 = vpop.f32.mrf.mxu1 }
 0x3d4   :  { %v6536_v49 = vpop.f32.mrf.mxu2 }
 0x438   :  { %v6547_v45 = vpop.f32.mrf.mxu3 }
 0x439   :  { %v6548_v36 = vadd.f32 %v6547_v45, %v6535_v56 }
 0x43b   :  { %6551 = vst [vmem:[%s15927_s5] sm:$0xff] %v6548_v36 }
 0x440   :  { %v6549_v7 = vpop.f32.mrf.mxu3 }

</bundles_post_ra>
